<compile_context>
chip_gen: v7x
topology: tpu7x:2x2x1
jax: 0.10.0
libtpu: 0.0.40
codegen_flags: <defaults>
</compile_context>

<pallas_src>
import functools
import math

import jax
import jax.numpy as jnp
from jax import lax
from jax.experimental import pallas as pl
from jax.experimental.pallas import tpu as pltpu

LANE = 128  # FC output padded to a full lane width for unmasked stores.


def _round_up(a, b):
    return ((a + b - 1) // b) * b


# ----------------------------------------------------------------------------
# Fused kernel: conv1 + (pool1·conv2) + (pool2·conv3) + conv4 + fc
# Activations never leave VMEM/vregs.
# ----------------------------------------------------------------------------
def _fused_kernel(x_ref,                      # (25, TB, 200) bf16 raw input, position-major
                  w1_ref, b1_ref,             # (9, 200, 20) bf16, (1, 20) f32
                  wc2_ref, bc2_ref,           # (180, 150), (1, 150)  pool1 folded into conv2
                  wc3_ref, bc3_ref,           # (150, 75),  (1, 75)   pool2 folded into conv3
                  wc4_ref, bc4_ref,           # (75, 75),   (1, 75)
                  wfc_ref, bfc_ref,           # (75, 128),  (1, 128)  lane padded
                  o_ref):                     # (TB, 128) f32
    dot = functools.partial(jnp.dot, preferred_element_type=jnp.float32)
    b1 = b1_ref[...]

    # ---- conv1: 3x3, stride 1, pad 0, +ReLU  (5x5 -> 3x3, 200 -> 20 ch) -----
    # Tap-decomposed on the raw input (no im2col), bf16 MXU + f32 accumulation.
    # TODO(synk): merge each tap's 3 consecutive input positions into a
    # (3*TB, 200) slab (27 matmuls instead of 81) once the leading-dim-merge
    # reshape is verified on the target Mosaic version.
    a1 = []                                   # order p = oh*3 + ow, each (TB, 20) f32
    for oh in range(3):
        for ow in range(3):
            acc = None
            for ki in range(3):
                for kj in range(3):
                    pos = (oh + ki) * 5 + (ow + kj)
                    t = dot(x_ref[pos], w1_ref[ki * 3 + kj])
                    acc = t if acc is None else acc + t
            a1.append(jnp.maximum(acc + b1, 0.0))

    # ---- pool1 + conv2 (pool1 is linear -> folded at param prep), +ReLU -----
    # One lane concat + one (TB,180)@(180,150) matmul replaces 24 tiny dots.
    # Result columns 0:75 = conv2 output row 0, 75:150 = row 1.
    a1cat = jnp.concatenate(a1, axis=-1)                                # (TB, 180)
    a3 = jnp.maximum(dot(a1cat, wc2_ref[...]) + bc2_ref[...], 0.0)      # (TB, 150)

    # ---- pool2 + conv3 (pool2 linear -> folded), +ReLU ----------------------
    a5 = jnp.maximum(dot(a3, wc3_ref[...]) + bc3_ref[...], 0.0)         # (TB, 75)

    # ---- conv4 (only tap ki=1 touches the 1x1 input), +ReLU -----------------
    a6 = jnp.maximum(dot(a5, wc4_ref[...]) + bc4_ref[...], 0.0)         # (TB, 75)

    # ---- fc (lane padded to 128 -> unmasked lane-dense store) ---------------
    o_ref[...] = (dot(a6, wfc_ref[...]) + bfc_ref[...]).astype(o_ref.dtype)


# ----------------------------------------------------------------------------
# Parameter init (PyTorch layout: OIHW conv weights, (out,in) fc weight)
# ----------------------------------------------------------------------------
def _kaiming_normal(key, shape, fan_in):
    std = math.sqrt(2.0 / fan_in)
    return std * jax.random.normal(key, shape, dtype=jnp.float32)


def init_params(key, n_classes):
    keys = jax.random.split(key, 7)

    def conv_p(k, cout, cin, kh, kw):
        w = _kaiming_normal(k, (cout, cin, kh, kw), cin * kh * kw)
        return w, jnp.zeros((cout,), jnp.float32)

    raw = {
        "conv1": conv_p(keys[0], 20, 200, 3, 3),   # patch_size=5 -> padding 0
        "pool1": conv_p(keys[1], 20, 20, 3, 1),
        "conv2": conv_p(keys[2], 75, 20, 3, 3),
        "pool2": conv_p(keys[3], 75, 75, 3, 1),
        "conv3": conv_p(keys[4], 75, 75, 3, 1),
        "conv4": conv_p(keys[5], 75, 75, 2, 1),
    }
    wfc = _kaiming_normal(keys[6], (n_classes, 75), 75)   # features_size = 75
    raw["fc"] = (wfc, jnp.zeros((n_classes,), jnp.float32))
    return raw


def prepare_params(raw, n_classes):
    """One-time (hoisted) conversion to the kernel's fused/folded matmul layout."""
    w1, b1 = raw["conv1"]          # (20, 200, 3, 3)
    wp1, bp1 = raw["pool1"]        # (20, 20, 3, 1)
    w2, b2 = raw["conv2"]          # (75, 20, 3, 3)
    wp2, bp2 = raw["pool2"]        # (75, 75, 3, 1)
    w3, b3 = raw["conv3"]          # (75, 75, 3, 1)
    w4, b4 = raw["conv4"]          # (75, 75, 2, 1)
    wfc, bfc = raw["fc"]           # (n_classes, 75)

    # conv1: per-tap (Cin, Cout) weights, tap = ki*3 + kj, bf16 for the MXU.
    w1_taps = w1.transpose(2, 3, 1, 0).reshape(9, 200, 20).astype(jnp.bfloat16)

    # pool1 / conv2 taps as (Cin, Cout).
    wp1_t = wp1[:, :, :, 0].transpose(2, 1, 0)          # (3, 20, 20)    [kp, in, out]
    w2_t = w2.transpose(2, 3, 1, 0)                     # (3, 3, 20, 75) [ki, kj, in, out]

    # Fold pool1 (linear, stride (2,1), pad (1,0)) into conv2.  For conv2 output
    # row `oh`, the effective weight seen by conv1 activation (ih, iw=kj) is a
    # composition of the pool1 and conv2 taps that connect them.
    def conv2_eff(oh):
        blocks = []
        for ih in range(3):
            for kj in range(3):
                if oh == 0:
                    if ih == 0:
                        m = wp1_t[1] @ w2_t[1, kj]
                    elif ih == 1:
                        m = wp1_t[2] @ w2_t[1, kj] + wp1_t[0] @ w2_t[2, kj]
                    else:
                        m = wp1_t[1] @ w2_t[2, kj]
                else:
                    if ih == 0:
                        m = wp1_t[1] @ w2_t[0, kj]
                    elif ih == 1:
                        m = wp1_t[2] @ w2_t[0, kj] + wp1_t[0] @ w2_t[1, kj]
                    else:
                        m = wp1_t[1] @ w2_t[1, kj]
                blocks.append(m)
        return jnp.concatenate(blocks, axis=0)          # (180, 75)

    bp1_row = bp1.reshape(1, 20)
    b2_row = b2.reshape(1, 75)
    bc2_0 = bp1_row @ (w2_t[1].sum(0) + w2_t[2].sum(0)) + b2_row
    bc2_1 = bp1_row @ (w2_t[0].sum(0) + w2_t[1].sum(0)) + b2_row
    wc2 = jnp.concatenate([conv2_eff(0), conv2_eff(1)], axis=1)   # (180, 150)
    bc2 = jnp.concatenate([bc2_0, bc2_1], axis=1)                 # (1, 150)

    # Fold pool2 (linear) into conv3 (only conv3's center tap sees the 1x1 data).
    wp2_t = wp2[:, :, :, 0].transpose(2, 1, 0)          # (3, 75, 75)
    w3_c = w3[:, :, 1, 0].T                             # (75, 75)
    wc3 = jnp.concatenate([wp2_t[1] @ w3_c, wp2_t[2] @ w3_c], axis=0)  # (150, 75)
    bc3 = bp2.reshape(1, 75) @ w3_c + b3.reshape(1, 75)

    wc4 = w4[:, :, 1, 0].T                              # only tap ki=1 sees data
    bc4 = b4.reshape(1, 75)

    wfc_pad = jnp.zeros((75, LANE), jnp.float32).at[:, :n_classes].set(wfc.T)
    bfc_pad = jnp.zeros((1, LANE), jnp.float32).at[:, :n_classes].set(
        bfc.reshape(1, -1))

    return {
        "w1": w1_taps, "b1": b1.reshape(1, 20),
        "wc2": wc2, "bc2": bc2,
        "wc3": wc3, "bc3": bc3,
        "wc4": wc4, "bc4": bc4,
        "wfc": wfc_pad, "bfc": bfc_pad,
    }


# ----------------------------------------------------------------------------
# Forward wrapper: one fused pallas_call over batch tiles of the raw bf16 input
# ----------------------------------------------------------------------------
def _choose_batch_tile(n, requested):
    tb = _round_up(max(16, min(int(requested), n)), 16)
    # v7x has 2 TensorCores sharing HBM: keep >= ~8 grid steps when the batch
    # allows it so the "parallel" grid axis can feed both cores.
    while tb >= 32 and (n + tb - 1) // tb < 8:
        tb = _round_up(tb // 2, 16)
    return tb


def hamida_forward(params, x, n_classes, *, batch_tile=256):
    """x: (N, 1, 200, 5, 5) or (N, 200, 5, 5) f32 -> (N, n_classes) f32."""
    if x.ndim == 5:
        assert x.shape[1] == 1
        # Squeeze ONLY the singleton axis 1 (avoids torch .squeeze() batch=1 bug).
        x = x.reshape(x.shape[0], x.shape[2], x.shape[3], x.shape[4])
    N, C, H, W = x.shape
    assert (C, H, W) == (200, 5, 5), (C, H, W)

    # Raw input, position-major + bf16: (25, N, 200).  This is the only large
    # HBM stream (10 KB/sample vs 64.8 KB/sample for the old f32 im2col).
    xr = jnp.transpose(x, (2, 3, 0, 1)).reshape(25, N, 200).astype(jnp.bfloat16)

    TB = _choose_batch_tile(N, batch_tile)
    n_pad = _round_up(N, TB)
    if n_pad != N:
        xr = jnp.pad(xr, ((0, 0), (0, n_pad - N), (0, 0)))
    grid_steps = n_pad // TB

    weights = (params["w1"], params["b1"], params["wc2"], params["bc2"],
               params["wc3"], params["bc3"], params["wc4"], params["bc4"],
               params["wfc"], params["bfc"])

    def full_spec(a):
        return pl.BlockSpec(a.shape, lambda i: (0,) * a.ndim)

    macs_per_sample = (9 * 9 * 200 * 20      # conv1 (tap decomposed)
                       + 180 * 150           # pool1+conv2 folded
                       + 150 * 75            # pool2+conv3 folded
                       + 75 * 75             # conv4
                       + 75 * LANE)          # fc (lane padded)
    weight_bytes = sum(int(w.size) * w.dtype.itemsize for w in weights)
    cost = pl.CostEstimate(
        flops=2 * macs_per_sample * n_pad,
        transcendentals=0,
        # Weights are grid-invariant (constant index_map) -> counted ONCE.
        bytes_accessed=int(xr.size) * xr.dtype.itemsize
        + weight_bytes
        + n_pad * LANE * 4,
    )

    out = pl.pallas_call(
        _fused_kernel,
        out_shape=jax.ShapeDtypeStruct((n_pad, LANE), jnp.float32),
        grid=(grid_steps,),
        in_specs=[pl.BlockSpec((25, TB, 200), lambda i: (0, i, 0))]
        + [full_spec(w) for w in weights],
        out_specs=pl.BlockSpec((TB, LANE), lambda i: (i, 0)),
        compiler_params=pltpu.CompilerParams(
            dimension_semantics=("parallel",),          # shard tiles over TCs
            # Double-buffered (25, TB, 200) bf16 block is ~5 MiB at TB=256;
            # 48 MiB stays safely under v7x's 64 MiB/TC (plenty on v5e/v6e).
            vmem_limit_bytes=48 * 1024 * 1024,
        ),
        cost_estimate=cost,
    )(xr, *weights)

    return out[:N, :n_classes]


# ----------------------------------------------------------------------------
# Pure-JAX reference (for correctness check) — uses raw PyTorch-layout params
# ----------------------------------------------------------------------------
def _conv_ref(x, w, b, stride, padding):
    out = lax.conv_general_dilated(
        x, w, window_strides=stride,
        padding=[(padding[0], padding[0]), (padding[1], padding[1])],
        dimension_numbers=("NCHW", "OIHW", "NCHW"))
    return out + b[None, :, None, None]


def reference_forward(raw, x):
    if x.ndim == 5:
        x = x.reshape(x.shape[0], x.shape[2], x.shape[3], x.shape[4])
    x = jax.nn.relu(_conv_ref(x, *raw["conv1"], (1, 1), (0, 0)))
    x = _conv_ref(x, *raw["pool1"], (2, 1), (1, 0))
    x = jax.nn.relu(_conv_ref(x, *raw["conv2"], (1, 1), (1, 0)))
    x = _conv_ref(x, *raw["pool2"], (2, 1), (1, 0))
    x = jax.nn.relu(_conv_ref(x, *raw["conv3"], (1, 1), (1, 0)))
    x = jax.nn.relu(_conv_ref(x, *raw["conv4"], (2, 1), (1, 0)))
    x = x.reshape(x.shape[0], -1)
    wfc, bfc = raw["fc"]
    return x @ wfc.T + bfc


if __name__ == "__main__":
    key = jax.random.PRNGKey(0)
    kx, kp = jax.random.split(key)

    batch = 2
    n_classes = 16
    # Module expects 200 spectral channels and a 5x5 patch (NCHW after squeeze).
    x = jax.random.normal(kx, (batch, 1, 200, 5, 5), dtype=jnp.float32)

    raw = init_params(kp, n_classes)
    params = prepare_params(raw, n_classes)

    fwd = jax.jit(hamida_forward, static_argnames=("n_classes", "batch_tile"))
    out = fwd(params, x, n_classes=n_classes)
    out = jax.block_until_ready(out)

    assert out.shape == (batch, n_classes), out.shape

    ref = reference_forward(raw, x)
    # conv1 runs in bf16 (f32 accumulation) -> tolerance loosened accordingly.
    if not bool(jnp.allclose(out, ref, atol=1e-1, rtol=5e-2)):
        raise AssertionError("Pallas output does not match JAX reference")

    print("KERNEL_OK")
</pallas_src>

<mosaic_0001>
module attributes {stable_mosaic.version = 11 : i64} {
  func.func @_fused_kernel(%arg0: i32, %arg1: memref<25x16x200xbf16, #tpu.memory_space<vmem>>, %arg2: memref<9x200x20xbf16, #tpu.memory_space<vmem>>, %arg3: memref<1x20xf32, #tpu.memory_space<vmem>>, %arg4: memref<180x150xf32, #tpu.memory_space<vmem>>, %arg5: memref<1x150xf32, #tpu.memory_space<vmem>>, %arg6: memref<150x75xf32, #tpu.memory_space<vmem>>, %arg7: memref<1x75xf32, #tpu.memory_space<vmem>>, %arg8: memref<75x75xf32, #tpu.memory_space<vmem>>, %arg9: memref<1x75xf32, #tpu.memory_space<vmem>>, %arg10: memref<75x128xf32, #tpu.memory_space<vmem>>, %arg11: memref<1x128xf32, #tpu.memory_space<vmem>>, %arg12: memref<16x128xf32, #tpu.memory_space<vmem>>) attributes {dimension_semantics = [#tpu.dimension_semantics<parallel>], iteration_bounds = array<i64: 1>, scalar_prefetch = 0 : i64, scratch_operands = 0 : i64, tpu.core_type = #tpu.core_type<tc>, window_params = [{transform_indices = @transform_0, window_bounds = array<i64: 25, 16, 200>}, {pipeline_mode = #tpu.pipeline_mode<synchronous>, transform_indices = @transform_1, window_bounds = array<i64: 9, 200, 20>}, {pipeline_mode = #tpu.pipeline_mode<synchronous>, transform_indices = @transform_2, window_bounds = array<i64: 1, 20>}, {pipeline_mode = #tpu.pipeline_mode<synchronous>, transform_indices = @transform_3, window_bounds = array<i64: 180, 150>}, {pipeline_mode = #tpu.pipeline_mode<synchronous>, transform_indices = @transform_4, window_bounds = array<i64: 1, 150>}, {pipeline_mode = #tpu.pipeline_mode<synchronous>, transform_indices = @transform_5, window_bounds = array<i64: 150, 75>}, {pipeline_mode = #tpu.pipeline_mode<synchronous>, transform_indices = @transform_6, window_bounds = array<i64: 1, 75>}, {pipeline_mode = #tpu.pipeline_mode<synchronous>, transform_indices = @transform_7, window_bounds = array<i64: 75, 75>}, {pipeline_mode = #tpu.pipeline_mode<synchronous>, transform_indices = @transform_8, window_bounds = array<i64: 1, 75>}, {pipeline_mode = #tpu.pipeline_mode<synchronous>, transform_indices = @transform_9, window_bounds = array<i64: 75, 128>}, {pipeline_mode = #tpu.pipeline_mode<synchronous>, transform_indices = @transform_10, window_bounds = array<i64: 1, 128>}, {transform_indices = @transform_11, window_bounds = array<i64: 16, 128>}]} {
    %c0 = arith.constant 0 : index
    %c0_0 = arith.constant 0 : index
    %0 = vector.load %arg3[%c0, %c0_0] : memref<1x20xf32, #tpu.memory_space<vmem>>, vector<1x20xf32>
    %c0_1 = arith.constant 0 : index
    %c0_2 = arith.constant 0 : index
    %c0_3 = arith.constant 0 : index
    %1 = vector.load %arg1[%c0_1, %c0_2, %c0_3] : memref<25x16x200xbf16, #tpu.memory_space<vmem>>, vector<1x16x200xbf16>
    %2 = vector.shape_cast %1 : vector<1x16x200xbf16> to vector<16x200xbf16>
    %c0_4 = arith.constant 0 : index
    %c0_5 = arith.constant 0 : index
    %c0_6 = arith.constant 0 : index
    %3 = vector.load %arg2[%c0_4, %c0_5, %c0_6] : memref<9x200x20xbf16, #tpu.memory_space<vmem>>, vector<1x200x20xbf16>
    %4 = vector.shape_cast %3 : vector<1x200x20xbf16> to vector<200x20xbf16>
    %cst = arith.constant dense<0.000000e+00> : vector<16x20xf32>
    %5 = tpu.matmul %2, %4, %cst {dimension_numbers = #tpu.dot_dimension_numbers<[1], [0], [0], [1], [0, 0, 1, 1], [], []>} : vector<16x200xbf16>, vector<200x20xbf16>, vector<16x20xf32> -> vector<16x20xf32>
    %c1 = arith.constant 1 : index
    %c0_7 = arith.constant 0 : index
    %c0_8 = arith.constant 0 : index
    %6 = vector.load %arg1[%c1, %c0_7, %c0_8] : memref<25x16x200xbf16, #tpu.memory_space<vmem>>, vector<1x16x200xbf16>
    %7 = vector.shape_cast %6 : vector<1x16x200xbf16> to vector<16x200xbf16>
    %c1_9 = arith.constant 1 : index
    %c0_10 = arith.constant 0 : index
    %c0_11 = arith.constant 0 : index
    %8 = vector.load %arg2[%c1_9, %c0_10, %c0_11] : memref<9x200x20xbf16, #tpu.memory_space<vmem>>, vector<1x200x20xbf16>
    %9 = vector.shape_cast %8 : vector<1x200x20xbf16> to vector<200x20xbf16>
    %cst_12 = arith.constant dense<0.000000e+00> : vector<16x20xf32>
    %10 = tpu.matmul %7, %9, %cst_12 {dimension_numbers = #tpu.dot_dimension_numbers<[1], [0], [0], [1], [0, 0, 1, 1], [], []>} : vector<16x200xbf16>, vector<200x20xbf16>, vector<16x20xf32> -> vector<16x20xf32>
    %11 = arith.addf %5, %10 : vector<16x20xf32>
    %c2 = arith.constant 2 : index
    %c0_13 = arith.constant 0 : index
    %c0_14 = arith.constant 0 : index
    %12 = vector.load %arg1[%c2, %c0_13, %c0_14] : memref<25x16x200xbf16, #tpu.memory_space<vmem>>, vector<1x16x200xbf16>
    %13 = vector.shape_cast %12 : vector<1x16x200xbf16> to vector<16x200xbf16>
    %c2_15 = arith.constant 2 : index
    %c0_16 = arith.constant 0 : index
    %c0_17 = arith.constant 0 : index
    %14 = vector.load %arg2[%c2_15, %c0_16, %c0_17] : memref<9x200x20xbf16, #tpu.memory_space<vmem>>, vector<1x200x20xbf16>
    %15 = vector.shape_cast %14 : vector<1x200x20xbf16> to vector<200x20xbf16>
    %cst_18 = arith.constant dense<0.000000e+00> : vector<16x20xf32>
    %16 = tpu.matmul %13, %15, %cst_18 {dimension_numbers = #tpu.dot_dimension_numbers<[1], [0], [0], [1], [0, 0, 1, 1], [], []>} : vector<16x200xbf16>, vector<200x20xbf16>, vector<16x20xf32> -> vector<16x20xf32>
    %17 = arith.addf %11, %16 : vector<16x20xf32>
    %c5 = arith.constant 5 : index
    %c0_19 = arith.constant 0 : index
    %c0_20 = arith.constant 0 : index
    %18 = vector.load %arg1[%c5, %c0_19, %c0_20] : memref<25x16x200xbf16, #tpu.memory_space<vmem>>, vector<1x16x200xbf16>
    %19 = vector.shape_cast %18 : vector<1x16x200xbf16> to vector<16x200xbf16>
    %c3 = arith.constant 3 : index
    %c0_21 = arith.constant 0 : index
    %c0_22 = arith.constant 0 : index
    %20 = vector.load %arg2[%c3, %c0_21, %c0_22] : memref<9x200x20xbf16, #tpu.memory_space<vmem>>, vector<1x200x20xbf16>
    %21 = vector.shape_cast %20 : vector<1x200x20xbf16> to vector<200x20xbf16>
    %cst_23 = arith.constant dense<0.000000e+00> : vector<16x20xf32>
    %22 = tpu.matmul %19, %21, %cst_23 {dimension_numbers = #tpu.dot_dimension_numbers<[1], [0], [0], [1], [0, 0, 1, 1], [], []>} : vector<16x200xbf16>, vector<200x20xbf16>, vector<16x20xf32> -> vector<16x20xf32>
    %23 = arith.addf %17, %22 : vector<16x20xf32>
    %c6 = arith.constant 6 : index
    %c0_24 = arith.constant 0 : index
    %c0_25 = arith.constant 0 : index
    %24 = vector.load %arg1[%c6, %c0_24, %c0_25] : memref<25x16x200xbf16, #tpu.memory_space<vmem>>, vector<1x16x200xbf16>
    %25 = vector.shape_cast %24 : vector<1x16x200xbf16> to vector<16x200xbf16>
    %c4 = arith.constant 4 : index
    %c0_26 = arith.constant 0 : index
    %c0_27 = arith.constant 0 : index
    %26 = vector.load %arg2[%c4, %c0_26, %c0_27] : memref<9x200x20xbf16, #tpu.memory_space<vmem>>, vector<1x200x20xbf16>
    %27 = vector.shape_cast %26 : vector<1x200x20xbf16> to vector<200x20xbf16>
    %cst_28 = arith.constant dense<0.000000e+00> : vector<16x20xf32>
    %28 = tpu.matmul %25, %27, %cst_28 {dimension_numbers = #tpu.dot_dimension_numbers<[1], [0], [0], [1], [0, 0, 1, 1], [], []>} : vector<16x200xbf16>, vector<200x20xbf16>, vector<16x20xf32> -> vector<16x20xf32>
    %29 = arith.addf %23, %28 : vector<16x20xf32>
    %c7 = arith.constant 7 : index
    %c0_29 = arith.constant 0 : index
    %c0_30 = arith.constant 0 : index
    %30 = vector.load %arg1[%c7, %c0_29, %c0_30] : memref<25x16x200xbf16, #tpu.memory_space<vmem>>, vector<1x16x200xbf16>
    %31 = vector.shape_cast %30 : vector<1x16x200xbf16> to vector<16x200xbf16>
    %c5_31 = arith.constant 5 : index
    %c0_32 = arith.constant 0 : index
    %c0_33 = arith.constant 0 : index
    %32 = vector.load %arg2[%c5_31, %c0_32, %c0_33] : memref<9x200x20xbf16, #tpu.memory_space<vmem>>, vector<1x200x20xbf16>
    %33 = vector.shape_cast %32 : vector<1x200x20xbf16> to vector<200x20xbf16>
    %cst_34 = arith.constant dense<0.000000e+00> : vector<16x20xf32>
    %34 = tpu.matmul %31, %33, %cst_34 {dimension_numbers = #tpu.dot_dimension_numbers<[1], [0], [0], [1], [0, 0, 1, 1], [], []>} : vector<16x200xbf16>, vector<200x20xbf16>, vector<16x20xf32> -> vector<16x20xf32>
    %35 = arith.addf %29, %34 : vector<16x20xf32>
    %c10 = arith.constant 10 : index
    %c0_35 = arith.constant 0 : index
    %c0_36 = arith.constant 0 : index
    %36 = vector.load %arg1[%c10, %c0_35, %c0_36] : memref<25x16x200xbf16, #tpu.memory_space<vmem>>, vector<1x16x200xbf16>
    %37 = vector.shape_cast %36 : vector<1x16x200xbf16> to vector<16x200xbf16>
    %c6_37 = arith.constant 6 : index
    %c0_38 = arith.constant 0 : index
    %c0_39 = arith.constant 0 : index
    %38 = vector.load %arg2[%c6_37, %c0_38, %c0_39] : memref<9x200x20xbf16, #tpu.memory_space<vmem>>, vector<1x200x20xbf16>
    %39 = vector.shape_cast %38 : vector<1x200x20xbf16> to vector<200x20xbf16>
    %cst_40 = arith.constant dense<0.000000e+00> : vector<16x20xf32>
    %40 = tpu.matmul %37, %39, %cst_40 {dimension_numbers = #tpu.dot_dimension_numbers<[1], [0], [0], [1], [0, 0, 1, 1], [], []>} : vector<16x200xbf16>, vector<200x20xbf16>, vector<16x20xf32> -> vector<16x20xf32>
    %41 = arith.addf %35, %40 : vector<16x20xf32>
    %c11 = arith.constant 11 : index
    %c0_41 = arith.constant 0 : index
    %c0_42 = arith.constant 0 : index
    %42 = vector.load %arg1[%c11, %c0_41, %c0_42] : memref<25x16x200xbf16, #tpu.memory_space<vmem>>, vector<1x16x200xbf16>
    %43 = vector.shape_cast %42 : vector<1x16x200xbf16> to vector<16x200xbf16>
    %c7_43 = arith.constant 7 : index
    %c0_44 = arith.constant 0 : index
    %c0_45 = arith.constant 0 : index
    %44 = vector.load %arg2[%c7_43, %c0_44, %c0_45] : memref<9x200x20xbf16, #tpu.memory_space<vmem>>, vector<1x200x20xbf16>
    %45 = vector.shape_cast %44 : vector<1x200x20xbf16> to vector<200x20xbf16>
    %cst_46 = arith.constant dense<0.000000e+00> : vector<16x20xf32>
    %46 = tpu.matmul %43, %45, %cst_46 {dimension_numbers = #tpu.dot_dimension_numbers<[1], [0], [0], [1], [0, 0, 1, 1], [], []>} : vector<16x200xbf16>, vector<200x20xbf16>, vector<16x20xf32> -> vector<16x20xf32>
    %47 = arith.addf %41, %46 : vector<16x20xf32>
    %c12 = arith.constant 12 : index
    %c0_47 = arith.constant 0 : index
    %c0_48 = arith.constant 0 : index
    %48 = vector.load %arg1[%c12, %c0_47, %c0_48] : memref<25x16x200xbf16, #tpu.memory_space<vmem>>, vector<1x16x200xbf16>
    %49 = vector.shape_cast %48 : vector<1x16x200xbf16> to vector<16x200xbf16>
    %c8 = arith.constant 8 : index
    %c0_49 = arith.constant 0 : index
    %c0_50 = arith.constant 0 : index
    %50 = vector.load %arg2[%c8, %c0_49, %c0_50] : memref<9x200x20xbf16, #tpu.memory_space<vmem>>, vector<1x200x20xbf16>
    %51 = vector.shape_cast %50 : vector<1x200x20xbf16> to vector<200x20xbf16>
    %cst_51 = arith.constant dense<0.000000e+00> : vector<16x20xf32>
    %52 = tpu.matmul %49, %51, %cst_51 {dimension_numbers = #tpu.dot_dimension_numbers<[1], [0], [0], [1], [0, 0, 1, 1], [], []>} : vector<16x200xbf16>, vector<200x20xbf16>, vector<16x20xf32> -> vector<16x20xf32>
    %53 = arith.addf %47, %52 : vector<16x20xf32>
    %54 = vector.broadcast %0 : vector<1x20xf32> to vector<16x20xf32>
    %55 = arith.addf %53, %54 : vector<16x20xf32>
    %cst_52 = arith.constant 0.000000e+00 : f32
    %56 = vector.broadcast %cst_52 : f32 to vector<16x20xf32>
    %57 = arith.maximumf %55, %56 : vector<16x20xf32>
    %c1_53 = arith.constant 1 : index
    %c0_54 = arith.constant 0 : index
    %c0_55 = arith.constant 0 : index
    %58 = vector.load %arg1[%c1_53, %c0_54, %c0_55] : memref<25x16x200xbf16, #tpu.memory_space<vmem>>, vector<1x16x200xbf16>
    %59 = vector.shape_cast %58 : vector<1x16x200xbf16> to vector<16x200xbf16>
    %c0_56 = arith.constant 0 : index
    %c0_57 = arith.constant 0 : index
    %c0_58 = arith.constant 0 : index
    %60 = vector.load %arg2[%c0_56, %c0_57, %c0_58] : memref<9x200x20xbf16, #tpu.memory_space<vmem>>, vector<1x200x20xbf16>
    %61 = vector.shape_cast %60 : vector<1x200x20xbf16> to vector<200x20xbf16>
    %cst_59 = arith.constant dense<0.000000e+00> : vector<16x20xf32>
    %62 = tpu.matmul %59, %61, %cst_59 {dimension_numbers = #tpu.dot_dimension_numbers<[1], [0], [0], [1], [0, 0, 1, 1], [], []>} : vector<16x200xbf16>, vector<200x20xbf16>, vector<16x20xf32> -> vector<16x20xf32>
    %c2_60 = arith.constant 2 : index
    %c0_61 = arith.constant 0 : index
    %c0_62 = arith.constant 0 : index
    %63 = vector.load %arg1[%c2_60, %c0_61, %c0_62] : memref<25x16x200xbf16, #tpu.memory_space<vmem>>, vector<1x16x200xbf16>
    %64 = vector.shape_cast %63 : vector<1x16x200xbf16> to vector<16x200xbf16>
    %c1_63 = arith.constant 1 : index
    %c0_64 = arith.constant 0 : index
    %c0_65 = arith.constant 0 : index
    %65 = vector.load %arg2[%c1_63, %c0_64, %c0_65] : memref<9x200x20xbf16, #tpu.memory_space<vmem>>, vector<1x200x20xbf16>
    %66 = vector.shape_cast %65 : vector<1x200x20xbf16> to vector<200x20xbf16>
    %cst_66 = arith.constant dense<0.000000e+00> : vector<16x20xf32>
    %67 = tpu.matmul %64, %66, %cst_66 {dimension_numbers = #tpu.dot_dimension_numbers<[1], [0], [0], [1], [0, 0, 1, 1], [], []>} : vector<16x200xbf16>, vector<200x20xbf16>, vector<16x20xf32> -> vector<16x20xf32>
    %68 = arith.addf %62, %67 : vector<16x20xf32>
    %c3_67 = arith.constant 3 : index
    %c0_68 = arith.constant 0 : index
    %c0_69 = arith.constant 0 : index
    %69 = vector.load %arg1[%c3_67, %c0_68, %c0_69] : memref<25x16x200xbf16, #tpu.memory_space<vmem>>, vector<1x16x200xbf16>
    %70 = vector.shape_cast %69 : vector<1x16x200xbf16> to vector<16x200xbf16>
    %c2_70 = arith.constant 2 : index
    %c0_71 = arith.constant 0 : index
    %c0_72 = arith.constant 0 : index
    %71 = vector.load %arg2[%c2_70, %c0_71, %c0_72] : memref<9x200x20xbf16, #tpu.memory_space<vmem>>, vector<1x200x20xbf16>
    %72 = vector.shape_cast %71 : vector<1x200x20xbf16> to vector<200x20xbf16>
    %cst_73 = arith.constant dense<0.000000e+00> : vector<16x20xf32>
    %73 = tpu.matmul %70, %72, %cst_73 {dimension_numbers = #tpu.dot_dimension_numbers<[1], [0], [0], [1], [0, 0, 1, 1], [], []>} : vector<16x200xbf16>, vector<200x20xbf16>, vector<16x20xf32> -> vector<16x20xf32>
    %74 = arith.addf %68, %73 : vector<16x20xf32>
    %c6_74 = arith.constant 6 : index
    %c0_75 = arith.constant 0 : index
    %c0_76 = arith.constant 0 : index
    %75 = vector.load %arg1[%c6_74, %c0_75, %c0_76] : memref<25x16x200xbf16, #tpu.memory_space<vmem>>, vector<1x16x200xbf16>
    %76 = vector.shape_cast %75 : vector<1x16x200xbf16> to vector<16x200xbf16>
    %c3_77 = arith.constant 3 : index
    %c0_78 = arith.constant 0 : index
    %c0_79 = arith.constant 0 : index
    %77 = vector.load %arg2[%c3_77, %c0_78, %c0_79] : memref<9x200x20xbf16, #tpu.memory_space<vmem>>, vector<1x200x20xbf16>
    %78 = vector.shape_cast %77 : vector<1x200x20xbf16> to vector<200x20xbf16>
    %cst_80 = arith.constant dense<0.000000e+00> : vector<16x20xf32>
    %79 = tpu.matmul %76, %78, %cst_80 {dimension_numbers = #tpu.dot_dimension_numbers<[1], [0], [0], [1], [0, 0, 1, 1], [], []>} : vector<16x200xbf16>, vector<200x20xbf16>, vector<16x20xf32> -> vector<16x20xf32>
    %80 = arith.addf %74, %79 : vector<16x20xf32>
    %c7_81 = arith.constant 7 : index
    %c0_82 = arith.constant 0 : index
    %c0_83 = arith.constant 0 : index
    %81 = vector.load %arg1[%c7_81, %c0_82, %c0_83] : memref<25x16x200xbf16, #tpu.memory_space<vmem>>, vector<1x16x200xbf16>
    %82 = vector.shape_cast %81 : vector<1x16x200xbf16> to vector<16x200xbf16>
    %c4_84 = arith.constant 4 : index
    %c0_85 = arith.constant 0 : index
    %c0_86 = arith.constant 0 : index
    %83 = vector.load %arg2[%c4_84, %c0_85, %c0_86] : memref<9x200x20xbf16, #tpu.memory_space<vmem>>, vector<1x200x20xbf16>
    %84 = vector.shape_cast %83 : vector<1x200x20xbf16> to vector<200x20xbf16>
    %cst_87 = arith.constant dense<0.000000e+00> : vector<16x20xf32>
    %85 = tpu.matmul %82, %84, %cst_87 {dimension_numbers = #tpu.dot_dimension_numbers<[1], [0], [0], [1], [0, 0, 1, 1], [], []>} : vector<16x200xbf16>, vector<200x20xbf16>, vector<16x20xf32> -> vector<16x20xf32>
    %86 = arith.addf %80, %85 : vector<16x20xf32>
    %c8_88 = arith.constant 8 : index
    %c0_89 = arith.constant 0 : index
    %c0_90 = arith.constant 0 : index
    %87 = vector.load %arg1[%c8_88, %c0_89, %c0_90] : memref<25x16x200xbf16, #tpu.memory_space<vmem>>, vector<1x16x200xbf16>
    %88 = vector.shape_cast %87 : vector<1x16x200xbf16> to vector<16x200xbf16>
    %c5_91 = arith.constant 5 : index
    %c0_92 = arith.constant 0 : index
    %c0_93 = arith.constant 0 : index
    %89 = vector.load %arg2[%c5_91, %c0_92, %c0_93] : memref<9x200x20xbf16, #tpu.memory_space<vmem>>, vector<1x200x20xbf16>
    %90 = vector.shape_cast %89 : vector<1x200x20xbf16> to vector<200x20xbf16>
    %cst_94 = arith.constant dense<0.000000e+00> : vector<16x20xf32>
    %91 = tpu.matmul %88, %90, %cst_94 {dimension_numbers = #tpu.dot_dimension_numbers<[1], [0], [0], [1], [0, 0, 1, 1], [], []>} : vector<16x200xbf16>, vector<200x20xbf16>, vector<16x20xf32> -> vector<16x20xf32>
    %92 = arith.addf %86, %91 : vector<16x20xf32>
    %c11_95 = arith.constant 11 : index
    %c0_96 = arith.constant 0 : index
    %c0_97 = arith.constant 0 : index
    %93 = vector.load %arg1[%c11_95, %c0_96, %c0_97] : memref<25x16x200xbf16, #tpu.memory_space<vmem>>, vector<1x16x200xbf16>
    %94 = vector.shape_cast %93 : vector<1x16x200xbf16> to vector<16x200xbf16>
    %c6_98 = arith.constant 6 : index
    %c0_99 = arith.constant 0 : index
    %c0_100 = arith.constant 0 : index
    %95 = vector.load %arg2[%c6_98, %c0_99, %c0_100] : memref<9x200x20xbf16, #tpu.memory_space<vmem>>, vector<1x200x20xbf16>
    %96 = vector.shape_cast %95 : vector<1x200x20xbf16> to vector<200x20xbf16>
    %cst_101 = arith.constant dense<0.000000e+00> : vector<16x20xf32>
    %97 = tpu.matmul %94, %96, %cst_101 {dimension_numbers = #tpu.dot_dimension_numbers<[1], [0], [0], [1], [0, 0, 1, 1], [], []>} : vector<16x200xbf16>, vector<200x20xbf16>, vector<16x20xf32> -> vector<16x20xf32>
    %98 = arith.addf %92, %97 : vector<16x20xf32>
    %c12_102 = arith.constant 12 : index
    %c0_103 = arith.constant 0 : index
    %c0_104 = arith.constant 0 : index
    %99 = vector.load %arg1[%c12_102, %c0_103, %c0_104] : memref<25x16x200xbf16, #tpu.memory_space<vmem>>, vector<1x16x200xbf16>
    %100 = vector.shape_cast %99 : vector<1x16x200xbf16> to vector<16x200xbf16>
    %c7_105 = arith.constant 7 : index
    %c0_106 = arith.constant 0 : index
    %c0_107 = arith.constant 0 : index
    %101 = vector.load %arg2[%c7_105, %c0_106, %c0_107] : memref<9x200x20xbf16, #tpu.memory_space<vmem>>, vector<1x200x20xbf16>
    %102 = vector.shape_cast %101 : vector<1x200x20xbf16> to vector<200x20xbf16>
    %cst_108 = arith.constant dense<0.000000e+00> : vector<16x20xf32>
    %103 = tpu.matmul %100, %102, %cst_108 {dimension_numbers = #tpu.dot_dimension_numbers<[1], [0], [0], [1], [0, 0, 1, 1], [], []>} : vector<16x200xbf16>, vector<200x20xbf16>, vector<16x20xf32> -> vector<16x20xf32>
    %104 = arith.addf %98, %103 : vector<16x20xf32>
    %c13 = arith.constant 13 : index
    %c0_109 = arith.constant 0 : index
    %c0_110 = arith.constant 0 : index
    %105 = vector.load %arg1[%c13, %c0_109, %c0_110] : memref<25x16x200xbf16, #tpu.memory_space<vmem>>, vector<1x16x200xbf16>
    %106 = vector.shape_cast %105 : vector<1x16x200xbf16> to vector<16x200xbf16>
    %c8_111 = arith.constant 8 : index
    %c0_112 = arith.constant 0 : index
    %c0_113 = arith.constant 0 : index
    %107 = vector.load %arg2[%c8_111, %c0_112, %c0_113] : memref<9x200x20xbf16, #tpu.memory_space<vmem>>, vector<1x200x20xbf16>
    %108 = vector.shape_cast %107 : vector<1x200x20xbf16> to vector<200x20xbf16>
    %cst_114 = arith.constant dense<0.000000e+00> : vector<16x20xf32>
    %109 = tpu.matmul %106, %108, %cst_114 {dimension_numbers = #tpu.dot_dimension_numbers<[1], [0], [0], [1], [0, 0, 1, 1], [], []>} : vector<16x200xbf16>, vector<200x20xbf16>, vector<16x20xf32> -> vector<16x20xf32>
    %110 = arith.addf %104, %109 : vector<16x20xf32>
    %111 = vector.broadcast %0 : vector<1x20xf32> to vector<16x20xf32>
    %112 = arith.addf %110, %111 : vector<16x20xf32>
    %cst_115 = arith.constant 0.000000e+00 : f32
    %113 = vector.broadcast %cst_115 : f32 to vector<16x20xf32>
    %114 = arith.maximumf %112, %113 : vector<16x20xf32>
    %c2_116 = arith.constant 2 : index
    %c0_117 = arith.constant 0 : index
    %c0_118 = arith.constant 0 : index
    %115 = vector.load %arg1[%c2_116, %c0_117, %c0_118] : memref<25x16x200xbf16, #tpu.memory_space<vmem>>, vector<1x16x200xbf16>
    %116 = vector.shape_cast %115 : vector<1x16x200xbf16> to vector<16x200xbf16>
    %c0_119 = arith.constant 0 : index
    %c0_120 = arith.constant 0 : index
    %c0_121 = arith.constant 0 : index
    %117 = vector.load %arg2[%c0_119, %c0_120, %c0_121] : memref<9x200x20xbf16, #tpu.memory_space<vmem>>, vector<1x200x20xbf16>
    %118 = vector.shape_cast %117 : vector<1x200x20xbf16> to vector<200x20xbf16>
    %cst_122 = arith.constant dense<0.000000e+00> : vector<16x20xf32>
    %119 = tpu.matmul %116, %118, %cst_122 {dimension_numbers = #tpu.dot_dimension_numbers<[1], [0], [0], [1], [0, 0, 1, 1], [], []>} : vector<16x200xbf16>, vector<200x20xbf16>, vector<16x20xf32> -> vector<16x20xf32>
    %c3_123 = arith.constant 3 : index
    %c0_124 = arith.constant 0 : index
    %c0_125 = arith.constant 0 : index
    %120 = vector.load %arg1[%c3_123, %c0_124, %c0_125] : memref<25x16x200xbf16, #tpu.memory_space<vmem>>, vector<1x16x200xbf16>
    %121 = vector.shape_cast %120 : vector<1x16x200xbf16> to vector<16x200xbf16>
    %c1_126 = arith.constant 1 : index
    %c0_127 = arith.constant 0 : index
    %c0_128 = arith.constant 0 : index
    %122 = vector.load %arg2[%c1_126, %c0_127, %c0_128] : memref<9x200x20xbf16, #tpu.memory_space<vmem>>, vector<1x200x20xbf16>
    %123 = vector.shape_cast %122 : vector<1x200x20xbf16> to vector<200x20xbf16>
    %cst_129 = arith.constant dense<0.000000e+00> : vector<16x20xf32>
    %124 = tpu.matmul %121, %123, %cst_129 {dimension_numbers = #tpu.dot_dimension_numbers<[1], [0], [0], [1], [0, 0, 1, 1], [], []>} : vector<16x200xbf16>, vector<200x20xbf16>, vector<16x20xf32> -> vector<16x20xf32>
    %125 = arith.addf %119, %124 : vector<16x20xf32>
    %c4_130 = arith.constant 4 : index
    %c0_131 = arith.constant 0 : index
    %c0_132 = arith.constant 0 : index
    %126 = vector.load %arg1[%c4_130, %c0_131, %c0_132] : memref<25x16x200xbf16, #tpu.memory_space<vmem>>, vector<1x16x200xbf16>
    %127 = vector.shape_cast %126 : vector<1x16x200xbf16> to vector<16x200xbf16>
    %c2_133 = arith.constant 2 : index
    %c0_134 = arith.constant 0 : index
    %c0_135 = arith.constant 0 : index
    %128 = vector.load %arg2[%c2_133, %c0_134, %c0_135] : memref<9x200x20xbf16, #tpu.memory_space<vmem>>, vector<1x200x20xbf16>
    %129 = vector.shape_cast %128 : vector<1x200x20xbf16> to vector<200x20xbf16>
    %cst_136 = arith.constant dense<0.000000e+00> : vector<16x20xf32>
    %130 = tpu.matmul %127, %129, %cst_136 {dimension_numbers = #tpu.dot_dimension_numbers<[1], [0], [0], [1], [0, 0, 1, 1], [], []>} : vector<16x200xbf16>, vector<200x20xbf16>, vector<16x20xf32> -> vector<16x20xf32>
    %131 = arith.addf %125, %130 : vector<16x20xf32>
    %c7_137 = arith.constant 7 : index
    %c0_138 = arith.constant 0 : index
    %c0_139 = arith.constant 0 : index
    %132 = vector.load %arg1[%c7_137, %c0_138, %c0_139] : memref<25x16x200xbf16, #tpu.memory_space<vmem>>, vector<1x16x200xbf16>
    %133 = vector.shape_cast %132 : vector<1x16x200xbf16> to vector<16x200xbf16>
    %c3_140 = arith.constant 3 : index
    %c0_141 = arith.constant 0 : index
    %c0_142 = arith.constant 0 : index
    %134 = vector.load %arg2[%c3_140, %c0_141, %c0_142] : memref<9x200x20xbf16, #tpu.memory_space<vmem>>, vector<1x200x20xbf16>
    %135 = vector.shape_cast %134 : vector<1x200x20xbf16> to vector<200x20xbf16>
    %cst_143 = arith.constant dense<0.000000e+00> : vector<16x20xf32>
    %136 = tpu.matmul %133, %135, %cst_143 {dimension_numbers = #tpu.dot_dimension_numbers<[1], [0], [0], [1], [0, 0, 1, 1], [], []>} : vector<16x200xbf16>, vector<200x20xbf16>, vector<16x20xf32> -> vector<16x20xf32>
    %137 = arith.addf %131, %136 : vector<16x20xf32>
    %c8_144 = arith.constant 8 : index
    %c0_145 = arith.constant 0 : index
    %c0_146 = arith.constant 0 : index
    %138 = vector.load %arg1[%c8_144, %c0_145, %c0_146] : memref<25x16x200xbf16, #tpu.memory_space<vmem>>, vector<1x16x200xbf16>
    %139 = vector.shape_cast %138 : vector<1x16x200xbf16> to vector<16x200xbf16>
    %c4_147 = arith.constant 4 : index
    %c0_148 = arith.constant 0 : index
    %c0_149 = arith.constant 0 : index
    %140 = vector.load %arg2[%c4_147, %c0_148, %c0_149] : memref<9x200x20xbf16, #tpu.memory_space<vmem>>, vector<1x200x20xbf16>
    %141 = vector.shape_cast %140 : vector<1x200x20xbf16> to vector<200x20xbf16>
    %cst_150 = arith.constant dense<0.000000e+00> : vector<16x20xf32>
    %142 = tpu.matmul %139, %141, %cst_150 {dimension_numbers = #tpu.dot_dimension_numbers<[1], [0], [0], [1], [0, 0, 1, 1], [], []>} : vector<16x200xbf16>, vector<200x20xbf16>, vector<16x20xf32> -> vector<16x20xf32>
    %143 = arith.addf %137, %142 : vector<16x20xf32>
    %c9 = arith.constant 9 : index
    %c0_151 = arith.constant 0 : index
    %c0_152 = arith.constant 0 : index
    %144 = vector.load %arg1[%c9, %c0_151, %c0_152] : memref<25x16x200xbf16, #tpu.memory_space<vmem>>, vector<1x16x200xbf16>
    %145 = vector.shape_cast %144 : vector<1x16x200xbf16> to vector<16x200xbf16>
    %c5_153 = arith.constant 5 : index
    %c0_154 = arith.constant 0 : index
    %c0_155 = arith.constant 0 : index
    %146 = vector.load %arg2[%c5_153, %c0_154, %c0_155] : memref<9x200x20xbf16, #tpu.memory_space<vmem>>, vector<1x200x20xbf16>
    %147 = vector.shape_cast %146 : vector<1x200x20xbf16> to vector<200x20xbf16>
    %cst_156 = arith.constant dense<0.000000e+00> : vector<16x20xf32>
    %148 = tpu.matmul %145, %147, %cst_156 {dimension_numbers = #tpu.dot_dimension_numbers<[1], [0], [0], [1], [0, 0, 1, 1], [], []>} : vector<16x200xbf16>, vector<200x20xbf16>, vector<16x20xf32> -> vector<16x20xf32>
    %149 = arith.addf %143, %148 : vector<16x20xf32>
    %c12_157 = arith.constant 12 : index
    %c0_158 = arith.constant 0 : index
    %c0_159 = arith.constant 0 : index
    %150 = vector.load %arg1[%c12_157, %c0_158, %c0_159] : memref<25x16x200xbf16, #tpu.memory_space<vmem>>, vector<1x16x200xbf16>
    %151 = vector.shape_cast %150 : vector<1x16x200xbf16> to vector<16x200xbf16>
    %c6_160 = arith.constant 6 : index
    %c0_161 = arith.constant 0 : index
    %c0_162 = arith.constant 0 : index
    %152 = vector.load %arg2[%c6_160, %c0_161, %c0_162] : memref<9x200x20xbf16, #tpu.memory_space<vmem>>, vector<1x200x20xbf16>
    %153 = vector.shape_cast %152 : vector<1x200x20xbf16> to vector<200x20xbf16>
    %cst_163 = arith.constant dense<0.000000e+00> : vector<16x20xf32>
    %154 = tpu.matmul %151, %153, %cst_163 {dimension_numbers = #tpu.dot_dimension_numbers<[1], [0], [0], [1], [0, 0, 1, 1], [], []>} : vector<16x200xbf16>, vector<200x20xbf16>, vector<16x20xf32> -> vector<16x20xf32>
    %155 = arith.addf %149, %154 : vector<16x20xf32>
    %c13_164 = arith.constant 13 : index
    %c0_165 = arith.constant 0 : index
    %c0_166 = arith.constant 0 : index
    %156 = vector.load %arg1[%c13_164, %c0_165, %c0_166] : memref<25x16x200xbf16, #tpu.memory_space<vmem>>, vector<1x16x200xbf16>
    %157 = vector.shape_cast %156 : vector<1x16x200xbf16> to vector<16x200xbf16>
    %c7_167 = arith.constant 7 : index
    %c0_168 = arith.constant 0 : index
    %c0_169 = arith.constant 0 : index
    %158 = vector.load %arg2[%c7_167, %c0_168, %c0_169] : memref<9x200x20xbf16, #tpu.memory_space<vmem>>, vector<1x200x20xbf16>
    %159 = vector.shape_cast %158 : vector<1x200x20xbf16> to vector<200x20xbf16>
    %cst_170 = arith.constant dense<0.000000e+00> : vector<16x20xf32>
    %160 = tpu.matmul %157, %159, %cst_170 {dimension_numbers = #tpu.dot_dimension_numbers<[1], [0], [0], [1], [0, 0, 1, 1], [], []>} : vector<16x200xbf16>, vector<200x20xbf16>, vector<16x20xf32> -> vector<16x20xf32>
    %161 = arith.addf %155, %160 : vector<16x20xf32>
    %c14 = arith.constant 14 : index
    %c0_171 = arith.constant 0 : index
    %c0_172 = arith.constant 0 : index
    %162 = vector.load %arg1[%c14, %c0_171, %c0_172] : memref<25x16x200xbf16, #tpu.memory_space<vmem>>, vector<1x16x200xbf16>
    %163 = vector.shape_cast %162 : vector<1x16x200xbf16> to vector<16x200xbf16>
    %c8_173 = arith.constant 8 : index
    %c0_174 = arith.constant 0 : index
    %c0_175 = arith.constant 0 : index
    %164 = vector.load %arg2[%c8_173, %c0_174, %c0_175] : memref<9x200x20xbf16, #tpu.memory_space<vmem>>, vector<1x200x20xbf16>
    %165 = vector.shape_cast %164 : vector<1x200x20xbf16> to vector<200x20xbf16>
    %cst_176 = arith.constant dense<0.000000e+00> : vector<16x20xf32>
    %166 = tpu.matmul %163, %165, %cst_176 {dimension_numbers = #tpu.dot_dimension_numbers<[1], [0], [0], [1], [0, 0, 1, 1], [], []>} : vector<16x200xbf16>, vector<200x20xbf16>, vector<16x20xf32> -> vector<16x20xf32>
    %167 = arith.addf %161, %166 : vector<16x20xf32>
    %168 = vector.broadcast %0 : vector<1x20xf32> to vector<16x20xf32>
    %169 = arith.addf %167, %168 : vector<16x20xf32>
    %cst_177 = arith.constant 0.000000e+00 : f32
    %170 = vector.broadcast %cst_177 : f32 to vector<16x20xf32>
    %171 = arith.maximumf %169, %170 : vector<16x20xf32>
    %c5_178 = arith.constant 5 : index
    %c0_179 = arith.constant 0 : index
    %c0_180 = arith.constant 0 : index
    %172 = vector.load %arg1[%c5_178, %c0_179, %c0_180] : memref<25x16x200xbf16, #tpu.memory_space<vmem>>, vector<1x16x200xbf16>
    %173 = vector.shape_cast %172 : vector<1x16x200xbf16> to vector<16x200xbf16>
    %c0_181 = arith.constant 0 : index
    %c0_182 = arith.constant 0 : index
    %c0_183 = arith.constant 0 : index
    %174 = vector.load %arg2[%c0_181, %c0_182, %c0_183] : memref<9x200x20xbf16, #tpu.memory_space<vmem>>, vector<1x200x20xbf16>
    %175 = vector.shape_cast %174 : vector<1x200x20xbf16> to vector<200x20xbf16>
    %cst_184 = arith.constant dense<0.000000e+00> : vector<16x20xf32>
    %176 = tpu.matmul %173, %175, %cst_184 {dimension_numbers = #tpu.dot_dimension_numbers<[1], [0], [0], [1], [0, 0, 1, 1], [], []>} : vector<16x200xbf16>, vector<200x20xbf16>, vector<16x20xf32> -> vector<16x20xf32>
    %c6_185 = arith.constant 6 : index
    %c0_186 = arith.constant 0 : index
    %c0_187 = arith.constant 0 : index
    %177 = vector.load %arg1[%c6_185, %c0_186, %c0_187] : memref<25x16x200xbf16, #tpu.memory_space<vmem>>, vector<1x16x200xbf16>
    %178 = vector.shape_cast %177 : vector<1x16x200xbf16> to vector<16x200xbf16>
    %c1_188 = arith.constant 1 : index
    %c0_189 = arith.constant 0 : index
    %c0_190 = arith.constant 0 : index
    %179 = vector.load %arg2[%c1_188, %c0_189, %c0_190] : memref<9x200x20xbf16, #tpu.memory_space<vmem>>, vector<1x200x20xbf16>
    %180 = vector.shape_cast %179 : vector<1x200x20xbf16> to vector<200x20xbf16>
    %cst_191 = arith.constant dense<0.000000e+00> : vector<16x20xf32>
    %181 = tpu.matmul %178, %180, %cst_191 {dimension_numbers = #tpu.dot_dimension_numbers<[1], [0], [0], [1], [0, 0, 1, 1], [], []>} : vector<16x200xbf16>, vector<200x20xbf16>, vector<16x20xf32> -> vector<16x20xf32>
    %182 = arith.addf %176, %181 : vector<16x20xf32>
    %c7_192 = arith.constant 7 : index
    %c0_193 = arith.constant 0 : index
    %c0_194 = arith.constant 0 : index
    %183 = vector.load %arg1[%c7_192, %c0_193, %c0_194] : memref<25x16x200xbf16, #tpu.memory_space<vmem>>, vector<1x16x200xbf16>
    %184 = vector.shape_cast %183 : vector<1x16x200xbf16> to vector<16x200xbf16>
    %c2_195 = arith.constant 2 : index
    %c0_196 = arith.constant 0 : index
    %c0_197 = arith.constant 0 : index
    %185 = vector.load %arg2[%c2_195, %c0_196, %c0_197] : memref<9x200x20xbf16, #tpu.memory_space<vmem>>, vector<1x200x20xbf16>
    %186 = vector.shape_cast %185 : vector<1x200x20xbf16> to vector<200x20xbf16>
    %cst_198 = arith.constant dense<0.000000e+00> : vector<16x20xf32>
    %187 = tpu.matmul %184, %186, %cst_198 {dimension_numbers = #tpu.dot_dimension_numbers<[1], [0], [0], [1], [0, 0, 1, 1], [], []>} : vector<16x200xbf16>, vector<200x20xbf16>, vector<16x20xf32> -> vector<16x20xf32>
    %188 = arith.addf %182, %187 : vector<16x20xf32>
    %c10_199 = arith.constant 10 : index
    %c0_200 = arith.constant 0 : index
    %c0_201 = arith.constant 0 : index
    %189 = vector.load %arg1[%c10_199, %c0_200, %c0_201] : memref<25x16x200xbf16, #tpu.memory_space<vmem>>, vector<1x16x200xbf16>
    %190 = vector.shape_cast %189 : vector<1x16x200xbf16> to vector<16x200xbf16>
    %c3_202 = arith.constant 3 : index
    %c0_203 = arith.constant 0 : index
    %c0_204 = arith.constant 0 : index
    %191 = vector.load %arg2[%c3_202, %c0_203, %c0_204] : memref<9x200x20xbf16, #tpu.memory_space<vmem>>, vector<1x200x20xbf16>
    %192 = vector.shape_cast %191 : vector<1x200x20xbf16> to vector<200x20xbf16>
    %cst_205 = arith.constant dense<0.000000e+00> : vector<16x20xf32>
    %193 = tpu.matmul %190, %192, %cst_205 {dimension_numbers = #tpu.dot_dimension_numbers<[1], [0], [0], [1], [0, 0, 1, 1], [], []>} : vector<16x200xbf16>, vector<200x20xbf16>, vector<16x20xf32> -> vector<16x20xf32>
    %194 = arith.addf %188, %193 : vector<16x20xf32>
    %c11_206 = arith.constant 11 : index
    %c0_207 = arith.constant 0 : index
    %c0_208 = arith.constant 0 : index
    %195 = vector.load %arg1[%c11_206, %c0_207, %c0_208] : memref<25x16x200xbf16, #tpu.memory_space<vmem>>, vector<1x16x200xbf16>
    %196 = vector.shape_cast %195 : vector<1x16x200xbf16> to vector<16x200xbf16>
    %c4_209 = arith.constant 4 : index
    %c0_210 = arith.constant 0 : index
    %c0_211 = arith.constant 0 : index
    %197 = vector.load %arg2[%c4_209, %c0_210, %c0_211] : memref<9x200x20xbf16, #tpu.memory_space<vmem>>, vector<1x200x20xbf16>
    %198 = vector.shape_cast %197 : vector<1x200x20xbf16> to vector<200x20xbf16>
    %cst_212 = arith.constant dense<0.000000e+00> : vector<16x20xf32>
    %199 = tpu.matmul %196, %198, %cst_212 {dimension_numbers = #tpu.dot_dimension_numbers<[1], [0], [0], [1], [0, 0, 1, 1], [], []>} : vector<16x200xbf16>, vector<200x20xbf16>, vector<16x20xf32> -> vector<16x20xf32>
    %200 = arith.addf %194, %199 : vector<16x20xf32>
    %c12_213 = arith.constant 12 : index
    %c0_214 = arith.constant 0 : index
    %c0_215 = arith.constant 0 : index
    %201 = vector.load %arg1[%c12_213, %c0_214, %c0_215] : memref<25x16x200xbf16, #tpu.memory_space<vmem>>, vector<1x16x200xbf16>
    %202 = vector.shape_cast %201 : vector<1x16x200xbf16> to vector<16x200xbf16>
    %c5_216 = arith.constant 5 : index
    %c0_217 = arith.constant 0 : index
    %c0_218 = arith.constant 0 : index
    %203 = vector.load %arg2[%c5_216, %c0_217, %c0_218] : memref<9x200x20xbf16, #tpu.memory_space<vmem>>, vector<1x200x20xbf16>
    %204 = vector.shape_cast %203 : vector<1x200x20xbf16> to vector<200x20xbf16>
    %cst_219 = arith.constant dense<0.000000e+00> : vector<16x20xf32>
    %205 = tpu.matmul %202, %204, %cst_219 {dimension_numbers = #tpu.dot_dimension_numbers<[1], [0], [0], [1], [0, 0, 1, 1], [], []>} : vector<16x200xbf16>, vector<200x20xbf16>, vector<16x20xf32> -> vector<16x20xf32>
    %206 = arith.addf %200, %205 : vector<16x20xf32>
    %c15 = arith.constant 15 : index
    %c0_220 = arith.constant 0 : index
    %c0_221 = arith.constant 0 : index
    %207 = vector.load %arg1[%c15, %c0_220, %c0_221] : memref<25x16x200xbf16, #tpu.memory_space<vmem>>, vector<1x16x200xbf16>
    %208 = vector.shape_cast %207 : vector<1x16x200xbf16> to vector<16x200xbf16>
    %c6_222 = arith.constant 6 : index
    %c0_223 = arith.constant 0 : index
    %c0_224 = arith.constant 0 : index
    %209 = vector.load %arg2[%c6_222, %c0_223, %c0_224] : memref<9x200x20xbf16, #tpu.memory_space<vmem>>, vector<1x200x20xbf16>
    %210 = vector.shape_cast %209 : vector<1x200x20xbf16> to vector<200x20xbf16>
    %cst_225 = arith.constant dense<0.000000e+00> : vector<16x20xf32>
    %211 = tpu.matmul %208, %210, %cst_225 {dimension_numbers = #tpu.dot_dimension_numbers<[1], [0], [0], [1], [0, 0, 1, 1], [], []>} : vector<16x200xbf16>, vector<200x20xbf16>, vector<16x20xf32> -> vector<16x20xf32>
    %212 = arith.addf %206, %211 : vector<16x20xf32>
    %c16 = arith.constant 16 : index
    %c0_226 = arith.constant 0 : index
    %c0_227 = arith.constant 0 : index
    %213 = vector.load %arg1[%c16, %c0_226, %c0_227] : memref<25x16x200xbf16, #tpu.memory_space<vmem>>, vector<1x16x200xbf16>
    %214 = vector.shape_cast %213 : vector<1x16x200xbf16> to vector<16x200xbf16>
    %c7_228 = arith.constant 7 : index
    %c0_229 = arith.constant 0 : index
    %c0_230 = arith.constant 0 : index
    %215 = vector.load %arg2[%c7_228, %c0_229, %c0_230] : memref<9x200x20xbf16, #tpu.memory_space<vmem>>, vector<1x200x20xbf16>
    %216 = vector.shape_cast %215 : vector<1x200x20xbf16> to vector<200x20xbf16>
    %cst_231 = arith.constant dense<0.000000e+00> : vector<16x20xf32>
    %217 = tpu.matmul %214, %216, %cst_231 {dimension_numbers = #tpu.dot_dimension_numbers<[1], [0], [0], [1], [0, 0, 1, 1], [], []>} : vector<16x200xbf16>, vector<200x20xbf16>, vector<16x20xf32> -> vector<16x20xf32>
    %218 = arith.addf %212, %217 : vector<16x20xf32>
    %c17 = arith.constant 17 : index
    %c0_232 = arith.constant 0 : index
    %c0_233 = arith.constant 0 : index
    %219 = vector.load %arg1[%c17, %c0_232, %c0_233] : memref<25x16x200xbf16, #tpu.memory_space<vmem>>, vector<1x16x200xbf16>
    %220 = vector.shape_cast %219 : vector<1x16x200xbf16> to vector<16x200xbf16>
    %c8_234 = arith.constant 8 : index
    %c0_235 = arith.constant 0 : index
    %c0_236 = arith.constant 0 : index
    %221 = vector.load %arg2[%c8_234, %c0_235, %c0_236] : memref<9x200x20xbf16, #tpu.memory_space<vmem>>, vector<1x200x20xbf16>
    %222 = vector.shape_cast %221 : vector<1x200x20xbf16> to vector<200x20xbf16>
    %cst_237 = arith.constant dense<0.000000e+00> : vector<16x20xf32>
    %223 = tpu.matmul %220, %222, %cst_237 {dimension_numbers = #tpu.dot_dimension_numbers<[1], [0], [0], [1], [0, 0, 1, 1], [], []>} : vector<16x200xbf16>, vector<200x20xbf16>, vector<16x20xf32> -> vector<16x20xf32>
    %224 = arith.addf %218, %223 : vector<16x20xf32>
    %225 = vector.broadcast %0 : vector<1x20xf32> to vector<16x20xf32>
    %226 = arith.addf %224, %225 : vector<16x20xf32>
    %cst_238 = arith.constant 0.000000e+00 : f32
    %227 = vector.broadcast %cst_238 : f32 to vector<16x20xf32>
    %228 = arith.maximumf %226, %227 : vector<16x20xf32>
    %c6_239 = arith.constant 6 : index
    %c0_240 = arith.constant 0 : index
    %c0_241 = arith.constant 0 : index
    %229 = vector.load %arg1[%c6_239, %c0_240, %c0_241] : memref<25x16x200xbf16, #tpu.memory_space<vmem>>, vector<1x16x200xbf16>
    %230 = vector.shape_cast %229 : vector<1x16x200xbf16> to vector<16x200xbf16>
    %c0_242 = arith.constant 0 : index
    %c0_243 = arith.constant 0 : index
    %c0_244 = arith.constant 0 : index
    %231 = vector.load %arg2[%c0_242, %c0_243, %c0_244] : memref<9x200x20xbf16, #tpu.memory_space<vmem>>, vector<1x200x20xbf16>
    %232 = vector.shape_cast %231 : vector<1x200x20xbf16> to vector<200x20xbf16>
    %cst_245 = arith.constant dense<0.000000e+00> : vector<16x20xf32>
    %233 = tpu.matmul %230, %232, %cst_245 {dimension_numbers = #tpu.dot_dimension_numbers<[1], [0], [0], [1], [0, 0, 1, 1], [], []>} : vector<16x200xbf16>, vector<200x20xbf16>, vector<16x20xf32> -> vector<16x20xf32>
    %c7_246 = arith.constant 7 : index
    %c0_247 = arith.constant 0 : index
    %c0_248 = arith.constant 0 : index
    %234 = vector.load %arg1[%c7_246, %c0_247, %c0_248] : memref<25x16x200xbf16, #tpu.memory_space<vmem>>, vector<1x16x200xbf16>
    %235 = vector.shape_cast %234 : vector<1x16x200xbf16> to vector<16x200xbf16>
    %c1_249 = arith.constant 1 : index
    %c0_250 = arith.constant 0 : index
    %c0_251 = arith.constant 0 : index
    %236 = vector.load %arg2[%c1_249, %c0_250, %c0_251] : memref<9x200x20xbf16, #tpu.memory_space<vmem>>, vector<1x200x20xbf16>
    %237 = vector.shape_cast %236 : vector<1x200x20xbf16> to vector<200x20xbf16>
    %cst_252 = arith.constant dense<0.000000e+00> : vector<16x20xf32>
    %238 = tpu.matmul %235, %237, %cst_252 {dimension_numbers = #tpu.dot_dimension_numbers<[1], [0], [0], [1], [0, 0, 1, 1], [], []>} : vector<16x200xbf16>, vector<200x20xbf16>, vector<16x20xf32> -> vector<16x20xf32>
    %239 = arith.addf %233, %238 : vector<16x20xf32>
    %c8_253 = arith.constant 8 : index
    %c0_254 = arith.constant 0 : index
    %c0_255 = arith.constant 0 : index
    %240 = vector.load %arg1[%c8_253, %c0_254, %c0_255] : memref<25x16x200xbf16, #tpu.memory_space<vmem>>, vector<1x16x200xbf16>
    %241 = vector.shape_cast %240 : vector<1x16x200xbf16> to vector<16x200xbf16>
    %c2_256 = arith.constant 2 : index
    %c0_257 = arith.constant 0 : index
    %c0_258 = arith.constant 0 : index
    %242 = vector.load %arg2[%c2_256, %c0_257, %c0_258] : memref<9x200x20xbf16, #tpu.memory_space<vmem>>, vector<1x200x20xbf16>
    %243 = vector.shape_cast %242 : vector<1x200x20xbf16> to vector<200x20xbf16>
    %cst_259 = arith.constant dense<0.000000e+00> : vector<16x20xf32>
    %244 = tpu.matmul %241, %243, %cst_259 {dimension_numbers = #tpu.dot_dimension_numbers<[1], [0], [0], [1], [0, 0, 1, 1], [], []>} : vector<16x200xbf16>, vector<200x20xbf16>, vector<16x20xf32> -> vector<16x20xf32>
    %245 = arith.addf %239, %244 : vector<16x20xf32>
    %c11_260 = arith.constant 11 : index
    %c0_261 = arith.constant 0 : index
    %c0_262 = arith.constant 0 : index
    %246 = vector.load %arg1[%c11_260, %c0_261, %c0_262] : memref<25x16x200xbf16, #tpu.memory_space<vmem>>, vector<1x16x200xbf16>
    %247 = vector.shape_cast %246 : vector<1x16x200xbf16> to vector<16x200xbf16>
    %c3_263 = arith.constant 3 : index
    %c0_264 = arith.constant 0 : index
    %c0_265 = arith.constant 0 : index
    %248 = vector.load %arg2[%c3_263, %c0_264, %c0_265] : memref<9x200x20xbf16, #tpu.memory_space<vmem>>, vector<1x200x20xbf16>
    %249 = vector.shape_cast %248 : vector<1x200x20xbf16> to vector<200x20xbf16>
    %cst_266 = arith.constant dense<0.000000e+00> : vector<16x20xf32>
    %250 = tpu.matmul %247, %249, %cst_266 {dimension_numbers = #tpu.dot_dimension_numbers<[1], [0], [0], [1], [0, 0, 1, 1], [], []>} : vector<16x200xbf16>, vector<200x20xbf16>, vector<16x20xf32> -> vector<16x20xf32>
    %251 = arith.addf %245, %250 : vector<16x20xf32>
    %c12_267 = arith.constant 12 : index
    %c0_268 = arith.constant 0 : index
    %c0_269 = arith.constant 0 : index
    %252 = vector.load %arg1[%c12_267, %c0_268, %c0_269] : memref<25x16x200xbf16, #tpu.memory_space<vmem>>, vector<1x16x200xbf16>
    %253 = vector.shape_cast %252 : vector<1x16x200xbf16> to vector<16x200xbf16>
    %c4_270 = arith.constant 4 : index
    %c0_271 = arith.constant 0 : index
    %c0_272 = arith.constant 0 : index
    %254 = vector.load %arg2[%c4_270, %c0_271, %c0_272] : memref<9x200x20xbf16, #tpu.memory_space<vmem>>, vector<1x200x20xbf16>
    %255 = vector.shape_cast %254 : vector<1x200x20xbf16> to vector<200x20xbf16>
    %cst_273 = arith.constant dense<0.000000e+00> : vector<16x20xf32>
    %256 = tpu.matmul %253, %255, %cst_273 {dimension_numbers = #tpu.dot_dimension_numbers<[1], [0], [0], [1], [0, 0, 1, 1], [], []>} : vector<16x200xbf16>, vector<200x20xbf16>, vector<16x20xf32> -> vector<16x20xf32>
    %257 = arith.addf %251, %256 : vector<16x20xf32>
    %c13_274 = arith.constant 13 : index
    %c0_275 = arith.constant 0 : index
    %c0_276 = arith.constant 0 : index
    %258 = vector.load %arg1[%c13_274, %c0_275, %c0_276] : memref<25x16x200xbf16, #tpu.memory_space<vmem>>, vector<1x16x200xbf16>
    %259 = vector.shape_cast %258 : vector<1x16x200xbf16> to vector<16x200xbf16>
    %c5_277 = arith.constant 5 : index
    %c0_278 = arith.constant 0 : index
    %c0_279 = arith.constant 0 : index
    %260 = vector.load %arg2[%c5_277, %c0_278, %c0_279] : memref<9x200x20xbf16, #tpu.memory_space<vmem>>, vector<1x200x20xbf16>
    %261 = vector.shape_cast %260 : vector<1x200x20xbf16> to vector<200x20xbf16>
    %cst_280 = arith.constant dense<0.000000e+00> : vector<16x20xf32>
    %262 = tpu.matmul %259, %261, %cst_280 {dimension_numbers = #tpu.dot_dimension_numbers<[1], [0], [0], [1], [0, 0, 1, 1], [], []>} : vector<16x200xbf16>, vector<200x20xbf16>, vector<16x20xf32> -> vector<16x20xf32>
    %263 = arith.addf %257, %262 : vector<16x20xf32>
    %c16_281 = arith.constant 16 : index
    %c0_282 = arith.constant 0 : index
    %c0_283 = arith.constant 0 : index
    %264 = vector.load %arg1[%c16_281, %c0_282, %c0_283] : memref<25x16x200xbf16, #tpu.memory_space<vmem>>, vector<1x16x200xbf16>
    %265 = vector.shape_cast %264 : vector<1x16x200xbf16> to vector<16x200xbf16>
    %c6_284 = arith.constant 6 : index
    %c0_285 = arith.constant 0 : index
    %c0_286 = arith.constant 0 : index
    %266 = vector.load %arg2[%c6_284, %c0_285, %c0_286] : memref<9x200x20xbf16, #tpu.memory_space<vmem>>, vector<1x200x20xbf16>
    %267 = vector.shape_cast %266 : vector<1x200x20xbf16> to vector<200x20xbf16>
    %cst_287 = arith.constant dense<0.000000e+00> : vector<16x20xf32>
    %268 = tpu.matmul %265, %267, %cst_287 {dimension_numbers = #tpu.dot_dimension_numbers<[1], [0], [0], [1], [0, 0, 1, 1], [], []>} : vector<16x200xbf16>, vector<200x20xbf16>, vector<16x20xf32> -> vector<16x20xf32>
    %269 = arith.addf %263, %268 : vector<16x20xf32>
    %c17_288 = arith.constant 17 : index
    %c0_289 = arith.constant 0 : index
    %c0_290 = arith.constant 0 : index
    %270 = vector.load %arg1[%c17_288, %c0_289, %c0_290] : memref<25x16x200xbf16, #tpu.memory_space<vmem>>, vector<1x16x200xbf16>
    %271 = vector.shape_cast %270 : vector<1x16x200xbf16> to vector<16x200xbf16>
    %c7_291 = arith.constant 7 : index
    %c0_292 = arith.constant 0 : index
    %c0_293 = arith.constant 0 : index
    %272 = vector.load %arg2[%c7_291, %c0_292, %c0_293] : memref<9x200x20xbf16, #tpu.memory_space<vmem>>, vector<1x200x20xbf16>
    %273 = vector.shape_cast %272 : vector<1x200x20xbf16> to vector<200x20xbf16>
    %cst_294 = arith.constant dense<0.000000e+00> : vector<16x20xf32>
    %274 = tpu.matmul %271, %273, %cst_294 {dimension_numbers = #tpu.dot_dimension_numbers<[1], [0], [0], [1], [0, 0, 1, 1], [], []>} : vector<16x200xbf16>, vector<200x20xbf16>, vector<16x20xf32> -> vector<16x20xf32>
    %275 = arith.addf %269, %274 : vector<16x20xf32>
    %c18 = arith.constant 18 : index
    %c0_295 = arith.constant 0 : index
    %c0_296 = arith.constant 0 : index
    %276 = vector.load %arg1[%c18, %c0_295, %c0_296] : memref<25x16x200xbf16, #tpu.memory_space<vmem>>, vector<1x16x200xbf16>
    %277 = vector.shape_cast %276 : vector<1x16x200xbf16> to vector<16x200xbf16>
    %c8_297 = arith.constant 8 : index
    %c0_298 = arith.constant 0 : index
    %c0_299 = arith.constant 0 : index
    %278 = vector.load %arg2[%c8_297, %c0_298, %c0_299] : memref<9x200x20xbf16, #tpu.memory_space<vmem>>, vector<1x200x20xbf16>
    %279 = vector.shape_cast %278 : vector<1x200x20xbf16> to vector<200x20xbf16>
    %cst_300 = arith.constant dense<0.000000e+00> : vector<16x20xf32>
    %280 = tpu.matmul %277, %279, %cst_300 {dimension_numbers = #tpu.dot_dimension_numbers<[1], [0], [0], [1], [0, 0, 1, 1], [], []>} : vector<16x200xbf16>, vector<200x20xbf16>, vector<16x20xf32> -> vector<16x20xf32>
    %281 = arith.addf %275, %280 : vector<16x20xf32>
    %282 = vector.broadcast %0 : vector<1x20xf32> to vector<16x20xf32>
    %283 = arith.addf %281, %282 : vector<16x20xf32>
    %cst_301 = arith.constant 0.000000e+00 : f32
    %284 = vector.broadcast %cst_301 : f32 to vector<16x20xf32>
    %285 = arith.maximumf %283, %284 : vector<16x20xf32>
    %c7_302 = arith.constant 7 : index
    %c0_303 = arith.constant 0 : index
    %c0_304 = arith.constant 0 : index
    %286 = vector.load %arg1[%c7_302, %c0_303, %c0_304] : memref<25x16x200xbf16, #tpu.memory_space<vmem>>, vector<1x16x200xbf16>
    %287 = vector.shape_cast %286 : vector<1x16x200xbf16> to vector<16x200xbf16>
    %c0_305 = arith.constant 0 : index
    %c0_306 = arith.constant 0 : index
    %c0_307 = arith.constant 0 : index
    %288 = vector.load %arg2[%c0_305, %c0_306, %c0_307] : memref<9x200x20xbf16, #tpu.memory_space<vmem>>, vector<1x200x20xbf16>
    %289 = vector.shape_cast %288 : vector<1x200x20xbf16> to vector<200x20xbf16>
    %cst_308 = arith.constant dense<0.000000e+00> : vector<16x20xf32>
    %290 = tpu.matmul %287, %289, %cst_308 {dimension_numbers = #tpu.dot_dimension_numbers<[1], [0], [0], [1], [0, 0, 1, 1], [], []>} : vector<16x200xbf16>, vector<200x20xbf16>, vector<16x20xf32> -> vector<16x20xf32>
    %c8_309 = arith.constant 8 : index
    %c0_310 = arith.constant 0 : index
    %c0_311 = arith.constant 0 : index
    %291 = vector.load %arg1[%c8_309, %c0_310, %c0_311] : memref<25x16x200xbf16, #tpu.memory_space<vmem>>, vector<1x16x200xbf16>
    %292 = vector.shape_cast %291 : vector<1x16x200xbf16> to vector<16x200xbf16>
    %c1_312 = arith.constant 1 : index
    %c0_313 = arith.constant 0 : index
    %c0_314 = arith.constant 0 : index
    %293 = vector.load %arg2[%c1_312, %c0_313, %c0_314] : memref<9x200x20xbf16, #tpu.memory_space<vmem>>, vector<1x200x20xbf16>
    %294 = vector.shape_cast %293 : vector<1x200x20xbf16> to vector<200x20xbf16>
    %cst_315 = arith.constant dense<0.000000e+00> : vector<16x20xf32>
    %295 = tpu.matmul %292, %294, %cst_315 {dimension_numbers = #tpu.dot_dimension_numbers<[1], [0], [0], [1], [0, 0, 1, 1], [], []>} : vector<16x200xbf16>, vector<200x20xbf16>, vector<16x20xf32> -> vector<16x20xf32>
    %296 = arith.addf %290, %295 : vector<16x20xf32>
    %c9_316 = arith.constant 9 : index
    %c0_317 = arith.constant 0 : index
    %c0_318 = arith.constant 0 : index
    %297 = vector.load %arg1[%c9_316, %c0_317, %c0_318] : memref<25x16x200xbf16, #tpu.memory_space<vmem>>, vector<1x16x200xbf16>
    %298 = vector.shape_cast %297 : vector<1x16x200xbf16> to vector<16x200xbf16>
    %c2_319 = arith.constant 2 : index
    %c0_320 = arith.constant 0 : index
    %c0_321 = arith.constant 0 : index
    %299 = vector.load %arg2[%c2_319, %c0_320, %c0_321] : memref<9x200x20xbf16, #tpu.memory_space<vmem>>, vector<1x200x20xbf16>
    %300 = vector.shape_cast %299 : vector<1x200x20xbf16> to vector<200x20xbf16>
    %cst_322 = arith.constant dense<0.000000e+00> : vector<16x20xf32>
    %301 = tpu.matmul %298, %300, %cst_322 {dimension_numbers = #tpu.dot_dimension_numbers<[1], [0], [0], [1], [0, 0, 1, 1], [], []>} : vector<16x200xbf16>, vector<200x20xbf16>, vector<16x20xf32> -> vector<16x20xf32>
    %302 = arith.addf %296, %301 : vector<16x20xf32>
    %c12_323 = arith.constant 12 : index
    %c0_324 = arith.constant 0 : index
    %c0_325 = arith.constant 0 : index
    %303 = vector.load %arg1[%c12_323, %c0_324, %c0_325] : memref<25x16x200xbf16, #tpu.memory_space<vmem>>, vector<1x16x200xbf16>
    %304 = vector.shape_cast %303 : vector<1x16x200xbf16> to vector<16x200xbf16>
    %c3_326 = arith.constant 3 : index
    %c0_327 = arith.constant 0 : index
    %c0_328 = arith.constant 0 : index
    %305 = vector.load %arg2[%c3_326, %c0_327, %c0_328] : memref<9x200x20xbf16, #tpu.memory_space<vmem>>, vector<1x200x20xbf16>
    %306 = vector.shape_cast %305 : vector<1x200x20xbf16> to vector<200x20xbf16>
    %cst_329 = arith.constant dense<0.000000e+00> : vector<16x20xf32>
    %307 = tpu.matmul %304, %306, %cst_329 {dimension_numbers = #tpu.dot_dimension_numbers<[1], [0], [0], [1], [0, 0, 1, 1], [], []>} : vector<16x200xbf16>, vector<200x20xbf16>, vector<16x20xf32> -> vector<16x20xf32>
    %308 = arith.addf %302, %307 : vector<16x20xf32>
    %c13_330 = arith.constant 13 : index
    %c0_331 = arith.constant 0 : index
    %c0_332 = arith.constant 0 : index
    %309 = vector.load %arg1[%c13_330, %c0_331, %c0_332] : memref<25x16x200xbf16, #tpu.memory_space<vmem>>, vector<1x16x200xbf16>
    %310 = vector.shape_cast %309 : vector<1x16x200xbf16> to vector<16x200xbf16>
    %c4_333 = arith.constant 4 : index
    %c0_334 = arith.constant 0 : index
    %c0_335 = arith.constant 0 : index
    %311 = vector.load %arg2[%c4_333, %c0_334, %c0_335] : memref<9x200x20xbf16, #tpu.memory_space<vmem>>, vector<1x200x20xbf16>
    %312 = vector.shape_cast %311 : vector<1x200x20xbf16> to vector<200x20xbf16>
    %cst_336 = arith.constant dense<0.000000e+00> : vector<16x20xf32>
    %313 = tpu.matmul %310, %312, %cst_336 {dimension_numbers = #tpu.dot_dimension_numbers<[1], [0], [0], [1], [0, 0, 1, 1], [], []>} : vector<16x200xbf16>, vector<200x20xbf16>, vector<16x20xf32> -> vector<16x20xf32>
    %314 = arith.addf %308, %313 : vector<16x20xf32>
    %c14_337 = arith.constant 14 : index
    %c0_338 = arith.constant 0 : index
    %c0_339 = arith.constant 0 : index
    %315 = vector.load %arg1[%c14_337, %c0_338, %c0_339] : memref<25x16x200xbf16, #tpu.memory_space<vmem>>, vector<1x16x200xbf16>
    %316 = vector.shape_cast %315 : vector<1x16x200xbf16> to vector<16x200xbf16>
    %c5_340 = arith.constant 5 : index
    %c0_341 = arith.constant 0 : index
    %c0_342 = arith.constant 0 : index
    %317 = vector.load %arg2[%c5_340, %c0_341, %c0_342] : memref<9x200x20xbf16, #tpu.memory_space<vmem>>, vector<1x200x20xbf16>
    %318 = vector.shape_cast %317 : vector<1x200x20xbf16> to vector<200x20xbf16>
    %cst_343 = arith.constant dense<0.000000e+00> : vector<16x20xf32>
    %319 = tpu.matmul %316, %318, %cst_343 {dimension_numbers = #tpu.dot_dimension_numbers<[1], [0], [0], [1], [0, 0, 1, 1], [], []>} : vector<16x200xbf16>, vector<200x20xbf16>, vector<16x20xf32> -> vector<16x20xf32>
    %320 = arith.addf %314, %319 : vector<16x20xf32>
    %c17_344 = arith.constant 17 : index
    %c0_345 = arith.constant 0 : index
    %c0_346 = arith.constant 0 : index
    %321 = vector.load %arg1[%c17_344, %c0_345, %c0_346] : memref<25x16x200xbf16, #tpu.memory_space<vmem>>, vector<1x16x200xbf16>
    %322 = vector.shape_cast %321 : vector<1x16x200xbf16> to vector<16x200xbf16>
    %c6_347 = arith.constant 6 : index
    %c0_348 = arith.constant 0 : index
    %c0_349 = arith.constant 0 : index
    %323 = vector.load %arg2[%c6_347, %c0_348, %c0_349] : memref<9x200x20xbf16, #tpu.memory_space<vmem>>, vector<1x200x20xbf16>
    %324 = vector.shape_cast %323 : vector<1x200x20xbf16> to vector<200x20xbf16>
    %cst_350 = arith.constant dense<0.000000e+00> : vector<16x20xf32>
    %325 = tpu.matmul %322, %324, %cst_350 {dimension_numbers = #tpu.dot_dimension_numbers<[1], [0], [0], [1], [0, 0, 1, 1], [], []>} : vector<16x200xbf16>, vector<200x20xbf16>, vector<16x20xf32> -> vector<16x20xf32>
    %326 = arith.addf %320, %325 : vector<16x20xf32>
    %c18_351 = arith.constant 18 : index
    %c0_352 = arith.constant 0 : index
    %c0_353 = arith.constant 0 : index
    %327 = vector.load %arg1[%c18_351, %c0_352, %c0_353] : memref<25x16x200xbf16, #tpu.memory_space<vmem>>, vector<1x16x200xbf16>
    %328 = vector.shape_cast %327 : vector<1x16x200xbf16> to vector<16x200xbf16>
    %c7_354 = arith.constant 7 : index
    %c0_355 = arith.constant 0 : index
    %c0_356 = arith.constant 0 : index
    %329 = vector.load %arg2[%c7_354, %c0_355, %c0_356] : memref<9x200x20xbf16, #tpu.memory_space<vmem>>, vector<1x200x20xbf16>
    %330 = vector.shape_cast %329 : vector<1x200x20xbf16> to vector<200x20xbf16>
    %cst_357 = arith.constant dense<0.000000e+00> : vector<16x20xf32>
    %331 = tpu.matmul %328, %330, %cst_357 {dimension_numbers = #tpu.dot_dimension_numbers<[1], [0], [0], [1], [0, 0, 1, 1], [], []>} : vector<16x200xbf16>, vector<200x20xbf16>, vector<16x20xf32> -> vector<16x20xf32>
    %332 = arith.addf %326, %331 : vector<16x20xf32>
    %c19 = arith.constant 19 : index
    %c0_358 = arith.constant 0 : index
    %c0_359 = arith.constant 0 : index
    %333 = vector.load %arg1[%c19, %c0_358, %c0_359] : memref<25x16x200xbf16, #tpu.memory_space<vmem>>, vector<1x16x200xbf16>
    %334 = vector.shape_cast %333 : vector<1x16x200xbf16> to vector<16x200xbf16>
    %c8_360 = arith.constant 8 : index
    %c0_361 = arith.constant 0 : index
    %c0_362 = arith.constant 0 : index
    %335 = vector.load %arg2[%c8_360, %c0_361, %c0_362] : memref<9x200x20xbf16, #tpu.memory_space<vmem>>, vector<1x200x20xbf16>
    %336 = vector.shape_cast %335 : vector<1x200x20xbf16> to vector<200x20xbf16>
    %cst_363 = arith.constant dense<0.000000e+00> : vector<16x20xf32>
    %337 = tpu.matmul %334, %336, %cst_363 {dimension_numbers = #tpu.dot_dimension_numbers<[1], [0], [0], [1], [0, 0, 1, 1], [], []>} : vector<16x200xbf16>, vector<200x20xbf16>, vector<16x20xf32> -> vector<16x20xf32>
    %338 = arith.addf %332, %337 : vector<16x20xf32>
    %339 = vector.broadcast %0 : vector<1x20xf32> to vector<16x20xf32>
    %340 = arith.addf %338, %339 : vector<16x20xf32>
    %cst_364 = arith.constant 0.000000e+00 : f32
    %341 = vector.broadcast %cst_364 : f32 to vector<16x20xf32>
    %342 = arith.maximumf %340, %341 : vector<16x20xf32>
    %c10_365 = arith.constant 10 : index
    %c0_366 = arith.constant 0 : index
    %c0_367 = arith.constant 0 : index
    %343 = vector.load %arg1[%c10_365, %c0_366, %c0_367] : memref<25x16x200xbf16, #tpu.memory_space<vmem>>, vector<1x16x200xbf16>
    %344 = vector.shape_cast %343 : vector<1x16x200xbf16> to vector<16x200xbf16>
    %c0_368 = arith.constant 0 : index
    %c0_369 = arith.constant 0 : index
    %c0_370 = arith.constant 0 : index
    %345 = vector.load %arg2[%c0_368, %c0_369, %c0_370] : memref<9x200x20xbf16, #tpu.memory_space<vmem>>, vector<1x200x20xbf16>
    %346 = vector.shape_cast %345 : vector<1x200x20xbf16> to vector<200x20xbf16>
    %cst_371 = arith.constant dense<0.000000e+00> : vector<16x20xf32>
    %347 = tpu.matmul %344, %346, %cst_371 {dimension_numbers = #tpu.dot_dimension_numbers<[1], [0], [0], [1], [0, 0, 1, 1], [], []>} : vector<16x200xbf16>, vector<200x20xbf16>, vector<16x20xf32> -> vector<16x20xf32>
    %c11_372 = arith.constant 11 : index
    %c0_373 = arith.constant 0 : index
    %c0_374 = arith.constant 0 : index
    %348 = vector.load %arg1[%c11_372, %c0_373, %c0_374] : memref<25x16x200xbf16, #tpu.memory_space<vmem>>, vector<1x16x200xbf16>
    %349 = vector.shape_cast %348 : vector<1x16x200xbf16> to vector<16x200xbf16>
    %c1_375 = arith.constant 1 : index
    %c0_376 = arith.constant 0 : index
    %c0_377 = arith.constant 0 : index
    %350 = vector.load %arg2[%c1_375, %c0_376, %c0_377] : memref<9x200x20xbf16, #tpu.memory_space<vmem>>, vector<1x200x20xbf16>
    %351 = vector.shape_cast %350 : vector<1x200x20xbf16> to vector<200x20xbf16>
    %cst_378 = arith.constant dense<0.000000e+00> : vector<16x20xf32>
    %352 = tpu.matmul %349, %351, %cst_378 {dimension_numbers = #tpu.dot_dimension_numbers<[1], [0], [0], [1], [0, 0, 1, 1], [], []>} : vector<16x200xbf16>, vector<200x20xbf16>, vector<16x20xf32> -> vector<16x20xf32>
    %353 = arith.addf %347, %352 : vector<16x20xf32>
    %c12_379 = arith.constant 12 : index
    %c0_380 = arith.constant 0 : index
    %c0_381 = arith.constant 0 : index
    %354 = vector.load %arg1[%c12_379, %c0_380, %c0_381] : memref<25x16x200xbf16, #tpu.memory_space<vmem>>, vector<1x16x200xbf16>
    %355 = vector.shape_cast %354 : vector<1x16x200xbf16> to vector<16x200xbf16>
    %c2_382 = arith.constant 2 : index
    %c0_383 = arith.constant 0 : index
    %c0_384 = arith.constant 0 : index
    %356 = vector.load %arg2[%c2_382, %c0_383, %c0_384] : memref<9x200x20xbf16, #tpu.memory_space<vmem>>, vector<1x200x20xbf16>
    %357 = vector.shape_cast %356 : vector<1x200x20xbf16> to vector<200x20xbf16>
    %cst_385 = arith.constant dense<0.000000e+00> : vector<16x20xf32>
    %358 = tpu.matmul %355, %357, %cst_385 {dimension_numbers = #tpu.dot_dimension_numbers<[1], [0], [0], [1], [0, 0, 1, 1], [], []>} : vector<16x200xbf16>, vector<200x20xbf16>, vector<16x20xf32> -> vector<16x20xf32>
    %359 = arith.addf %353, %358 : vector<16x20xf32>
    %c15_386 = arith.constant 15 : index
    %c0_387 = arith.constant 0 : index
    %c0_388 = arith.constant 0 : index
    %360 = vector.load %arg1[%c15_386, %c0_387, %c0_388] : memref<25x16x200xbf16, #tpu.memory_space<vmem>>, vector<1x16x200xbf16>
    %361 = vector.shape_cast %360 : vector<1x16x200xbf16> to vector<16x200xbf16>
    %c3_389 = arith.constant 3 : index
    %c0_390 = arith.constant 0 : index
    %c0_391 = arith.constant 0 : index
    %362 = vector.load %arg2[%c3_389, %c0_390, %c0_391] : memref<9x200x20xbf16, #tpu.memory_space<vmem>>, vector<1x200x20xbf16>
    %363 = vector.shape_cast %362 : vector<1x200x20xbf16> to vector<200x20xbf16>
    %cst_392 = arith.constant dense<0.000000e+00> : vector<16x20xf32>
    %364 = tpu.matmul %361, %363, %cst_392 {dimension_numbers = #tpu.dot_dimension_numbers<[1], [0], [0], [1], [0, 0, 1, 1], [], []>} : vector<16x200xbf16>, vector<200x20xbf16>, vector<16x20xf32> -> vector<16x20xf32>
    %365 = arith.addf %359, %364 : vector<16x20xf32>
    %c16_393 = arith.constant 16 : index
    %c0_394 = arith.constant 0 : index
    %c0_395 = arith.constant 0 : index
    %366 = vector.load %arg1[%c16_393, %c0_394, %c0_395] : memref<25x16x200xbf16, #tpu.memory_space<vmem>>, vector<1x16x200xbf16>
    %367 = vector.shape_cast %366 : vector<1x16x200xbf16> to vector<16x200xbf16>
    %c4_396 = arith.constant 4 : index
    %c0_397 = arith.constant 0 : index
    %c0_398 = arith.constant 0 : index
    %368 = vector.load %arg2[%c4_396, %c0_397, %c0_398] : memref<9x200x20xbf16, #tpu.memory_space<vmem>>, vector<1x200x20xbf16>
    %369 = vector.shape_cast %368 : vector<1x200x20xbf16> to vector<200x20xbf16>
    %cst_399 = arith.constant dense<0.000000e+00> : vector<16x20xf32>
    %370 = tpu.matmul %367, %369, %cst_399 {dimension_numbers = #tpu.dot_dimension_numbers<[1], [0], [0], [1], [0, 0, 1, 1], [], []>} : vector<16x200xbf16>, vector<200x20xbf16>, vector<16x20xf32> -> vector<16x20xf32>
    %371 = arith.addf %365, %370 : vector<16x20xf32>
    %c17_400 = arith.constant 17 : index
    %c0_401 = arith.constant 0 : index
    %c0_402 = arith.constant 0 : index
    %372 = vector.load %arg1[%c17_400, %c0_401, %c0_402] : memref<25x16x200xbf16, #tpu.memory_space<vmem>>, vector<1x16x200xbf16>
    %373 = vector.shape_cast %372 : vector<1x16x200xbf16> to vector<16x200xbf16>
    %c5_403 = arith.constant 5 : index
    %c0_404 = arith.constant 0 : index
    %c0_405 = arith.constant 0 : index
    %374 = vector.load %arg2[%c5_403, %c0_404, %c0_405] : memref<9x200x20xbf16, #tpu.memory_space<vmem>>, vector<1x200x20xbf16>
    %375 = vector.shape_cast %374 : vector<1x200x20xbf16> to vector<200x20xbf16>
    %cst_406 = arith.constant dense<0.000000e+00> : vector<16x20xf32>
    %376 = tpu.matmul %373, %375, %cst_406 {dimension_numbers = #tpu.dot_dimension_numbers<[1], [0], [0], [1], [0, 0, 1, 1], [], []>} : vector<16x200xbf16>, vector<200x20xbf16>, vector<16x20xf32> -> vector<16x20xf32>
    %377 = arith.addf %371, %376 : vector<16x20xf32>
    %c20 = arith.constant 20 : index
    %c0_407 = arith.constant 0 : index
    %c0_408 = arith.constant 0 : index
    %378 = vector.load %arg1[%c20, %c0_407, %c0_408] : memref<25x16x200xbf16, #tpu.memory_space<vmem>>, vector<1x16x200xbf16>
    %379 = vector.shape_cast %378 : vector<1x16x200xbf16> to vector<16x200xbf16>
    %c6_409 = arith.constant 6 : index
    %c0_410 = arith.constant 0 : index
    %c0_411 = arith.constant 0 : index
    %380 = vector.load %arg2[%c6_409, %c0_410, %c0_411] : memref<9x200x20xbf16, #tpu.memory_space<vmem>>, vector<1x200x20xbf16>
    %381 = vector.shape_cast %380 : vector<1x200x20xbf16> to vector<200x20xbf16>
    %cst_412 = arith.constant dense<0.000000e+00> : vector<16x20xf32>
    %382 = tpu.matmul %379, %381, %cst_412 {dimension_numbers = #tpu.dot_dimension_numbers<[1], [0], [0], [1], [0, 0, 1, 1], [], []>} : vector<16x200xbf16>, vector<200x20xbf16>, vector<16x20xf32> -> vector<16x20xf32>
    %383 = arith.addf %377, %382 : vector<16x20xf32>
    %c21 = arith.constant 21 : index
    %c0_413 = arith.constant 0 : index
    %c0_414 = arith.constant 0 : index
    %384 = vector.load %arg1[%c21, %c0_413, %c0_414] : memref<25x16x200xbf16, #tpu.memory_space<vmem>>, vector<1x16x200xbf16>
    %385 = vector.shape_cast %384 : vector<1x16x200xbf16> to vector<16x200xbf16>
    %c7_415 = arith.constant 7 : index
    %c0_416 = arith.constant 0 : index
    %c0_417 = arith.constant 0 : index
    %386 = vector.load %arg2[%c7_415, %c0_416, %c0_417] : memref<9x200x20xbf16, #tpu.memory_space<vmem>>, vector<1x200x20xbf16>
    %387 = vector.shape_cast %386 : vector<1x200x20xbf16> to vector<200x20xbf16>
    %cst_418 = arith.constant dense<0.000000e+00> : vector<16x20xf32>
    %388 = tpu.matmul %385, %387, %cst_418 {dimension_numbers = #tpu.dot_dimension_numbers<[1], [0], [0], [1], [0, 0, 1, 1], [], []>} : vector<16x200xbf16>, vector<200x20xbf16>, vector<16x20xf32> -> vector<16x20xf32>
    %389 = arith.addf %383, %388 : vector<16x20xf32>
    %c22 = arith.constant 22 : index
    %c0_419 = arith.constant 0 : index
    %c0_420 = arith.constant 0 : index
    %390 = vector.load %arg1[%c22, %c0_419, %c0_420] : memref<25x16x200xbf16, #tpu.memory_space<vmem>>, vector<1x16x200xbf16>
    %391 = vector.shape_cast %390 : vector<1x16x200xbf16> to vector<16x200xbf16>
    %c8_421 = arith.constant 8 : index
    %c0_422 = arith.constant 0 : index
    %c0_423 = arith.constant 0 : index
    %392 = vector.load %arg2[%c8_421, %c0_422, %c0_423] : memref<9x200x20xbf16, #tpu.memory_space<vmem>>, vector<1x200x20xbf16>
    %393 = vector.shape_cast %392 : vector<1x200x20xbf16> to vector<200x20xbf16>
    %cst_424 = arith.constant dense<0.000000e+00> : vector<16x20xf32>
    %394 = tpu.matmul %391, %393, %cst_424 {dimension_numbers = #tpu.dot_dimension_numbers<[1], [0], [0], [1], [0, 0, 1, 1], [], []>} : vector<16x200xbf16>, vector<200x20xbf16>, vector<16x20xf32> -> vector<16x20xf32>
    %395 = arith.addf %389, %394 : vector<16x20xf32>
    %396 = vector.broadcast %0 : vector<1x20xf32> to vector<16x20xf32>
    %397 = arith.addf %395, %396 : vector<16x20xf32>
    %cst_425 = arith.constant 0.000000e+00 : f32
    %398 = vector.broadcast %cst_425 : f32 to vector<16x20xf32>
    %399 = arith.maximumf %397, %398 : vector<16x20xf32>
    %c11_426 = arith.constant 11 : index
    %c0_427 = arith.constant 0 : index
    %c0_428 = arith.constant 0 : index
    %400 = vector.load %arg1[%c11_426, %c0_427, %c0_428] : memref<25x16x200xbf16, #tpu.memory_space<vmem>>, vector<1x16x200xbf16>
    %401 = vector.shape_cast %400 : vector<1x16x200xbf16> to vector<16x200xbf16>
    %c0_429 = arith.constant 0 : index
    %c0_430 = arith.constant 0 : index
    %c0_431 = arith.constant 0 : index
    %402 = vector.load %arg2[%c0_429, %c0_430, %c0_431] : memref<9x200x20xbf16, #tpu.memory_space<vmem>>, vector<1x200x20xbf16>
    %403 = vector.shape_cast %402 : vector<1x200x20xbf16> to vector<200x20xbf16>
    %cst_432 = arith.constant dense<0.000000e+00> : vector<16x20xf32>
    %404 = tpu.matmul %401, %403, %cst_432 {dimension_numbers = #tpu.dot_dimension_numbers<[1], [0], [0], [1], [0, 0, 1, 1], [], []>} : vector<16x200xbf16>, vector<200x20xbf16>, vector<16x20xf32> -> vector<16x20xf32>
    %c12_433 = arith.constant 12 : index
    %c0_434 = arith.constant 0 : index
    %c0_435 = arith.constant 0 : index
    %405 = vector.load %arg1[%c12_433, %c0_434, %c0_435] : memref<25x16x200xbf16, #tpu.memory_space<vmem>>, vector<1x16x200xbf16>
    %406 = vector.shape_cast %405 : vector<1x16x200xbf16> to vector<16x200xbf16>
    %c1_436 = arith.constant 1 : index
    %c0_437 = arith.constant 0 : index
    %c0_438 = arith.constant 0 : index
    %407 = vector.load %arg2[%c1_436, %c0_437, %c0_438] : memref<9x200x20xbf16, #tpu.memory_space<vmem>>, vector<1x200x20xbf16>
    %408 = vector.shape_cast %407 : vector<1x200x20xbf16> to vector<200x20xbf16>
    %cst_439 = arith.constant dense<0.000000e+00> : vector<16x20xf32>
    %409 = tpu.matmul %406, %408, %cst_439 {dimension_numbers = #tpu.dot_dimension_numbers<[1], [0], [0], [1], [0, 0, 1, 1], [], []>} : vector<16x200xbf16>, vector<200x20xbf16>, vector<16x20xf32> -> vector<16x20xf32>
    %410 = arith.addf %404, %409 : vector<16x20xf32>
    %c13_440 = arith.constant 13 : index
    %c0_441 = arith.constant 0 : index
    %c0_442 = arith.constant 0 : index
    %411 = vector.load %arg1[%c13_440, %c0_441, %c0_442] : memref<25x16x200xbf16, #tpu.memory_space<vmem>>, vector<1x16x200xbf16>
    %412 = vector.shape_cast %411 : vector<1x16x200xbf16> to vector<16x200xbf16>
    %c2_443 = arith.constant 2 : index
    %c0_444 = arith.constant 0 : index
    %c0_445 = arith.constant 0 : index
    %413 = vector.load %arg2[%c2_443, %c0_444, %c0_445] : memref<9x200x20xbf16, #tpu.memory_space<vmem>>, vector<1x200x20xbf16>
    %414 = vector.shape_cast %413 : vector<1x200x20xbf16> to vector<200x20xbf16>
    %cst_446 = arith.constant dense<0.000000e+00> : vector<16x20xf32>
    %415 = tpu.matmul %412, %414, %cst_446 {dimension_numbers = #tpu.dot_dimension_numbers<[1], [0], [0], [1], [0, 0, 1, 1], [], []>} : vector<16x200xbf16>, vector<200x20xbf16>, vector<16x20xf32> -> vector<16x20xf32>
    %416 = arith.addf %410, %415 : vector<16x20xf32>
    %c16_447 = arith.constant 16 : index
    %c0_448 = arith.constant 0 : index
    %c0_449 = arith.constant 0 : index
    %417 = vector.load %arg1[%c16_447, %c0_448, %c0_449] : memref<25x16x200xbf16, #tpu.memory_space<vmem>>, vector<1x16x200xbf16>
    %418 = vector.shape_cast %417 : vector<1x16x200xbf16> to vector<16x200xbf16>
    %c3_450 = arith.constant 3 : index
    %c0_451 = arith.constant 0 : index
    %c0_452 = arith.constant 0 : index
    %419 = vector.load %arg2[%c3_450, %c0_451, %c0_452] : memref<9x200x20xbf16, #tpu.memory_space<vmem>>, vector<1x200x20xbf16>
    %420 = vector.shape_cast %419 : vector<1x200x20xbf16> to vector<200x20xbf16>
    %cst_453 = arith.constant dense<0.000000e+00> : vector<16x20xf32>
    %421 = tpu.matmul %418, %420, %cst_453 {dimension_numbers = #tpu.dot_dimension_numbers<[1], [0], [0], [1], [0, 0, 1, 1], [], []>} : vector<16x200xbf16>, vector<200x20xbf16>, vector<16x20xf32> -> vector<16x20xf32>
    %422 = arith.addf %416, %421 : vector<16x20xf32>
    %c17_454 = arith.constant 17 : index
    %c0_455 = arith.constant 0 : index
    %c0_456 = arith.constant 0 : index
    %423 = vector.load %arg1[%c17_454, %c0_455, %c0_456] : memref<25x16x200xbf16, #tpu.memory_space<vmem>>, vector<1x16x200xbf16>
    %424 = vector.shape_cast %423 : vector<1x16x200xbf16> to vector<16x200xbf16>
    %c4_457 = arith.constant 4 : index
    %c0_458 = arith.constant 0 : index
    %c0_459 = arith.constant 0 : index
    %425 = vector.load %arg2[%c4_457, %c0_458, %c0_459] : memref<9x200x20xbf16, #tpu.memory_space<vmem>>, vector<1x200x20xbf16>
    %426 = vector.shape_cast %425 : vector<1x200x20xbf16> to vector<200x20xbf16>
    %cst_460 = arith.constant dense<0.000000e+00> : vector<16x20xf32>
    %427 = tpu.matmul %424, %426, %cst_460 {dimension_numbers = #tpu.dot_dimension_numbers<[1], [0], [0], [1], [0, 0, 1, 1], [], []>} : vector<16x200xbf16>, vector<200x20xbf16>, vector<16x20xf32> -> vector<16x20xf32>
    %428 = arith.addf %422, %427 : vector<16x20xf32>
    %c18_461 = arith.constant 18 : index
    %c0_462 = arith.constant 0 : index
    %c0_463 = arith.constant 0 : index
    %429 = vector.load %arg1[%c18_461, %c0_462, %c0_463] : memref<25x16x200xbf16, #tpu.memory_space<vmem>>, vector<1x16x200xbf16>
    %430 = vector.shape_cast %429 : vector<1x16x200xbf16> to vector<16x200xbf16>
    %c5_464 = arith.constant 5 : index
    %c0_465 = arith.constant 0 : index
    %c0_466 = arith.constant 0 : index
    %431 = vector.load %arg2[%c5_464, %c0_465, %c0_466] : memref<9x200x20xbf16, #tpu.memory_space<vmem>>, vector<1x200x20xbf16>
    %432 = vector.shape_cast %431 : vector<1x200x20xbf16> to vector<200x20xbf16>
    %cst_467 = arith.constant dense<0.000000e+00> : vector<16x20xf32>
    %433 = tpu.matmul %430, %432, %cst_467 {dimension_numbers = #tpu.dot_dimension_numbers<[1], [0], [0], [1], [0, 0, 1, 1], [], []>} : vector<16x200xbf16>, vector<200x20xbf16>, vector<16x20xf32> -> vector<16x20xf32>
    %434 = arith.addf %428, %433 : vector<16x20xf32>
    %c21_468 = arith.constant 21 : index
    %c0_469 = arith.constant 0 : index
    %c0_470 = arith.constant 0 : index
    %435 = vector.load %arg1[%c21_468, %c0_469, %c0_470] : memref<25x16x200xbf16, #tpu.memory_space<vmem>>, vector<1x16x200xbf16>
    %436 = vector.shape_cast %435 : vector<1x16x200xbf16> to vector<16x200xbf16>
    %c6_471 = arith.constant 6 : index
    %c0_472 = arith.constant 0 : index
    %c0_473 = arith.constant 0 : index
    %437 = vector.load %arg2[%c6_471, %c0_472, %c0_473] : memref<9x200x20xbf16, #tpu.memory_space<vmem>>, vector<1x200x20xbf16>
    %438 = vector.shape_cast %437 : vector<1x200x20xbf16> to vector<200x20xbf16>
    %cst_474 = arith.constant dense<0.000000e+00> : vector<16x20xf32>
    %439 = tpu.matmul %436, %438, %cst_474 {dimension_numbers = #tpu.dot_dimension_numbers<[1], [0], [0], [1], [0, 0, 1, 1], [], []>} : vector<16x200xbf16>, vector<200x20xbf16>, vector<16x20xf32> -> vector<16x20xf32>
    %440 = arith.addf %434, %439 : vector<16x20xf32>
    %c22_475 = arith.constant 22 : index
    %c0_476 = arith.constant 0 : index
    %c0_477 = arith.constant 0 : index
    %441 = vector.load %arg1[%c22_475, %c0_476, %c0_477] : memref<25x16x200xbf16, #tpu.memory_space<vmem>>, vector<1x16x200xbf16>
    %442 = vector.shape_cast %441 : vector<1x16x200xbf16> to vector<16x200xbf16>
    %c7_478 = arith.constant 7 : index
    %c0_479 = arith.constant 0 : index
    %c0_480 = arith.constant 0 : index
    %443 = vector.load %arg2[%c7_478, %c0_479, %c0_480] : memref<9x200x20xbf16, #tpu.memory_space<vmem>>, vector<1x200x20xbf16>
    %444 = vector.shape_cast %443 : vector<1x200x20xbf16> to vector<200x20xbf16>
    %cst_481 = arith.constant dense<0.000000e+00> : vector<16x20xf32>
    %445 = tpu.matmul %442, %444, %cst_481 {dimension_numbers = #tpu.dot_dimension_numbers<[1], [0], [0], [1], [0, 0, 1, 1], [], []>} : vector<16x200xbf16>, vector<200x20xbf16>, vector<16x20xf32> -> vector<16x20xf32>
    %446 = arith.addf %440, %445 : vector<16x20xf32>
    %c23 = arith.constant 23 : index
    %c0_482 = arith.constant 0 : index
    %c0_483 = arith.constant 0 : index
    %447 = vector.load %arg1[%c23, %c0_482, %c0_483] : memref<25x16x200xbf16, #tpu.memory_space<vmem>>, vector<1x16x200xbf16>
    %448 = vector.shape_cast %447 : vector<1x16x200xbf16> to vector<16x200xbf16>
    %c8_484 = arith.constant 8 : index
    %c0_485 = arith.constant 0 : index
    %c0_486 = arith.constant 0 : index
    %449 = vector.load %arg2[%c8_484, %c0_485, %c0_486] : memref<9x200x20xbf16, #tpu.memory_space<vmem>>, vector<1x200x20xbf16>
    %450 = vector.shape_cast %449 : vector<1x200x20xbf16> to vector<200x20xbf16>
    %cst_487 = arith.constant dense<0.000000e+00> : vector<16x20xf32>
    %451 = tpu.matmul %448, %450, %cst_487 {dimension_numbers = #tpu.dot_dimension_numbers<[1], [0], [0], [1], [0, 0, 1, 1], [], []>} : vector<16x200xbf16>, vector<200x20xbf16>, vector<16x20xf32> -> vector<16x20xf32>
    %452 = arith.addf %446, %451 : vector<16x20xf32>
    %453 = vector.broadcast %0 : vector<1x20xf32> to vector<16x20xf32>
    %454 = arith.addf %452, %453 : vector<16x20xf32>
    %cst_488 = arith.constant 0.000000e+00 : f32
    %455 = vector.broadcast %cst_488 : f32 to vector<16x20xf32>
    %456 = arith.maximumf %454, %455 : vector<16x20xf32>
    %c12_489 = arith.constant 12 : index
    %c0_490 = arith.constant 0 : index
    %c0_491 = arith.constant 0 : index
    %457 = vector.load %arg1[%c12_489, %c0_490, %c0_491] : memref<25x16x200xbf16, #tpu.memory_space<vmem>>, vector<1x16x200xbf16>
    %458 = vector.shape_cast %457 : vector<1x16x200xbf16> to vector<16x200xbf16>
    %c0_492 = arith.constant 0 : index
    %c0_493 = arith.constant 0 : index
    %c0_494 = arith.constant 0 : index
    %459 = vector.load %arg2[%c0_492, %c0_493, %c0_494] : memref<9x200x20xbf16, #tpu.memory_space<vmem>>, vector<1x200x20xbf16>
    %460 = vector.shape_cast %459 : vector<1x200x20xbf16> to vector<200x20xbf16>
    %cst_495 = arith.constant dense<0.000000e+00> : vector<16x20xf32>
    %461 = tpu.matmul %458, %460, %cst_495 {dimension_numbers = #tpu.dot_dimension_numbers<[1], [0], [0], [1], [0, 0, 1, 1], [], []>} : vector<16x200xbf16>, vector<200x20xbf16>, vector<16x20xf32> -> vector<16x20xf32>
    %c13_496 = arith.constant 13 : index
    %c0_497 = arith.constant 0 : index
    %c0_498 = arith.constant 0 : index
    %462 = vector.load %arg1[%c13_496, %c0_497, %c0_498] : memref<25x16x200xbf16, #tpu.memory_space<vmem>>, vector<1x16x200xbf16>
    %463 = vector.shape_cast %462 : vector<1x16x200xbf16> to vector<16x200xbf16>
    %c1_499 = arith.constant 1 : index
    %c0_500 = arith.constant 0 : index
    %c0_501 = arith.constant 0 : index
    %464 = vector.load %arg2[%c1_499, %c0_500, %c0_501] : memref<9x200x20xbf16, #tpu.memory_space<vmem>>, vector<1x200x20xbf16>
    %465 = vector.shape_cast %464 : vector<1x200x20xbf16> to vector<200x20xbf16>
    %cst_502 = arith.constant dense<0.000000e+00> : vector<16x20xf32>
    %466 = tpu.matmul %463, %465, %cst_502 {dimension_numbers = #tpu.dot_dimension_numbers<[1], [0], [0], [1], [0, 0, 1, 1], [], []>} : vector<16x200xbf16>, vector<200x20xbf16>, vector<16x20xf32> -> vector<16x20xf32>
    %467 = arith.addf %461, %466 : vector<16x20xf32>
    %c14_503 = arith.constant 14 : index
    %c0_504 = arith.constant 0 : index
    %c0_505 = arith.constant 0 : index
    %468 = vector.load %arg1[%c14_503, %c0_504, %c0_505] : memref<25x16x200xbf16, #tpu.memory_space<vmem>>, vector<1x16x200xbf16>
    %469 = vector.shape_cast %468 : vector<1x16x200xbf16> to vector<16x200xbf16>
    %c2_506 = arith.constant 2 : index
    %c0_507 = arith.constant 0 : index
    %c0_508 = arith.constant 0 : index
    %470 = vector.load %arg2[%c2_506, %c0_507, %c0_508] : memref<9x200x20xbf16, #tpu.memory_space<vmem>>, vector<1x200x20xbf16>
    %471 = vector.shape_cast %470 : vector<1x200x20xbf16> to vector<200x20xbf16>
    %cst_509 = arith.constant dense<0.000000e+00> : vector<16x20xf32>
    %472 = tpu.matmul %469, %471, %cst_509 {dimension_numbers = #tpu.dot_dimension_numbers<[1], [0], [0], [1], [0, 0, 1, 1], [], []>} : vector<16x200xbf16>, vector<200x20xbf16>, vector<16x20xf32> -> vector<16x20xf32>
    %473 = arith.addf %467, %472 : vector<16x20xf32>
    %c17_510 = arith.constant 17 : index
    %c0_511 = arith.constant 0 : index
    %c0_512 = arith.constant 0 : index
    %474 = vector.load %arg1[%c17_510, %c0_511, %c0_512] : memref<25x16x200xbf16, #tpu.memory_space<vmem>>, vector<1x16x200xbf16>
    %475 = vector.shape_cast %474 : vector<1x16x200xbf16> to vector<16x200xbf16>
    %c3_513 = arith.constant 3 : index
    %c0_514 = arith.constant 0 : index
    %c0_515 = arith.constant 0 : index
    %476 = vector.load %arg2[%c3_513, %c0_514, %c0_515] : memref<9x200x20xbf16, #tpu.memory_space<vmem>>, vector<1x200x20xbf16>
    %477 = vector.shape_cast %476 : vector<1x200x20xbf16> to vector<200x20xbf16>
    %cst_516 = arith.constant dense<0.000000e+00> : vector<16x20xf32>
    %478 = tpu.matmul %475, %477, %cst_516 {dimension_numbers = #tpu.dot_dimension_numbers<[1], [0], [0], [1], [0, 0, 1, 1], [], []>} : vector<16x200xbf16>, vector<200x20xbf16>, vector<16x20xf32> -> vector<16x20xf32>
    %479 = arith.addf %473, %478 : vector<16x20xf32>
    %c18_517 = arith.constant 18 : index
    %c0_518 = arith.constant 0 : index
    %c0_519 = arith.constant 0 : index
    %480 = vector.load %arg1[%c18_517, %c0_518, %c0_519] : memref<25x16x200xbf16, #tpu.memory_space<vmem>>, vector<1x16x200xbf16>
    %481 = vector.shape_cast %480 : vector<1x16x200xbf16> to vector<16x200xbf16>
    %c4_520 = arith.constant 4 : index
    %c0_521 = arith.constant 0 : index
    %c0_522 = arith.constant 0 : index
    %482 = vector.load %arg2[%c4_520, %c0_521, %c0_522] : memref<9x200x20xbf16, #tpu.memory_space<vmem>>, vector<1x200x20xbf16>
    %483 = vector.shape_cast %482 : vector<1x200x20xbf16> to vector<200x20xbf16>
    %cst_523 = arith.constant dense<0.000000e+00> : vector<16x20xf32>
    %484 = tpu.matmul %481, %483, %cst_523 {dimension_numbers = #tpu.dot_dimension_numbers<[1], [0], [0], [1], [0, 0, 1, 1], [], []>} : vector<16x200xbf16>, vector<200x20xbf16>, vector<16x20xf32> -> vector<16x20xf32>
    %485 = arith.addf %479, %484 : vector<16x20xf32>
    %c19_524 = arith.constant 19 : index
    %c0_525 = arith.constant 0 : index
    %c0_526 = arith.constant 0 : index
    %486 = vector.load %arg1[%c19_524, %c0_525, %c0_526] : memref<25x16x200xbf16, #tpu.memory_space<vmem>>, vector<1x16x200xbf16>
    %487 = vector.shape_cast %486 : vector<1x16x200xbf16> to vector<16x200xbf16>
    %c5_527 = arith.constant 5 : index
    %c0_528 = arith.constant 0 : index
    %c0_529 = arith.constant 0 : index
    %488 = vector.load %arg2[%c5_527, %c0_528, %c0_529] : memref<9x200x20xbf16, #tpu.memory_space<vmem>>, vector<1x200x20xbf16>
    %489 = vector.shape_cast %488 : vector<1x200x20xbf16> to vector<200x20xbf16>
    %cst_530 = arith.constant dense<0.000000e+00> : vector<16x20xf32>
    %490 = tpu.matmul %487, %489, %cst_530 {dimension_numbers = #tpu.dot_dimension_numbers<[1], [0], [0], [1], [0, 0, 1, 1], [], []>} : vector<16x200xbf16>, vector<200x20xbf16>, vector<16x20xf32> -> vector<16x20xf32>
    %491 = arith.addf %485, %490 : vector<16x20xf32>
    %c22_531 = arith.constant 22 : index
    %c0_532 = arith.constant 0 : index
    %c0_533 = arith.constant 0 : index
    %492 = vector.load %arg1[%c22_531, %c0_532, %c0_533] : memref<25x16x200xbf16, #tpu.memory_space<vmem>>, vector<1x16x200xbf16>
    %493 = vector.shape_cast %492 : vector<1x16x200xbf16> to vector<16x200xbf16>
    %c6_534 = arith.constant 6 : index
    %c0_535 = arith.constant 0 : index
    %c0_536 = arith.constant 0 : index
    %494 = vector.load %arg2[%c6_534, %c0_535, %c0_536] : memref<9x200x20xbf16, #tpu.memory_space<vmem>>, vector<1x200x20xbf16>
    %495 = vector.shape_cast %494 : vector<1x200x20xbf16> to vector<200x20xbf16>
    %cst_537 = arith.constant dense<0.000000e+00> : vector<16x20xf32>
    %496 = tpu.matmul %493, %495, %cst_537 {dimension_numbers = #tpu.dot_dimension_numbers<[1], [0], [0], [1], [0, 0, 1, 1], [], []>} : vector<16x200xbf16>, vector<200x20xbf16>, vector<16x20xf32> -> vector<16x20xf32>
    %497 = arith.addf %491, %496 : vector<16x20xf32>
    %c23_538 = arith.constant 23 : index
    %c0_539 = arith.constant 0 : index
    %c0_540 = arith.constant 0 : index
    %498 = vector.load %arg1[%c23_538, %c0_539, %c0_540] : memref<25x16x200xbf16, #tpu.memory_space<vmem>>, vector<1x16x200xbf16>
    %499 = vector.shape_cast %498 : vector<1x16x200xbf16> to vector<16x200xbf16>
    %c7_541 = arith.constant 7 : index
    %c0_542 = arith.constant 0 : index
    %c0_543 = arith.constant 0 : index
    %500 = vector.load %arg2[%c7_541, %c0_542, %c0_543] : memref<9x200x20xbf16, #tpu.memory_space<vmem>>, vector<1x200x20xbf16>
    %501 = vector.shape_cast %500 : vector<1x200x20xbf16> to vector<200x20xbf16>
    %cst_544 = arith.constant dense<0.000000e+00> : vector<16x20xf32>
    %502 = tpu.matmul %499, %501, %cst_544 {dimension_numbers = #tpu.dot_dimension_numbers<[1], [0], [0], [1], [0, 0, 1, 1], [], []>} : vector<16x200xbf16>, vector<200x20xbf16>, vector<16x20xf32> -> vector<16x20xf32>
    %503 = arith.addf %497, %502 : vector<16x20xf32>
    %c24 = arith.constant 24 : index
    %c0_545 = arith.constant 0 : index
    %c0_546 = arith.constant 0 : index
    %504 = vector.load %arg1[%c24, %c0_545, %c0_546] : memref<25x16x200xbf16, #tpu.memory_space<vmem>>, vector<1x16x200xbf16>
    %505 = vector.shape_cast %504 : vector<1x16x200xbf16> to vector<16x200xbf16>
    %c8_547 = arith.constant 8 : index
    %c0_548 = arith.constant 0 : index
    %c0_549 = arith.constant 0 : index
    %506 = vector.load %arg2[%c8_547, %c0_548, %c0_549] : memref<9x200x20xbf16, #tpu.memory_space<vmem>>, vector<1x200x20xbf16>
    %507 = vector.shape_cast %506 : vector<1x200x20xbf16> to vector<200x20xbf16>
    %cst_550 = arith.constant dense<0.000000e+00> : vector<16x20xf32>
    %508 = tpu.matmul %505, %507, %cst_550 {dimension_numbers = #tpu.dot_dimension_numbers<[1], [0], [0], [1], [0, 0, 1, 1], [], []>} : vector<16x200xbf16>, vector<200x20xbf16>, vector<16x20xf32> -> vector<16x20xf32>
    %509 = arith.addf %503, %508 : vector<16x20xf32>
    %510 = vector.broadcast %0 : vector<1x20xf32> to vector<16x20xf32>
    %511 = arith.addf %509, %510 : vector<16x20xf32>
    %cst_551 = arith.constant 0.000000e+00 : f32
    %512 = vector.broadcast %cst_551 : f32 to vector<16x20xf32>
    %513 = arith.maximumf %511, %512 : vector<16x20xf32>
    %514 = tpu.concatenate %57, %114, %171, %228, %285, %342, %399, %456, %513 in 1 : vector<16x20xf32>, vector<16x20xf32>, vector<16x20xf32>, vector<16x20xf32>, vector<16x20xf32>, vector<16x20xf32>, vector<16x20xf32>, vector<16x20xf32>, vector<16x20xf32> -> vector<16x180xf32>
    %c0_552 = arith.constant 0 : index
    %c0_553 = arith.constant 0 : index
    %515 = vector.load %arg4[%c0_552, %c0_553] : memref<180x150xf32, #tpu.memory_space<vmem>>, vector<180x150xf32>
    %cst_554 = arith.constant dense<0.000000e+00> : vector<16x150xf32>
    %516 = tpu.matmul %514, %515, %cst_554 {dimension_numbers = #tpu.dot_dimension_numbers<[1], [0], [0], [1], [0, 0, 1, 1], [], []>} : vector<16x180xf32>, vector<180x150xf32>, vector<16x150xf32> -> vector<16x150xf32>
    %c0_555 = arith.constant 0 : index
    %c0_556 = arith.constant 0 : index
    %517 = vector.load %arg5[%c0_555, %c0_556] : memref<1x150xf32, #tpu.memory_space<vmem>>, vector<1x150xf32>
    %518 = vector.broadcast %517 : vector<1x150xf32> to vector<16x150xf32>
    %519 = arith.addf %516, %518 : vector<16x150xf32>
    %cst_557 = arith.constant 0.000000e+00 : f32
    %520 = vector.broadcast %cst_557 : f32 to vector<16x150xf32>
    %521 = arith.maximumf %519, %520 : vector<16x150xf32>
    %c0_558 = arith.constant 0 : index
    %c0_559 = arith.constant 0 : index
    %522 = vector.load %arg6[%c0_558, %c0_559] : memref<150x75xf32, #tpu.memory_space<vmem>>, vector<150x75xf32>
    %cst_560 = arith.constant dense<0.000000e+00> : vector<16x75xf32>
    %523 = tpu.matmul %521, %522, %cst_560 {dimension_numbers = #tpu.dot_dimension_numbers<[1], [0], [0], [1], [0, 0, 1, 1], [], []>} : vector<16x150xf32>, vector<150x75xf32>, vector<16x75xf32> -> vector<16x75xf32>
    %c0_561 = arith.constant 0 : index
    %c0_562 = arith.constant 0 : index
    %524 = vector.load %arg7[%c0_561, %c0_562] : memref<1x75xf32, #tpu.memory_space<vmem>>, vector<1x75xf32>
    %525 = vector.broadcast %524 : vector<1x75xf32> to vector<16x75xf32>
    %526 = arith.addf %523, %525 : vector<16x75xf32>
    %cst_563 = arith.constant 0.000000e+00 : f32
    %527 = vector.broadcast %cst_563 : f32 to vector<16x75xf32>
    %528 = arith.maximumf %526, %527 : vector<16x75xf32>
    %c0_564 = arith.constant 0 : index
    %c0_565 = arith.constant 0 : index
    %529 = vector.load %arg8[%c0_564, %c0_565] : memref<75x75xf32, #tpu.memory_space<vmem>>, vector<75x75xf32>
    %cst_566 = arith.constant dense<0.000000e+00> : vector<16x75xf32>
    %530 = tpu.matmul %528, %529, %cst_566 {dimension_numbers = #tpu.dot_dimension_numbers<[1], [0], [0], [1], [0, 0, 1, 1], [], []>} : vector<16x75xf32>, vector<75x75xf32>, vector<16x75xf32> -> vector<16x75xf32>
    %c0_567 = arith.constant 0 : index
    %c0_568 = arith.constant 0 : index
    %531 = vector.load %arg9[%c0_567, %c0_568] : memref<1x75xf32, #tpu.memory_space<vmem>>, vector<1x75xf32>
    %532 = vector.broadcast %531 : vector<1x75xf32> to vector<16x75xf32>
    %533 = arith.addf %530, %532 : vector<16x75xf32>
    %cst_569 = arith.constant 0.000000e+00 : f32
    %534 = vector.broadcast %cst_569 : f32 to vector<16x75xf32>
    %535 = arith.maximumf %533, %534 : vector<16x75xf32>
    %c0_570 = arith.constant 0 : index
    %c0_571 = arith.constant 0 : index
    %536 = vector.load %arg10[%c0_570, %c0_571] : memref<75x128xf32, #tpu.memory_space<vmem>>, vector<75x128xf32>
    %cst_572 = arith.constant dense<0.000000e+00> : vector<16x128xf32>
    %537 = tpu.matmul %535, %536, %cst_572 {dimension_numbers = #tpu.dot_dimension_numbers<[1], [0], [0], [1], [0, 0, 1, 1], [], []>} : vector<16x75xf32>, vector<75x128xf32>, vector<16x128xf32> -> vector<16x128xf32>
    %c0_573 = arith.constant 0 : index
    %c0_574 = arith.constant 0 : index
    %538 = vector.load %arg11[%c0_573, %c0_574] : memref<1x128xf32, #tpu.memory_space<vmem>>, vector<1x128xf32>
    %539 = vector.broadcast %538 : vector<1x128xf32> to vector<16x128xf32>
    %540 = arith.addf %537, %539 : vector<16x128xf32>
    %c0_575 = arith.constant 0 : index
    %c0_576 = arith.constant 0 : index
    %541 = vector.load %arg12[%c0_575, %c0_576] : memref<16x128xf32, #tpu.memory_space<vmem>>, vector<16x128xf32>
    tpu.vector_store %arg12[%c0_575, %c0_576], %540 {strides = array<i32>} : memref<16x128xf32, #tpu.memory_space<vmem>>, vector<16x128xf32>,
    return
  }
  func.func @transform_0(%arg0: i32) -> (i32, i32, i32) {
    %c0_i32 = arith.constant 0 : i32
    %c0_i32_0 = arith.constant 0 : i32
    %c0_i32_1 = arith.constant 0 : i32
    return %c0_i32, %arg0, %c0_i32_0 : i32, i32, i32
  }
  func.func @transform_1(%arg0: i32) -> (i32, i32, i32) {
    %c0_i32 = arith.constant 0 : i32
    %c0_i32_0 = arith.constant 0 : i32
    %c0_i32_1 = arith.constant 0 : i32
    %c0_i32_2 = arith.constant 0 : i32
    return %c0_i32, %c0_i32_0, %c0_i32_1 : i32, i32, i32
  }
  func.func @transform_2(%arg0: i32) -> (i32, i32) {
    %c0_i32 = arith.constant 0 : i32
    %c0_i32_0 = arith.constant 0 : i32
    %c0_i32_1 = arith.constant 0 : i32
    return %c0_i32, %c0_i32_0 : i32, i32
  }
  func.func @transform_3(%arg0: i32) -> (i32, i32) {
    %c0_i32 = arith.constant 0 : i32
    %c0_i32_0 = arith.constant 0 : i32
    %c0_i32_1 = arith.constant 0 : i32
    return %c0_i32, %c0_i32_0 : i32, i32
  }
  func.func @transform_4(%arg0: i32) -> (i32, i32) {
    %c0_i32 = arith.constant 0 : i32
    %c0_i32_0 = arith.constant 0 : i32
    %c0_i32_1 = arith.constant 0 : i32
    return %c0_i32, %c0_i32_0 : i32, i32
  }
  func.func @transform_5(%arg0: i32) -> (i32, i32) {
    %c0_i32 = arith.constant 0 : i32
    %c0_i32_0 = arith.constant 0 : i32
    %c0_i32_1 = arith.constant 0 : i32
    return %c0_i32, %c0_i32_0 : i32, i32
  }
  func.func @transform_6(%arg0: i32) -> (i32, i32) {
    %c0_i32 = arith.constant 0 : i32
    %c0_i32_0 = arith.constant 0 : i32
    %c0_i32_1 = arith.constant 0 : i32
    return %c0_i32, %c0_i32_0 : i32, i32
  }
  func.func @transform_7(%arg0: i32) -> (i32, i32) {
    %c0_i32 = arith.constant 0 : i32
    %c0_i32_0 = arith.constant 0 : i32
    %c0_i32_1 = arith.constant 0 : i32
    return %c0_i32, %c0_i32_0 : i32, i32
  }
  func.func @transform_8(%arg0: i32) -> (i32, i32) {
    %c0_i32 = arith.constant 0 : i32
    %c0_i32_0 = arith.constant 0 : i32
    %c0_i32_1 = arith.constant 0 : i32
    return %c0_i32, %c0_i32_0 : i32, i32
  }
  func.func @transform_9(%arg0: i32) -> (i32, i32) {
    %c0_i32 = arith.constant 0 : i32
    %c0_i32_0 = arith.constant 0 : i32
    %c0_i32_1 = arith.constant 0 : i32
    return %c0_i32, %c0_i32_0 : i32, i32
  }
  func.func @transform_10(%arg0: i32) -> (i32, i32) {
    %c0_i32 = arith.constant 0 : i32
    %c0_i32_0 = arith.constant 0 : i32
    %c0_i32_1 = arith.constant 0 : i32
    return %c0_i32, %c0_i32_0 : i32, i32
  }
  func.func @transform_11(%arg0: i32) -> (i32, i32) {
    %c0_i32 = arith.constant 0 : i32
    %c0_i32_0 = arith.constant 0 : i32
    return %arg0, %c0_i32 : i32, i32
  }
}

</mosaic_0001>

<bundles_post_ra>
// kernel: hamida_forward.1
= control target key start
LH: loop header
LB: loop body
LE: loop exit
PB: predicated region body
PF: predicated region fallthrough
CT: control target
= control target key end

     0   :  { %v12642_v0 = vmov 0   ;;  %vm180_vm0 = vcmask 588800   ;;  %vm184_vm1 = vcmask 1043456   ;;  %s6818_s24 = smov 20   ;;  %s6819_s19 = smov 40   ;;  %vm4904_vm2 = vcmask 162816   ;;  %s12585_s1 = inlined_call_operand.vmem [shape: bf16[9,200,20], index: 1, kind: input, shape index: {}]   ;;  %s12586_s0 = inlined_call_operand.vmem [shape: bf16[25,16,200], index: 0, kind: input, shape index: {}]   ;;  %s12587_s2 = inlined_call_operand.vmem [shape: f32[1,20], index: 2, kind: input, shape index: {}]   ;;  %s12588_s3 = inlined_call_operand.vmem [shape: f32[180,150], index: 3, kind: input, shape index: {}]   ;;  %s12589_s5 = inlined_call_operand.vmem [shape: f32[150,75], index: 5, kind: input, shape index: {}]   ;;  %s12590_s7 = inlined_call_operand.vmem [shape: f32[75,75], index: 7, kind: input, shape index: {}]   ;;  %s12591_s4 = inlined_call_operand.vmem [shape: f32[1,150], index: 4, kind: input, shape index: {}]   ;;  %s12592_s9 = inlined_call_operand.vmem [shape: f32[75,128], index: 9, kind: input, shape index: {}]   ;;  %s12593_s6 = inlined_call_operand.vmem [shape: f32[1,75], index: 6, kind: input, shape index: {}]   ;;  %s12594_s8 = inlined_call_operand.vmem [shape: f32[1,75], index: 8, kind: input, shape index: {}]   ;;  %s12595_s10 = inlined_call_operand.vmem [shape: f32[1,128], index: 10, kind: input, shape index: {}]   ;;  %s12596_s11 = inlined_call_operand.vmem [shape: f32[16,128], index: 11, kind: output, shape index: {}]  }
   0x1   :  { %188 = vmatprep.subr.bf16.mxu0 %v12642_v0  ;;  %319 = vmatprep.subr.bf16.mxu1 %v12642_v0  ;;  %v6136_v1 = vld [vmem:[%s12585_s1 + $0x64] sm:$0xff]   ;;  %v6138_v3 = vld [vmem:[%s12585_s1 + $0x6c] sm:$0xff]   ;;  %v6140_v5 = vld [vmem:[%s12585_s1 + $0x74] sm:$0xff]   ;;  %s6821_s30 = smov 80   ;;  %s6822_s22 = smov 100   ;;  %vm4907_vm3 = vcmask 326656  }
   0x2   :  { %v6137_v2 = vld [vmem:[%s12585_s1] sm:$0xff]   ;;  %189 = vmatpush1.bf16.msra.mxu0 %v6136_v1  ;;  %v6139_v4 = vld [vmem:[%s12585_s1 + $0x8] sm:$0xff]   ;;  %v6141_v6 = vld [vmem:[%s12585_s1 + $0x10] sm:$0xff]   ;;  %s6823_s16 = smov 120   ;;  %vm4910_vm4 = vcmask 490496   ;;  %vm4913_vm5 = vcmask 654336  }
   0x3   :  { %320 = vmatpush1.bf16.msra.mxu1 %v6137_v2  ;;  %190 = vmatprep.subr.bf16.mxu0 %v12642_v0  ;;  %v6142_v7 = vld [vmem:[%s12585_s1 + $0x7c] sm:$0xff]   ;;  %v6144_v9 = vld [vmem:[%s12585_s1 + $0x84] sm:$0xff]   ;;  %v6146_v11 = vld [vmem:[%s12585_s1 + $0x8c] sm:$0xff]   ;;  %vm4922_vm6 = vcmask 97280   ;;  %vm4916_vm7 = vcmask 818176   ;;  %vm4925_vm8 = vcmask 261120  }
   0x4   :  { %321 = vmatprep.subr.bf16.mxu1 %v12642_v0  ;;  %v6143_v8 = vld [vmem:[%s12585_s1 + $0x18] sm:$0xff]   ;;  %v6145_v10 = vld [vmem:[%s12585_s1 + $0x20] sm:$0xff]   ;;  %v6147_v12 = vld [vmem:[%s12585_s1 + $0x28] sm:$0xff]   ;;  %vm4919_vm9 = vcmask 982016   ;;  %vm4986_vm10 = vcmask 424960   ;;  %vm5113_vm11 = vcmask 1045504  }
   0x5   :  { %v6148_v13 = vld [vmem:[%s12585_s1 + $0x94] sm:$0xff]   ;;  %v6150_v15 = vld [vmem:[%s12585_s1 + $0x9c] sm:$0xff]   ;;  %v6167_v18 = vld [vmem:[%s12586_s0 + $0x4] ss:$8 sps:$4 sm:$0xff]   ;;  %vm5106_vm12 = vcmask 179200   ;;  %vm5218_vm13 = vcmask 1042432  }
   0x6   :  { %191 = vmatpush1.bf16.msra.mxu0 %v6138_v3  ;;  %v6149_v14 = vld [vmem:[%s12585_s1 + $0x30] sm:$0xff]   ;;  %v6151_v17 = vld [vmem:[%s12585_s1 + $0x38] sm:$0xff]   ;;  %5464 = vmatprep.mubr.msk.bf16.mxu1 %vm180_vm0, %v6167_v18  ;;  %v6152_v19 = vld [vmem:[%s12585_s1 + $0xa4] sm:$0xff]   ;;  %vm6828_vm14 = vmmov 1  }
   0x7   :  { %322 = vmatpush1.bf16.msra.mxu1 %v6139_v4  ;;  %192 = vmatprep.subr.bf16.mxu0 %v12642_v0  ;;  %v6164_v16 = vld [vmem:[%s12586_s0 + $0x14] ss:$8 sps:$4 sm:$0xff]   ;;  %v6153_v20 = vld [vmem:[%s12585_s1 + $0x40] sm:$0xff]   ;;  %v6154_v21 = vld [vmem:[%s12585_s1 + $0xac] sm:$0xff]  }
   0x8   :  { %323 = vmatprep.subr.bf16.mxu1 %v12642_v0  ;;  %5448 = vmatprep.mubr.msk.bf16.mxu0 %vm180_vm0, %v6164_v16  ;;  %v6155_v22 = vld [vmem:[%s12585_s1 + $0x48] sm:$0xff]   ;;  %v6156_v23 = vld [vmem:[%s12585_s1 + $0xb4] sm:$0xff]   ;;  %v6158_v25 = vld [vmem:[%s12585_s1 + $0xbc] sm:$0xff]  }
   0x9   :  { %v6157_v24 = vld [vmem:[%s12585_s1 + $0x50] sm:$0xff]   ;;  %v6160_v26 = vld [vmem:[%s12585_s1 + $0xc4] ss:$0 sps:$4 sm:$0xff]   ;;  %v6159_v27 = vld [vmem:[%s12585_s1 + $0x58] sm:$0xff]  }
   0xa   :  { %193 = vmatpush1.bf16.msra.mxu0 %v6140_v5  ;;  %v6161_v28 = vld [vmem:[%s12585_s1 + $0x60] ss:$0 sps:$4 sm:$0xff]   ;;  %v7000_v29 = vsel %vm184_vm1, %v6160_v26, 0  ;;  %v6162_v30 = vld [vmem:[%s12586_s0 + $0x10] ss:$8 sps:$4 sm:$0xff]   ;;  %v6168_v33 = vld [vmem:[%s12585_s1 + $0xc8] sm:$0xff]  }
   0xb   :  { %324 = vmatpush1.bf16.msra.mxu1 %v6141_v6  ;;  %194 = vmatprep.subr.bf16.mxu0 %v12642_v0  ;;  %12829 = vst [vmem:[#allocation2_spill] sm:$0xff] %v7000_v29  ;;  %v7008_v31 = vsel %vm184_vm1, %v6161_v28, 0  ;;  %v6165_v32 = vld [vmem:[%s12586_s0] ss:$8 sps:$4 sm:$0xff]   ;;  %v6169_v34 = vld [vmem:[%s12585_s1 + $0x12c] sm:$0xff]   ;;  %v6171_v37 = vld [vmem:[%s12585_s1 + $0x134] sm:$0xff]  }
   0xc   :  { %325 = vmatprep.subr.bf16.mxu1 %v12642_v0  ;;  %12830 = vst [vmem:[#allocation3_spill] sm:$0xff] %v7008_v31  ;;  %v6170_v35 = vld [vmem:[%s12585_s1 + $0xd0] sm:$0xff]   ;;  %v7029_v36 = vld [vmem:[%s12586_s0 + $0x24] ss:$8 sps:$4 sm:$0xff]   ;;  %v7045_v39 = vld [vmem:[%s12585_s1 + $0xd8] sm:$0xff]  }
   0xd   :  { %v6197_v38 = vld [vmem:[%s12586_s0 + $0x54] ss:$8 sps:$4 sm:$0xff]   ;;  %v7056_v41 = vld [vmem:[%s12585_s1 + $0xe0] sm:$0xff]   ;;  %v7067_v43 = vld [vmem:[%s12585_s1 + $0xe8] sm:$0xff]  }
   0xe   :  { %195 = vmatpush1.bf16.msra.mxu0 %v6142_v7  ;;  %v6173_v40 = vld [vmem:[%s12585_s1 + $0x13c] sm:$0xff]   ;;  %v6175_v42 = vld [vmem:[%s12585_s1 + $0x144] sm:$0xff]   ;;  %v6177_v44 = vld [vmem:[%s12585_s1 + $0x14c] sm:$0xff]  }
   0xf   :  { %326 = vmatpush1.bf16.msra.mxu1 %v6143_v8  ;;  %196 = vmatprep.subr.bf16.mxu0 %v12642_v0  ;;  %v7078_v45 = vld [vmem:[%s12585_s1 + $0xf0] sm:$0xff]   ;;  %v7089_v47 = vld [vmem:[%s12585_s1 + $0xf8] sm:$0xff]   ;;  %v7100_v49 = vld [vmem:[%s12585_s1 + $0x100] sm:$0xff]  }
  0x10   :  { %327 = vmatprep.subr.bf16.mxu1 %v12642_v0  ;;  %v6179_v46 = vld [vmem:[%s12585_s1 + $0x154] sm:$0xff]   ;;  %v6181_v48 = vld [vmem:[%s12585_s1 + $0x15c] sm:$0xff]   ;;  %v6183_v50 = vld [vmem:[%s12585_s1 + $0x164] sm:$0xff]  }
  0x11   :  { %v7111_v51 = vld [vmem:[%s12585_s1 + $0x108] sm:$0xff]   ;;  %v7122_v53 = vld [vmem:[%s12585_s1 + $0x110] sm:$0xff]   ;;  %v7135_v55 = vld [vmem:[%s12585_s1 + $0x118] sm:$0xff]  }
  0x12   :  { %197 = vmatpush1.bf16.msra.mxu0 %v6144_v9  ;;  %v6185_v52 = vld [vmem:[%s12585_s1 + $0x16c] sm:$0xff]   ;;  %v7128_v54 = vld [vmem:[%s12585_s1 + $0x174] sm:$0xff]   ;;  %v7142_v56 = vld [vmem:[%s12585_s1 + $0x17c] sm:$0xff]  }
  0x13   :  { %328 = vmatpush1.bf16.msra.mxu1 %v6145_v10  ;;  %198 = vmatprep.subr.bf16.mxu0 %v12642_v0  ;;  %v7148_v57 = vld [vmem:[%s12585_s1 + $0x120] sm:$0xff]   ;;  %v6192_v58 = vld [vmem:[%s12585_s1 + $0x128] ss:$0 sps:$4 sm:$0xff]   ;;  %v6193_v60 = vld [vmem:[%s12585_s1 + $0x18c] ss:$0 sps:$4 sm:$0xff]  }
  0x14   :  { %329 = vmatprep.subr.bf16.mxu1 %v12642_v0  ;;  %v7159_v59 = vld [vmem:[%s12585_s1 + $0x184] sm:$0xff]   ;;  %v7167_v61 = vsel %vm184_vm1, %v6192_v58, 0  ;;  %v7178_v63 = vsel %vm184_vm1, %v6193_v60, 0  ;;  %v6199_v1 = vld [vmem:[%s12586_s0 + $0x50] ss:$8 sps:$4 sm:$0xff]   ;;  %v7219_v7 = vld [vmem:[%s12585_s1 + $0x1fc] sm:$0xff]  }
  0x15   :  { %12831 = vst [vmem:[#allocation4_spill] sm:$0xff] %v7167_v61  ;;  %v7174_v62 = vld [vmem:[%s12586_s0 + $0x20] ss:$8 sps:$4 sm:$0xff]   ;;  %v7187_v2 = vld [vmem:[%s12585_s1 + $0x190] sm:$0xff]   ;;  %v7200_v4 = vld [vmem:[%s12586_s0 + $0x64] ss:$8 sps:$4 sm:$0xff]  }
  0x16   :  { %199 = vmatpush1.bf16.msra.mxu0 %v6146_v11  ;;  %v7194_v3 = vld [vmem:[%s12585_s1 + $0x1f4] sm:$0xff]   ;;  %v7230_v8 = vld [vmem:[%s12585_s1 + $0x1a0] sm:$0xff]   ;;  %v7244_v10 = vld [vmem:[%s12585_s1 + $0x1a8] sm:$0xff]  }
  0x17   :  { %330 = vmatpush1.bf16.msra.mxu1 %v6147_v12  ;;  %200 = vmatprep.subr.bf16.mxu0 %v12642_v0  ;;  %v7206_v5 = vld [vmem:[%s12586_s0 + $0x74] ss:$8 sps:$4 sm:$0xff]   ;;  %v7237_v9 = vld [vmem:[%s12585_s1 + $0x204] sm:$0xff]   ;;  %v7251_v11 = vld [vmem:[%s12585_s1 + $0x20c] sm:$0xff]  }
  0x18   :  { %331 = vmatprep.subr.bf16.mxu1 %v12642_v0  ;;  %v7212_v6 = vld [vmem:[%s12585_s1 + $0x198] sm:$0xff]   ;;  %v7258_v12 = vld [vmem:[%s12585_s1 + $0x1b0] sm:$0xff]   ;;  %v7285_v16 = vld [vmem:[%s12585_s1 + $0x1c0] sm:$0xff]  }
  0x19   :  { %v7299_v18 = vld [vmem:[%s12585_s1 + $0x1c8] sm:$0xff]   ;;  %v6224_v28 = vld [vmem:[%s12585_s1 + $0x1f0] ss:$0 sps:$4 sm:$0xff]   ;;  %v7458_v58 = vld [vmem:[%s12585_s1 + $0x2d4] sm:$0xff]  }
  0x1a   :  { %201 = vmatpush1.bf16.msra.mxu0 %v6148_v13  ;;  %v7265_v13 = vld [vmem:[%s12585_s1 + $0x214] sm:$0xff]   ;;  %v7356_v26 = vld [vmem:[%s12585_s1 + $0x1e8] sm:$0xff]   ;;  %12838 = vst [vmem:[#allocation11_spill] sm:$0xff] %v7458_v58  ;;  %vm12524_vm15 = vmpackc.low %vm5218_vm13, %vm6828_vm14 }
  0x1b   :  { %332 = vmatpush1.bf16.msra.mxu1 %v6149_v14  ;;  %202 = vmatprep.subr.bf16.mxu0 %v12642_v0  ;;  %v7271_v14 = vld [vmem:[%s12585_s1 + $0x1b8] sm:$0xff]  }
  0x1c   :  { %333 = vmatprep.subr.bf16.mxu1 %v12642_v0  ;;  %v7465_v60 = vld [vmem:[%s12585_s1 + $0x278] sm:$0xff]  }
  0x1e   :  { %203 = vmatpush1.bf16.msra.mxu0 %v6150_v15  ;;  %v7277_v15 = vld [vmem:[%s12585_s1 + $0x21c] sm:$0xff]  }
  0x1f   :  { %334 = vmatpush1.bf16.msra.mxu1 %v6151_v17  ;;  %204 = vmatprep.subr.bf16.mxu0 %v12642_v0  ;;  %v7290_v17 = vld [vmem:[%s12585_s1 + $0x224] sm:$0xff]  }
  0x20   :  { %335 = vmatprep.subr.bf16.mxu1 %v12642_v0 }
  0x22   :  { %205 = vmatpush1.bf16.msra.mxu0 %v6152_v19  ;;  %v7307_v19 = vld [vmem:[%s12585_s1 + $0x22c] sm:$0xff]  }
  0x23   :  { %336 = vmatpush1.bf16.msra.mxu1 %v6153_v20  ;;  %206 = vmatprep.subr.bf16.mxu0 %v12642_v0  ;;  %v7313_v20 = vld [vmem:[%s12585_s1 + $0x1d0] sm:$0xff]  }
  0x24   :  { %337 = vmatprep.subr.bf16.mxu1 %v12642_v0 }
  0x26   :  { %207 = vmatpush1.bf16.msra.mxu0 %v6154_v21  ;;  %v7318_v21 = vld [vmem:[%s12585_s1 + $0x234] sm:$0xff]  }
  0x27   :  { %338 = vmatpush1.bf16.msra.mxu1 %v6155_v22  ;;  %208 = vmatprep.subr.bf16.mxu0 %v12642_v0  ;;  %v7328_v22 = vld [vmem:[%s12585_s1 + $0x1d8] sm:$0xff]  }
  0x28   :  { %339 = vmatprep.subr.bf16.mxu1 %v12642_v0 }
  0x2a   :  { %209 = vmatpush1.bf16.msra.mxu0 %v6156_v23  ;;  %v7335_v23 = vld [vmem:[%s12585_s1 + $0x23c] sm:$0xff]  }
  0x2b   :  { %340 = vmatpush1.bf16.msra.mxu1 %v6157_v24  ;;  %210 = vmatprep.subr.bf16.mxu0 %v12642_v0  ;;  %v7342_v24 = vld [vmem:[%s12585_s1 + $0x1e0] sm:$0xff]  }
  0x2c   :  { %341 = vmatprep.subr.bf16.mxu1 %v12642_v0 }
  0x2e   :  { %211 = vmatpush1.bf16.msra.mxu0 %v6158_v25  ;;  %v7349_v25 = vld [vmem:[%s12585_s1 + $0x244] sm:$0xff]  }
  0x2f   :  { %342 = vmatpush1.bf16.msra.mxu1 %v6159_v27  ;;  %212 = vmatprep.subr.bf16.mxu0 %v12642_v0  ;;  %12832 = vst [vmem:[#allocation5_spill] sm:$0xff] %v7349_v25  ;;  %v7363_v27 = vld [vmem:[%s12585_s1 + $0x24c] sm:$0xff]  }
  0x30   :  { %343 = vmatprep.subr.bf16.mxu1 %v12642_v0  ;;  %12833 = vst [vmem:[#allocation6_spill] sm:$0xff] %v7363_v27 }
  0x32   :  { %213 = vmatpush1.bf16.msra.mxu0 %v7000_v29 }
  0x33   :  { %344 = vmatpush1.bf16.msra.mxu1 %v7008_v31  ;;  %479 = vmatprep.subr.bf16.mxu0 %v12642_v0 }
  0x34   :  { %641 = vmatprep.subr.bf16.mxu1 %v12642_v0 }
  0x35   :  { %221 = vmatmul.mubr.bf16.vlgmr.msra.gmra.mrb[0].mxu0 %v6162_v30  ;;  %v6225_v30 = vld [vmem:[%s12585_s1 + $0x254] ss:$0 sps:$4 sm:$0xff]  }
  0x36   :  { %352 = vmatmul.mubr.bf16.vlgmr.msra.gmra.mrb[0].mxu1 %v6165_v32  ;;  %480 = vmatpush1.bf16.msra.mxu0 %v6168_v33  ;;  %v7376_v32 = vsel %vm184_vm1, %v6224_v28, 0  ;;  %v7380_v33 = vsel %vm184_vm1, %v6225_v30, 0  ;;  %v7479_v28 = vld [vmem:[%s12585_s1 + $0x280] sm:$0xff]  }
  0x37   :  { %642 = vmatpush1.bf16.msra.mxu1 %v6169_v34  ;;  %481 = vmatprep.subr.bf16.mxu0 %v12642_v0  ;;  %12834 = vst [vmem:[#allocation7_spill] sm:$0xff] %v7380_v33  ;;  %v7385_v34 = vld [vmem:[%s12586_s0 + $0x60] ss:$8 sps:$4 sm:$0xff]  }
  0x38   :  { %643 = vmatprep.subr.bf16.mxu1 %v12642_v0  ;;  %5507 = vmatprep.mubr.msk.bf16.mxu0 %vm180_vm0, %v7029_v36  ;;  %v7486_v30 = vld [vmem:[%s12585_s1 + $0x2e4] sm:$0xff]  }
  0x39   :  { %5550 = vmatprep.mubr.msk.bf16.mxu1 %vm180_vm0, %v6197_v38  ;;  %v7403_v38 = vld [vmem:[%s12585_s1 + $0x2bc] sm:$0xff]   ;;  %12840 = vst [vmem:[#allocation13_spill] sm:$0xff] %v7486_v30 }
  0x3a   :  { %482 = vmatpush1.bf16.msra.mxu0 %v6170_v35  ;;  %v7391_v35 = vld [vmem:[%s12586_s0 + $0x70] ss:$8 sps:$4 sm:$0xff]   ;;  %12835 = vst [vmem:[#allocation8_spill] sm:$0xff] %v7403_v38 }
  0x3b   :  { %644 = vmatpush1.bf16.msra.mxu1 %v6171_v37  ;;  %483 = vmatprep.subr.bf16.mxu0 %v12642_v0  ;;  %v7396_v37 = vld [vmem:[%s12585_s1 + $0x258] sm:$0xff]  }
  0x3c   :  { %645 = vmatprep.subr.bf16.mxu1 %v12642_v0 }
  0x3e   :  { %484 = vmatpush1.bf16.msra.mxu0 %v7045_v39 }
  0x3f   :  { %646 = vmatpush1.bf16.msra.mxu1 %v6173_v40  ;;  %485 = vmatprep.subr.bf16.mxu0 %v12642_v0  ;;  %v6258_v40 = vld [vmem:[%s12586_s0 + $0xa4] ss:$8 sps:$4 sm:$0xff]  }
  0x40   :  { %647 = vmatprep.subr.bf16.mxu1 %v12642_v0 }
  0x42   :  { %486 = vmatpush1.bf16.msra.mxu0 %v7056_v41 }
  0x43   :  { %648 = vmatpush1.bf16.msra.mxu1 %v6175_v42  ;;  %487 = vmatprep.subr.bf16.mxu0 %v12642_v0  ;;  %v7413_v42 = vld [vmem:[%s12586_s0 + $0xb4] ss:$8 sps:$4 sm:$0xff]  }
  0x44   :  { %649 = vmatprep.subr.bf16.mxu1 %v12642_v0 }
  0x46   :  { %488 = vmatpush1.bf16.msra.mxu0 %v7067_v43 }
  0x47   :  { %650 = vmatpush1.bf16.msra.mxu1 %v6177_v44  ;;  %489 = vmatprep.subr.bf16.mxu0 %v12642_v0  ;;  %v7420_v44 = vld [vmem:[%s12585_s1 + $0x260] sm:$0xff]  }
  0x48   :  { %651 = vmatprep.subr.bf16.mxu1 %v12642_v0 }
  0x4a   :  { %490 = vmatpush1.bf16.msra.mxu0 %v7078_v45 }
  0x4b   :  { %652 = vmatpush1.bf16.msra.mxu1 %v6179_v46  ;;  %491 = vmatprep.subr.bf16.mxu0 %v12642_v0  ;;  %v7427_v46 = vld [vmem:[%s12585_s1 + $0x2c4] sm:$0xff]  }
  0x4c   :  { %653 = vmatprep.subr.bf16.mxu1 %v12642_v0  ;;  %12836 = vst [vmem:[#allocation9_spill] sm:$0xff] %v7427_v46 }
  0x4e   :  { %492 = vmatpush1.bf16.msra.mxu0 %v7089_v47 }
  0x4f   :  { %654 = vmatpush1.bf16.msra.mxu1 %v6181_v48  ;;  %493 = vmatprep.subr.bf16.mxu0 %v12642_v0  ;;  %v7437_v48 = vld [vmem:[%s12585_s1 + $0x268] sm:$0xff]  }
  0x50   :  { %655 = vmatprep.subr.bf16.mxu1 %v12642_v0 }
  0x52   :  { %494 = vmatpush1.bf16.msra.mxu0 %v7100_v49 }
  0x53   :  { %656 = vmatpush1.bf16.msra.mxu1 %v6183_v50  ;;  %495 = vmatprep.subr.bf16.mxu0 %v12642_v0  ;;  %v7444_v50 = vld [vmem:[%s12585_s1 + $0x2cc] sm:$0xff]  }
  0x54   :  { %657 = vmatprep.subr.bf16.mxu1 %v12642_v0  ;;  %12837 = vst [vmem:[#allocation10_spill] sm:$0xff] %v7444_v50 }
  0x56   :  { %496 = vmatpush1.bf16.msra.mxu0 %v7111_v51 }
  0x57   :  { %658 = vmatpush1.bf16.msra.mxu1 %v6185_v52  ;;  %497 = vmatprep.subr.bf16.mxu0 %v12642_v0  ;;  %v7451_v52 = vld [vmem:[%s12585_s1 + $0x270] sm:$0xff]  }
  0x58   :  { %659 = vmatprep.subr.bf16.mxu1 %v12642_v0 }
  0x5a   :  { %498 = vmatpush1.bf16.msra.mxu0 %v7122_v53 }
  0x5b   :  { %660 = vmatpush1.bf16.msra.mxu1 %v7128_v54  ;;  %499 = vmatprep.subr.bf16.mxu0 %v12642_v0 }
  0x5c   :  { %661 = vmatprep.subr.bf16.mxu1 %v12642_v0 }
  0x5e   :  { %500 = vmatpush1.bf16.msra.mxu0 %v7135_v55 }
  0x5f   :  { %662 = vmatpush1.bf16.msra.mxu1 %v7142_v56  ;;  %501 = vmatprep.subr.bf16.mxu0 %v12642_v0 }
  0x60   :  { %663 = vmatprep.subr.bf16.mxu1 %v12642_v0 }
  0x62   :  { %502 = vmatpush1.bf16.msra.mxu0 %v7148_v57 }
  0x63   :  { %664 = vmatpush1.bf16.msra.mxu1 %v7159_v59  ;;  %503 = vmatprep.subr.bf16.mxu0 %v12642_v0 }
  0x64   :  { %665 = vmatprep.subr.bf16.mxu1 %v12642_v0 }
  0x66   :  { %504 = vmatpush1.bf16.msra.mxu0 %v7167_v61 }
  0x67   :  { %666 = vmatpush1.bf16.msra.mxu1 %v7178_v63  ;;  %803 = vmatprep.subr.bf16.mxu0 %v12642_v0 }
  0x68   :  { %965 = vmatprep.subr.bf16.mxu1 %v12642_v0 }
  0x69   :  { %512 = vmatmul.mubr.bf16.vlgmr.msra.gmra.mrb[4].mxu0 %v7174_v62 }
  0x6a   :  { %674 = vmatmul.mubr.bf16.vlgmr.msra.gmra.mrb[4].mxu1 %v6199_v1  ;;  %804 = vmatpush1.bf16.msra.mxu0 %v7187_v2  ;;  %v7472_v1 = vld [vmem:[%s12585_s1 + $0x2dc] sm:$0xff]  }
  0x6b   :  { %966 = vmatpush1.bf16.msra.mxu1 %v7194_v3  ;;  %805 = vmatprep.subr.bf16.mxu0 %v12642_v0  ;;  %12839 = vst [vmem:[#allocation12_spill] sm:$0xff] %v7472_v1 }
  0x6c   :  { %967 = vmatprep.subr.bf16.mxu1 %v12642_v0  ;;  %5593 = vmatprep.mubr.msk.bf16.mxu0 %vm180_vm0, %v7200_v4 }
  0x6d   :  { %5636 = vmatprep.mubr.msk.bf16.mxu1 %vm180_vm0, %v7206_v5 }
  0x6e   :  { %806 = vmatpush1.bf16.msra.mxu0 %v7212_v6 }
  0x6f   :  { %968 = vmatpush1.bf16.msra.mxu1 %v7219_v7  ;;  %807 = vmatprep.subr.bf16.mxu0 %v12642_v0 }
  0x70   :  { %969 = vmatprep.subr.bf16.mxu1 %v12642_v0 }
  0x72   :  { %808 = vmatpush1.bf16.msra.mxu0 %v7230_v8 }
  0x73   :  { %970 = vmatpush1.bf16.msra.mxu1 %v7237_v9  ;;  %809 = vmatprep.subr.bf16.mxu0 %v12642_v0 }
  0x74   :  { %971 = vmatprep.subr.bf16.mxu1 %v12642_v0 }
  0x76   :  { %810 = vmatpush1.bf16.msra.mxu0 %v7244_v10 }
  0x77   :  { %972 = vmatpush1.bf16.msra.mxu1 %v7251_v11  ;;  %811 = vmatprep.subr.bf16.mxu0 %v12642_v0 }
  0x78   :  { %973 = vmatprep.subr.bf16.mxu1 %v12642_v0 }
  0x7a   :  { %812 = vmatpush1.bf16.msra.mxu0 %v7258_v12 }
  0x7b   :  { %974 = vmatpush1.bf16.msra.mxu1 %v7265_v13  ;;  %813 = vmatprep.subr.bf16.mxu0 %v12642_v0 }
  0x7c   :  { %975 = vmatprep.subr.bf16.mxu1 %v12642_v0 }
  0x7e   :  { %814 = vmatpush1.bf16.msra.mxu0 %v7271_v14 }
  0x7f   :  { %976 = vmatpush1.bf16.msra.mxu1 %v7277_v15  ;;  %815 = vmatprep.subr.bf16.mxu0 %v12642_v0 }
  0x80   :  { %977 = vmatprep.subr.bf16.mxu1 %v12642_v0 }
  0x82   :  { %816 = vmatpush1.bf16.msra.mxu0 %v7285_v16 }
  0x83   :  { %978 = vmatpush1.bf16.msra.mxu1 %v7290_v17  ;;  %817 = vmatprep.subr.bf16.mxu0 %v12642_v0 }
  0x84   :  { %979 = vmatprep.subr.bf16.mxu1 %v12642_v0 }
  0x86   :  { %818 = vmatpush1.bf16.msra.mxu0 %v7299_v18 }
  0x87   :  { %980 = vmatpush1.bf16.msra.mxu1 %v7307_v19  ;;  %819 = vmatprep.subr.bf16.mxu0 %v12642_v0 }
  0x88   :  { %981 = vmatprep.subr.bf16.mxu1 %v12642_v0 }
  0x8a   :  { %820 = vmatpush1.bf16.msra.mxu0 %v7313_v20 }
  0x8b   :  { %982 = vmatpush1.bf16.msra.mxu1 %v7318_v21  ;;  %821 = vmatprep.subr.bf16.mxu0 %v12642_v0 }
  0x8c   :  { %983 = vmatprep.subr.bf16.mxu1 %v12642_v0 }
  0x8e   :  { %822 = vmatpush1.bf16.msra.mxu0 %v7328_v22 }
  0x8f   :  { %984 = vmatpush1.bf16.msra.mxu1 %v7335_v23  ;;  %823 = vmatprep.subr.bf16.mxu0 %v12642_v0 }
  0x90   :  { %985 = vmatprep.subr.bf16.mxu1 %v12642_v0 }
  0x92   :  { %824 = vmatpush1.bf16.msra.mxu0 %v7342_v24 }
  0x93   :  { %986 = vmatpush1.bf16.msra.mxu1 %v7349_v25  ;;  %825 = vmatprep.subr.bf16.mxu0 %v12642_v0 }
  0x94   :  { %987 = vmatprep.subr.bf16.mxu1 %v12642_v0 }
  0x96   :  { %826 = vmatpush1.bf16.msra.mxu0 %v7356_v26 }
  0x97   :  { %988 = vmatpush1.bf16.msra.mxu1 %v7363_v27  ;;  %827 = vmatprep.subr.bf16.mxu0 %v12642_v0  ;;  %v6256_v27 = vld [vmem:[%s12585_s1 + $0x2b8] ss:$0 sps:$4 sm:$0xff]  }
  0x98   :  { %989 = vmatprep.subr.bf16.mxu1 %v12642_v0 }
  0x9a   :  { %828 = vmatpush1.bf16.msra.mxu0 %v7376_v32 }
  0x9b   :  { %990 = vmatpush1.bf16.msra.mxu1 %v7380_v33  ;;  %1127 = vmatprep.subr.bf16.mxu0 %v12642_v0  ;;  %v7563_v33 = vld [vmem:[%s12585_s1 + $0x2b0] sm:$0xff]  }
  0x9c   :  { %1289 = vmatprep.subr.bf16.mxu1 %v12642_v0  ;;  %12848 = vst [vmem:[#allocation21_spill] sm:$0xff] %v7563_v33 }
  0x9d   :  { %836 = vmatmul.mubr.bf16.vlgmr.msra.gmra.mrb[8].mxu0 %v7385_v34 }
  0x9e   :  { %998 = vmatmul.mubr.bf16.vlgmr.msra.gmra.mrb[8].mxu1 %v7391_v35  ;;  %1128 = vmatpush1.bf16.msra.mxu0 %v7396_v37 }
  0x9f   :  { %1290 = vmatpush1.bf16.msra.mxu1 %v7403_v38  ;;  %1129 = vmatprep.subr.bf16.mxu0 %v12642_v0  ;;  %v7549_v38 = vld [vmem:[%s12585_s1 + $0x2a8] sm:$0xff]  }
  0xa0   :  { %1291 = vmatprep.subr.bf16.mxu1 %v12642_v0  ;;  %5679 = vmatprep.mubr.msk.bf16.mxu0 %vm180_vm0, %v6258_v40  ;;  %v7493_v40 = vld [vmem:[%s12585_s1 + $0x288] sm:$0xff]   ;;  %12846 = vst [vmem:[#allocation19_spill] sm:$0xff] %v7549_v38 }
  0xa1   :  { %5722 = vmatprep.mubr.msk.bf16.mxu1 %vm180_vm0, %v7413_v42 }
  0xa2   :  { %1130 = vmatpush1.bf16.msra.mxu0 %v7420_v44 }
  0xa3   :  { %1292 = vmatpush1.bf16.msra.mxu1 %v7427_v46  ;;  %1131 = vmatprep.subr.bf16.mxu0 %v12642_v0  ;;  %v7535_v46 = vld [vmem:[%s12585_s1 + $0x2a0] sm:$0xff]  }
  0xa4   :  { %1293 = vmatprep.subr.bf16.mxu1 %v12642_v0  ;;  %12844 = vst [vmem:[#allocation17_spill] sm:$0xff] %v7535_v46 }
  0xa6   :  { %1132 = vmatpush1.bf16.msra.mxu0 %v7437_v48 }
  0xa7   :  { %1294 = vmatpush1.bf16.msra.mxu1 %v7444_v50  ;;  %1133 = vmatprep.subr.bf16.mxu0 %v12642_v0  ;;  %v7521_v50 = vld [vmem:[%s12585_s1 + $0x298] sm:$0xff]  }
  0xa8   :  { %1295 = vmatprep.subr.bf16.mxu1 %v12642_v0 }
  0xaa   :  { %1134 = vmatpush1.bf16.msra.mxu0 %v7451_v52 }
  0xab   :  { %1296 = vmatpush1.bf16.msra.mxu1 %v7458_v58  ;;  %1135 = vmatprep.subr.bf16.mxu0 %v12642_v0  ;;  %v7507_v58 = vld [vmem:[%s12585_s1 + $0x290] sm:$0xff]  }
  0xac   :  { %1297 = vmatprep.subr.bf16.mxu1 %v12642_v0 }
  0xae   :  { %1136 = vmatpush1.bf16.msra.mxu0 %v7465_v60 }
  0xaf   :  { %1298 = vmatpush1.bf16.msra.mxu1 %v7472_v1  ;;  %1137 = vmatprep.subr.bf16.mxu0 %v12642_v0  ;;  %v7500_v1 = vld [vmem:[%s12585_s1 + $0x2ec] sm:$0xff]  }
  0xb0   :  { %1299 = vmatprep.subr.bf16.mxu1 %v12642_v0  ;;  %12841 = vst [vmem:[#allocation14_spill] sm:$0xff] %v7500_v1 }
  0xb2   :  { %1138 = vmatpush1.bf16.msra.mxu0 %v7479_v28 }
  0xb3   :  { %1300 = vmatpush1.bf16.msra.mxu1 %v7486_v30  ;;  %1139 = vmatprep.subr.bf16.mxu0 %v12642_v0  ;;  %v7514_v30 = vld [vmem:[%s12585_s1 + $0x2f4] sm:$0xff]  }
  0xb4   :  { %1301 = vmatprep.subr.bf16.mxu1 %v12642_v0  ;;  %12842 = vst [vmem:[#allocation15_spill] sm:$0xff] %v7514_v30 }
  0xb6   :  { %1140 = vmatpush1.bf16.msra.mxu0 %v7493_v40 }
  0xb7   :  { %1302 = vmatpush1.bf16.msra.mxu1 %v7500_v1  ;;  %1141 = vmatprep.subr.bf16.mxu0 %v12642_v0  ;;  %v7528_v1 = vld [vmem:[%s12585_s1 + $0x2fc] sm:$0xff]  }
  0xb8   :  { %1303 = vmatprep.subr.bf16.mxu1 %v12642_v0  ;;  %12843 = vst [vmem:[#allocation16_spill] sm:$0xff] %v7528_v1 }
  0xba   :  { %1142 = vmatpush1.bf16.msra.mxu0 %v7507_v58 }
  0xbb   :  { %1304 = vmatpush1.bf16.msra.mxu1 %v7514_v30  ;;  %1143 = vmatprep.subr.bf16.mxu0 %v12642_v0  ;;  %v7542_v30 = vld [vmem:[%s12585_s1 + $0x304] sm:$0xff]  }
  0xbc   :  { %1305 = vmatprep.subr.bf16.mxu1 %v12642_v0  ;;  %12845 = vst [vmem:[#allocation18_spill] sm:$0xff] %v7542_v30 }
  0xbe   :  { %1144 = vmatpush1.bf16.msra.mxu0 %v7521_v50 }
  0xbf   :  { %1306 = vmatpush1.bf16.msra.mxu1 %v7528_v1  ;;  %1145 = vmatprep.subr.bf16.mxu0 %v12642_v0  ;;  %v7556_v1 = vld [vmem:[%s12585_s1 + $0x30c] sm:$0xff]  }
  0xc0   :  { %1307 = vmatprep.subr.bf16.mxu1 %v12642_v0  ;;  %12847 = vst [vmem:[#allocation20_spill] sm:$0xff] %v7556_v1 }
  0xc2   :  { %1146 = vmatpush1.bf16.msra.mxu0 %v7535_v46  ;;  %v6260_v46 = vld [vmem:[%s12586_s0 + $0xa0] ss:$8 sps:$4 sm:$0xff]  }
  0xc3   :  { %1308 = vmatpush1.bf16.msra.mxu1 %v7542_v30  ;;  %1147 = vmatprep.subr.bf16.mxu0 %v12642_v0  ;;  %v7570_v30 = vld [vmem:[%s12585_s1 + $0x314] sm:$0xff]  }
  0xc4   :  { %1309 = vmatprep.subr.bf16.mxu1 %v12642_v0  ;;  %12849 = vst [vmem:[#allocation22_spill] sm:$0xff] %v7570_v30 }
  0xc6   :  { %1148 = vmatpush1.bf16.msra.mxu0 %v7549_v38  ;;  %v6257_v38 = vld [vmem:[%s12585_s1 + $0x31c] ss:$0 sps:$4 sm:$0xff]  }
  0xc7   :  { %1310 = vmatpush1.bf16.msra.mxu1 %v7556_v1  ;;  %1149 = vmatprep.subr.bf16.mxu0 %v12642_v0  ;;  %v7583_v1 = vsel %vm184_vm1, %v6256_v27, 0  ;;  %v7587_v25 = vsel %vm184_vm1, %v6257_v38, 0  ;;  %v7601_v27 = vld [vmem:[%s12585_s1 + $0x320] sm:$0xff]  }
  0xc8   :  { %1311 = vmatprep.subr.bf16.mxu1 %v12642_v0  ;;  %12850 = vst [vmem:[#allocation23_spill] sm:$0xff] %v7583_v1  ;;  %12851 = vst [vmem:[#allocation24_spill] sm:$0xff] %v7587_v25  ;;  %v7609_v38 = vld [vmem:[%s12586_s0 + $0xc4] ss:$8 sps:$4 sm:$0xff]  }
  0xc9   :  { %12853 = vst [vmem:[#allocation26_spill] sm:$0xff] %v7601_v27  ;;  %12854 = vst [vmem:[#allocation27_spill] sm:$0xff] %v7609_v38 }
  0xca   :  { %1150 = vmatpush1.bf16.msra.mxu0 %v7563_v33 }
  0xcb   :  { %1312 = vmatpush1.bf16.msra.mxu1 %v7570_v30  ;;  %1151 = vmatprep.subr.bf16.mxu0 %v12642_v0  ;;  %v7596_v30 = vld [vmem:[%s12586_s0 + $0xb0] ss:$8 sps:$4 sm:$0xff]  }
  0xcc   :  { %1313 = vmatprep.subr.bf16.mxu1 %v12642_v0  ;;  %12852 = vst [vmem:[#allocation25_spill] sm:$0xff] %v7596_v30 }
  0xce   :  { %1152 = vmatpush1.bf16.msra.mxu0 %v7583_v1  ;;  %v7616_v1 = vld [vmem:[%s12585_s1 + $0x328] sm:$0xff]  }
  0xcf   :  { %1314 = vmatpush1.bf16.msra.mxu1 %v7587_v25  ;;  %1451 = vmatprep.subr.bf16.mxu0 %v12642_v0  ;;  %12855 = vst [vmem:[#allocation28_spill] sm:$0xff] %v7616_v1  ;;  %v7621_v25 = vld [vmem:[%s12585_s1 + $0x64] sm:$0xff]  }
  0xd0   :  { %1504 = vmatprep.subr.bf16.mxu1 %v12642_v0  ;;  %12856 = vst [vmem:[#allocation29_spill] sm:$0xff] %v7621_v25 }
  0xd1   :  { %1160 = vmatmul.mubr.bf16.vlgmr.msra.gmra.mrb[12].mxu0 %v6260_v46  ;;  %v7634_v46 = vld [vmem:[%s12585_s1 + $0x330] sm:$0xff]  }
  0xd2   :  { %1322 = vmatmul.mubr.bf16.vlgmr.msra.gmra.mrb[12].mxu1 %v7596_v30  ;;  %1452 = vmatpush1.bf16.msra.mxu0 %v7601_v27  ;;  %12857 = vst [vmem:[#allocation30_spill] sm:$0xff] %v7634_v46  ;;  %v7826_v30 = vld [vmem:[%s12585_s1 + $0x8] sm:$0xff]  }
  0xd3   :  { %1505 = vmatpush1.bf16.msra.mxu1 %v7621_v25  ;;  %1453 = vmatprep.subr.bf16.mxu0 %v12642_v0  ;;  %v7639_v25 = vld [vmem:[%s12585_s1 + $0x6c] sm:$0xff]  }
  0xd4   :  { %1506 = vmatprep.subr.bf16.mxu1 %v12642_v0  ;;  %5765 = vmatprep.mubr.msk.bf16.mxu0 %vm180_vm0, %v7609_v38  ;;  %12858 = vst [vmem:[#allocation31_spill] sm:$0xff] %v7639_v25  ;;  %v7788_v38 = vld [vmem:[%s12586_s0 + $0xc0] ss:$8 sps:$4 sm:$0xff]  }
  0xd5   :  { %5767 = vmatprep.mubr.msk.bf16.mxu1 %vm180_vm0, %v7029_v36  ;;  %v7648_v36 = vld [vmem:[%s12585_s1 + $0x338] sm:$0xff]   ;;  %12879 = vst [vmem:[#allocation52_spill] sm:$0xff] %v7788_v38 }
  0xd6   :  { %1454 = vmatpush1.bf16.msra.mxu0 %v7616_v1  ;;  %12859 = vst [vmem:[#allocation32_spill] sm:$0xff] %v7648_v36  ;;  %v7653_v1 = vld [vmem:[%s12585_s1 + $0x74] sm:$0xff]  }
  0xd7   :  { %1507 = vmatpush1.bf16.msra.mxu1 %v7639_v25  ;;  %1455 = vmatprep.subr.bf16.mxu0 %v12642_v0  ;;  %12860 = vst [vmem:[#allocation33_spill] sm:$0xff] %v7653_v1  ;;  %v7662_v25 = vld [vmem:[%s12585_s1 + $0x340] sm:$0xff]  }
  0xd8   :  { %1508 = vmatprep.subr.bf16.mxu1 %v12642_v0  ;;  %12861 = vst [vmem:[#allocation34_spill] sm:$0xff] %v7662_v25 }
  0xda   :  { %1456 = vmatpush1.bf16.msra.mxu0 %v7634_v46  ;;  %v7667_v46 = vld [vmem:[%s12585_s1 + $0x7c] sm:$0xff]  }
  0xdb   :  { %1509 = vmatpush1.bf16.msra.mxu1 %v7653_v1  ;;  %1457 = vmatprep.subr.bf16.mxu0 %v12642_v0  ;;  %12862 = vst [vmem:[#allocation35_spill] sm:$0xff] %v7667_v46  ;;  %v7676_v1 = vld [vmem:[%s12585_s1 + $0x348] sm:$0xff]  }
  0xdc   :  { %1510 = vmatprep.subr.bf16.mxu1 %v12642_v0  ;;  %12863 = vst [vmem:[#allocation36_spill] sm:$0xff] %v7676_v1 }
  0xde   :  { %1458 = vmatpush1.bf16.msra.mxu0 %v7648_v36  ;;  %v7681_v36 = vld [vmem:[%s12585_s1 + $0x84] sm:$0xff]  }
  0xdf   :  { %1511 = vmatpush1.bf16.msra.mxu1 %v7667_v46  ;;  %1459 = vmatprep.subr.bf16.mxu0 %v12642_v0  ;;  %12864 = vst [vmem:[#allocation37_spill] sm:$0xff] %v7681_v36  ;;  %v7690_v46 = vld [vmem:[%s12585_s1 + $0x350] sm:$0xff]  }
  0xe0   :  { %1512 = vmatprep.subr.bf16.mxu1 %v12642_v0  ;;  %12865 = vst [vmem:[#allocation38_spill] sm:$0xff] %v7690_v46 }
  0xe2   :  { %1460 = vmatpush1.bf16.msra.mxu0 %v7662_v25  ;;  %v7695_v25 = vld [vmem:[%s12585_s1 + $0x8c] sm:$0xff]  }
  0xe3   :  { %1513 = vmatpush1.bf16.msra.mxu1 %v7681_v36  ;;  %1461 = vmatprep.subr.bf16.mxu0 %v12642_v0  ;;  %12866 = vst [vmem:[#allocation39_spill] sm:$0xff] %v7695_v25  ;;  %v7704_v36 = vld [vmem:[%s12585_s1 + $0x358] sm:$0xff]  }
  0xe4   :  { %1514 = vmatprep.subr.bf16.mxu1 %v12642_v0  ;;  %12867 = vst [vmem:[#allocation40_spill] sm:$0xff] %v7704_v36 }
  0xe6   :  { %1462 = vmatpush1.bf16.msra.mxu0 %v7676_v1  ;;  %v7709_v1 = vld [vmem:[%s12585_s1 + $0x94] sm:$0xff]  }
  0xe7   :  { %1515 = vmatpush1.bf16.msra.mxu1 %v7695_v25  ;;  %1463 = vmatprep.subr.bf16.mxu0 %v12642_v0  ;;  %12868 = vst [vmem:[#allocation41_spill] sm:$0xff] %v7709_v1  ;;  %v7718_v25 = vld [vmem:[%s12585_s1 + $0x360] sm:$0xff]  }
  0xe8   :  { %1516 = vmatprep.subr.bf16.mxu1 %v12642_v0  ;;  %12869 = vst [vmem:[#allocation42_spill] sm:$0xff] %v7718_v25 }
  0xea   :  { %1464 = vmatpush1.bf16.msra.mxu0 %v7690_v46  ;;  %v7723_v46 = vld [vmem:[%s12585_s1 + $0x9c] sm:$0xff]  }
  0xeb   :  { %1517 = vmatpush1.bf16.msra.mxu1 %v7709_v1  ;;  %1465 = vmatprep.subr.bf16.mxu0 %v12642_v0  ;;  %12870 = vst [vmem:[#allocation43_spill] sm:$0xff] %v7723_v46  ;;  %v7732_v1 = vld [vmem:[%s12585_s1 + $0x368] sm:$0xff]  }
  0xec   :  { %1518 = vmatprep.subr.bf16.mxu1 %v12642_v0  ;;  %12871 = vst [vmem:[#allocation44_spill] sm:$0xff] %v7732_v1 }
  0xee   :  { %1466 = vmatpush1.bf16.msra.mxu0 %v7704_v36  ;;  %v7737_v36 = vld [vmem:[%s12585_s1 + $0xa4] sm:$0xff]  }
  0xef   :  { %1519 = vmatpush1.bf16.msra.mxu1 %v7723_v46  ;;  %1467 = vmatprep.subr.bf16.mxu0 %v12642_v0  ;;  %12872 = vst [vmem:[#allocation45_spill] sm:$0xff] %v7737_v36  ;;  %v7746_v46 = vld [vmem:[%s12585_s1 + $0x370] sm:$0xff]  }
  0xf0   :  { %1520 = vmatprep.subr.bf16.mxu1 %v12642_v0  ;;  %12873 = vst [vmem:[#allocation46_spill] sm:$0xff] %v7746_v46 }
  0xf2   :  { %1468 = vmatpush1.bf16.msra.mxu0 %v7718_v25  ;;  %v7751_v25 = vld [vmem:[%s12585_s1 + $0xac] sm:$0xff]  }
  0xf3   :  { %1521 = vmatpush1.bf16.msra.mxu1 %v7737_v36  ;;  %1469 = vmatprep.subr.bf16.mxu0 %v12642_v0  ;;  %12874 = vst [vmem:[#allocation47_spill] sm:$0xff] %v7751_v25  ;;  %v7760_v36 = vld [vmem:[%s12585_s1 + $0x378] sm:$0xff]  }
  0xf4   :  { %1522 = vmatprep.subr.bf16.mxu1 %v12642_v0  ;;  %12875 = vst [vmem:[#allocation48_spill] sm:$0xff] %v7760_v36 }
  0xf6   :  { %1470 = vmatpush1.bf16.msra.mxu0 %v7732_v1  ;;  %v7765_v1 = vld [vmem:[%s12585_s1 + $0xb4] sm:$0xff]  }
  0xf7   :  { %1523 = vmatpush1.bf16.msra.mxu1 %v7751_v25  ;;  %1471 = vmatprep.subr.bf16.mxu0 %v12642_v0  ;;  %12876 = vst [vmem:[#allocation49_spill] sm:$0xff] %v7765_v1  ;;  %v6276_v25 = vld [vmem:[%s12585_s1 + $0x380] ss:$0 sps:$4 sm:$0xff]  }
  0xf8   :  { %1524 = vmatprep.subr.bf16.mxu1 %v12642_v0 }
  0xfa   :  { %1472 = vmatpush1.bf16.msra.mxu0 %v7746_v46  ;;  %v7777_v46 = vld [vmem:[%s12585_s1 + $0xbc] sm:$0xff]  }
  0xfb   :  { %1525 = vmatpush1.bf16.msra.mxu1 %v7765_v1  ;;  %1473 = vmatprep.subr.bf16.mxu0 %v12642_v0  ;;  %12877 = vst [vmem:[#allocation50_spill] sm:$0xff] %v7777_v46  ;;  %v7782_v1 = vsel %vm184_vm1, %v6276_v25, 0  ;;  %v7798_v25 = vld [vmem:[%s12586_s0 + $0x34] ss:$8 sps:$4 sm:$0xff]  }
  0xfc   :  { %1526 = vmatprep.subr.bf16.mxu1 %v12642_v0  ;;  %12878 = vst [vmem:[#allocation51_spill] sm:$0xff] %v7782_v1 }
  0xfe   :  { %1474 = vmatpush1.bf16.msra.mxu0 %v7760_v36 }
  0xff   :  { %1527 = vmatpush1.bf16.msra.mxu1 %v7777_v46  ;;  %1475 = vmatprep.subr.bf16.mxu0 %v12642_v0  ;;  %v7804_v46 = vld [vmem:[%s12585_s1] sm:$0xff]  }
 0x100   :  { %1528 = vmatprep.subr.bf16.mxu1 %v12642_v0  ;;  %12880 = vst [vmem:[#allocation53_spill] sm:$0xff] %v7804_v46 }
 0x102   :  { %1476 = vmatpush1.bf16.msra.mxu0 %v7782_v1 }
 0x103   :  { %1529 = vmatpush1.bf16.msra.mxu1 %v7000_v29  ;;  %1545 = vmatprep.subr.bf16.mxu0 %v12642_v0  ;;  %v12882_v29 = vmov 0  }
 0x104   :  { %1601 = vmatprep.subr.bf16.mxu1 %v12642_v0  ;;  %v7810_v0 = vld [vmem:[%s12585_s1 + $0xc8] sm:$0xff]  }
 0x105   :  { %1484 = vmatmul.mubr.bf16.vlgmr.msra.gmra.mrb[16].mxu0 %v7788_v38  ;;  %12881 = vst [vmem:[#allocation54_spill] sm:$0xff] %v7810_v0 }
 0x106   :  { %1537 = vmatmul.mubr.bf16.vlgmr.msra.gmra.mrb[16].mxu1 %v7174_v62  ;;  %1546 = vmatpush1.bf16.msra.mxu0 %v7804_v46  ;;  %v6342_v62 = vld [vmem:[%s12586_s0 + $0x14] ss:$8 sps:$4 sm:$0xff]  }
 0x107   :  { %1602 = vmatpush1.bf16.msra.mxu1 %v7810_v0  ;;  %1547 = vmatprep.subr.bf16.mxu0 %v12882_v29 }
 0x108   :  { %v222_v38 = vpop.f32.mrb[0].mxu0  ;;  %1603 = vmatprep.subr.bf16.mxu1 %v12882_v29  ;;  %5768 = vmatprep.mubr.msk.bf16.mxu0 %vm180_vm0, %v6342_v62  ;;  %v7832_v62 = vld [vmem:[%s12585_s1 + $0xd0] sm:$0xff]  }
 0x109   :  { %v353_v1 = vpop.f32.mrb[0].mxu1  ;;  %v224_v46 = vpop.f32.mrb[1].mxu0  ;;  %5773 = vmatprep.mubr.msk.bf16.mxu1 %vm180_vm0, %v7798_v25  ;;  %12883 = vst [vmem:[#allocation55_spill] sm:$0xff] %v7832_v62 }
 0x10a   :  { %v7821_v36 = vadd.f32 %v353_v1, %v222_v38  ;;  %v355_v27 = vpop.f32.mrb[1].mxu1  ;;  %v225_v0 = vpop.f32.mrb[2].mxu0  ;;  %1548 = vmatpush1.bf16.msra.mxu0 %v7826_v30  ;;  %v7842_v38 = vld [vmem:[%s12585_s1 + $0x10] sm:$0xff]  }
 0x10b   :  { %v356_v33 = vpop.f32.mrb[2].mxu1  ;;  %1604 = vmatpush1.bf16.msra.mxu1 %v7832_v62  ;;  %v227_v46 = vpop.f32.mrb[3].mxu0  ;;  %1549 = vmatprep.subr.bf16.mxu0 %v12882_v29 }
 0x10c   :  { %v7836_v1 = vadd.f32 %v356_v33, %v225_v0  ;;  %1605 = vmatprep.subr.bf16.mxu1 %v12882_v29  ;;  %v358_v27 = vpop.f32.mrb[3].mxu1  ;;  %v7851_v0 = vld [vmem:[%s12585_s1 + $0x18] sm:$0xff]   ;;  %v7945_v33 = vld [vmem:[%s12585_s1 + $0x12c] sm:$0xff]  }
 0x10d   :  { %12885 = vst [vmem:[#allocation57_spill] sm:$0xff] %v7945_v33 }
 0x10e   :  { %1550 = vmatpush1.bf16.msra.mxu0 %v7842_v38 }
 0x10f   :  { %1606 = vmatpush1.bf16.msra.mxu1 %v7045_v39  ;;  %1551 = vmatprep.subr.bf16.mxu0 %v12882_v29  ;;  %v7860_v39 = vld [vmem:[%s12585_s1 + $0x20] sm:$0xff]  }
 0x110   :  { %1607 = vmatprep.subr.bf16.mxu1 %v12882_v29 }
 0x112   :  { %1552 = vmatpush1.bf16.msra.mxu0 %v7851_v0 }
 0x113   :  { %1608 = vmatpush1.bf16.msra.mxu1 %v7056_v41  ;;  %1553 = vmatprep.subr.bf16.mxu0 %v12882_v29  ;;  %v7869_v41 = vld [vmem:[%s12585_s1 + $0x28] sm:$0xff]  }
 0x114   :  { %1609 = vmatprep.subr.bf16.mxu1 %v12882_v29 }
 0x116   :  { %1554 = vmatpush1.bf16.msra.mxu0 %v7860_v39 }
 0x117   :  { %1610 = vmatpush1.bf16.msra.mxu1 %v7067_v43  ;;  %1555 = vmatprep.subr.bf16.mxu0 %v12882_v29  ;;  %v7878_v43 = vld [vmem:[%s12585_s1 + $0x30] sm:$0xff]  }
 0x118   :  { %1611 = vmatprep.subr.bf16.mxu1 %v12882_v29 }
 0x11a   :  { %1556 = vmatpush1.bf16.msra.mxu0 %v7869_v41 }
 0x11b   :  { %1612 = vmatpush1.bf16.msra.mxu1 %v7078_v45  ;;  %1557 = vmatprep.subr.bf16.mxu0 %v12882_v29  ;;  %v7887_v45 = vld [vmem:[%s12585_s1 + $0x38] sm:$0xff]  }
 0x11c   :  { %1613 = vmatprep.subr.bf16.mxu1 %v12882_v29 }
 0x11e   :  { %1558 = vmatpush1.bf16.msra.mxu0 %v7878_v43 }
 0x11f   :  { %1614 = vmatpush1.bf16.msra.mxu1 %v7089_v47  ;;  %1559 = vmatprep.subr.bf16.mxu0 %v12882_v29  ;;  %v7896_v47 = vld [vmem:[%s12585_s1 + $0x40] sm:$0xff]  }
 0x120   :  { %1615 = vmatprep.subr.bf16.mxu1 %v12882_v29 }
 0x122   :  { %1560 = vmatpush1.bf16.msra.mxu0 %v7887_v45 }
 0x123   :  { %1616 = vmatpush1.bf16.msra.mxu1 %v7100_v49  ;;  %1561 = vmatprep.subr.bf16.mxu0 %v12882_v29  ;;  %v7905_v49 = vld [vmem:[%s12585_s1 + $0x48] sm:$0xff]  }
 0x124   :  { %1617 = vmatprep.subr.bf16.mxu1 %v12882_v29 }
 0x126   :  { %1562 = vmatpush1.bf16.msra.mxu0 %v7896_v47 }
 0x127   :  { %1618 = vmatpush1.bf16.msra.mxu1 %v7111_v51  ;;  %1563 = vmatprep.subr.bf16.mxu0 %v12882_v29  ;;  %v7914_v51 = vld [vmem:[%s12585_s1 + $0x50] sm:$0xff]  }
 0x128   :  { %1619 = vmatprep.subr.bf16.mxu1 %v12882_v29 }
 0x12a   :  { %1564 = vmatpush1.bf16.msra.mxu0 %v7905_v49 }
 0x12b   :  { %1620 = vmatpush1.bf16.msra.mxu1 %v7122_v53  ;;  %1565 = vmatprep.subr.bf16.mxu0 %v12882_v29  ;;  %v7923_v53 = vld [vmem:[%s12585_s1 + $0x58] sm:$0xff]  }
 0x12c   :  { %1621 = vmatprep.subr.bf16.mxu1 %v12882_v29 }
 0x12e   :  { %1566 = vmatpush1.bf16.msra.mxu0 %v7914_v51 }
 0x12f   :  { %1622 = vmatpush1.bf16.msra.mxu1 %v7135_v55  ;;  %1567 = vmatprep.subr.bf16.mxu0 %v12882_v29  ;;  %v7933_v55 = vld [vmem:[%s12586_s0 + $0x30] ss:$8 sps:$4 sm:$0xff]  }
 0x130   :  { %1623 = vmatprep.subr.bf16.mxu1 %v12882_v29  ;;  %12884 = vst [vmem:[#allocation56_spill] sm:$0xff] %v7933_v55 }
 0x132   :  { %1568 = vmatpush1.bf16.msra.mxu0 %v7923_v53 }
 0x133   :  { %1624 = vmatpush1.bf16.msra.mxu1 %v7148_v57  ;;  %1569 = vmatprep.subr.bf16.mxu0 %v12882_v29  ;;  %v6355_v57 = vld [vmem:[%s12586_s0 + $0x10] ss:$8 sps:$4 sm:$0xff]  }
 0x134   :  { %1625 = vmatprep.subr.bf16.mxu1 %v12882_v29 }
 0x136   :  { %1570 = vmatpush1.bf16.msra.mxu0 %v7008_v31 }
 0x137   :  { %1626 = vmatpush1.bf16.msra.mxu1 %v7167_v61  ;;  %1644 = vmatprep.subr.bf16.mxu0 %v12882_v29 }
 0x138   :  { %1687 = vmatprep.subr.bf16.mxu1 %v12882_v29 }
 0x139   :  { %1578 = vmatmul.mubr.bf16.vlgmr.msra.gmra.mrb[20].mxu0 %v6355_v57 }
 0x13a   :  { %1634 = vmatmul.mubr.bf16.vlgmr.msra.gmra.mrb[20].mxu1 %v7933_v55  ;;  %1645 = vmatpush1.bf16.msra.mxu0 %v7945_v33 }
 0x13b   :  { %1688 = vmatpush1.bf16.msra.mxu1 %v7187_v2  ;;  %1646 = vmatprep.subr.bf16.mxu0 %v12882_v29  ;;  %v7959_v2 = vld [vmem:[%s12585_s1 + $0x134] sm:$0xff]  }
 0x13c   :  { %v513_v46 = vpop.f32.mrb[4].mxu0  ;;  %1689 = vmatprep.subr.bf16.mxu1 %v12882_v29  ;;  %5774 = vmatprep.mubr.msk.bf16.mxu0 %vm180_vm0, %v7200_v4 }
 0x13d   :  { %v520_v27 = vadd.f32 %v513_v46, %v7821_v36  ;;  %v515_v57 = vpop.f32.mrb[5].mxu0  ;;  %v675_v61 = vpop.f32.mrb[4].mxu1  ;;  %5775 = vmatprep.mubr.msk.bf16.mxu1 %vm180_vm0, %v7206_v5 }
 0x13e   :  { %v516_v62 = vpop.f32.mrb[6].mxu0  ;;  %1647 = vmatpush1.bf16.msra.mxu0 %v7959_v2  ;;  %v677_v33 = vpop.f32.mrb[5].mxu1  ;;  %v7973_v57 = vld [vmem:[%s12585_s1 + $0x13c] sm:$0xff]  }
 0x13f   :  { %v521_v55 = vadd.f32 %v516_v62, %v7836_v1  ;;  %v7963_v31 = vadd.f32 %v675_v61, %v520_v27  ;;  %1690 = vmatpush1.bf16.msra.mxu1 %v7212_v6  ;;  %v518_v4 = vpop.f32.mrb[7].mxu0  ;;  %v678_v36 = vpop.f32.mrb[6].mxu1  ;;  %1648 = vmatprep.subr.bf16.mxu0 %v12882_v29  ;;  %v7982_v61 = vld [vmem:[%s12585_s1 + $0x144] sm:$0xff]   ;;  %v7991_v6 = vld [vmem:[%s12585_s1 + $0x14c] sm:$0xff]  }
 0x140   :  { %1691 = vmatprep.subr.bf16.mxu1 %v12882_v29  ;;  %v680_v5 = vpop.f32.mrb[7].mxu1  ;;  %v12898_v33 = vld [vmem:[#allocation28_spill] sm:$0xff] }
 0x141   :  { %v7968_v46 = vadd.f32 %v678_v36, %v521_v55 }
 0x142   :  { %1649 = vmatpush1.bf16.msra.mxu0 %v7973_v57 }
 0x143   :  { %1692 = vmatpush1.bf16.msra.mxu1 %v7230_v8  ;;  %1650 = vmatprep.subr.bf16.mxu0 %v12882_v29  ;;  %v8000_v8 = vld [vmem:[%s12585_s1 + $0x154] sm:$0xff]  }
 0x144   :  { %1693 = vmatprep.subr.bf16.mxu1 %v12882_v29 }
 0x146   :  { %1651 = vmatpush1.bf16.msra.mxu0 %v7982_v61 }
 0x147   :  { %1694 = vmatpush1.bf16.msra.mxu1 %v7244_v10  ;;  %1652 = vmatprep.subr.bf16.mxu0 %v12882_v29  ;;  %v8009_v10 = vld [vmem:[%s12585_s1 + $0x15c] sm:$0xff]  }
 0x148   :  { %1695 = vmatprep.subr.bf16.mxu1 %v12882_v29 }
 0x14a   :  { %1653 = vmatpush1.bf16.msra.mxu0 %v7991_v6 }
 0x14b   :  { %1696 = vmatpush1.bf16.msra.mxu1 %v7258_v12  ;;  %1654 = vmatprep.subr.bf16.mxu0 %v12882_v29  ;;  %v8018_v12 = vld [vmem:[%s12585_s1 + $0x164] sm:$0xff]  }
 0x14c   :  { %1697 = vmatprep.subr.bf16.mxu1 %v12882_v29 }
 0x14e   :  { %1655 = vmatpush1.bf16.msra.mxu0 %v8000_v8 }
 0x14f   :  { %1698 = vmatpush1.bf16.msra.mxu1 %v7271_v14  ;;  %1656 = vmatprep.subr.bf16.mxu0 %v12882_v29  ;;  %v8027_v14 = vld [vmem:[%s12585_s1 + $0x16c] sm:$0xff]  }
 0x150   :  { %1699 = vmatprep.subr.bf16.mxu1 %v12882_v29 }
 0x152   :  { %1657 = vmatpush1.bf16.msra.mxu0 %v8009_v10 }
 0x153   :  { %1700 = vmatpush1.bf16.msra.mxu1 %v7285_v16  ;;  %1658 = vmatprep.subr.bf16.mxu0 %v12882_v29 }
 0x154   :  { %1701 = vmatprep.subr.bf16.mxu1 %v12882_v29 }
 0x156   :  { %1659 = vmatpush1.bf16.msra.mxu0 %v8018_v12 }
 0x157   :  { %1702 = vmatpush1.bf16.msra.mxu1 %v7299_v18  ;;  %1660 = vmatprep.subr.bf16.mxu0 %v12882_v29 }
 0x158   :  { %1703 = vmatprep.subr.bf16.mxu1 %v12882_v29 }
 0x15a   :  { %1661 = vmatpush1.bf16.msra.mxu0 %v8027_v14 }
 0x15b   :  { %1704 = vmatpush1.bf16.msra.mxu1 %v7313_v20  ;;  %1662 = vmatprep.subr.bf16.mxu0 %v12882_v29 }
 0x15c   :  { %1705 = vmatprep.subr.bf16.mxu1 %v12882_v29 }
 0x15e   :  { %1663 = vmatpush1.bf16.msra.mxu0 %v7128_v54  ;;  %v8052_v54 = vld [vmem:[%s12586_s0 + $0x84] ss:$8 sps:$4 sm:$0xff]  }
 0x15f   :  { %1706 = vmatpush1.bf16.msra.mxu1 %v7328_v22  ;;  %1664 = vmatprep.subr.bf16.mxu0 %v12882_v29 }
 0x160   :  { %1707 = vmatprep.subr.bf16.mxu1 %v12882_v29 }
 0x162   :  { %1665 = vmatpush1.bf16.msra.mxu0 %v7142_v56 }
 0x163   :  { %1708 = vmatpush1.bf16.msra.mxu1 %v7342_v24  ;;  %1666 = vmatprep.subr.bf16.mxu0 %v12882_v29 }
 0x164   :  { %1709 = vmatprep.subr.bf16.mxu1 %v12882_v29 }
 0x166   :  { %1667 = vmatpush1.bf16.msra.mxu0 %v7159_v59 }
 0x167   :  { %1710 = vmatpush1.bf16.msra.mxu1 %v7356_v26  ;;  %1668 = vmatprep.subr.bf16.mxu0 %v12882_v29 }
 0x168   :  { %1711 = vmatprep.subr.bf16.mxu1 %v12882_v29 }
 0x16a   :  { %1669 = vmatpush1.bf16.msra.mxu0 %v7178_v63 }
 0x16b   :  { %1712 = vmatpush1.bf16.msra.mxu1 %v7376_v32  ;;  %1745 = vmatprep.subr.bf16.mxu0 %v12882_v29 }
 0x16c   :  { %1788 = vmatprep.subr.bf16.mxu1 %v12882_v29 }
 0x16d   :  { %1677 = vmatmul.mubr.bf16.vlgmr.msra.gmra.mrb[24].mxu0 %v7385_v34 }
 0x16e   :  { %1720 = vmatmul.mubr.bf16.vlgmr.msra.gmra.mrb[24].mxu1 %v7391_v35  ;;  %1746 = vmatpush1.bf16.msra.mxu0 %v7194_v3 }
 0x16f   :  { %1789 = vmatpush1.bf16.msra.mxu1 %v7396_v37  ;;  %1747 = vmatprep.subr.bf16.mxu0 %v12882_v29  ;;  %v12893_v37 = vld [vmem:[#allocation25_spill] sm:$0xff] }
 0x170   :  { %v837_v56 = vpop.f32.mrb[8].mxu0  ;;  %1790 = vmatprep.subr.bf16.mxu1 %v12882_v29  ;;  %5780 = vmatprep.mubr.msk.bf16.mxu0 %vm180_vm0, %v8052_v54 }
 0x171   :  { %v844_v59 = vadd.f32 %v837_v56, %v7963_v31  ;;  %v839_v16 = vpop.f32.mrb[9].mxu0  ;;  %v999_v18 = vpop.f32.mrb[8].mxu1  ;;  %5781 = vmatprep.mubr.msk.bf16.mxu1 %vm180_vm0, %v7413_v42  ;;  %v12894_v42 = vld [vmem:[#allocation8_spill] sm:$0xff]  ;;  %v12900_v56 = vld [vmem:[#allocation30_spill] sm:$0xff] }
 0x172   :  { %v840_v20 = vpop.f32.mrb[10].mxu0  ;;  %1748 = vmatpush1.bf16.msra.mxu0 %v7219_v7  ;;  %v1001_v3 = vpop.f32.mrb[9].mxu1  ;;  %v12886_v7 = vld [vmem:[#allocation17_spill] sm:$0xff]  ;;  %v12902_v16 = vld [vmem:[#allocation32_spill] sm:$0xff] }
 0x173   :  { %v845_v22 = vadd.f32 %v840_v20, %v7968_v46  ;;  %v1006_v24 = vadd.f32 %v999_v18, %v844_v59  ;;  %1791 = vmatpush1.bf16.msra.mxu1 %v7420_v44  ;;  %v842_v26 = vpop.f32.mrb[11].mxu0  ;;  %v1002_v34 = vpop.f32.mrb[10].mxu1  ;;  %1749 = vmatprep.subr.bf16.mxu0 %v12882_v29  ;;  %v12895_v44 = vld [vmem:[#allocation26_spill] sm:$0xff]  ;;  %v12901_v59 = vld [vmem:[#allocation11_spill] sm:$0xff]  ;;  %v12903_v18 = vld [vmem:[#allocation12_spill] sm:$0xff] }
 0x174   :  { %1792 = vmatprep.subr.bf16.mxu1 %v12882_v29  ;;  %v1004_v31 = vpop.f32.mrb[11].mxu1  ;;  %v12899_v46 = vld [vmem:[#allocation10_spill] sm:$0xff]  ;;  %v12905_v3 = vld [vmem:[#allocation13_spill] sm:$0xff] }
 0x175   :  { %v1007_v35 = vadd.f32 %v1002_v34, %v845_v22  ;;  %v12904_v20 = vld [vmem:[#allocation34_spill] sm:$0xff]  ;;  %v12906_v22 = vld [vmem:[#allocation36_spill] sm:$0xff]  ;;  %v12909_v34 = vld [vmem:[#allocation15_spill] sm:$0xff] }
 0x176   :  { %1750 = vmatpush1.bf16.msra.mxu0 %v7237_v9  ;;  %v12887_v9 = vld [vmem:[#allocation5_spill] sm:$0xff]  ;;  %v12908_v26 = vld [vmem:[#allocation38_spill] sm:$0xff]  ;;  %v12910_v31 = vld [vmem:[#allocation40_spill] sm:$0xff] }
 0x177   :  { %1793 = vmatpush1.bf16.msra.mxu1 %v7437_v48  ;;  %1751 = vmatprep.subr.bf16.mxu0 %v12882_v29 }
 0x178   :  { %1794 = vmatprep.subr.bf16.mxu1 %v12882_v29 }
 0x17a   :  { %1752 = vmatpush1.bf16.msra.mxu0 %v7251_v11  ;;  %v12888_v11 = vld [vmem:[#allocation19_spill] sm:$0xff] }
 0x17b   :  { %1795 = vmatpush1.bf16.msra.mxu1 %v7451_v52  ;;  %1753 = vmatprep.subr.bf16.mxu0 %v12882_v29 }
 0x17c   :  { %1796 = vmatprep.subr.bf16.mxu1 %v12882_v29 }
 0x17e   :  { %1754 = vmatpush1.bf16.msra.mxu0 %v7265_v13  ;;  %v12889_v13 = vld [vmem:[#allocation6_spill] sm:$0xff] }
 0x17f   :  { %1797 = vmatpush1.bf16.msra.mxu1 %v7465_v60  ;;  %1755 = vmatprep.subr.bf16.mxu0 %v12882_v29 }
 0x180   :  { %1798 = vmatprep.subr.bf16.mxu1 %v12882_v29 }
 0x182   :  { %1756 = vmatpush1.bf16.msra.mxu0 %v7277_v15  ;;  %v12890_v15 = vld [vmem:[#allocation21_spill] sm:$0xff] }
 0x183   :  { %1799 = vmatpush1.bf16.msra.mxu1 %v7479_v28  ;;  %1757 = vmatprep.subr.bf16.mxu0 %v12882_v29 }
 0x184   :  { %1800 = vmatprep.subr.bf16.mxu1 %v12882_v29 }
 0x186   :  { %1758 = vmatpush1.bf16.msra.mxu0 %v7290_v17  ;;  %v8113_v17 = vld [vmem:[%s12586_s0 + $0x80] ss:$8 sps:$4 sm:$0xff]  }
 0x187   :  { %1801 = vmatpush1.bf16.msra.mxu1 %v7493_v40  ;;  %1759 = vmatprep.subr.bf16.mxu0 %v12882_v29  ;;  %v12897_v40 = vld [vmem:[#allocation9_spill] sm:$0xff] }
 0x188   :  { %1802 = vmatprep.subr.bf16.mxu1 %v12882_v29 }
 0x18a   :  { %1760 = vmatpush1.bf16.msra.mxu0 %v7307_v19  ;;  %v12891_v19 = vld [vmem:[#allocation7_spill] sm:$0xff] }
 0x18b   :  { %1803 = vmatpush1.bf16.msra.mxu1 %v7507_v58  ;;  %1761 = vmatprep.subr.bf16.mxu0 %v12882_v29 }
 0x18c   :  { %1804 = vmatprep.subr.bf16.mxu1 %v12882_v29 }
 0x18e   :  { %1762 = vmatpush1.bf16.msra.mxu0 %v7318_v21  ;;  %v12892_v21 = vld [vmem:[#allocation23_spill] sm:$0xff] }
 0x18f   :  { %1805 = vmatpush1.bf16.msra.mxu1 %v7521_v50  ;;  %1763 = vmatprep.subr.bf16.mxu0 %v12882_v29  ;;  %v12896_v50 = vld [vmem:[#allocation27_spill] sm:$0xff] }
 0x190   :  { %1806 = vmatprep.subr.bf16.mxu1 %v12882_v29 }
 0x192   :  { %1764 = vmatpush1.bf16.msra.mxu0 %v7335_v23  ;;  %v8123_v23 = vld [vmem:[%s12586_s0 + $0xd4] ss:$8 sps:$4 sm:$0xff]  }
 0x193   :  { %1807 = vmatpush1.bf16.msra.mxu1 %v12886_v7  ;;  %1765 = vmatprep.subr.bf16.mxu0 %v12882_v29  ;;  %v12912_v7 = vld [vmem:[#allocation42_spill] sm:$0xff] }
 0x194   :  { %1808 = vmatprep.subr.bf16.mxu1 %v12882_v29 }
 0x196   :  { %1766 = vmatpush1.bf16.msra.mxu0 %v12887_v9  ;;  %v12913_v9 = vld [vmem:[#allocation18_spill] sm:$0xff] }
 0x197   :  { %1809 = vmatpush1.bf16.msra.mxu1 %v12888_v11  ;;  %1767 = vmatprep.subr.bf16.mxu0 %v12882_v29  ;;  %v12914_v11 = vld [vmem:[#allocation44_spill] sm:$0xff] }
 0x198   :  { %1810 = vmatprep.subr.bf16.mxu1 %v12882_v29 }
 0x19a   :  { %1768 = vmatpush1.bf16.msra.mxu0 %v12889_v13  ;;  %v12915_v13 = vld [vmem:[#allocation20_spill] sm:$0xff] }
 0x19b   :  { %1811 = vmatpush1.bf16.msra.mxu1 %v12890_v15  ;;  %1769 = vmatprep.subr.bf16.mxu0 %v12882_v29  ;;  %v12916_v15 = vld [vmem:[#allocation46_spill] sm:$0xff] }
 0x19c   :  { %1812 = vmatprep.subr.bf16.mxu1 %v12882_v29 }
 0x19e   :  { %1770 = vmatpush1.bf16.msra.mxu0 %v12891_v19 }
 0x19f   :  { %1813 = vmatpush1.bf16.msra.mxu1 %v12892_v21  ;;  %1831 = vmatprep.subr.bf16.mxu0 %v12882_v29 }
 0x1a0   :  { %1889 = vmatprep.subr.bf16.mxu1 %v12882_v29 }
 0x1a1   :  { %1778 = vmatmul.mubr.bf16.vlgmr.msra.gmra.mrb[28].mxu0 %v8113_v17 }
 0x1a2   :  { %1821 = vmatmul.mubr.bf16.vlgmr.msra.gmra.mrb[28].mxu1 %v12893_v37  ;;  %1832 = vmatpush1.bf16.msra.mxu0 %v12894_v42  ;;  %v12917_v37 = vld [vmem:[#allocation22_spill] sm:$0xff]  ;;  %v12918_v42 = vld [vmem:[#allocation48_spill] sm:$0xff] }
 0x1a3   :  { %1890 = vmatpush1.bf16.msra.mxu1 %v12895_v44  ;;  %1833 = vmatprep.subr.bf16.mxu0 %v12882_v29  ;;  %v12919_v44 = vld [vmem:[#allocation24_spill] sm:$0xff] }
 0x1a4   :  { %v1161_v48 = vpop.f32.mrb[12].mxu0  ;;  %1891 = vmatprep.subr.bf16.mxu1 %v12882_v29  ;;  %5782 = vmatprep.mubr.msk.bf16.mxu0 %vm180_vm0, %v12896_v50  ;;  %v12920_v50 = vld [vmem:[#allocation51_spill] sm:$0xff] }
 0x1a5   :  { %v1168_v52 = vadd.f32 %v1161_v48, %v1006_v24  ;;  %v1163_v58 = vpop.f32.mrb[13].mxu0  ;;  %v1323_v60 = vpop.f32.mrb[12].mxu1  ;;  %5787 = vmatprep.mubr.msk.bf16.mxu1 %vm180_vm0, %v8123_v23  ;;  %v12907_v24 = vld [vmem:[#allocation14_spill] sm:$0xff]  ;;  %v8182_v48 = vld [vmem:[%s12586_s0 + $0xd0] ss:$8 sps:$4 sm:$0xff]  }
 0x1a6   :  { %v1164_v28 = vpop.f32.mrb[14].mxu0  ;;  %1834 = vmatpush1.bf16.msra.mxu0 %v12897_v40  ;;  %v1325_v62 = vpop.f32.mrb[13].mxu1  ;;  %v12922_v58 = vld [vmem:[#allocation29_spill] sm:$0xff] }
 0x1a7   :  { %v1169_v1 = vadd.f32 %v1164_v28, %v1007_v35  ;;  %v1330_v55 = vadd.f32 %v1323_v60, %v1168_v52  ;;  %1892 = vmatpush1.bf16.msra.mxu1 %v12898_v33  ;;  %v1166_v27 = vpop.f32.mrb[15].mxu0  ;;  %v1326_v4 = vpop.f32.mrb[14].mxu1  ;;  %1835 = vmatprep.subr.bf16.mxu0 %v12882_v29  ;;  %v12911_v35 = vld [vmem:[#allocation16_spill] sm:$0xff]  ;;  %v12923_v60 = vld [vmem:[#allocation53_spill] sm:$0xff]  ;;  %v6365_v33 = vld [vmem:[%s12586_s0 + $0x24] ss:$8 sps:$4 sm:$0xff]  }
 0x1a8   :  { %1893 = vmatprep.subr.bf16.mxu1 %v12882_v29  ;;  %v1328_v36 = vpop.f32.mrb[15].mxu1  ;;  %v12921_v52 = vld [vmem:[#allocation52_spill] sm:$0xff] }
 0x1a9   :  { %v1331_v5 = vadd.f32 %v1326_v4, %v1169_v1  ;;  %v12925_v4 = vld [vmem:[#allocation31_spill] sm:$0xff] }
 0x1aa   :  { %1836 = vmatpush1.bf16.msra.mxu0 %v12899_v46 }
 0x1ab   :  { %1894 = vmatpush1.bf16.msra.mxu1 %v12900_v56  ;;  %1837 = vmatprep.subr.bf16.mxu0 %v12882_v29 }
 0x1ac   :  { %1895 = vmatprep.subr.bf16.mxu1 %v12882_v29 }
 0x1ae   :  { %1838 = vmatpush1.bf16.msra.mxu0 %v12901_v59  ;;  %v12927_v59 = vld [vmem:[#allocation33_spill] sm:$0xff] }
 0x1af   :  { %1896 = vmatpush1.bf16.msra.mxu1 %v12902_v16  ;;  %1839 = vmatprep.subr.bf16.mxu0 %v12882_v29  ;;  %v12938_v16 = vld [vmem:[#allocation3_spill] sm:$0xff] }
 0x1b0   :  { %1897 = vmatprep.subr.bf16.mxu1 %v12882_v29 }
 0x1b2   :  { %1840 = vmatpush1.bf16.msra.mxu0 %v12903_v18  ;;  %v12939_v18 = vld [vmem:[#allocation56_spill] sm:$0xff] }
 0x1b3   :  { %1898 = vmatpush1.bf16.msra.mxu1 %v12904_v20  ;;  %1841 = vmatprep.subr.bf16.mxu0 %v12882_v29  ;;  %v12940_v20 = vld [vmem:[#allocation54_spill] sm:$0xff] }
 0x1b4   :  { %1899 = vmatprep.subr.bf16.mxu1 %v12882_v29 }
 0x1b6   :  { %1842 = vmatpush1.bf16.msra.mxu0 %v12905_v3  ;;  %v12941_v3 = vld [vmem:[#allocation57_spill] sm:$0xff] }
 0x1b7   :  { %1900 = vmatpush1.bf16.msra.mxu1 %v12906_v22  ;;  %1843 = vmatprep.subr.bf16.mxu0 %v12882_v29 }
 0x1b8   :  { %1901 = vmatprep.subr.bf16.mxu1 %v12882_v29 }
 0x1ba   :  { %1844 = vmatpush1.bf16.msra.mxu0 %v12907_v24 }
 0x1bb   :  { %1902 = vmatpush1.bf16.msra.mxu1 %v12908_v26  ;;  %1845 = vmatprep.subr.bf16.mxu0 %v12882_v29 }
 0x1bc   :  { %1903 = vmatprep.subr.bf16.mxu1 %v12882_v29 }
 0x1be   :  { %1846 = vmatpush1.bf16.msra.mxu0 %v12909_v34 }
 0x1bf   :  { %1904 = vmatpush1.bf16.msra.mxu1 %v12910_v31  ;;  %1847 = vmatprep.subr.bf16.mxu0 %v12882_v29  ;;  %v8271_v31 = vld [vmem:[%s12586_s0 + $0x74] ss:$8 sps:$4 sm:$0xff]  }
 0x1c0   :  { %1905 = vmatprep.subr.bf16.mxu1 %v12882_v29 }
 0x1c2   :  { %1848 = vmatpush1.bf16.msra.mxu0 %v12911_v35 }
 0x1c3   :  { %1906 = vmatpush1.bf16.msra.mxu1 %v12912_v7  ;;  %1849 = vmatprep.subr.bf16.mxu0 %v12882_v29  ;;  %v12942_v7 = vld [vmem:[#allocation55_spill] sm:$0xff] }
 0x1c4   :  { %1907 = vmatprep.subr.bf16.mxu1 %v12882_v29 }
 0x1c6   :  { %1850 = vmatpush1.bf16.msra.mxu0 %v12913_v9 }
 0x1c7   :  { %1908 = vmatpush1.bf16.msra.mxu1 %v12914_v11  ;;  %1851 = vmatprep.subr.bf16.mxu0 %v12882_v29 }
 0x1c8   :  { %1909 = vmatprep.subr.bf16.mxu1 %v12882_v29 }
 0x1ca   :  { %1852 = vmatpush1.bf16.msra.mxu0 %v12915_v13 }
 0x1cb   :  { %1910 = vmatpush1.bf16.msra.mxu1 %v12916_v15  ;;  %1853 = vmatprep.subr.bf16.mxu0 %v12882_v29 }
 0x1cc   :  { %1911 = vmatprep.subr.bf16.mxu1 %v12882_v29 }
 0x1ce   :  { %1854 = vmatpush1.bf16.msra.mxu0 %v12917_v37 }
 0x1cf   :  { %1912 = vmatpush1.bf16.msra.mxu1 %v12918_v42  ;;  %1855 = vmatprep.subr.bf16.mxu0 %v12882_v29 }
 0x1d0   :  { %1913 = vmatprep.subr.bf16.mxu1 %v12882_v29 }
 0x1d2   :  { %1856 = vmatpush1.bf16.msra.mxu0 %v12919_v44 }
 0x1d3   :  { %1914 = vmatpush1.bf16.msra.mxu1 %v12920_v50  ;;  %1936 = vmatprep.subr.bf16.mxu0 %v12882_v29 }
 0x1d4   :  { %1977 = vmatprep.subr.bf16.mxu1 %v12882_v29 }
 0x1d5   :  { %1864 = vmatmul.mubr.bf16.vlgmr.msra.gmra.mrb[32].mxu0 %v12921_v52 }
 0x1d6   :  { %1922 = vmatmul.mubr.bf16.vlgmr.msra.gmra.mrb[32].mxu1 %v8182_v48  ;;  %1937 = vmatpush1.bf16.msra.mxu0 %v12922_v58  ;;  %v8287_v58 = vld [vmem:[%s12585_s1 + $0xd8] sm:$0xff]  }
 0x1d7   :  { %1978 = vmatpush1.bf16.msra.mxu1 %v12923_v60  ;;  %1938 = vmatprep.subr.bf16.mxu0 %v12882_v29  ;;  %v8356_v60 = vld [vmem:[%s12585_s1 + $0x174] sm:$0xff]  }
 0x1d8   :  { %v1485_v28 = vpop.f32.mrb[16].mxu0  ;;  %1979 = vmatprep.subr.bf16.mxu1 %v12882_v29  ;;  %5788 = vmatprep.mubr.msk.bf16.mxu0 %vm180_vm0, %v7798_v25 }
 0x1d9   :  { %v8195_v40 = vadd.f32 %v1485_v28, %v1330_v55  ;;  %v1487_v62 = vpop.f32.mrb[17].mxu0  ;;  %v8197_v1 = vpop.f32.mrb[16].mxu1  ;;  %5789 = vmatprep.mubr.msk.bf16.mxu1 %vm180_vm0, %v6365_v33  ;;  %v8370_v28 = vld [vmem:[%s12585_s1 + $0x17c] sm:$0xff]  }
 0x1da   :  { %v1488_v27 = vpop.f32.mrb[18].mxu0  ;;  %1939 = vmatpush1.bf16.msra.mxu0 %v12925_v4  ;;  %v1540_v36 = vpop.f32.mrb[17].mxu1  ;;  %v8378_v62 = vld [vmem:[%s12585_s1 + $0x120] sm:$0xff]   ;;  %v6292_v4 = vld [vmem:[%s12586_s0 + $0x94] ss:$8 sps:$4 sm:$0xff]  }
 0x1db   :  { %12924 = vst [vmem:[#allocation17_spill] sm:$0xff] %v8195_v40  ;;  %v8204_v46 = vadd.f32 %v1488_v27, %v1331_v5  ;;  %1980 = vmatpush1.bf16.msra.mxu1 %v7826_v30  ;;  %v1490_v25 = vpop.f32.mrb[19].mxu0  ;;  %1940 = vmatprep.subr.bf16.mxu0 %v12882_v29  ;;  %v8208_v55 = vpop.f32.mrb[18].mxu1  ;;  %v12928_v5 = vld [vmem:[#allocation35_spill] sm:$0xff]  ;;  %v12929_v30 = vld [vmem:[#allocation37_spill] sm:$0xff]  ;;  %v12943_v27 = vld [vmem:[#allocation4_spill] sm:$0xff] }
 0x1dc   :  { %1981 = vmatprep.subr.bf16.mxu1 %v12882_v29  ;;  %v1543_v56 = vpop.f32.mrb[19].mxu1  ;;  %v6291_v33 = vld [vmem:[%s12586_s0 + $0x40] ss:$8 sps:$4 sm:$0xff]   ;;  %v8402_v36 = vld [vmem:[%s12586_s0 + $0x70] ss:$8 sps:$4 sm:$0xff]  }
 0x1dd   :  { %12926 = vst [vmem:[#allocation5_spill] sm:$0xff] %v8204_v46  ;;  %v8408_v25 = vld [vmem:[%s12585_s1 + $0x190] sm:$0xff]  }
 0x1de   :  { %1941 = vmatpush1.bf16.msra.mxu0 %v12927_v59 }
 0x1df   :  { %1982 = vmatpush1.bf16.msra.mxu1 %v7842_v38  ;;  %1942 = vmatprep.subr.bf16.mxu0 %v12882_v29  ;;  %v12930_v38 = vld [vmem:[#allocation39_spill] sm:$0xff] }
 0x1e0   :  { %1983 = vmatprep.subr.bf16.mxu1 %v12882_v29 }
 0x1e2   :  { %1943 = vmatpush1.bf16.msra.mxu0 %v12928_v5 }
 0x1e3   :  { %1984 = vmatpush1.bf16.msra.mxu1 %v7851_v0  ;;  %1944 = vmatprep.subr.bf16.mxu0 %v12882_v29  ;;  %v12931_v0 = vld [vmem:[#allocation41_spill] sm:$0xff] }
 0x1e4   :  { %1985 = vmatprep.subr.bf16.mxu1 %v12882_v29 }
 0x1e6   :  { %1945 = vmatpush1.bf16.msra.mxu0 %v12929_v30 }
 0x1e7   :  { %1986 = vmatpush1.bf16.msra.mxu1 %v7860_v39  ;;  %1946 = vmatprep.subr.bf16.mxu0 %v12882_v29  ;;  %v12932_v39 = vld [vmem:[#allocation43_spill] sm:$0xff] }
 0x1e8   :  { %1987 = vmatprep.subr.bf16.mxu1 %v12882_v29 }
 0x1ea   :  { %1947 = vmatpush1.bf16.msra.mxu0 %v12930_v38 }
 0x1eb   :  { %1988 = vmatpush1.bf16.msra.mxu1 %v7869_v41  ;;  %1948 = vmatprep.subr.bf16.mxu0 %v12882_v29  ;;  %v12933_v41 = vld [vmem:[#allocation45_spill] sm:$0xff] }
 0x1ec   :  { %1989 = vmatprep.subr.bf16.mxu1 %v12882_v29 }
 0x1ee   :  { %1949 = vmatpush1.bf16.msra.mxu0 %v12931_v0  ;;  %v8426_v0 = vld [vmem:[%s12585_s1 + $0x198] sm:$0xff]  }
 0x1ef   :  { %1990 = vmatpush1.bf16.msra.mxu1 %v7878_v43  ;;  %1950 = vmatprep.subr.bf16.mxu0 %v12882_v29  ;;  %v12934_v43 = vld [vmem:[#allocation47_spill] sm:$0xff] }
 0x1f0   :  { %1991 = vmatprep.subr.bf16.mxu1 %v12882_v29 }
 0x1f2   :  { %1951 = vmatpush1.bf16.msra.mxu0 %v12932_v39 }
 0x1f3   :  { %1992 = vmatpush1.bf16.msra.mxu1 %v7887_v45  ;;  %1952 = vmatprep.subr.bf16.mxu0 %v12882_v29  ;;  %v12935_v45 = vld [vmem:[#allocation49_spill] sm:$0xff] }
 0x1f4   :  { %1993 = vmatprep.subr.bf16.mxu1 %v12882_v29 }
 0x1f6   :  { %1953 = vmatpush1.bf16.msra.mxu0 %v12933_v41 }
 0x1f7   :  { %1994 = vmatpush1.bf16.msra.mxu1 %v7896_v47  ;;  %1954 = vmatprep.subr.bf16.mxu0 %v12882_v29  ;;  %v12936_v47 = vld [vmem:[#allocation50_spill] sm:$0xff] }
 0x1f8   :  { %1995 = vmatprep.subr.bf16.mxu1 %v12882_v29 }
 0x1fa   :  { %1955 = vmatpush1.bf16.msra.mxu0 %v12934_v43 }
 0x1fb   :  { %1996 = vmatpush1.bf16.msra.mxu1 %v7905_v49  ;;  %1956 = vmatprep.subr.bf16.mxu0 %v12882_v29  ;;  %v12937_v49 = vld [vmem:[#allocation2_spill] sm:$0xff] }
 0x1fc   :  { %1997 = vmatprep.subr.bf16.mxu1 %v12882_v29 }
 0x1fe   :  { %1957 = vmatpush1.bf16.msra.mxu0 %v12935_v45 }
 0x1ff   :  { %1998 = vmatpush1.bf16.msra.mxu1 %v7914_v51  ;;  %1958 = vmatprep.subr.bf16.mxu0 %v12882_v29  ;;  %v6289_v51 = vld [vmem:[%s12586_s0 + $0x44] ss:$8 sps:$4 sm:$0xff]  }
 0x200   :  { %1999 = vmatprep.subr.bf16.mxu1 %v12882_v29 }
 0x202   :  { %1959 = vmatpush1.bf16.msra.mxu0 %v12936_v47 }
 0x203   :  { %2000 = vmatpush1.bf16.msra.mxu1 %v7923_v53  ;;  %1960 = vmatprep.subr.bf16.mxu0 %v12882_v29  ;;  %v6366_v53 = vld [vmem:[%s12586_s0 + $0x20] ss:$8 sps:$4 sm:$0xff]  }
 0x204   :  { %2001 = vmatprep.subr.bf16.mxu1 %v12882_v29 }
 0x206   :  { %1961 = vmatpush1.bf16.msra.mxu0 %v12937_v49 }
 0x207   :  { %2002 = vmatpush1.bf16.msra.mxu1 %v12938_v16  ;;  %2033 = vmatprep.subr.bf16.mxu0 %v12882_v29 }
 0x208   :  { %2076 = vmatprep.subr.bf16.mxu1 %v12882_v29 }
 0x209   :  { %1969 = vmatmul.mubr.bf16.vlgmr.msra.gmra.mrb[36].mxu0 %v12939_v18 }
 0x20a   :  { %2010 = vmatmul.mubr.bf16.vlgmr.msra.gmra.mrb[36].mxu1 %v6366_v53  ;;  %2034 = vmatpush1.bf16.msra.mxu0 %v12940_v20  ;;  %v8445_v53 = vld [vmem:[%s12585_s1 + $0x1a0] sm:$0xff]  }
 0x20b   :  { %2077 = vmatpush1.bf16.msra.mxu1 %v12941_v3  ;;  %2035 = vmatprep.subr.bf16.mxu0 %v12882_v29  ;;  %v8451_v20 = vld [vmem:[%s12585_s1 + $0x204] sm:$0xff]  }
 0x20c   :  { %v1579_v22 = vpop.f32.mrb[20].mxu0  ;;  %2078 = vmatprep.subr.bf16.mxu1 %v12882_v29  ;;  %5794 = vmatprep.mubr.msk.bf16.mxu0 %vm180_vm0, %v6289_v51  ;;  %v8459_v3 = vld [vmem:[%s12585_s1 + $0x1a8] sm:$0xff]  }
 0x20d   :  { %v1580_v24 = vadd.f32 %v1579_v22, %v8197_v1  ;;  %v1581_v26 = vpop.f32.mrb[21].mxu0  ;;  %v1635_v34 = vpop.f32.mrb[20].mxu1  ;;  %5795 = vmatprep.mubr.msk.bf16.mxu1 %vm180_vm0, %v8271_v31  ;;  %v8384_v1 = vld [vmem:[%s12585_s1 + $0x184] sm:$0xff]   ;;  %v8465_v22 = vld [vmem:[%s12585_s1 + $0x20c] sm:$0xff]  }
 0x20e   :  { %v1582_v35 = vpop.f32.mrb[22].mxu0  ;;  %2036 = vmatpush1.bf16.msra.mxu0 %v12942_v7  ;;  %v1637_v9 = vpop.f32.mrb[21].mxu1  ;;  %v8479_v26 = vld [vmem:[%s12585_s1 + $0x214] sm:$0xff]   ;;  %v8501_v7 = vld [vmem:[%s12585_s1 + $0x1c0] sm:$0xff]  }
 0x20f   :  { %v1583_v11 = vadd.f32 %v1582_v35, %v8208_v55  ;;  %v8277_v13 = vadd.f32 %v1635_v34, %v1580_v24  ;;  %2079 = vmatpush1.bf16.msra.mxu1 %v7959_v2  ;;  %v1584_v15 = vpop.f32.mrb[23].mxu0  ;;  %v1638_v37 = vpop.f32.mrb[22].mxu1  ;;  %2037 = vmatprep.subr.bf16.mxu0 %v12882_v29  ;;  %v8296_v2 = vld [vmem:[%s12585_s1 + $0xe0] sm:$0xff]   ;;  %v8414_v55 = vld [vmem:[%s12585_s1 + $0x1f4] sm:$0xff]  }
 0x210   :  { %2080 = vmatprep.subr.bf16.mxu1 %v12882_v29  ;;  %v1640_v42 = vpop.f32.mrb[23].mxu1  ;;  %v8473_v24 = vld [vmem:[%s12585_s1 + $0x1b0] sm:$0xff]   ;;  %v8487_v34 = vld [vmem:[%s12585_s1 + $0x1b8] sm:$0xff]   ;;  %v8507_v9 = vld [vmem:[%s12585_s1 + $0x224] sm:$0xff]  }
 0x211   :  { %v8282_v52 = vadd.f32 %v1638_v37, %v1583_v11  ;;  %v8493_v35 = vld [vmem:[%s12585_s1 + $0x21c] sm:$0xff]   ;;  %v8515_v11 = vld [vmem:[%s12585_s1 + $0x1c8] sm:$0xff]   ;;  %v8529_v15 = vld [vmem:[%s12585_s1 + $0x1d0] sm:$0xff]  }
 0x212   :  { %2038 = vmatpush1.bf16.msra.mxu0 %v8287_v58  ;;  %v8535_v37 = vld [vmem:[%s12585_s1 + $0x234] sm:$0xff]  }
 0x213   :  { %2081 = vmatpush1.bf16.msra.mxu1 %v7973_v57  ;;  %2039 = vmatprep.subr.bf16.mxu0 %v12882_v29  ;;  %v8305_v57 = vld [vmem:[%s12585_s1 + $0xe8] sm:$0xff]   ;;  %v8543_v42 = vld [vmem:[%s12585_s1 + $0x1d8] sm:$0xff]  }
 0x214   :  { %2082 = vmatprep.subr.bf16.mxu1 %v12882_v29 }
 0x216   :  { %2040 = vmatpush1.bf16.msra.mxu0 %v8296_v2 }
 0x217   :  { %2083 = vmatpush1.bf16.msra.mxu1 %v7982_v61  ;;  %2041 = vmatprep.subr.bf16.mxu0 %v12882_v29  ;;  %v8314_v61 = vld [vmem:[%s12585_s1 + $0xf0] sm:$0xff]  }
 0x218   :  { %2084 = vmatprep.subr.bf16.mxu1 %v12882_v29 }
 0x21a   :  { %2042 = vmatpush1.bf16.msra.mxu0 %v8305_v57 }
 0x21b   :  { %2085 = vmatpush1.bf16.msra.mxu1 %v7991_v6  ;;  %2043 = vmatprep.subr.bf16.mxu0 %v12882_v29  ;;  %v8323_v6 = vld [vmem:[%s12585_s1 + $0xf8] sm:$0xff]  }
 0x21c   :  { %2086 = vmatprep.subr.bf16.mxu1 %v12882_v29 }
 0x21e   :  { %2044 = vmatpush1.bf16.msra.mxu0 %v8314_v61 }
 0x21f   :  { %2087 = vmatpush1.bf16.msra.mxu1 %v8000_v8  ;;  %2045 = vmatprep.subr.bf16.mxu0 %v12882_v29  ;;  %v8332_v8 = vld [vmem:[%s12585_s1 + $0x100] sm:$0xff]  }
 0x220   :  { %2088 = vmatprep.subr.bf16.mxu1 %v12882_v29 }
 0x222   :  { %2046 = vmatpush1.bf16.msra.mxu0 %v8323_v6 }
 0x223   :  { %2089 = vmatpush1.bf16.msra.mxu1 %v8009_v10  ;;  %2047 = vmatprep.subr.bf16.mxu0 %v12882_v29  ;;  %v8341_v10 = vld [vmem:[%s12585_s1 + $0x108] sm:$0xff]  }
 0x224   :  { %2090 = vmatprep.subr.bf16.mxu1 %v12882_v29 }
 0x226   :  { %2048 = vmatpush1.bf16.msra.mxu0 %v8332_v8 }
 0x227   :  { %2091 = vmatpush1.bf16.msra.mxu1 %v8018_v12  ;;  %2049 = vmatprep.subr.bf16.mxu0 %v12882_v29  ;;  %v8350_v12 = vld [vmem:[%s12585_s1 + $0x110] sm:$0xff]  }
 0x228   :  { %2092 = vmatprep.subr.bf16.mxu1 %v12882_v29 }
 0x22a   :  { %2050 = vmatpush1.bf16.msra.mxu0 %v8341_v10 }
 0x22b   :  { %2093 = vmatpush1.bf16.msra.mxu1 %v8027_v14  ;;  %2051 = vmatprep.subr.bf16.mxu0 %v12882_v29  ;;  %v8364_v14 = vld [vmem:[%s12585_s1 + $0x118] sm:$0xff]  }
 0x22c   :  { %2094 = vmatprep.subr.bf16.mxu1 %v12882_v29 }
 0x22e   :  { %2052 = vmatpush1.bf16.msra.mxu0 %v8350_v12 }
 0x22f   :  { %2095 = vmatpush1.bf16.msra.mxu1 %v8356_v60  ;;  %2053 = vmatprep.subr.bf16.mxu0 %v12882_v29 }
 0x230   :  { %2096 = vmatprep.subr.bf16.mxu1 %v12882_v29 }
 0x232   :  { %2054 = vmatpush1.bf16.msra.mxu0 %v8364_v14 }
 0x233   :  { %2097 = vmatpush1.bf16.msra.mxu1 %v8370_v28  ;;  %2055 = vmatprep.subr.bf16.mxu0 %v12882_v29 }
 0x234   :  { %2098 = vmatprep.subr.bf16.mxu1 %v12882_v29 }
 0x236   :  { %2056 = vmatpush1.bf16.msra.mxu0 %v8378_v62 }
 0x237   :  { %2099 = vmatpush1.bf16.msra.mxu1 %v8384_v1  ;;  %2057 = vmatprep.subr.bf16.mxu0 %v12882_v29 }
 0x238   :  { %2100 = vmatprep.subr.bf16.mxu1 %v12882_v29 }
 0x23a   :  { %2058 = vmatpush1.bf16.msra.mxu0 %v12943_v27 }
 0x23b   :  { %2101 = vmatpush1.bf16.msra.mxu1 %v7178_v63  ;;  %2119 = vmatprep.subr.bf16.mxu0 %v12882_v29 }
 0x23c   :  { %2177 = vmatprep.subr.bf16.mxu1 %v12882_v29 }
 0x23d   :  { %2066 = vmatmul.mubr.bf16.vlgmr.msra.gmra.mrb[40].mxu0 %v6291_v33  ;;  %v8557_v33 = vld [vmem:[%s12585_s1 + $0x1e0] sm:$0xff]  }
 0x23e   :  { %2109 = vmatmul.mubr.bf16.vlgmr.msra.gmra.mrb[40].mxu1 %v8402_v36  ;;  %2120 = vmatpush1.bf16.msra.mxu0 %v8408_v25 }
 0x23f   :  { %2178 = vmatpush1.bf16.msra.mxu1 %v8414_v55  ;;  %2121 = vmatprep.subr.bf16.mxu0 %v12882_v29 }
 0x240   :  { %v1678_v56 = vpop.f32.mrb[24].mxu0  ;;  %2179 = vmatprep.subr.bf16.mxu1 %v12882_v29  ;;  %5796 = vmatprep.mubr.msk.bf16.mxu0 %vm180_vm0, %v8052_v54  ;;  %v8435_v54 = vld [vmem:[%s12585_s1 + $0x1fc] sm:$0xff]  }
 0x241   :  { %v1685_v59 = vadd.f32 %v1678_v56, %v8277_v13  ;;  %v1680_v5 = vpop.f32.mrb[25].mxu0  ;;  %v1721_v30 = vpop.f32.mrb[24].mxu1  ;;  %5801 = vmatprep.mubr.msk.bf16.mxu1 %vm180_vm0, %v6292_v4  ;;  %v8521_v13 = vld [vmem:[%s12585_s1 + $0x22c] sm:$0xff]   ;;  %v8563_v4 = vld [vmem:[%s12585_s1 + $0x244] sm:$0xff]  }
 0x242   :  { %v1681_v38 = vpop.f32.mrb[26].mxu0  ;;  %2122 = vmatpush1.bf16.msra.mxu0 %v8426_v0  ;;  %v1723_v39 = vpop.f32.mrb[25].mxu1  ;;  %12945 = vst [vmem:[#allocation6_spill] sm:$0xff] %v8563_v4  ;;  %v8571_v56 = vld [vmem:[%s12585_s1 + $0x1e8] sm:$0xff]   ;;  %v6294_v5 = vld [vmem:[%s12586_s0 + $0x90] ss:$8 sps:$4 sm:$0xff]  }
 0x243   :  { %v1686_v41 = vadd.f32 %v1681_v38, %v8282_v52  ;;  %v8430_v43 = vadd.f32 %v1721_v30, %v1685_v59  ;;  %2180 = vmatpush1.bf16.msra.mxu1 %v8435_v54  ;;  %v1683_v45 = vpop.f32.mrb[27].mxu0  ;;  %v1724_v47 = vpop.f32.mrb[26].mxu1  ;;  %2123 = vmatprep.subr.bf16.mxu0 %v12882_v29  ;;  %v8549_v52 = vld [vmem:[%s12585_s1 + $0x23c] sm:$0xff]   ;;  %v8577_v59 = vld [vmem:[%s12585_s1 + $0x24c] sm:$0xff]  }
 0x244   :  { %2181 = vmatprep.subr.bf16.mxu1 %v12882_v29  ;;  %v1726_v51 = vpop.f32.mrb[27].mxu1  ;;  %12944 = vst [vmem:[#allocation19_spill] sm:$0xff] %v8549_v52  ;;  %12946 = vst [vmem:[#allocation21_spill] sm:$0xff] %v8577_v59  ;;  %v8593_v30 = vld [vmem:[%s12585_s1 + $0x258] sm:$0xff]  }
 0x245   :  { %v8440_v18 = vadd.f32 %v1724_v47, %v1686_v41  ;;  %v8599_v38 = vld [vmem:[%s12585_s1 + $0x2bc] sm:$0xff]  }
 0x246   :  { %2124 = vmatpush1.bf16.msra.mxu0 %v8445_v53  ;;  %12947 = vst [vmem:[#allocation25_spill] sm:$0xff] %v8599_v38 }
 0x247   :  { %2182 = vmatpush1.bf16.msra.mxu1 %v8451_v20  ;;  %2125 = vmatprep.subr.bf16.mxu0 %v12882_v29 }
 0x248   :  { %2183 = vmatprep.subr.bf16.mxu1 %v12882_v29 }
 0x24a   :  { %2126 = vmatpush1.bf16.msra.mxu0 %v8459_v3 }
 0x24b   :  { %2184 = vmatpush1.bf16.msra.mxu1 %v8465_v22  ;;  %2127 = vmatprep.subr.bf16.mxu0 %v12882_v29 }
 0x24c   :  { %2185 = vmatprep.subr.bf16.mxu1 %v12882_v29 }
 0x24e   :  { %2128 = vmatpush1.bf16.msra.mxu0 %v8473_v24 }
 0x24f   :  { %2186 = vmatpush1.bf16.msra.mxu1 %v8479_v26  ;;  %2129 = vmatprep.subr.bf16.mxu0 %v12882_v29 }
 0x250   :  { %2187 = vmatprep.subr.bf16.mxu1 %v12882_v29 }
 0x252   :  { %2130 = vmatpush1.bf16.msra.mxu0 %v8487_v34 }
 0x253   :  { %2188 = vmatpush1.bf16.msra.mxu1 %v8493_v35  ;;  %2131 = vmatprep.subr.bf16.mxu0 %v12882_v29 }
 0x254   :  { %2189 = vmatprep.subr.bf16.mxu1 %v12882_v29 }
 0x256   :  { %2132 = vmatpush1.bf16.msra.mxu0 %v8501_v7 }
 0x257   :  { %2190 = vmatpush1.bf16.msra.mxu1 %v8507_v9  ;;  %2133 = vmatprep.subr.bf16.mxu0 %v12882_v29 }
 0x258   :  { %2191 = vmatprep.subr.bf16.mxu1 %v12882_v29 }
 0x25a   :  { %2134 = vmatpush1.bf16.msra.mxu0 %v8515_v11 }
 0x25b   :  { %2192 = vmatpush1.bf16.msra.mxu1 %v8521_v13  ;;  %2135 = vmatprep.subr.bf16.mxu0 %v12882_v29 }
 0x25c   :  { %2193 = vmatprep.subr.bf16.mxu1 %v12882_v29 }
 0x25e   :  { %2136 = vmatpush1.bf16.msra.mxu0 %v8529_v15 }
 0x25f   :  { %2194 = vmatpush1.bf16.msra.mxu1 %v8535_v37  ;;  %2137 = vmatprep.subr.bf16.mxu0 %v12882_v29 }
 0x260   :  { %2195 = vmatprep.subr.bf16.mxu1 %v12882_v29 }
 0x262   :  { %2138 = vmatpush1.bf16.msra.mxu0 %v8543_v42 }
 0x263   :  { %2196 = vmatpush1.bf16.msra.mxu1 %v8549_v52  ;;  %2139 = vmatprep.subr.bf16.mxu0 %v12882_v29 }
 0x264   :  { %2197 = vmatprep.subr.bf16.mxu1 %v12882_v29 }
 0x266   :  { %2140 = vmatpush1.bf16.msra.mxu0 %v8557_v33 }
 0x267   :  { %2198 = vmatpush1.bf16.msra.mxu1 %v8563_v4  ;;  %2141 = vmatprep.subr.bf16.mxu0 %v12882_v29 }
 0x268   :  { %2199 = vmatprep.subr.bf16.mxu1 %v12882_v29 }
 0x26a   :  { %2142 = vmatpush1.bf16.msra.mxu0 %v8571_v56 }
 0x26b   :  { %2200 = vmatpush1.bf16.msra.mxu1 %v8577_v59  ;;  %2143 = vmatprep.subr.bf16.mxu0 %v12882_v29  ;;  %v8754_v59 = vld [vmem:[%s12585_s1 + $0x30c] sm:$0xff]  }
 0x26c   :  { %2201 = vmatprep.subr.bf16.mxu1 %v12882_v29  ;;  %12960 = vst [vmem:[#allocation36_spill] sm:$0xff] %v8754_v59 }
 0x26e   :  { %2144 = vmatpush1.bf16.msra.mxu0 %v7376_v32 }
 0x26f   :  { %2202 = vmatpush1.bf16.msra.mxu1 %v12891_v19  ;;  %2220 = vmatprep.subr.bf16.mxu0 %v12882_v29 }
 0x270   :  { %2263 = vmatprep.subr.bf16.mxu1 %v12882_v29 }
 0x271   :  { %2152 = vmatmul.mubr.bf16.vlgmr.msra.gmra.mrb[44].mxu0 %v8113_v17  ;;  %v8607_v17 = vld [vmem:[%s12586_s0 + $0xc4] ss:$8 sps:$4 sm:$0xff]  }
 0x272   :  { %2210 = vmatmul.mubr.bf16.vlgmr.msra.gmra.mrb[44].mxu1 %v6294_v5  ;;  %2221 = vmatpush1.bf16.msra.mxu0 %v8593_v30  ;;  %v8617_v5 = vld [vmem:[%s12585_s1 + $0x260] sm:$0xff]  }
 0x273   :  { %2264 = vmatpush1.bf16.msra.mxu1 %v8599_v38  ;;  %2222 = vmatprep.subr.bf16.mxu0 %v12882_v29 }
 0x274   :  { %v1779_v39 = vpop.f32.mrb[28].mxu0  ;;  %2265 = vmatprep.subr.bf16.mxu1 %v12882_v29  ;;  %5802 = vmatprep.mubr.msk.bf16.mxu0 %vm180_vm0, %v8607_v17 }
 0x275   :  { %v1786_v41 = vadd.f32 %v1779_v39, %v8430_v43  ;;  %v1781_v45 = vpop.f32.mrb[29].mxu0  ;;  %v1822_v47 = vpop.f32.mrb[28].mxu1  ;;  %5803 = vmatprep.mubr.msk.bf16.mxu1 %vm180_vm0, %v8123_v23  ;;  %v8626_v43 = vld [vmem:[%s12585_s1 + $0x2c4] sm:$0xff]  }
 0x276   :  { %v1782_v51 = vpop.f32.mrb[30].mxu0  ;;  %2223 = vmatpush1.bf16.msra.mxu0 %v8617_v5  ;;  %v1824_v46 = vpop.f32.mrb[29].mxu1  ;;  %12948 = vst [vmem:[#allocation8_spill] sm:$0xff] %v8626_v43 }
 0x277   :  { %v1787_v40 = vadd.f32 %v1782_v51, %v8440_v18  ;;  %v8621_v38 = vadd.f32 %v1822_v47, %v1786_v41  ;;  %2266 = vmatpush1.bf16.msra.mxu1 %v8626_v43  ;;  %v1784_v23 = vpop.f32.mrb[31].mxu0  ;;  %v1825_v39 = vpop.f32.mrb[30].mxu1  ;;  %2224 = vmatprep.subr.bf16.mxu0 %v12882_v29  ;;  %v8636_v46 = vld [vmem:[%s12585_s1 + $0x268] sm:$0xff]   ;;  %v8656_v41 = vld [vmem:[%s12585_s1 + $0x2d4] sm:$0xff]   ;;  %v8670_v51 = vld [vmem:[%s12585_s1 + $0x2dc] sm:$0xff]  }
 0x278   :  { %2267 = vmatprep.subr.bf16.mxu1 %v12882_v29  ;;  %v1827_v45 = vpop.f32.mrb[31].mxu1  ;;  %v8642_v18 = vld [vmem:[%s12585_s1 + $0x2cc] sm:$0xff]   ;;  %12950 = vst [vmem:[#allocation27_spill] sm:$0xff] %v8656_v41  ;;  %v8664_v47 = vld [vmem:[%s12585_s1 + $0x278] sm:$0xff]   ;;  %12951 = vst [vmem:[#allocation9_spill] sm:$0xff] %v8670_v51 }
 0x279   :  { %v8631_v19 = vadd.f32 %v1825_v39, %v1787_v40  ;;  %12949 = vst [vmem:[#allocation26_spill] sm:$0xff] %v8642_v18  ;;  %v8650_v40 = vld [vmem:[%s12585_s1 + $0x270] sm:$0xff]   ;;  %v8678_v23 = vld [vmem:[%s12585_s1 + $0x280] sm:$0xff]   ;;  %v8692_v45 = vld [vmem:[%s12585_s1 + $0x288] sm:$0xff]  }
 0x27a   :  { %2225 = vmatpush1.bf16.msra.mxu0 %v8636_v46  ;;  %v8684_v39 = vld [vmem:[%s12585_s1 + $0x2e4] sm:$0xff]  }
 0x27b   :  { %2268 = vmatpush1.bf16.msra.mxu1 %v8642_v18  ;;  %2226 = vmatprep.subr.bf16.mxu0 %v12882_v29  ;;  %12952 = vst [vmem:[#allocation28_spill] sm:$0xff] %v8684_v39  ;;  %v8726_v18 = vld [vmem:[%s12585_s1 + $0x2fc] sm:$0xff]   ;;  %v8740_v43 = vld [vmem:[%s12585_s1 + $0x304] sm:$0xff]  }
 0x27c   :  { %2269 = vmatprep.subr.bf16.mxu1 %v12882_v29  ;;  %12956 = vst [vmem:[#allocation32_spill] sm:$0xff] %v8726_v18  ;;  %12958 = vst [vmem:[#allocation34_spill] sm:$0xff] %v8740_v43 }
 0x27e   :  { %2227 = vmatpush1.bf16.msra.mxu0 %v8650_v40 }
 0x27f   :  { %2270 = vmatpush1.bf16.msra.mxu1 %v8656_v41  ;;  %2228 = vmatprep.subr.bf16.mxu0 %v12882_v29  ;;  %v8712_v41 = vld [vmem:[%s12585_s1 + $0x2f4] sm:$0xff]  }
 0x280   :  { %2271 = vmatprep.subr.bf16.mxu1 %v12882_v29  ;;  %12954 = vst [vmem:[#allocation30_spill] sm:$0xff] %v8712_v41 }
 0x282   :  { %2229 = vmatpush1.bf16.msra.mxu0 %v8664_v47 }
 0x283   :  { %2272 = vmatpush1.bf16.msra.mxu1 %v8670_v51  ;;  %2230 = vmatprep.subr.bf16.mxu0 %v12882_v29  ;;  %v8698_v51 = vld [vmem:[%s12585_s1 + $0x2ec] sm:$0xff]  }
 0x284   :  { %2273 = vmatprep.subr.bf16.mxu1 %v12882_v29  ;;  %12953 = vst [vmem:[#allocation10_spill] sm:$0xff] %v8698_v51 }
 0x286   :  { %2231 = vmatpush1.bf16.msra.mxu0 %v8678_v23 }
 0x287   :  { %2274 = vmatpush1.bf16.msra.mxu1 %v8684_v39  ;;  %2232 = vmatprep.subr.bf16.mxu0 %v12882_v29  ;;  %v8706_v39 = vld [vmem:[%s12585_s1 + $0x290] sm:$0xff]  }
 0x288   :  { %2275 = vmatprep.subr.bf16.mxu1 %v12882_v29 }
 0x28a   :  { %2233 = vmatpush1.bf16.msra.mxu0 %v8692_v45 }
 0x28b   :  { %2276 = vmatpush1.bf16.msra.mxu1 %v8698_v51  ;;  %2234 = vmatprep.subr.bf16.mxu0 %v12882_v29  ;;  %v8720_v51 = vld [vmem:[%s12585_s1 + $0x298] sm:$0xff]  }
 0x28c   :  { %2277 = vmatprep.subr.bf16.mxu1 %v12882_v29  ;;  %12955 = vst [vmem:[#allocation11_spill] sm:$0xff] %v8720_v51 }
 0x28e   :  { %2235 = vmatpush1.bf16.msra.mxu0 %v8706_v39 }
 0x28f   :  { %2278 = vmatpush1.bf16.msra.mxu1 %v8712_v41  ;;  %2236 = vmatprep.subr.bf16.mxu0 %v12882_v29  ;;  %v8734_v41 = vld [vmem:[%s12585_s1 + $0x2a0] sm:$0xff]  }
 0x290   :  { %2279 = vmatprep.subr.bf16.mxu1 %v12882_v29  ;;  %12957 = vst [vmem:[#allocation12_spill] sm:$0xff] %v8734_v41 }
 0x292   :  { %2237 = vmatpush1.bf16.msra.mxu0 %v8720_v51  ;;  %v8827_v51 = vld [vmem:[%s12587_s2] ss:$0 sm:$0xff] }
 0x293   :  { %2280 = vmatpush1.bf16.msra.mxu1 %v8726_v18  ;;  %2238 = vmatprep.subr.bf16.mxu0 %v12882_v29  ;;  %v8748_v18 = vld [vmem:[%s12585_s1 + $0x2a8] sm:$0xff]   ;;  %12968 = vst [vmem:[#allocation44_spill] sm:$0xff] %v8827_v51 }
 0x294   :  { %2281 = vmatprep.subr.bf16.mxu1 %v12882_v29  ;;  %12959 = vst [vmem:[#allocation13_spill] sm:$0xff] %v8748_v18 }
 0x296   :  { %2239 = vmatpush1.bf16.msra.mxu0 %v8734_v41  ;;  %v8813_v41 = vld [vmem:[%s12585_s1 + $0x328] sm:$0xff]  }
 0x297   :  { %2282 = vmatpush1.bf16.msra.mxu1 %v8740_v43  ;;  %2240 = vmatprep.subr.bf16.mxu0 %v12882_v29  ;;  %v8762_v43 = vld [vmem:[%s12585_s1 + $0x2b0] sm:$0xff]  }
 0x298   :  { %2283 = vmatprep.subr.bf16.mxu1 %v12882_v29  ;;  %12961 = vst [vmem:[#allocation14_spill] sm:$0xff] %v8762_v43 }
 0x29a   :  { %2241 = vmatpush1.bf16.msra.mxu0 %v8748_v18  ;;  %v8768_v18 = vld [vmem:[%s12585_s1 + $0x314] sm:$0xff]  }
 0x29b   :  { %2284 = vmatpush1.bf16.msra.mxu1 %v8754_v59  ;;  %2242 = vmatprep.subr.bf16.mxu0 %v12882_v29  ;;  %12962 = vst [vmem:[#allocation38_spill] sm:$0xff] %v8768_v18  ;;  %v6295_v59 = vld [vmem:[%s12586_s0 + $0xe4] ss:$8 sps:$4 sm:$0xff]  }
 0x29c   :  { %2285 = vmatprep.subr.bf16.mxu1 %v12882_v29 }
 0x29e   :  { %2243 = vmatpush1.bf16.msra.mxu0 %v8762_v43 }
 0x29f   :  { %2286 = vmatpush1.bf16.msra.mxu1 %v8768_v18  ;;  %2244 = vmatprep.subr.bf16.mxu0 %v12882_v29  ;;  %v8783_v18 = vld [vmem:[%s12586_s0 + $0xc0] ss:$8 sps:$4 sm:$0xff]  }
 0x2a0   :  { %2287 = vmatprep.subr.bf16.mxu1 %v12882_v29  ;;  %12963 = vst [vmem:[#allocation15_spill] sm:$0xff] %v8783_v18 }
 0x2a2   :  { %2245 = vmatpush1.bf16.msra.mxu0 %v12892_v21  ;;  %v8796_v21 = vld [vmem:[%s12585_s1 + $0x64] sm:$0xff]  }
 0x2a3   :  { %2288 = vmatpush1.bf16.msra.mxu1 %v12919_v44  ;;  %2321 = vmatprep.subr.bf16.mxu0 %v12882_v29  ;;  %v8790_v44 = vld [vmem:[%s12585_s1 + $0x320] sm:$0xff]   ;;  %12965 = vst [vmem:[#allocation16_spill] sm:$0xff] %v8796_v21 }
 0x2a4   :  { %2368 = vmatprep.subr.bf16.mxu1 %v12882_v29  ;;  %12964 = vst [vmem:[#allocation40_spill] sm:$0xff] %v8790_v44 }
 0x2a5   :  { %2253 = vmatmul.mubr.bf16.vlgmr.msra.gmra.mrb[48].mxu0 %v8783_v18 }
 0x2a6   :  { %2296 = vmatmul.mubr.bf16.vlgmr.msra.gmra.mrb[48].mxu1 %v8182_v48  ;;  %2322 = vmatpush1.bf16.msra.mxu0 %v8790_v44  ;;  %v8806_v44 = vld [vmem:[%s12586_s0 + $0x64] ss:$8 sps:$4 sm:$0xff]  }
 0x2a7   :  { %2369 = vmatpush1.bf16.msra.mxu1 %v8796_v21  ;;  %2323 = vmatprep.subr.bf16.mxu0 %v12882_v29  ;;  %12966 = vst [vmem:[#allocation42_spill] sm:$0xff] %v8806_v44 }
 0x2a8   :  { %v1865_v43 = vpop.f32.mrb[32].mxu0  ;;  %2370 = vmatprep.subr.bf16.mxu1 %v12882_v29  ;;  %5808 = vmatprep.mubr.msk.bf16.mxu0 %vm180_vm0, %v6295_v59 }
 0x2a9   :  { %v1872_v48 = vadd.f32 %v1865_v43, %v8621_v38  ;;  %v1867_v18 = vpop.f32.mrb[33].mxu0  ;;  %v1923_v4 = vpop.f32.mrb[32].mxu1  ;;  %5809 = vmatprep.mubr.msk.bf16.mxu1 %vm180_vm0, %v8806_v44 }
 0x2aa   :  { %v1868_v21 = vpop.f32.mrb[34].mxu0  ;;  %2324 = vmatpush1.bf16.msra.mxu0 %v8813_v41  ;;  %v1925_v59 = vpop.f32.mrb[33].mxu1  ;;  %v8820_v18 = vld [vmem:[%s12585_s1 + $0x6c] sm:$0xff]  }
 0x2ab   :  { %v1873_v38 = vadd.f32 %v1868_v21, %v8631_v19  ;;  %v1930_v43 = vadd.f32 %v1923_v4, %v1872_v48  ;;  %12967 = vst [vmem:[#allocation18_spill] sm:$0xff] %v8820_v18  ;;  %2371 = vmatpush1.bf16.msra.mxu1 %v8820_v18  ;;  %v1870_v44 = vpop.f32.mrb[35].mxu0  ;;  %v1926_v52 = vpop.f32.mrb[34].mxu1  ;;  %2325 = vmatprep.subr.bf16.mxu0 %v12882_v29  ;;  %v8834_v48 = vld [vmem:[%s12585_s1 + $0x330] sm:$0xff]  }
 0x2ac   :  { %2372 = vmatprep.subr.bf16.mxu1 %v12882_v29  ;;  %v1928_v19 = vpop.f32.mrb[35].mxu1  ;;  %v8841_v59 = vld [vmem:[%s12585_s1 + $0x74] sm:$0xff]  }
 0x2ad   :  { %v1932_v21 = vadd.f32 %v8827_v51, %v1930_v43  ;;  %v1931_v4 = vadd.f32 %v1926_v52, %v1873_v38  ;;  %12969 = vst [vmem:[#allocation20_spill] sm:$0xff] %v8841_v59  ;;  %v8849_v43 = vld [vmem:[%s12585_s1 + $0x338] sm:$0xff]  }
 0x2ae   :  { %2326 = vmatpush1.bf16.msra.mxu0 %v8834_v48  ;;  %v8855_v19 = vld [vmem:[%s12585_s1 + $0x7c] sm:$0xff]   ;;  %v8953_v18 = vld [vmem:[%s12585_s1 + $0xb4] sm:$0xff]  }
 0x2af   :  { %v1933_v44 = vadd.f32 %v8827_v51, %v1931_v4  ;;  %2373 = vmatpush1.bf16.msra.mxu1 %v8841_v59  ;;  %2327 = vmatprep.subr.bf16.mxu0 %v12882_v29  ;;  %v1934_v52 = vmax.f32 %v1932_v21, 0.0  ;;  %12970 = vst [vmem:[#allocation46_spill] sm:$0xff] %v8855_v19  ;;  %v8863_v21 = vld [vmem:[%s12585_s1 + $0x340] sm:$0xff]   ;;  %v8939_v51 = vld [vmem:[%s12585_s1 + $0xac] sm:$0xff]   ;;  %12982 = vst [vmem:[#allocation43_spill] sm:$0xff] %v8953_v18 }
 0x2b0   :  { %2374 = vmatprep.subr.bf16.mxu1 %v12882_v29  ;;  %v8925_v59 = vld [vmem:[%s12585_s1 + $0xa4] sm:$0xff]   ;;  %12980 = vst [vmem:[#allocation39_spill] sm:$0xff] %v8939_v51 }
 0x2b1   :  { %v1935_v38 = vmax.f32 %v1933_v44, 0.0  ;;  %v8869_v44 = vld [vmem:[%s12585_s1 + $0x84] sm:$0xff]   ;;  %12978 = vst [vmem:[#allocation35_spill] sm:$0xff] %v8925_v59 }
 0x2b2   :  { %2328 = vmatpush1.bf16.msra.mxu0 %v8849_v43  ;;  %12971 = vst [vmem:[#allocation22_spill] sm:$0xff] %v8869_v44 }
 0x2b3   :  { %2375 = vmatpush1.bf16.msra.mxu1 %v8855_v19  ;;  %2329 = vmatprep.subr.bf16.mxu0 %v12882_v29  ;;  %v6116_v4 = vpack.i.bf16 %v1935_v38, %v1934_v52  ;;  %v8877_v52 = vld [vmem:[%s12585_s1 + $0x348] sm:$0xff]   ;;  %v8911_v19 = vld [vmem:[%s12585_s1 + $0x9c] sm:$0xff]  }
 0x2b4   :  { %2376 = vmatprep.subr.bf16.mxu1 %v12882_v29  ;;  %v8883_v38 = vld [vmem:[%s12585_s1 + $0x8c] sm:$0xff]   ;;  %12976 = vst [vmem:[#allocation31_spill] sm:$0xff] %v8911_v19 }
 0x2b5   :  { %6117 = vrot.lane.b32.xlu0 %v6116_v4, %s6818_s24  ;;  %12972 = vst [vmem:[#allocation48_spill] sm:$0xff] %v8883_v38  ;;  %v8891_v4 = vld [vmem:[%s12585_s1 + $0x350] sm:$0xff]   ;;  %s6820_s24 = smov 60  }
 0x2b6   :  { %2330 = vmatpush1.bf16.msra.mxu0 %v8863_v21  ;;  %12973 = vst [vmem:[#allocation52_spill] sm:$0xff] %v8891_v4 }
 0x2b7   :  { %2377 = vmatpush1.bf16.msra.mxu1 %v8869_v44  ;;  %2331 = vmatprep.subr.bf16.mxu0 %v12882_v29  ;;  %v8897_v44 = vld [vmem:[%s12585_s1 + $0x94] sm:$0xff]  }
 0x2b8   :  { %2378 = vmatprep.subr.bf16.mxu1 %v12882_v29  ;;  %12974 = vst [vmem:[#allocation29_spill] sm:$0xff] %v8897_v44 }
 0x2ba   :  { %2332 = vmatpush1.bf16.msra.mxu0 %v8877_v52 }
 0x2bb   :  { %2379 = vmatpush1.bf16.msra.mxu1 %v8883_v38  ;;  %2333 = vmatprep.subr.bf16.mxu0 %v12882_v29  ;;  %v8905_v38 = vld [vmem:[%s12585_s1 + $0x358] sm:$0xff]  }
 0x2bc   :  { %2380 = vmatprep.subr.bf16.mxu1 %v12882_v29  ;;  %12975 = vst [vmem:[#allocation53_spill] sm:$0xff] %v8905_v38 }
 0x2be   :  { %2334 = vmatpush1.bf16.msra.mxu0 %v8891_v4 }
 0x2bf   :  { %2381 = vmatpush1.bf16.msra.mxu1 %v8897_v44  ;;  %2335 = vmatprep.subr.bf16.mxu0 %v12882_v29  ;;  %v8919_v44 = vld [vmem:[%s12585_s1 + $0x360] sm:$0xff]  }
 0x2c0   :  { %2382 = vmatprep.subr.bf16.mxu1 %v12882_v29  ;;  %12977 = vst [vmem:[#allocation33_spill] sm:$0xff] %v8919_v44 }
 0x2c2   :  { %2336 = vmatpush1.bf16.msra.mxu0 %v8905_v38  ;;  %v9010_v38 = vld [vmem:[%s12585_s1 + $0x8] sm:$0xff]  }
 0x2c3   :  { %2383 = vmatpush1.bf16.msra.mxu1 %v8911_v19  ;;  %2337 = vmatprep.subr.bf16.mxu0 %v12882_v29  ;;  %v8933_v19 = vld [vmem:[%s12585_s1 + $0x368] sm:$0xff]  }
 0x2c4   :  { %2384 = vmatprep.subr.bf16.mxu1 %v12882_v29  ;;  %12979 = vst [vmem:[#allocation37_spill] sm:$0xff] %v8933_v19 }
 0x2c6   :  { %2338 = vmatpush1.bf16.msra.mxu0 %v8919_v44 }
 0x2c7   :  { %2385 = vmatpush1.bf16.msra.mxu1 %v8925_v59  ;;  %2339 = vmatprep.subr.bf16.mxu0 %v12882_v29  ;;  %v8947_v59 = vld [vmem:[%s12585_s1 + $0x370] sm:$0xff]  }
 0x2c8   :  { %2386 = vmatprep.subr.bf16.mxu1 %v12882_v29  ;;  %12981 = vst [vmem:[#allocation41_spill] sm:$0xff] %v8947_v59 }
 0x2ca   :  { %2340 = vmatpush1.bf16.msra.mxu0 %v8933_v19 }
 0x2cb   :  { %2387 = vmatpush1.bf16.msra.mxu1 %v8939_v51  ;;  %2341 = vmatprep.subr.bf16.mxu0 %v12882_v29  ;;  %v8961_v51 = vld [vmem:[%s12585_s1 + $0x378] sm:$0xff]  }
 0x2cc   :  { %2388 = vmatprep.subr.bf16.mxu1 %v12882_v29  ;;  %12983 = vst [vmem:[#allocation45_spill] sm:$0xff] %v8961_v51 }
 0x2ce   :  { %2342 = vmatpush1.bf16.msra.mxu0 %v8947_v59  ;;  %v8967_v59 = vld [vmem:[%s12585_s1 + $0xbc] sm:$0xff]  }
 0x2cf   :  { %2389 = vmatpush1.bf16.msra.mxu1 %v8953_v18  ;;  %2343 = vmatprep.subr.bf16.mxu0 %v12882_v29  ;;  %12984 = vst [vmem:[#allocation47_spill] sm:$0xff] %v8967_v59  ;;  %v6297_v18 = vld [vmem:[%s12586_s0 + $0xe0] ss:$8 sps:$4 sm:$0xff]  }
 0x2d0   :  { %2390 = vmatprep.subr.bf16.mxu1 %v12882_v29 }
 0x2d2   :  { %2344 = vmatpush1.bf16.msra.mxu0 %v8961_v51  ;;  %v8988_v51 = vld [vmem:[%s12585_s1] sm:$0xff]  }
 0x2d3   :  { %2391 = vmatpush1.bf16.msra.mxu1 %v8967_v59  ;;  %2345 = vmatprep.subr.bf16.mxu0 %v12882_v29  ;;  %v8982_v59 = vld [vmem:[%s12586_s0 + $0x60] ss:$8 sps:$4 sm:$0xff]   ;;  %12986 = vst [vmem:[#allocation50_spill] sm:$0xff] %v8988_v51 }
 0x2d4   :  { %2392 = vmatprep.subr.bf16.mxu1 %v12882_v29  ;;  %12985 = vst [vmem:[#allocation49_spill] sm:$0xff] %v8982_v59 }
 0x2d6   :  { %2346 = vmatpush1.bf16.msra.mxu0 %v12920_v50 }
 0x2d7   :  { %2393 = vmatpush1.bf16.msra.mxu1 %v12937_v49  ;;  %2409 = vmatprep.subr.bf16.mxu0 %v12882_v29  ;;  %v8994_v49 = vld [vmem:[%s12585_s1 + $0xc8] sm:$0xff]  }
 0x2d8   :  { %2450 = vmatprep.subr.bf16.mxu1 %v12882_v29  ;;  %12987 = vst [vmem:[#allocation3_spill] sm:$0xff] %v8994_v49 }
 0x2d9   :  { %2354 = vmatmul.mubr.bf16.vlgmr.msra.gmra.mrb[52].mxu0 %v6297_v18 }
 0x2da   :  { %2401 = vmatmul.mubr.bf16.vlgmr.msra.gmra.mrb[52].mxu1 %v8982_v59  ;;  %2410 = vmatpush1.bf16.msra.mxu0 %v8988_v51  ;;  %v6460_v59 = vld [vmem:[%s12586_s0 + $0x54] ss:$8 sps:$4 sm:$0xff]  }
 0x2db   :  { %2451 = vmatpush1.bf16.msra.mxu1 %v8994_v49  ;;  %2411 = vmatprep.subr.bf16.mxu0 %v12882_v29 }
 0x2dc   :  { %v1970_v18 = vpop.f32.mrb[36].mxu0  ;;  %2452 = vmatprep.subr.bf16.mxu1 %v12882_v29  ;;  %5810 = vmatprep.mubr.msk.bf16.mxu0 %vm180_vm0, %v6460_v59  ;;  %v9016_v59 = vld [vmem:[%s12585_s1 + $0xd0] sm:$0xff]  }
 0x2dd   :  { %v2011_v50 = vpop.f32.mrb[36].mxu1  ;;  %v1972_v51 = vpop.f32.mrb[37].mxu0  ;;  %5811 = vmatprep.mubr.msk.bf16.mxu1 %vm180_vm0, %v8271_v31  ;;  %12988 = vst [vmem:[#allocation56_spill] sm:$0xff] %v9016_v59 }
 0x2de   :  { %v9005_v19 = vadd.f32 %v2011_v50, %v1970_v18  ;;  %v2013_v44 = vpop.f32.mrb[37].mxu1  ;;  %v1973_v49 = vpop.f32.mrb[38].mxu0  ;;  %2412 = vmatpush1.bf16.msra.mxu0 %v9010_v38  ;;  %v6475_v18 = vld [vmem:[%s12586_s0 + $0xa4] ss:$8 sps:$4 sm:$0xff]  }
 0x2df   :  { %v2014_v4 = vpop.f32.mrb[38].mxu1  ;;  %2453 = vmatpush1.bf16.msra.mxu1 %v9016_v59  ;;  %v1975_v31 = vpop.f32.mrb[39].mxu0  ;;  %2413 = vmatprep.subr.bf16.mxu0 %v12882_v29  ;;  %v9026_v44 = vld [vmem:[%s12585_s1 + $0x10] sm:$0xff]  }
 0x2e0   :  { %v9020_v50 = vadd.f32 %v2014_v4, %v1973_v49  ;;  %2454 = vmatprep.subr.bf16.mxu1 %v12882_v29  ;;  %v2016_v51 = vpop.f32.mrb[39].mxu1  ;;  %v9035_v49 = vld [vmem:[%s12585_s1 + $0x18] sm:$0xff]  }
 0x2e2   :  { %2414 = vmatpush1.bf16.msra.mxu0 %v9026_v44 }
 0x2e3   :  { %2455 = vmatpush1.bf16.msra.mxu1 %v8287_v58  ;;  %2415 = vmatprep.subr.bf16.mxu0 %v12882_v29  ;;  %v9044_v58 = vld [vmem:[%s12585_s1 + $0x20] sm:$0xff]  }
 0x2e4   :  { %2456 = vmatprep.subr.bf16.mxu1 %v12882_v29 }
 0x2e6   :  { %2416 = vmatpush1.bf16.msra.mxu0 %v9035_v49 }
 0x2e7   :  { %2457 = vmatpush1.bf16.msra.mxu1 %v8296_v2  ;;  %2417 = vmatprep.subr.bf16.mxu0 %v12882_v29  ;;  %v9053_v2 = vld [vmem:[%s12585_s1 + $0x28] sm:$0xff]  }
 0x2e8   :  { %2458 = vmatprep.subr.bf16.mxu1 %v12882_v29 }
 0x2ea   :  { %2418 = vmatpush1.bf16.msra.mxu0 %v9044_v58 }
 0x2eb   :  { %2459 = vmatpush1.bf16.msra.mxu1 %v8305_v57  ;;  %2419 = vmatprep.subr.bf16.mxu0 %v12882_v29  ;;  %v9062_v57 = vld [vmem:[%s12585_s1 + $0x30] sm:$0xff]  }
 0x2ec   :  { %2460 = vmatprep.subr.bf16.mxu1 %v12882_v29 }
 0x2ee   :  { %2420 = vmatpush1.bf16.msra.mxu0 %v9053_v2 }
 0x2ef   :  { %2461 = vmatpush1.bf16.msra.mxu1 %v8314_v61  ;;  %2421 = vmatprep.subr.bf16.mxu0 %v12882_v29  ;;  %v9071_v61 = vld [vmem:[%s12585_s1 + $0x38] sm:$0xff]  }
 0x2f0   :  { %2462 = vmatprep.subr.bf16.mxu1 %v12882_v29 }
 0x2f2   :  { %2422 = vmatpush1.bf16.msra.mxu0 %v9062_v57 }
 0x2f3   :  { %2463 = vmatpush1.bf16.msra.mxu1 %v8323_v6  ;;  %2423 = vmatprep.subr.bf16.mxu0 %v12882_v29  ;;  %v9080_v6 = vld [vmem:[%s12585_s1 + $0x40] sm:$0xff]  }
 0x2f4   :  { %2464 = vmatprep.subr.bf16.mxu1 %v12882_v29 }
 0x2f6   :  { %2424 = vmatpush1.bf16.msra.mxu0 %v9071_v61 }
 0x2f7   :  { %2465 = vmatpush1.bf16.msra.mxu1 %v8332_v8  ;;  %2425 = vmatprep.subr.bf16.mxu0 %v12882_v29  ;;  %v9089_v8 = vld [vmem:[%s12585_s1 + $0x48] sm:$0xff]  }
 0x2f8   :  { %2466 = vmatprep.subr.bf16.mxu1 %v12882_v29 }
 0x2fa   :  { %2426 = vmatpush1.bf16.msra.mxu0 %v9080_v6 }
 0x2fb   :  { %2467 = vmatpush1.bf16.msra.mxu1 %v8341_v10  ;;  %2427 = vmatprep.subr.bf16.mxu0 %v12882_v29  ;;  %v9098_v10 = vld [vmem:[%s12585_s1 + $0x50] sm:$0xff]  }
 0x2fc   :  { %2468 = vmatprep.subr.bf16.mxu1 %v12882_v29 }
 0x2fe   :  { %2428 = vmatpush1.bf16.msra.mxu0 %v9089_v8 }
 0x2ff   :  { %2469 = vmatpush1.bf16.msra.mxu1 %v8350_v12  ;;  %2429 = vmatprep.subr.bf16.mxu0 %v12882_v29  ;;  %v9107_v12 = vld [vmem:[%s12585_s1 + $0x58] sm:$0xff]  }
 0x300   :  { %2470 = vmatprep.subr.bf16.mxu1 %v12882_v29 }
 0x302   :  { %2430 = vmatpush1.bf16.msra.mxu0 %v9098_v10 }
 0x303   :  { %2471 = vmatpush1.bf16.msra.mxu1 %v8364_v14  ;;  %2431 = vmatprep.subr.bf16.mxu0 %v12882_v29  ;;  %v6473_v14 = vld [vmem:[%s12586_s0 + $0x50] ss:$8 sps:$4 sm:$0xff]  }
 0x304   :  { %2472 = vmatprep.subr.bf16.mxu1 %v12882_v29 }
 0x306   :  { %2432 = vmatpush1.bf16.msra.mxu0 %v9107_v12 }
 0x307   :  { %2473 = vmatpush1.bf16.msra.mxu1 %v8378_v62  ;;  %2433 = vmatprep.subr.bf16.mxu0 %v12882_v29  ;;  %v9124_v62 = vld [vmem:[%s12585_s1 + $0x12c] sm:$0xff]  }
 0x308   :  { %2474 = vmatprep.subr.bf16.mxu1 %v12882_v29  ;;  %12989 = vst [vmem:[#allocation54_spill] sm:$0xff] %v9124_v62 }
 0x30a   :  { %2434 = vmatpush1.bf16.msra.mxu0 %v12938_v16 }
 0x30b   :  { %2475 = vmatpush1.bf16.msra.mxu1 %v12943_v27  ;;  %2493 = vmatprep.subr.bf16.mxu0 %v12882_v29  ;;  %v9145_v27 = vld [vmem:[%s12585_s1 + $0x134] sm:$0xff]  }
 0x30c   :  { %2536 = vmatprep.subr.bf16.mxu1 %v12882_v29  ;;  %12991 = vst [vmem:[#allocation55_spill] sm:$0xff] %v9145_v27 }
 0x30d   :  { %2442 = vmatmul.mubr.bf16.vlgmr.msra.gmra.mrb[56].mxu0 %v6473_v14  ;;  %v9138_v14 = vld [vmem:[%s12586_s0 + $0xb4] ss:$8 sps:$4 sm:$0xff]  }
 0x30e   :  { %2483 = vmatmul.mubr.bf16.vlgmr.msra.gmra.mrb[56].mxu1 %v8402_v36  ;;  %2494 = vmatpush1.bf16.msra.mxu0 %v9124_v62  ;;  %12990 = vst [vmem:[#allocation57_spill] sm:$0xff] %v9138_v14 }
 0x30f   :  { %2537 = vmatpush1.bf16.msra.mxu1 %v8408_v25  ;;  %2495 = vmatprep.subr.bf16.mxu0 %v12882_v29 }
 0x310   :  { %v2067_v4 = vpop.f32.mrb[40].mxu0  ;;  %2538 = vmatprep.subr.bf16.mxu1 %v12882_v29  ;;  %5812 = vmatprep.mubr.msk.bf16.mxu0 %vm180_vm0, %v6475_v18 }
 0x311   :  { %v2074_v36 = vadd.f32 %v2067_v4, %v9005_v19  ;;  %v2069_v31 = vpop.f32.mrb[41].mxu0  ;;  %v2110_v51 = vpop.f32.mrb[40].mxu1  ;;  %5813 = vmatprep.mubr.msk.bf16.mxu1 %vm180_vm0, %v9138_v14 }
 0x312   :  { %v2070_v25 = vpop.f32.mrb[42].mxu0  ;;  %2496 = vmatpush1.bf16.msra.mxu0 %v9145_v27  ;;  %v2112_v18 = vpop.f32.mrb[41].mxu1  ;;  %v9159_v27 = vld [vmem:[%s12585_s1 + $0x13c] sm:$0xff]  }
 0x313   :  { %v2075_v19 = vadd.f32 %v2070_v25, %v9020_v50  ;;  %v9149_v4 = vadd.f32 %v2110_v51, %v2074_v36  ;;  %2539 = vmatpush1.bf16.msra.mxu1 %v8426_v0  ;;  %v2072_v31 = vpop.f32.mrb[43].mxu0  ;;  %v2113_v59 = vpop.f32.mrb[42].mxu1  ;;  %2497 = vmatprep.subr.bf16.mxu0 %v12882_v29  ;;  %v9168_v0 = vld [vmem:[%s12585_s1 + $0x144] sm:$0xff]  }
 0x314   :  { %2540 = vmatprep.subr.bf16.mxu1 %v12882_v29  ;;  %v2115_v14 = vpop.f32.mrb[43].mxu1 }
 0x315   :  { %v9154_v62 = vadd.f32 %v2113_v59, %v2075_v19 }
 0x316   :  { %2498 = vmatpush1.bf16.msra.mxu0 %v9159_v27 }
 0x317   :  { %2541 = vmatpush1.bf16.msra.mxu1 %v8445_v53  ;;  %2499 = vmatprep.subr.bf16.mxu0 %v12882_v29  ;;  %v9177_v53 = vld [vmem:[%s12585_s1 + $0x14c] sm:$0xff]  }
 0x318   :  { %2542 = vmatprep.subr.bf16.mxu1 %v12882_v29 }
 0x31a   :  { %2500 = vmatpush1.bf16.msra.mxu0 %v9168_v0 }
 0x31b   :  { %2543 = vmatpush1.bf16.msra.mxu1 %v8459_v3  ;;  %2501 = vmatprep.subr.bf16.mxu0 %v12882_v29  ;;  %v9186_v3 = vld [vmem:[%s12585_s1 + $0x154] sm:$0xff]  }
 0x31c   :  { %2544 = vmatprep.subr.bf16.mxu1 %v12882_v29 }
 0x31e   :  { %2502 = vmatpush1.bf16.msra.mxu0 %v9177_v53 }
 0x31f   :  { %2545 = vmatpush1.bf16.msra.mxu1 %v8473_v24  ;;  %2503 = vmatprep.subr.bf16.mxu0 %v12882_v29  ;;  %v9195_v24 = vld [vmem:[%s12585_s1 + $0x15c] sm:$0xff]  }
 0x320   :  { %2546 = vmatprep.subr.bf16.mxu1 %v12882_v29 }
 0x322   :  { %2504 = vmatpush1.bf16.msra.mxu0 %v9186_v3 }
 0x323   :  { %2547 = vmatpush1.bf16.msra.mxu1 %v8487_v34  ;;  %2505 = vmatprep.subr.bf16.mxu0 %v12882_v29  ;;  %v9204_v34 = vld [vmem:[%s12585_s1 + $0x164] sm:$0xff]  }
 0x324   :  { %2548 = vmatprep.subr.bf16.mxu1 %v12882_v29 }
 0x326   :  { %2506 = vmatpush1.bf16.msra.mxu0 %v9195_v24 }
 0x327   :  { %2549 = vmatpush1.bf16.msra.mxu1 %v8501_v7  ;;  %2507 = vmatprep.subr.bf16.mxu0 %v12882_v29  ;;  %v9213_v7 = vld [vmem:[%s12585_s1 + $0x16c] sm:$0xff]  }
 0x328   :  { %2550 = vmatprep.subr.bf16.mxu1 %v12882_v29 }
 0x32a   :  { %2508 = vmatpush1.bf16.msra.mxu0 %v9204_v34 }
 0x32b   :  { %2551 = vmatpush1.bf16.msra.mxu1 %v8515_v11  ;;  %2509 = vmatprep.subr.bf16.mxu0 %v12882_v29 }
 0x32c   :  { %2552 = vmatprep.subr.bf16.mxu1 %v12882_v29 }
 0x32e   :  { %2510 = vmatpush1.bf16.msra.mxu0 %v9213_v7 }
 0x32f   :  { %2553 = vmatpush1.bf16.msra.mxu1 %v8529_v15  ;;  %2511 = vmatprep.subr.bf16.mxu0 %v12882_v29 }
 0x330   :  { %2554 = vmatprep.subr.bf16.mxu1 %v12882_v29 }
 0x332   :  { %2512 = vmatpush1.bf16.msra.mxu0 %v8356_v60  ;;  %v6485_v60 = vld [vmem:[%s12586_s0 + $0xa0] ss:$8 sps:$4 sm:$0xff]  }
 0x333   :  { %2555 = vmatpush1.bf16.msra.mxu1 %v8543_v42  ;;  %2513 = vmatprep.subr.bf16.mxu0 %v12882_v29 }
 0x334   :  { %2556 = vmatprep.subr.bf16.mxu1 %v12882_v29 }
 0x336   :  { %2514 = vmatpush1.bf16.msra.mxu0 %v8370_v28  ;;  %v6298_v28 = vld [vmem:[%s12586_s0 + $0xf4] ss:$8 sps:$4 sm:$0xff]  }
 0x337   :  { %2557 = vmatpush1.bf16.msra.mxu1 %v8557_v33  ;;  %2515 = vmatprep.subr.bf16.mxu0 %v12882_v29 }
 0x338   :  { %2558 = vmatprep.subr.bf16.mxu1 %v12882_v29 }
 0x33a   :  { %2516 = vmatpush1.bf16.msra.mxu0 %v8384_v1  ;;  %v9244_v1 = vld [vmem:[%s12586_s0 + $0xb0] ss:$8 sps:$4 sm:$0xff]  }
 0x33b   :  { %2559 = vmatpush1.bf16.msra.mxu1 %v8571_v56  ;;  %2517 = vmatprep.subr.bf16.mxu0 %v12882_v29 }
 0x33c   :  { %2560 = vmatprep.subr.bf16.mxu1 %v12882_v29 }
 0x33e   :  { %2518 = vmatpush1.bf16.msra.mxu0 %v7178_v63 }
 0x33f   :  { %2561 = vmatpush1.bf16.msra.mxu1 %v7376_v32  ;;  %2579 = vmatprep.subr.bf16.mxu0 %v12882_v29 }
 0x340   :  { %2637 = vmatprep.subr.bf16.mxu1 %v12882_v29 }
 0x341   :  { %2526 = vmatmul.mubr.bf16.vlgmr.msra.gmra.mrb[60].mxu0 %v6485_v60 }
 0x342   :  { %2569 = vmatmul.mubr.bf16.vlgmr.msra.gmra.mrb[60].mxu1 %v9244_v1  ;;  %2580 = vmatpush1.bf16.msra.mxu0 %v8414_v55 }
 0x343   :  { %2638 = vmatpush1.bf16.msra.mxu1 %v8593_v30  ;;  %2581 = vmatprep.subr.bf16.mxu0 %v12882_v29 }
 0x344   :  { %v2153_v11 = vpop.f32.mrb[44].mxu0  ;;  %2639 = vmatprep.subr.bf16.mxu1 %v12882_v29  ;;  %5814 = vmatprep.mubr.msk.bf16.mxu0 %vm180_vm0, %v8607_v17 }
 0x345   :  { %v2160_v15 = vadd.f32 %v2153_v11, %v9149_v4  ;;  %v2155_v42 = vpop.f32.mrb[45].mxu0  ;;  %v2211_v33 = vpop.f32.mrb[44].mxu1  ;;  %5819 = vmatprep.mubr.msk.bf16.mxu1 %vm180_vm0, %v6298_v28  ;;  %v13004_v4 = vld [vmem:[#allocation8_spill] sm:$0xff] }
 0x346   :  { %v2156_v56 = vpop.f32.mrb[46].mxu0  ;;  %2582 = vmatpush1.bf16.msra.mxu0 %v8435_v54  ;;  %v2213_v55 = vpop.f32.mrb[45].mxu1  ;;  %v12992_v54 = vld [vmem:[#allocation11_spill] sm:$0xff] }
 0x347   :  { %v2161_v30 = vadd.f32 %v2156_v56, %v9154_v62  ;;  %v9257_v59 = vadd.f32 %v2211_v33, %v2160_v15  ;;  %2640 = vmatpush1.bf16.msra.mxu1 %v8617_v5  ;;  %v2158_v50 = vpop.f32.mrb[47].mxu0  ;;  %v2214_v36 = vpop.f32.mrb[46].mxu1  ;;  %2583 = vmatprep.subr.bf16.mxu0 %v12882_v29  ;;  %v6300_v5 = vld [vmem:[%s12586_s0 + $0xf0] ss:$8 sps:$4 sm:$0xff]   ;;  %v13005_v56 = vld [vmem:[#allocation26_spill] sm:$0xff]  ;;  %v13006_v55 = vld [vmem:[#allocation27_spill] sm:$0xff] }
 0x348   :  { %2641 = vmatprep.subr.bf16.mxu1 %v12882_v29  ;;  %v2216_v17 = vpop.f32.mrb[47].mxu1  ;;  %v13014_v50 = vld [vmem:[#allocation33_spill] sm:$0xff] }
 0x349   :  { %v9262_v51 = vadd.f32 %v2214_v36, %v2161_v30  ;;  %v13010_v30 = vld [vmem:[#allocation52_spill] sm:$0xff]  ;;  %v13015_v36 = vld [vmem:[#allocation34_spill] sm:$0xff]  ;;  %v13016_v17 = vld [vmem:[#allocation37_spill] sm:$0xff] }
 0x34a   :  { %2584 = vmatpush1.bf16.msra.mxu0 %v8451_v20  ;;  %v12993_v20 = vld [vmem:[#allocation19_spill] sm:$0xff] }
 0x34b   :  { %2642 = vmatpush1.bf16.msra.mxu1 %v8636_v46  ;;  %2585 = vmatprep.subr.bf16.mxu0 %v12882_v29  ;;  %v13000_v46 = vld [vmem:[#allocation23_spill] sm:$0xff] }
 0x34c   :  { %2643 = vmatprep.subr.bf16.mxu1 %v12882_v29 }
 0x34e   :  { %2586 = vmatpush1.bf16.msra.mxu0 %v8465_v22  ;;  %v12994_v22 = vld [vmem:[#allocation12_spill] sm:$0xff] }
 0x34f   :  { %2644 = vmatpush1.bf16.msra.mxu1 %v8650_v40  ;;  %2587 = vmatprep.subr.bf16.mxu0 %v12882_v29  ;;  %v9314_v40 = vld [vmem:[%s12586_s0 + $0x104] ss:$8 sps:$4 sm:$0xff]  }
 0x350   :  { %2645 = vmatprep.subr.bf16.mxu1 %v12882_v29 }
 0x352   :  { %2588 = vmatpush1.bf16.msra.mxu0 %v8479_v26  ;;  %v12995_v26 = vld [vmem:[#allocation6_spill] sm:$0xff] }
 0x353   :  { %2646 = vmatpush1.bf16.msra.mxu1 %v8664_v47  ;;  %2589 = vmatprep.subr.bf16.mxu0 %v12882_v29  ;;  %v13001_v47 = vld [vmem:[#allocation15_spill] sm:$0xff] }
 0x354   :  { %2647 = vmatprep.subr.bf16.mxu1 %v12882_v29 }
 0x356   :  { %2590 = vmatpush1.bf16.msra.mxu0 %v8493_v35  ;;  %v12996_v35 = vld [vmem:[#allocation13_spill] sm:$0xff] }
 0x357   :  { %2648 = vmatpush1.bf16.msra.mxu1 %v8678_v23  ;;  %2591 = vmatprep.subr.bf16.mxu0 %v12882_v29  ;;  %v9320_v23 = vld [vmem:[%s12586_s0 + $0x114] ss:$8 sps:$4 sm:$0xff]  }
 0x358   :  { %2649 = vmatprep.subr.bf16.mxu1 %v12882_v29 }
 0x35a   :  { %2592 = vmatpush1.bf16.msra.mxu0 %v8507_v9  ;;  %v12997_v9 = vld [vmem:[#allocation21_spill] sm:$0xff] }
 0x35b   :  { %2650 = vmatpush1.bf16.msra.mxu1 %v8692_v45  ;;  %2593 = vmatprep.subr.bf16.mxu0 %v12882_v29  ;;  %v13003_v45 = vld [vmem:[#allocation40_spill] sm:$0xff] }
 0x35c   :  { %2651 = vmatprep.subr.bf16.mxu1 %v12882_v29 }
 0x35e   :  { %2594 = vmatpush1.bf16.msra.mxu0 %v8521_v13  ;;  %v12998_v13 = vld [vmem:[#allocation14_spill] sm:$0xff] }
 0x35f   :  { %2652 = vmatpush1.bf16.msra.mxu1 %v8706_v39  ;;  %2595 = vmatprep.subr.bf16.mxu0 %v12882_v29  ;;  %v13002_v39 = vld [vmem:[#allocation25_spill] sm:$0xff] }
 0x360   :  { %2653 = vmatprep.subr.bf16.mxu1 %v12882_v29 }
 0x362   :  { %2596 = vmatpush1.bf16.msra.mxu0 %v8535_v37  ;;  %v12999_v37 = vld [vmem:[#allocation7_spill] sm:$0xff] }
 0x363   :  { %2654 = vmatpush1.bf16.msra.mxu1 %v12992_v54  ;;  %2597 = vmatprep.subr.bf16.mxu0 %v12882_v29  ;;  %v13018_v54 = vld [vmem:[#allocation41_spill] sm:$0xff] }
 0x364   :  { %2655 = vmatprep.subr.bf16.mxu1 %v12882_v29 }
 0x366   :  { %2598 = vmatpush1.bf16.msra.mxu0 %v12993_v20  ;;  %v13019_v20 = vld [vmem:[#allocation38_spill] sm:$0xff] }
 0x367   :  { %2656 = vmatpush1.bf16.msra.mxu1 %v12994_v22  ;;  %2599 = vmatprep.subr.bf16.mxu0 %v12882_v29  ;;  %v13020_v22 = vld [vmem:[#allocation45_spill] sm:$0xff] }
 0x368   :  { %2657 = vmatprep.subr.bf16.mxu1 %v12882_v29 }
 0x36a   :  { %2600 = vmatpush1.bf16.msra.mxu0 %v12995_v26  ;;  %v9383_v26 = vld [vmem:[%s12586_s0 + $0x100] ss:$8 sps:$4 sm:$0xff]  }
 0x36b   :  { %2658 = vmatpush1.bf16.msra.mxu1 %v12996_v35  ;;  %2601 = vmatprep.subr.bf16.mxu0 %v12882_v29  ;;  %v13021_v35 = vld [vmem:[#allocation24_spill] sm:$0xff] }
 0x36c   :  { %2659 = vmatprep.subr.bf16.mxu1 %v12882_v29 }
 0x36e   :  { %2602 = vmatpush1.bf16.msra.mxu0 %v12997_v9  ;;  %v9389_v9 = vld [vmem:[%s12586_s0 + $0x110] ss:$8 sps:$4 sm:$0xff]  }
 0x36f   :  { %2660 = vmatpush1.bf16.msra.mxu1 %v12998_v13  ;;  %2603 = vmatprep.subr.bf16.mxu0 %v12882_v29  ;;  %v13022_v13 = vld [vmem:[#allocation51_spill] sm:$0xff] }
 0x370   :  { %2661 = vmatprep.subr.bf16.mxu1 %v12882_v29 }
 0x372   :  { %2604 = vmatpush1.bf16.msra.mxu0 %v12999_v37 }
 0x373   :  { %2662 = vmatpush1.bf16.msra.mxu1 %v13000_v46  ;;  %2695 = vmatprep.subr.bf16.mxu0 %v12882_v29 }
 0x374   :  { %2753 = vmatprep.subr.bf16.mxu1 %v12882_v29 }
 0x375   :  { %2612 = vmatmul.mubr.bf16.vlgmr.msra.gmra.mrb[64].mxu0 %v13001_v47  ;;  %v13024_v47 = vld [vmem:[#allocation50_spill] sm:$0xff] }
 0x376   :  { %2670 = vmatmul.mubr.bf16.vlgmr.msra.gmra.mrb[64].mxu1 %v6300_v5  ;;  %2696 = vmatpush1.bf16.msra.mxu0 %v13002_v39  ;;  %v13023_v5 = vld [vmem:[#allocation16_spill] sm:$0xff] }
 0x377   :  { %2754 = vmatpush1.bf16.msra.mxu1 %v13003_v45  ;;  %2697 = vmatprep.subr.bf16.mxu0 %v12882_v29  ;;  %v9403_v45 = vld [vmem:[%s12586_s0 + $0x74] ss:$8 sps:$4 sm:$0xff]  }
 0x378   :  { %v2254_v62 = vpop.f32.mrb[48].mxu0  ;;  %2755 = vmatprep.subr.bf16.mxu1 %v12882_v29  ;;  %5824 = vmatprep.mubr.msk.bf16.mxu0 %vm180_vm0, %v9314_v40 }
 0x379   :  { %v2261_v14 = vadd.f32 %v2254_v62, %v9257_v59  ;;  %v2256_v25 = vpop.f32.mrb[49].mxu0  ;;  %v2297_v18 = vpop.f32.mrb[48].mxu1  ;;  %5829 = vmatprep.mubr.msk.bf16.mxu1 %vm180_vm0, %v9320_v23  ;;  %v13012_v59 = vld [vmem:[#allocation53_spill] sm:$0xff] }
 0x37a   :  { %v2257_v19 = vpop.f32.mrb[50].mxu0  ;;  %2698 = vmatpush1.bf16.msra.mxu0 %v13004_v4  ;;  %v2299_v31 = vpop.f32.mrb[49].mxu1  ;;  %v13026_v4 = vld [vmem:[#allocation18_spill] sm:$0xff] }
 0x37b   :  { %v2262_v60 = vadd.f32 %v2257_v19, %v9262_v51  ;;  %v9333_v28 = vadd.f32 %v2297_v18, %v2261_v14  ;;  %2756 = vmatpush1.bf16.msra.mxu1 %v8813_v41  ;;  %v2259_v11 = vpop.f32.mrb[51].mxu0  ;;  %v2300_v15 = vpop.f32.mrb[50].mxu1  ;;  %2699 = vmatprep.subr.bf16.mxu0 %v12882_v29  ;;  %v13007_v41 = vld [vmem:[#allocation9_spill] sm:$0xff]  ;;  %v13017_v51 = vld [vmem:[#allocation36_spill] sm:$0xff]  ;;  %v13025_v18 = vld [vmem:[#allocation42_spill] sm:$0xff] }
 0x37c   :  { %2757 = vmatprep.subr.bf16.mxu1 %v12882_v29  ;;  %v2302_v42 = vpop.f32.mrb[51].mxu1 }
 0x37d   :  { %v9338_v33 = vadd.f32 %v2300_v15, %v2262_v60  ;;  %v13027_v60 = vld [vmem:[#allocation44_spill] sm:$0xff] }
 0x37e   :  { %2700 = vmatpush1.bf16.msra.mxu0 %v13005_v56 }
 0x37f   :  { %2758 = vmatpush1.bf16.msra.mxu1 %v8834_v48  ;;  %2701 = vmatprep.subr.bf16.mxu0 %v12882_v29  ;;  %v13008_v48 = vld [vmem:[#allocation28_spill] sm:$0xff] }
 0x380   :  { %2759 = vmatprep.subr.bf16.mxu1 %v12882_v29 }
 0x382   :  { %2702 = vmatpush1.bf16.msra.mxu0 %v13006_v55 }
 0x383   :  { %2760 = vmatpush1.bf16.msra.mxu1 %v8849_v43  ;;  %2703 = vmatprep.subr.bf16.mxu0 %v12882_v29  ;;  %v13009_v43 = vld [vmem:[#allocation10_spill] sm:$0xff] }
 0x384   :  { %2761 = vmatprep.subr.bf16.mxu1 %v12882_v29 }
 0x386   :  { %2704 = vmatpush1.bf16.msra.mxu0 %v13007_v41  ;;  %v13028_v41 = vld [vmem:[#allocation20_spill] sm:$0xff] }
 0x387   :  { %2762 = vmatpush1.bf16.msra.mxu1 %v8863_v21  ;;  %2705 = vmatprep.subr.bf16.mxu0 %v12882_v29  ;;  %v13011_v21 = vld [vmem:[#allocation30_spill] sm:$0xff] }
 0x388   :  { %2763 = vmatprep.subr.bf16.mxu1 %v12882_v29 }
 0x38a   :  { %2706 = vmatpush1.bf16.msra.mxu0 %v13008_v48 }
 0x38b   :  { %2764 = vmatpush1.bf16.msra.mxu1 %v8877_v52  ;;  %2707 = vmatprep.subr.bf16.mxu0 %v12882_v29  ;;  %v13013_v52 = vld [vmem:[#allocation32_spill] sm:$0xff] }
 0x38c   :  { %2765 = vmatprep.subr.bf16.mxu1 %v12882_v29 }
 0x38e   :  { %2708 = vmatpush1.bf16.msra.mxu0 %v13009_v43 }
 0x38f   :  { %2766 = vmatpush1.bf16.msra.mxu1 %v13010_v30  ;;  %2709 = vmatprep.subr.bf16.mxu0 %v12882_v29  ;;  %v13030_v30 = vld [vmem:[#allocation22_spill] sm:$0xff] }
 0x390   :  { %2767 = vmatprep.subr.bf16.mxu1 %v12882_v29 }
 0x392   :  { %2710 = vmatpush1.bf16.msra.mxu0 %v13011_v21  ;;  %v13040_v21 = vld [vmem:[#allocation3_spill] sm:$0xff] }
 0x393   :  { %2768 = vmatpush1.bf16.msra.mxu1 %v13012_v59  ;;  %2711 = vmatprep.subr.bf16.mxu0 %v12882_v29  ;;  %v13041_v59 = vld [vmem:[#allocation54_spill] sm:$0xff] }
 0x394   :  { %2769 = vmatprep.subr.bf16.mxu1 %v12882_v29 }
 0x396   :  { %2712 = vmatpush1.bf16.msra.mxu0 %v13013_v52 }
 0x397   :  { %2770 = vmatpush1.bf16.msra.mxu1 %v13014_v50  ;;  %2713 = vmatprep.subr.bf16.mxu0 %v12882_v29  ;;  %v9479_v50 = vld [vmem:[%s12586_s0 + $0x84] ss:$8 sps:$4 sm:$0xff]  }
 0x398   :  { %2771 = vmatprep.subr.bf16.mxu1 %v12882_v29 }
 0x39a   :  { %2714 = vmatpush1.bf16.msra.mxu0 %v13015_v36 }
 0x39b   :  { %2772 = vmatpush1.bf16.msra.mxu1 %v13016_v17  ;;  %2715 = vmatprep.subr.bf16.mxu0 %v12882_v29 }
 0x39c   :  { %2773 = vmatprep.subr.bf16.mxu1 %v12882_v29 }
 0x39e   :  { %2716 = vmatpush1.bf16.msra.mxu0 %v13017_v51 }
 0x39f   :  { %2774 = vmatpush1.bf16.msra.mxu1 %v13018_v54  ;;  %2717 = vmatprep.subr.bf16.mxu0 %v12882_v29  ;;  %v13042_v54 = vld [vmem:[#allocation57_spill] sm:$0xff] }
 0x3a0   :  { %2775 = vmatprep.subr.bf16.mxu1 %v12882_v29 }
 0x3a2   :  { %2718 = vmatpush1.bf16.msra.mxu0 %v13019_v20 }
 0x3a3   :  { %2776 = vmatpush1.bf16.msra.mxu1 %v13020_v22  ;;  %2719 = vmatprep.subr.bf16.mxu0 %v12882_v29  ;;  %v13043_v22 = vld [vmem:[#allocation56_spill] sm:$0xff] }
 0x3a4   :  { %2777 = vmatprep.subr.bf16.mxu1 %v12882_v29 }
 0x3a6   :  { %2720 = vmatpush1.bf16.msra.mxu0 %v13021_v35 }
 0x3a7   :  { %2778 = vmatpush1.bf16.msra.mxu1 %v13022_v13  ;;  %2800 = vmatprep.subr.bf16.mxu0 %v12882_v29 }
 0x3a8   :  { %2841 = vmatprep.subr.bf16.mxu1 %v12882_v29 }
 0x3a9   :  { %2728 = vmatmul.mubr.bf16.vlgmr.msra.gmra.mrb[68].mxu0 %v9383_v26 }
 0x3aa   :  { %2786 = vmatmul.mubr.bf16.vlgmr.msra.gmra.mrb[68].mxu1 %v9389_v9  ;;  %2801 = vmatpush1.bf16.msra.mxu0 %v13023_v5 }
 0x3ab   :  { %2842 = vmatpush1.bf16.msra.mxu1 %v13024_v47  ;;  %2802 = vmatprep.subr.bf16.mxu0 %v12882_v29 }
 0x3ac   :  { %v2355_v39 = vpop.f32.mrb[52].mxu0  ;;  %2843 = vmatprep.subr.bf16.mxu1 %v12882_v29  ;;  %5830 = vmatprep.mubr.msk.bf16.mxu0 %vm180_vm0, %v9403_v45 }
 0x3ad   :  { %v2362_v62 = vadd.f32 %v2355_v39, %v9333_v28  ;;  %v2357_v14 = vpop.f32.mrb[53].mxu0  ;;  %v9408_v25 = vpop.f32.mrb[52].mxu1  ;;  %5831 = vmatprep.mubr.msk.bf16.mxu1 %vm180_vm0, %v13025_v18 }
 0x3ae   :  { %v2358_v19 = vpop.f32.mrb[54].mxu0  ;;  %2803 = vmatpush1.bf16.msra.mxu0 %v13026_v4  ;;  %v2404_v31 = vpop.f32.mrb[53].mxu1  ;;  %v9498_v4 = vld [vmem:[%s12585_s1 + $0xd8] sm:$0xff]  }
 0x3af   :  { %v2364_v11 = vadd.f32 %v13027_v60, %v2362_v62  ;;  %v2363_v15 = vadd.f32 %v2358_v19, %v9338_v33  ;;  %2844 = vmatpush1.bf16.msra.mxu1 %v9010_v38  ;;  %v2360_v42 = vpop.f32.mrb[55].mxu0  ;;  %2804 = vmatprep.subr.bf16.mxu0 %v12882_v29  ;;  %v9417_v28 = vpop.f32.mrb[54].mxu1  ;;  %v13029_v33 = vld [vmem:[#allocation46_spill] sm:$0xff]  ;;  %v13044_v62 = vld [vmem:[#allocation55_spill] sm:$0xff] }
 0x3b0   :  { %2845 = vmatprep.subr.bf16.mxu1 %v12882_v29  ;;  %v2407_v56 = vpop.f32.mrb[55].mxu1  ;;  %v9507_v31 = vld [vmem:[%s12585_s1 + $0xe0] sm:$0xff]  }
 0x3b1   :  { %v2365_v55 = vadd.f32 %v13027_v60, %v2363_v15  ;;  %v2366_v48 = vmax.f32 %v2364_v11, 0.0  ;;  %v9567_v60 = vld [vmem:[%s12585_s1 + $0x174] sm:$0xff]   ;;  %v9581_v11 = vld [vmem:[%s12585_s1 + $0x17c] sm:$0xff]   ;;  %v9595_v42 = vld [vmem:[%s12585_s1 + $0x184] sm:$0xff]  }
 0x3b2   :  { %2805 = vmatpush1.bf16.msra.mxu0 %v13028_v41  ;;  %v9589_v15 = vld [vmem:[%s12585_s1 + $0x120] sm:$0xff]   ;;  %v9620_v41 = vld [vmem:[%s12585_s1 + $0x1f4] sm:$0xff]  }
 0x3b3   :  { %v2367_v43 = vmax.f32 %v2365_v55, 0.0  ;;  %2846 = vmatpush1.bf16.msra.mxu1 %v9026_v44  ;;  %2806 = vmatprep.subr.bf16.mxu0 %v12882_v29  ;;  %v13031_v44 = vld [vmem:[#allocation48_spill] sm:$0xff]  ;;  %v9607_v56 = vld [vmem:[%s12586_s0 + $0x80] ss:$8 sps:$4 sm:$0xff]  }
 0x3b4   :  { %2847 = vmatprep.subr.bf16.mxu1 %v12882_v29  ;;  %v9614_v55 = vld [vmem:[%s12585_s1 + $0x190] sm:$0xff]  }
 0x3b5   :  { %v6121_v38 = vpack.i.bf16 %v2367_v43, %v2366_v48 }
 0x3b6   :  { %2807 = vmatpush1.bf16.msra.mxu0 %v13029_v33 }
 0x3b7   :  { %2848 = vmatpush1.bf16.msra.mxu1 %v9035_v49  ;;  %6122 = vrot.lane.b32.xlu0 %v6121_v38, %s6819_s19  ;;  %v13032_v49 = vld [vmem:[#allocation29_spill] sm:$0xff] }
 0x3b8   :  { %2808 = vmatprep.subr.bf16.mxu0 %v12882_v29  ;;  %2849 = vmatprep.subr.bf16.mxu1 %v12882_v29 }
 0x3ba   :  { %2809 = vmatpush1.bf16.msra.mxu0 %v13030_v30  ;;  %v9636_v30 = vld [vmem:[%s12586_s0 + $0xd4] ss:$8 sps:$4 sm:$0xff]  }
 0x3bb   :  { %2850 = vmatpush1.bf16.msra.mxu1 %v9044_v58  ;;  %2810 = vmatprep.subr.bf16.mxu0 %v12882_v29  ;;  %v13033_v58 = vld [vmem:[#allocation31_spill] sm:$0xff] }
 0x3bc   :  { %2851 = vmatprep.subr.bf16.mxu1 %v12882_v29 }
 0x3be   :  { %2811 = vmatpush1.bf16.msra.mxu0 %v13031_v44 }
 0x3bf   :  { %2852 = vmatpush1.bf16.msra.mxu1 %v9053_v2  ;;  %2812 = vmatprep.subr.bf16.mxu0 %v12882_v29  ;;  %v13034_v2 = vld [vmem:[#allocation35_spill] sm:$0xff] }
 0x3c0   :  { %2853 = vmatprep.subr.bf16.mxu1 %v12882_v29 }
 0x3c2   :  { %2813 = vmatpush1.bf16.msra.mxu0 %v13032_v49  ;;  %v9643_v49 = vld [vmem:[%s12585_s1 + $0x198] sm:$0xff]  }
 0x3c3   :  { %2854 = vmatpush1.bf16.msra.mxu1 %v9062_v57  ;;  %2814 = vmatprep.subr.bf16.mxu0 %v12882_v29  ;;  %v13035_v57 = vld [vmem:[#allocation39_spill] sm:$0xff] }
 0x3c4   :  { %2855 = vmatprep.subr.bf16.mxu1 %v12882_v29 }
 0x3c6   :  { %2815 = vmatpush1.bf16.msra.mxu0 %v13033_v58 }
 0x3c7   :  { %2856 = vmatpush1.bf16.msra.mxu1 %v9071_v61  ;;  %2816 = vmatprep.subr.bf16.mxu0 %v12882_v29  ;;  %v13036_v61 = vld [vmem:[#allocation43_spill] sm:$0xff] }
 0x3c8   :  { %2857 = vmatprep.subr.bf16.mxu1 %v12882_v29 }
 0x3ca   :  { %2817 = vmatpush1.bf16.msra.mxu0 %v13034_v2 }
 0x3cb   :  { %2858 = vmatpush1.bf16.msra.mxu1 %v9080_v6  ;;  %2818 = vmatprep.subr.bf16.mxu0 %v12882_v29  ;;  %v13037_v6 = vld [vmem:[#allocation47_spill] sm:$0xff] }
 0x3cc   :  { %2859 = vmatprep.subr.bf16.mxu1 %v12882_v29 }
 0x3ce   :  { %2819 = vmatpush1.bf16.msra.mxu0 %v13035_v57 }
 0x3cf   :  { %2860 = vmatpush1.bf16.msra.mxu1 %v9089_v8  ;;  %2820 = vmatprep.subr.bf16.mxu0 %v12882_v29  ;;  %v13038_v8 = vld [vmem:[#allocation2_spill] sm:$0xff] }
 0x3d0   :  { %2861 = vmatprep.subr.bf16.mxu1 %v12882_v29 }
 0x3d2   :  { %2821 = vmatpush1.bf16.msra.mxu0 %v13036_v61  ;;  %v9652_v61 = vld [vmem:[%s12585_s1 + $0x1fc] sm:$0xff]  }
 0x3d3   :  { %2862 = vmatpush1.bf16.msra.mxu1 %v9098_v10  ;;  %2822 = vmatprep.subr.bf16.mxu0 %v12882_v29  ;;  %v9468_v10 = vld [vmem:[%s12586_s0 + $0x70] ss:$8 sps:$4 sm:$0xff]  }
 0x3d4   :  { %2863 = vmatprep.subr.bf16.mxu1 %v12882_v29 }
 0x3d6   :  { %2823 = vmatpush1.bf16.msra.mxu0 %v13037_v6 }
 0x3d7   :  { %2864 = vmatpush1.bf16.msra.mxu1 %v9107_v12  ;;  %2824 = vmatprep.subr.bf16.mxu0 %v12882_v29  ;;  %v13039_v12 = vld [vmem:[#allocation49_spill] sm:$0xff] }
 0x3d8   :  { %2865 = vmatprep.subr.bf16.mxu1 %v12882_v29 }
 0x3da   :  { %2825 = vmatpush1.bf16.msra.mxu0 %v13038_v8 }
 0x3db   :  { %2866 = vmatpush1.bf16.msra.mxu1 %v12938_v16  ;;  %2882 = vmatprep.subr.bf16.mxu0 %v12882_v29 }
 0x3dc   :  { %2925 = vmatprep.subr.bf16.mxu1 %v12882_v29 }
 0x3dd   :  { %2833 = vmatmul.mubr.bf16.vlgmr.msra.gmra.mrb[72].mxu0 %v9468_v10 }
 0x3de   :  { %2874 = vmatmul.mubr.bf16.vlgmr.msra.gmra.mrb[72].mxu1 %v13039_v12  ;;  %2883 = vmatpush1.bf16.msra.mxu0 %v13040_v21 }
 0x3df   :  { %2926 = vmatpush1.bf16.msra.mxu1 %v13041_v59  ;;  %2884 = vmatprep.subr.bf16.mxu0 %v12882_v29 }
 0x3e0   :  { %v2443_v52 = vpop.f32.mrb[56].mxu0  ;;  %2927 = vmatprep.subr.bf16.mxu1 %v12882_v29  ;;  %5832 = vmatprep.mubr.msk.bf16.mxu0 %vm180_vm0, %v9479_v50 }
 0x3e1   :  { %v2444_v36 = vadd.f32 %v2443_v52, %v9408_v25  ;;  %v2445_v17 = vpop.f32.mrb[57].mxu0  ;;  %v2484_v51 = vpop.f32.mrb[56].mxu1  ;;  %5833 = vmatprep.mubr.msk.bf16.mxu1 %vm180_vm0, %v13042_v54  ;;  %v9662_v52 = vld [vmem:[%s12585_s1 + $0x1a0] sm:$0xff]   ;;  %v9690_v54 = vld [vmem:[%s12585_s1 + $0x1b0] sm:$0xff]  }
 0x3e2   :  { %v2446_v20 = vpop.f32.mrb[58].mxu0  ;;  %2885 = vmatpush1.bf16.msra.mxu0 %v13043_v22  ;;  %v2486_v5 = vpop.f32.mrb[57].mxu1  ;;  %v9676_v17 = vld [vmem:[%s12585_s1 + $0x1a8] sm:$0xff]   ;;  %v9704_v22 = vld [vmem:[%s12585_s1 + $0x1b8] sm:$0xff]  }
 0x3e3   :  { %v2447_v47 = vadd.f32 %v2446_v20, %v9417_v28  ;;  %v9488_v39 = vadd.f32 %v2484_v51, %v2444_v36  ;;  %2928 = vmatpush1.bf16.msra.mxu1 %v13044_v62  ;;  %v2448_v14 = vpop.f32.mrb[59].mxu0  ;;  %v2487_v18 = vpop.f32.mrb[58].mxu1  ;;  %2886 = vmatprep.subr.bf16.mxu0 %v12882_v29  ;;  %v13045_v28 = vld [vmem:[#allocation4_spill] sm:$0xff]  ;;  %v9668_v36 = vld [vmem:[%s12585_s1 + $0x204] sm:$0xff]   ;;  %v9710_v5 = vld [vmem:[%s12585_s1 + $0x21c] sm:$0xff]  }
 0x3e4   :  { %2929 = vmatprep.subr.bf16.mxu1 %v12882_v29  ;;  %v2489_v25 = vpop.f32.mrb[59].mxu1  ;;  %v9682_v51 = vld [vmem:[%s12585_s1 + $0x20c] sm:$0xff]   ;;  %v9696_v20 = vld [vmem:[%s12585_s1 + $0x214] sm:$0xff]  }
 0x3e5   :  { %v9493_v19 = vadd.f32 %v2487_v18, %v2447_v47  ;;  %v9718_v47 = vld [vmem:[%s12585_s1 + $0x1c0] sm:$0xff]   ;;  %v9732_v62 = vld [vmem:[%s12585_s1 + $0x1c8] sm:$0xff]   ;;  %v9746_v18 = vld [vmem:[%s12585_s1 + $0x1d0] sm:$0xff]  }
 0x3e6   :  { %2887 = vmatpush1.bf16.msra.mxu0 %v9498_v4  ;;  %v9738_v14 = vld [vmem:[%s12585_s1 + $0x22c] sm:$0xff]   ;;  %v9752_v25 = vld [vmem:[%s12585_s1 + $0x234] sm:$0xff]  }
 0x3e7   :  { %2930 = vmatpush1.bf16.msra.mxu1 %v9159_v27  ;;  %2888 = vmatprep.subr.bf16.mxu0 %v12882_v29  ;;  %v9516_v27 = vld [vmem:[%s12585_s1 + $0xe8] sm:$0xff]   ;;  %13047 = vst [vmem:[#allocation19_spill] sm:$0xff] %v9738_v14  ;;  %13048 = vst [vmem:[#allocation12_spill] sm:$0xff] %v9752_v25 }
 0x3e8   :  { %2931 = vmatprep.subr.bf16.mxu1 %v12882_v29 }
 0x3ea   :  { %2889 = vmatpush1.bf16.msra.mxu0 %v9507_v31 }
 0x3eb   :  { %2932 = vmatpush1.bf16.msra.mxu1 %v9168_v0  ;;  %2890 = vmatprep.subr.bf16.mxu0 %v12882_v29  ;;  %v9525_v0 = vld [vmem:[%s12585_s1 + $0xf0] sm:$0xff]  }
 0x3ec   :  { %2933 = vmatprep.subr.bf16.mxu1 %v12882_v29 }
 0x3ee   :  { %2891 = vmatpush1.bf16.msra.mxu0 %v9516_v27 }
 0x3ef   :  { %2934 = vmatpush1.bf16.msra.mxu1 %v9177_v53  ;;  %2892 = vmatprep.subr.bf16.mxu0 %v12882_v29  ;;  %v9534_v53 = vld [vmem:[%s12585_s1 + $0xf8] sm:$0xff]  }
 0x3f0   :  { %2935 = vmatprep.subr.bf16.mxu1 %v12882_v29 }
 0x3f2   :  { %2893 = vmatpush1.bf16.msra.mxu0 %v9525_v0 }
 0x3f3   :  { %2936 = vmatpush1.bf16.msra.mxu1 %v9186_v3  ;;  %2894 = vmatprep.subr.bf16.mxu0 %v12882_v29  ;;  %v9543_v3 = vld [vmem:[%s12585_s1 + $0x100] sm:$0xff]  }
 0x3f4   :  { %2937 = vmatprep.subr.bf16.mxu1 %v12882_v29 }
 0x3f6   :  { %2895 = vmatpush1.bf16.msra.mxu0 %v9534_v53 }
 0x3f7   :  { %2938 = vmatpush1.bf16.msra.mxu1 %v9195_v24  ;;  %2896 = vmatprep.subr.bf16.mxu0 %v12882_v29  ;;  %v9552_v24 = vld [vmem:[%s12585_s1 + $0x108] sm:$0xff]  }
 0x3f8   :  { %2939 = vmatprep.subr.bf16.mxu1 %v12882_v29 }
 0x3fa   :  { %2897 = vmatpush1.bf16.msra.mxu0 %v9543_v3 }
 0x3fb   :  { %2940 = vmatpush1.bf16.msra.mxu1 %v9204_v34  ;;  %2898 = vmatprep.subr.bf16.mxu0 %v12882_v29  ;;  %v9561_v34 = vld [vmem:[%s12585_s1 + $0x110] sm:$0xff]  }
 0x3fc   :  { %2941 = vmatprep.subr.bf16.mxu1 %v12882_v29 }
 0x3fe   :  { %2899 = vmatpush1.bf16.msra.mxu0 %v9552_v24 }
 0x3ff   :  { %2942 = vmatpush1.bf16.msra.mxu1 %v9213_v7  ;;  %2900 = vmatprep.subr.bf16.mxu0 %v12882_v29  ;;  %v9575_v7 = vld [vmem:[%s12585_s1 + $0x118] sm:$0xff]  }
 0x400   :  { %2943 = vmatprep.subr.bf16.mxu1 %v12882_v29 }
 0x402   :  { %2901 = vmatpush1.bf16.msra.mxu0 %v9561_v34 }
 0x403   :  { %2944 = vmatpush1.bf16.msra.mxu1 %v9567_v60  ;;  %2902 = vmatprep.subr.bf16.mxu0 %v12882_v29 }
 0x404   :  { %2945 = vmatprep.subr.bf16.mxu1 %v12882_v29 }
 0x406   :  { %2903 = vmatpush1.bf16.msra.mxu0 %v9575_v7 }
 0x407   :  { %2946 = vmatpush1.bf16.msra.mxu1 %v9581_v11  ;;  %2904 = vmatprep.subr.bf16.mxu0 %v12882_v29 }
 0x408   :  { %2947 = vmatprep.subr.bf16.mxu1 %v12882_v29 }
 0x40a   :  { %2905 = vmatpush1.bf16.msra.mxu0 %v9589_v15 }
 0x40b   :  { %2948 = vmatpush1.bf16.msra.mxu1 %v9595_v42  ;;  %2906 = vmatprep.subr.bf16.mxu0 %v12882_v29 }
 0x40c   :  { %2949 = vmatprep.subr.bf16.mxu1 %v12882_v29 }
 0x40e   :  { %2907 = vmatpush1.bf16.msra.mxu0 %v13045_v28 }
 0x40f   :  { %2950 = vmatpush1.bf16.msra.mxu1 %v7178_v63  ;;  %2968 = vmatprep.subr.bf16.mxu0 %v12882_v29 }
 0x410   :  { %3011 = vmatprep.subr.bf16.mxu1 %v12882_v29 }
 0x411   :  { %2915 = vmatmul.mubr.bf16.vlgmr.msra.gmra.mrb[76].mxu0 %v9607_v56 }
 0x412   :  { %2958 = vmatmul.mubr.bf16.vlgmr.msra.gmra.mrb[76].mxu1 %v9244_v1  ;;  %2969 = vmatpush1.bf16.msra.mxu0 %v9614_v55  ;;  %v9628_v1 = vld [vmem:[%s12586_s0 + $0xc4] ss:$8 sps:$4 sm:$0xff]  }
 0x413   :  { %3012 = vmatpush1.bf16.msra.mxu1 %v9620_v41  ;;  %2970 = vmatprep.subr.bf16.mxu0 %v12882_v29 }
 0x414   :  { %v2527_v48 = vpop.f32.mrb[60].mxu0  ;;  %3013 = vmatprep.subr.bf16.mxu1 %v12882_v29  ;;  %5834 = vmatprep.mubr.msk.bf16.mxu0 %vm180_vm0, %v9628_v1 }
 0x415   :  { %v2534_v43 = vadd.f32 %v2527_v48, %v9488_v39  ;;  %v2529_v38 = vpop.f32.mrb[61].mxu0  ;;  %v2570_v33 = vpop.f32.mrb[60].mxu1  ;;  %5835 = vmatprep.mubr.msk.bf16.mxu1 %vm180_vm0, %v9636_v30  ;;  %v9724_v39 = vld [vmem:[%s12585_s1 + $0x224] sm:$0xff]   ;;  %v9766_v48 = vld [vmem:[%s12585_s1 + $0x23c] sm:$0xff]  }
 0x416   :  { %v2530_v44 = vpop.f32.mrb[62].mxu0  ;;  %2971 = vmatpush1.bf16.msra.mxu0 %v9643_v49  ;;  %v2572_v58 = vpop.f32.mrb[61].mxu1  ;;  %13046 = vst [vmem:[#allocation11_spill] sm:$0xff] %v9724_v39  ;;  %13049 = vst [vmem:[#allocation6_spill] sm:$0xff] %v9766_v48  ;;  %v9780_v38 = vld [vmem:[%s12585_s1 + $0x244] sm:$0xff]  }
 0x417   :  { %v2535_v2 = vadd.f32 %v2530_v44, %v9493_v19  ;;  %v9647_v57 = vadd.f32 %v2570_v33, %v2534_v43  ;;  %3014 = vmatpush1.bf16.msra.mxu1 %v9652_v61  ;;  %v2532_v6 = vpop.f32.mrb[63].mxu0  ;;  %v2573_v12 = vpop.f32.mrb[62].mxu1  ;;  %2972 = vmatprep.subr.bf16.mxu0 %v12882_v29  ;;  %v9760_v19 = vld [vmem:[%s12585_s1 + $0x1d8] sm:$0xff]   ;;  %v9774_v43 = vld [vmem:[%s12585_s1 + $0x1e0] sm:$0xff]   ;;  %13050 = vst [vmem:[#allocation13_spill] sm:$0xff] %v9780_v38  ;;  %v9788_v33 = vld [vmem:[%s12585_s1 + $0x1e8] sm:$0xff]  }
 0x418   :  { %3015 = vmatprep.subr.bf16.mxu1 %v12882_v29  ;;  %v2575_v21 = vpop.f32.mrb[63].mxu1  ;;  %v9794_v44 = vld [vmem:[%s12585_s1 + $0x24c] sm:$0xff]   ;;  %v9806_v58 = vld [vmem:[%s12586_s0 + $0xc0] ss:$8 sps:$4 sm:$0xff]   ;;  %v9818_v6 = vld [vmem:[%s12585_s1 + $0x258] sm:$0xff]  }
 0x419   :  { %v9657_v59 = vadd.f32 %v2573_v12, %v2535_v2  ;;  %13051 = vst [vmem:[#allocation21_spill] sm:$0xff] %v9794_v44  ;;  %v9812_v2 = vld [vmem:[%s12586_s0 + $0xd0] ss:$8 sps:$4 sm:$0xff]   ;;  %v9824_v12 = vld [vmem:[%s12585_s1 + $0x2bc] sm:$0xff]  }
 0x41a   :  { %2973 = vmatpush1.bf16.msra.mxu0 %v9662_v52  ;;  %13052 = vst [vmem:[#allocation14_spill] sm:$0xff] %v9824_v12 }
 0x41b   :  { %3016 = vmatpush1.bf16.msra.mxu1 %v9668_v36  ;;  %2974 = vmatprep.subr.bf16.mxu0 %v12882_v29 }
 0x41c   :  { %3017 = vmatprep.subr.bf16.mxu1 %v12882_v29 }
 0x41e   :  { %2975 = vmatpush1.bf16.msra.mxu0 %v9676_v17 }
 0x41f   :  { %3018 = vmatpush1.bf16.msra.mxu1 %v9682_v51  ;;  %2976 = vmatprep.subr.bf16.mxu0 %v12882_v29 }
 0x420   :  { %3019 = vmatprep.subr.bf16.mxu1 %v12882_v29 }
 0x422   :  { %2977 = vmatpush1.bf16.msra.mxu0 %v9690_v54 }
 0x423   :  { %3020 = vmatpush1.bf16.msra.mxu1 %v9696_v20  ;;  %2978 = vmatprep.subr.bf16.mxu0 %v12882_v29 }
 0x424   :  { %3021 = vmatprep.subr.bf16.mxu1 %v12882_v29 }
 0x426   :  { %2979 = vmatpush1.bf16.msra.mxu0 %v9704_v22 }
 0x427   :  { %3022 = vmatpush1.bf16.msra.mxu1 %v9710_v5  ;;  %2980 = vmatprep.subr.bf16.mxu0 %v12882_v29 }
 0x428   :  { %3023 = vmatprep.subr.bf16.mxu1 %v12882_v29 }
 0x42a   :  { %2981 = vmatpush1.bf16.msra.mxu0 %v9718_v47 }
 0x42b   :  { %3024 = vmatpush1.bf16.msra.mxu1 %v9724_v39  ;;  %2982 = vmatprep.subr.bf16.mxu0 %v12882_v29 }
 0x42c   :  { %3025 = vmatprep.subr.bf16.mxu1 %v12882_v29 }
 0x42e   :  { %2983 = vmatpush1.bf16.msra.mxu0 %v9732_v62 }
 0x42f   :  { %3026 = vmatpush1.bf16.msra.mxu1 %v9738_v14  ;;  %2984 = vmatprep.subr.bf16.mxu0 %v12882_v29 }
 0x430   :  { %3027 = vmatprep.subr.bf16.mxu1 %v12882_v29 }
 0x432   :  { %2985 = vmatpush1.bf16.msra.mxu0 %v9746_v18 }
 0x433   :  { %3028 = vmatpush1.bf16.msra.mxu1 %v9752_v25  ;;  %2986 = vmatprep.subr.bf16.mxu0 %v12882_v29 }
 0x434   :  { %3029 = vmatprep.subr.bf16.mxu1 %v12882_v29 }
 0x436   :  { %2987 = vmatpush1.bf16.msra.mxu0 %v9760_v19 }
 0x437   :  { %3030 = vmatpush1.bf16.msra.mxu1 %v9766_v48  ;;  %2988 = vmatprep.subr.bf16.mxu0 %v12882_v29 }
 0x438   :  { %3031 = vmatprep.subr.bf16.mxu1 %v12882_v29 }
 0x43a   :  { %2989 = vmatpush1.bf16.msra.mxu0 %v9774_v43 }
 0x43b   :  { %3032 = vmatpush1.bf16.msra.mxu1 %v9780_v38  ;;  %2990 = vmatprep.subr.bf16.mxu0 %v12882_v29 }
 0x43c   :  { %3033 = vmatprep.subr.bf16.mxu1 %v12882_v29 }
 0x43e   :  { %2991 = vmatpush1.bf16.msra.mxu0 %v9788_v33 }
 0x43f   :  { %3034 = vmatpush1.bf16.msra.mxu1 %v9794_v44  ;;  %2992 = vmatprep.subr.bf16.mxu0 %v12882_v29 }
 0x440   :  { %3035 = vmatprep.subr.bf16.mxu1 %v12882_v29 }
 0x442   :  { %2993 = vmatpush1.bf16.msra.mxu0 %v7376_v32 }
 0x443   :  { %3036 = vmatpush1.bf16.msra.mxu1 %v12999_v37  ;;  %3054 = vmatprep.subr.bf16.mxu0 %v12882_v29 }
 0x444   :  { %3097 = vmatprep.subr.bf16.mxu1 %v12882_v29 }
 0x445   :  { %3001 = vmatmul.mubr.bf16.vlgmr.msra.gmra.mrb[80].mxu0 %v9806_v58 }
 0x446   :  { %3044 = vmatmul.mubr.bf16.vlgmr.msra.gmra.mrb[80].mxu1 %v9812_v2  ;;  %3055 = vmatpush1.bf16.msra.mxu0 %v9818_v6 }
 0x447   :  { %3098 = vmatpush1.bf16.msra.mxu1 %v9824_v12  ;;  %3056 = vmatprep.subr.bf16.mxu0 %v12882_v29  ;;  %v9837_v12 = vld [vmem:[%s12585_s1 + $0x260] sm:$0xff]  }
 0x448   :  { %v2613_v21 = vpop.f32.mrb[64].mxu0  ;;  %3099 = vmatprep.subr.bf16.mxu1 %v12882_v29  ;;  %5836 = vmatprep.mubr.msk.bf16.mxu0 %vm180_vm0, %v9314_v40  ;;  %v9846_v40 = vld [vmem:[%s12585_s1 + $0x2c4] sm:$0xff]  }
 0x449   :  { %v2620_v37 = vadd.f32 %v2613_v21, %v9647_v57  ;;  %v2615_v44 = vpop.f32.mrb[65].mxu0  ;;  %v2671_v38 = vpop.f32.mrb[64].mxu1  ;;  %5837 = vmatprep.mubr.msk.bf16.mxu1 %vm180_vm0, %v9320_v23  ;;  %13053 = vst [vmem:[#allocation15_spill] sm:$0xff] %v9846_v40 }
 0x44a   :  { %v2616_v48 = vpop.f32.mrb[66].mxu0  ;;  %3057 = vmatpush1.bf16.msra.mxu0 %v9837_v12  ;;  %v2673_v25 = vpop.f32.mrb[65].mxu1 }
 0x44b   :  { %v2621_v14 = vadd.f32 %v2616_v48, %v9657_v59  ;;  %v9841_v39 = vadd.f32 %v2671_v38, %v2620_v37  ;;  %3100 = vmatpush1.bf16.msra.mxu1 %v9846_v40  ;;  %v2618_v23 = vpop.f32.mrb[67].mxu0  ;;  %v2674_v57 = vpop.f32.mrb[66].mxu1  ;;  %3058 = vmatprep.subr.bf16.mxu0 %v12882_v29  ;;  %v9856_v37 = vld [vmem:[%s12585_s1 + $0x268] sm:$0xff]   ;;  %v9876_v25 = vld [vmem:[%s12585_s1 + $0x2d4] sm:$0xff]   ;;  %v9890_v38 = vld [vmem:[%s12585_s1 + $0x2dc] sm:$0xff]  }
 0x44c   :  { %3101 = vmatprep.subr.bf16.mxu1 %v12882_v29  ;;  %v2676_v44 = vpop.f32.mrb[67].mxu1  ;;  %v9862_v59 = vld [vmem:[%s12585_s1 + $0x2cc] sm:$0xff]   ;;  %13055 = vst [vmem:[#allocation40_spill] sm:$0xff] %v9876_v25  ;;  %v9884_v48 = vld [vmem:[%s12585_s1 + $0x278] sm:$0xff]   ;;  %13056 = vst [vmem:[#allocation8_spill] sm:$0xff] %v9890_v38 }
 0x44d   :  { %v9851_v21 = vadd.f32 %v2674_v57, %v2621_v14  ;;  %13054 = vst [vmem:[#allocation25_spill] sm:$0xff] %v9862_v59  ;;  %v9870_v14 = vld [vmem:[%s12585_s1 + $0x270] sm:$0xff]   ;;  %v9898_v23 = vld [vmem:[%s12585_s1 + $0x280] sm:$0xff]   ;;  %v9912_v44 = vld [vmem:[%s12585_s1 + $0x288] sm:$0xff]  }
 0x44e   :  { %3059 = vmatpush1.bf16.msra.mxu0 %v9856_v37  ;;  %v9904_v57 = vld [vmem:[%s12585_s1 + $0x2e4] sm:$0xff]   ;;  %13058 = vst [vmem:[#allocation27_spill] sm:$0xff] %v9912_v44 }
 0x44f   :  { %3102 = vmatpush1.bf16.msra.mxu1 %v9862_v59  ;;  %3060 = vmatprep.subr.bf16.mxu0 %v12882_v29  ;;  %13057 = vst [vmem:[#allocation26_spill] sm:$0xff] %v9904_v57  ;;  %v9946_v59 = vld [vmem:[%s12585_s1 + $0x2fc] sm:$0xff]   ;;  %v9960_v40 = vld [vmem:[%s12585_s1 + $0x304] sm:$0xff]  }
 0x450   :  { %3103 = vmatprep.subr.bf16.mxu1 %v12882_v29  ;;  %13063 = vst [vmem:[#allocation30_spill] sm:$0xff] %v9946_v59  ;;  %13065 = vst [vmem:[#allocation32_spill] sm:$0xff] %v9960_v40 }
 0x452   :  { %3061 = vmatpush1.bf16.msra.mxu0 %v9870_v14 }
 0x453   :  { %3104 = vmatpush1.bf16.msra.mxu1 %v9876_v25  ;;  %3062 = vmatprep.subr.bf16.mxu0 %v12882_v29  ;;  %v9932_v25 = vld [vmem:[%s12585_s1 + $0x2f4] sm:$0xff]  }
 0x454   :  { %3105 = vmatprep.subr.bf16.mxu1 %v12882_v29  ;;  %13061 = vst [vmem:[#allocation10_spill] sm:$0xff] %v9932_v25 }
 0x456   :  { %3063 = vmatpush1.bf16.msra.mxu0 %v9884_v48 }
 0x457   :  { %3106 = vmatpush1.bf16.msra.mxu1 %v9890_v38  ;;  %3064 = vmatprep.subr.bf16.mxu0 %v12882_v29  ;;  %v9918_v38 = vld [vmem:[%s12585_s1 + $0x2ec] sm:$0xff]  }
 0x458   :  { %3107 = vmatprep.subr.bf16.mxu1 %v12882_v29  ;;  %13059 = vst [vmem:[#allocation9_spill] sm:$0xff] %v9918_v38 }
 0x45a   :  { %3065 = vmatpush1.bf16.msra.mxu0 %v9898_v23 }
 0x45b   :  { %3108 = vmatpush1.bf16.msra.mxu1 %v9904_v57  ;;  %3066 = vmatprep.subr.bf16.mxu0 %v12882_v29  ;;  %v9926_v57 = vld [vmem:[%s12585_s1 + $0x290] sm:$0xff]  }
 0x45c   :  { %3109 = vmatprep.subr.bf16.mxu1 %v12882_v29  ;;  %13060 = vst [vmem:[#allocation28_spill] sm:$0xff] %v9926_v57 }
 0x45e   :  { %3067 = vmatpush1.bf16.msra.mxu0 %v9912_v44 }
 0x45f   :  { %3110 = vmatpush1.bf16.msra.mxu1 %v9918_v38  ;;  %3068 = vmatprep.subr.bf16.mxu0 %v12882_v29  ;;  %v9940_v38 = vld [vmem:[%s12585_s1 + $0x298] sm:$0xff]  }
 0x460   :  { %3111 = vmatprep.subr.bf16.mxu1 %v12882_v29  ;;  %13062 = vst [vmem:[#allocation52_spill] sm:$0xff] %v9940_v38 }
 0x462   :  { %3069 = vmatpush1.bf16.msra.mxu0 %v9926_v57 }
 0x463   :  { %3112 = vmatpush1.bf16.msra.mxu1 %v9932_v25  ;;  %3070 = vmatprep.subr.bf16.mxu0 %v12882_v29  ;;  %v9954_v25 = vld [vmem:[%s12585_s1 + $0x2a0] sm:$0xff]  }
 0x464   :  { %3113 = vmatprep.subr.bf16.mxu1 %v12882_v29  ;;  %13064 = vst [vmem:[#allocation53_spill] sm:$0xff] %v9954_v25 }
 0x466   :  { %3071 = vmatpush1.bf16.msra.mxu0 %v9940_v38 }
 0x467   :  { %3114 = vmatpush1.bf16.msra.mxu1 %v9946_v59  ;;  %3072 = vmatprep.subr.bf16.mxu0 %v12882_v29  ;;  %v9968_v59 = vld [vmem:[%s12585_s1 + $0x2a8] sm:$0xff]  }
 0x468   :  { %3115 = vmatprep.subr.bf16.mxu1 %v12882_v29  ;;  %13066 = vst [vmem:[#allocation33_spill] sm:$0xff] %v9968_v59 }
 0x46a   :  { %3073 = vmatpush1.bf16.msra.mxu0 %v9954_v25  ;;  %v9974_v25 = vld [vmem:[%s12585_s1 + $0x30c] sm:$0xff]  }
 0x46b   :  { %3116 = vmatpush1.bf16.msra.mxu1 %v9960_v40  ;;  %3074 = vmatprep.subr.bf16.mxu0 %v12882_v29  ;;  %13067 = vst [vmem:[#allocation34_spill] sm:$0xff] %v9974_v25  ;;  %v9982_v40 = vld [vmem:[%s12585_s1 + $0x2b0] sm:$0xff]  }
 0x46c   :  { %3117 = vmatprep.subr.bf16.mxu1 %v12882_v29  ;;  %13068 = vst [vmem:[#allocation37_spill] sm:$0xff] %v9982_v40 }
 0x46e   :  { %3075 = vmatpush1.bf16.msra.mxu0 %v9968_v59  ;;  %v9988_v59 = vld [vmem:[%s12585_s1 + $0x314] sm:$0xff]  }
 0x46f   :  { %3118 = vmatpush1.bf16.msra.mxu1 %v9974_v25  ;;  %3076 = vmatprep.subr.bf16.mxu0 %v12882_v29  ;;  %13069 = vst [vmem:[#allocation36_spill] sm:$0xff] %v9988_v59  ;;  %v10000_v25 = vld [vmem:[%s12586_s0 + $0x124] ss:$8 sps:$4 sm:$0xff]  }
 0x470   :  { %3119 = vmatprep.subr.bf16.mxu1 %v12882_v29 }
 0x472   :  { %3077 = vmatpush1.bf16.msra.mxu0 %v9982_v40 }
 0x473   :  { %3120 = vmatpush1.bf16.msra.mxu1 %v9988_v59  ;;  %3078 = vmatprep.subr.bf16.mxu0 %v12882_v29  ;;  %v10007_v59 = vld [vmem:[%s12585_s1 + $0x320] sm:$0xff]  }
 0x474   :  { %3121 = vmatprep.subr.bf16.mxu1 %v12882_v29  ;;  %13070 = vst [vmem:[#allocation41_spill] sm:$0xff] %v10007_v59 }
 0x476   :  { %3079 = vmatpush1.bf16.msra.mxu0 %v13000_v46 }
 0x477   :  { %3122 = vmatpush1.bf16.msra.mxu1 %v13021_v35  ;;  %3155 = vmatprep.subr.bf16.mxu0 %v12882_v29  ;;  %v10013_v35 = vld [vmem:[%s12585_s1 + $0x64] sm:$0xff]  }
 0x478   :  { %3202 = vmatprep.subr.bf16.mxu1 %v12882_v29  ;;  %13071 = vst [vmem:[#allocation38_spill] sm:$0xff] %v10013_v35 }
 0x479   :  { %3087 = vmatmul.mubr.bf16.vlgmr.msra.gmra.mrb[84].mxu0 %v9383_v26 }
 0x47a   :  { %3130 = vmatmul.mubr.bf16.vlgmr.msra.gmra.mrb[84].mxu1 %v9389_v9  ;;  %3156 = vmatpush1.bf16.msra.mxu0 %v10007_v59 }
 0x47b   :  { %3203 = vmatpush1.bf16.msra.mxu1 %v10013_v35  ;;  %3157 = vmatprep.subr.bf16.mxu0 %v12882_v29  ;;  %v10026_v35 = vld [vmem:[%s12585_s1 + $0x328] sm:$0xff]  }
 0x47c   :  { %v2729_v46 = vpop.f32.mrb[68].mxu0  ;;  %3204 = vmatprep.subr.bf16.mxu1 %v12882_v29  ;;  %5842 = vmatprep.mubr.msk.bf16.mxu0 %vm180_vm0, %v10000_v25 }
 0x47d   :  { %v2736_v26 = vadd.f32 %v2729_v46, %v9841_v39  ;;  %v2731_v9 = vpop.f32.mrb[69].mxu0  ;;  %v2787_v40 = vpop.f32.mrb[68].mxu1  ;;  %5843 = vmatprep.mubr.msk.bf16.mxu1 %vm180_vm0, %v9479_v50  ;;  %v10033_v46 = vld [vmem:[%s12585_s1 + $0x6c] sm:$0xff]  }
 0x47e   :  { %v2732_v59 = vpop.f32.mrb[70].mxu0  ;;  %3158 = vmatpush1.bf16.msra.mxu0 %v10026_v35  ;;  %v2789_v38 = vpop.f32.mrb[69].mxu1  ;;  %13072 = vst [vmem:[#allocation45_spill] sm:$0xff] %v10033_v46 }
 0x47f   :  { %v2737_v57 = vadd.f32 %v2732_v59, %v9851_v21  ;;  %v2794_v44 = vadd.f32 %v2787_v40, %v2736_v26  ;;  %3205 = vmatpush1.bf16.msra.mxu1 %v10033_v46  ;;  %v2734_v50 = vpop.f32.mrb[71].mxu0  ;;  %v2790_v39 = vpop.f32.mrb[70].mxu1  ;;  %3159 = vmatprep.subr.bf16.mxu0 %v12882_v29  ;;  %v10041_v38 = vld [vmem:[%s12587_s2] ss:$0 sm:$0xff]  ;;  %v10047_v59 = vld [vmem:[%s12585_s1 + $0x330] sm:$0xff]  }
 0x480   :  { %3206 = vmatprep.subr.bf16.mxu1 %v12882_v29  ;;  %v2792_v9 = vpop.f32.mrb[71].mxu1  ;;  %13073 = vst [vmem:[#allocation16_spill] sm:$0xff] %v10041_v38  ;;  %v10054_v50 = vld [vmem:[%s12585_s1 + $0x74] sm:$0xff]  }
 0x481   :  { %v2796_v40 = vadd.f32 %v10041_v38, %v2794_v44  ;;  %v2795_v21 = vadd.f32 %v2790_v39, %v2737_v57  ;;  %13074 = vst [vmem:[#allocation50_spill] sm:$0xff] %v10054_v50  ;;  %v10062_v39 = vld [vmem:[%s12585_s1 + $0x338] sm:$0xff]  }
 0x482   :  { %3160 = vmatpush1.bf16.msra.mxu0 %v10047_v59  ;;  %v10068_v9 = vld [vmem:[%s12585_s1 + $0x7c] sm:$0xff]   ;;  %v10166_v46 = vld [vmem:[%s12585_s1 + $0xb4] sm:$0xff]  }
 0x483   :  { %v2797_v26 = vadd.f32 %v10041_v38, %v2795_v21  ;;  %3207 = vmatpush1.bf16.msra.mxu1 %v10054_v50  ;;  %3161 = vmatprep.subr.bf16.mxu0 %v12882_v29  ;;  %v2798_v57 = vmax.f32 %v2796_v40, 0.0  ;;  %13075 = vst [vmem:[#allocation42_spill] sm:$0xff] %v10068_v9  ;;  %v10076_v40 = vld [vmem:[%s12585_s1 + $0x340] sm:$0xff]   ;;  %v10152_v38 = vld [vmem:[%s12585_s1 + $0xac] sm:$0xff]   ;;  %13085 = vst [vmem:[#allocation39_spill] sm:$0xff] %v10166_v46 }
 0x484   :  { %3208 = vmatprep.subr.bf16.mxu1 %v12882_v29  ;;  %v10138_v50 = vld [vmem:[%s12585_s1 + $0xa4] sm:$0xff]   ;;  %13083 = vst [vmem:[#allocation31_spill] sm:$0xff] %v10152_v38 }
 0x485   :  { %v2799_v44 = vmax.f32 %v2797_v26, 0.0  ;;  %v10082_v26 = vld [vmem:[%s12585_s1 + $0x84] sm:$0xff]   ;;  %13081 = vst [vmem:[#allocation48_spill] sm:$0xff] %v10138_v50 }
 0x486   :  { %3162 = vmatpush1.bf16.msra.mxu0 %v10062_v39  ;;  %13076 = vst [vmem:[#allocation18_spill] sm:$0xff] %v10082_v26 }
 0x487   :  { %3209 = vmatpush1.bf16.msra.mxu1 %v10068_v9  ;;  %3163 = vmatprep.subr.bf16.mxu0 %v12882_v29  ;;  %v6126_v21 = vpack.i.bf16 %v2799_v44, %v2798_v57  ;;  %v10090_v57 = vld [vmem:[%s12585_s1 + $0x348] sm:$0xff]   ;;  %v10124_v9 = vld [vmem:[%s12585_s1 + $0x9c] sm:$0xff]  }
 0x488   :  { %3210 = vmatprep.subr.bf16.mxu1 %v12882_v29  ;;  %v10096_v44 = vld [vmem:[%s12585_s1 + $0x8c] sm:$0xff]   ;;  %13079 = vst [vmem:[#allocation46_spill] sm:$0xff] %v10124_v9 }
 0x489   :  { %6127 = vrot.lane.b32.xlu1 %v6126_v21, %s6820_s24  ;;  %13077 = vst [vmem:[#allocation44_spill] sm:$0xff] %v10096_v44  ;;  %v10104_v21 = vld [vmem:[%s12585_s1 + $0x350] sm:$0xff]  }
 0x48a   :  { %3164 = vmatpush1.bf16.msra.mxu0 %v10076_v40 }
 0x48b   :  { %3211 = vmatpush1.bf16.msra.mxu1 %v10082_v26  ;;  %3165 = vmatprep.subr.bf16.mxu0 %v12882_v29  ;;  %v10110_v26 = vld [vmem:[%s12585_s1 + $0x94] sm:$0xff]  }
 0x48c   :  { %3212 = vmatprep.subr.bf16.mxu1 %v12882_v29  ;;  %13078 = vst [vmem:[#allocation20_spill] sm:$0xff] %v10110_v26 }
 0x48e   :  { %3166 = vmatpush1.bf16.msra.mxu0 %v10090_v57 }
 0x48f   :  { %3213 = vmatpush1.bf16.msra.mxu1 %v10096_v44  ;;  %3167 = vmatprep.subr.bf16.mxu0 %v12882_v29  ;;  %v10118_v44 = vld [vmem:[%s12585_s1 + $0x358] sm:$0xff]  }
 0x490   :  { %3214 = vmatprep.subr.bf16.mxu1 %v12882_v29 }
 0x492   :  { %3168 = vmatpush1.bf16.msra.mxu0 %v10104_v21 }
 0x493   :  { %3215 = vmatpush1.bf16.msra.mxu1 %v10110_v26  ;;  %3169 = vmatprep.subr.bf16.mxu0 %v12882_v29  ;;  %v10132_v26 = vld [vmem:[%s12585_s1 + $0x360] sm:$0xff]  }
 0x494   :  { %3216 = vmatprep.subr.bf16.mxu1 %v12882_v29  ;;  %13080 = vst [vmem:[#allocation22_spill] sm:$0xff] %v10132_v26 }
 0x496   :  { %3170 = vmatpush1.bf16.msra.mxu0 %v10118_v44 }
 0x497   :  { %3217 = vmatpush1.bf16.msra.mxu1 %v10124_v9  ;;  %3171 = vmatprep.subr.bf16.mxu0 %v12882_v29  ;;  %v10146_v9 = vld [vmem:[%s12585_s1 + $0x368] sm:$0xff]  }
 0x498   :  { %3218 = vmatprep.subr.bf16.mxu1 %v12882_v29  ;;  %13082 = vst [vmem:[#allocation29_spill] sm:$0xff] %v10146_v9 }
 0x49a   :  { %3172 = vmatpush1.bf16.msra.mxu0 %v10132_v26  ;;  %v10221_v26 = vld [vmem:[%s12585_s1 + $0x8] sm:$0xff]  }
 0x49b   :  { %3219 = vmatpush1.bf16.msra.mxu1 %v10138_v50  ;;  %3173 = vmatprep.subr.bf16.mxu0 %v12882_v29  ;;  %v10160_v50 = vld [vmem:[%s12585_s1 + $0x370] sm:$0xff]  }
 0x49c   :  { %3220 = vmatprep.subr.bf16.mxu1 %v12882_v29  ;;  %13084 = vst [vmem:[#allocation35_spill] sm:$0xff] %v10160_v50 }
 0x49e   :  { %3174 = vmatpush1.bf16.msra.mxu0 %v10146_v9 }
 0x49f   :  { %3221 = vmatpush1.bf16.msra.mxu1 %v10152_v38  ;;  %3175 = vmatprep.subr.bf16.mxu0 %v12882_v29  ;;  %v10174_v38 = vld [vmem:[%s12585_s1 + $0x378] sm:$0xff]  }
 0x4a0   :  { %3222 = vmatprep.subr.bf16.mxu1 %v12882_v29  ;;  %13086 = vst [vmem:[#allocation43_spill] sm:$0xff] %v10174_v38 }
 0x4a2   :  { %3176 = vmatpush1.bf16.msra.mxu0 %v10160_v50  ;;  %v10180_v50 = vld [vmem:[%s12585_s1 + $0xbc] sm:$0xff]  }
 0x4a3   :  { %3223 = vmatpush1.bf16.msra.mxu1 %v10166_v46  ;;  %3177 = vmatprep.subr.bf16.mxu0 %v12882_v29  ;;  %13087 = vst [vmem:[#allocation47_spill] sm:$0xff] %v10180_v50  ;;  %v10188_v46 = vld [vmem:[%s12586_s0 + $0x120] ss:$8 sps:$4 sm:$0xff]  }
 0x4a4   :  { %3224 = vmatprep.subr.bf16.mxu1 %v12882_v29  ;;  %13088 = vst [vmem:[#allocation49_spill] sm:$0xff] %v10188_v46 }
 0x4a6   :  { %3178 = vmatpush1.bf16.msra.mxu0 %v10174_v38 }
 0x4a7   :  { %3225 = vmatpush1.bf16.msra.mxu1 %v10180_v50  ;;  %3179 = vmatprep.subr.bf16.mxu0 %v12882_v29  ;;  %v10199_v50 = vld [vmem:[%s12585_s1] sm:$0xff]  }
 0x4a8   :  { %3226 = vmatprep.subr.bf16.mxu1 %v12882_v29  ;;  %13089 = vst [vmem:[#allocation3_spill] sm:$0xff] %v10199_v50 }
 0x4aa   :  { %3180 = vmatpush1.bf16.msra.mxu0 %v13022_v13  ;;  %v10205_v13 = vld [vmem:[%s12585_s1 + $0xc8] sm:$0xff]  }
 0x4ab   :  { %3227 = vmatpush1.bf16.msra.mxu1 %v13038_v8  ;;  %3243 = vmatprep.subr.bf16.mxu0 %v12882_v29  ;;  %13090 = vst [vmem:[#allocation54_spill] sm:$0xff] %v10205_v13 }
 0x4ac   :  { %3284 = vmatprep.subr.bf16.mxu1 %v12882_v29 }
 0x4ad   :  { %3188 = vmatmul.mubr.bf16.vlgmr.msra.gmra.mrb[88].mxu0 %v10188_v46 }
 0x4ae   :  { %3235 = vmatmul.mubr.bf16.vlgmr.msra.gmra.mrb[88].mxu1 %v9607_v56  ;;  %3244 = vmatpush1.bf16.msra.mxu0 %v10199_v50  ;;  %v6583_v50 = vld [vmem:[%s12586_s0 + $0x94] ss:$8 sps:$4 sm:$0xff]  }
 0x4af   :  { %3285 = vmatpush1.bf16.msra.mxu1 %v10205_v13  ;;  %3245 = vmatprep.subr.bf16.mxu0 %v12882_v29 }
 0x4b0   :  { %v2834_v8 = vpop.f32.mrb[72].mxu0  ;;  %3286 = vmatprep.subr.bf16.mxu1 %v12882_v29  ;;  %5844 = vmatprep.mubr.msk.bf16.mxu0 %vm180_vm0, %v9403_v45 }
 0x4b1   :  { %v2875_v56 = vpop.f32.mrb[72].mxu1  ;;  %v2836_v46 = vpop.f32.mrb[73].mxu0  ;;  %5845 = vmatprep.mubr.msk.bf16.mxu1 %vm180_vm0, %v6583_v50 }
 0x4b2   :  { %v10216_v38 = vadd.f32 %v2875_v56, %v2834_v8  ;;  %v2877_v9 = vpop.f32.mrb[73].mxu1  ;;  %v2837_v13 = vpop.f32.mrb[74].mxu0  ;;  %3246 = vmatpush1.bf16.msra.mxu0 %v10221_v26  ;;  %v10227_v46 = vld [vmem:[%s12585_s1 + $0xd0] sm:$0xff]  }
 0x4b3   :  { %v2878_v45 = vpop.f32.mrb[74].mxu1  ;;  %13091 = vst [vmem:[#allocation57_spill] sm:$0xff] %v10227_v46  ;;  %3287 = vmatpush1.bf16.msra.mxu1 %v10227_v46  ;;  %v2839_v50 = vpop.f32.mrb[75].mxu0  ;;  %3247 = vmatprep.subr.bf16.mxu0 %v12882_v29  ;;  %v10237_v56 = vld [vmem:[%s12585_s1 + $0x10] sm:$0xff]  }
 0x4b4   :  { %v10231_v8 = vadd.f32 %v2878_v45, %v2837_v13  ;;  %3288 = vmatprep.subr.bf16.mxu1 %v12882_v29  ;;  %v2880_v9 = vpop.f32.mrb[75].mxu1  ;;  %v10246_v13 = vld [vmem:[%s12585_s1 + $0x18] sm:$0xff]  }
 0x4b6   :  { %3248 = vmatpush1.bf16.msra.mxu0 %v10237_v56 }
 0x4b7   :  { %3289 = vmatpush1.bf16.msra.mxu1 %v9498_v4  ;;  %3249 = vmatprep.subr.bf16.mxu0 %v12882_v29  ;;  %v10255_v4 = vld [vmem:[%s12585_s1 + $0x20] sm:$0xff]  }
 0x4b8   :  { %3290 = vmatprep.subr.bf16.mxu1 %v12882_v29 }
 0x4ba   :  { %3250 = vmatpush1.bf16.msra.mxu0 %v10246_v13 }
 0x4bb   :  { %3291 = vmatpush1.bf16.msra.mxu1 %v9507_v31  ;;  %3251 = vmatprep.subr.bf16.mxu0 %v12882_v29  ;;  %v10264_v31 = vld [vmem:[%s12585_s1 + $0x28] sm:$0xff]  }
 0x4bc   :  { %3292 = vmatprep.subr.bf16.mxu1 %v12882_v29 }
 0x4be   :  { %3252 = vmatpush1.bf16.msra.mxu0 %v10255_v4 }
 0x4bf   :  { %3293 = vmatpush1.bf16.msra.mxu1 %v9516_v27  ;;  %3253 = vmatprep.subr.bf16.mxu0 %v12882_v29  ;;  %v10273_v27 = vld [vmem:[%s12585_s1 + $0x30] sm:$0xff]  }
 0x4c0   :  { %3294 = vmatprep.subr.bf16.mxu1 %v12882_v29 }
 0x4c2   :  { %3254 = vmatpush1.bf16.msra.mxu0 %v10264_v31 }
 0x4c3   :  { %3295 = vmatpush1.bf16.msra.mxu1 %v9525_v0  ;;  %3255 = vmatprep.subr.bf16.mxu0 %v12882_v29  ;;  %v10282_v0 = vld [vmem:[%s12585_s1 + $0x38] sm:$0xff]  }
 0x4c4   :  { %3296 = vmatprep.subr.bf16.mxu1 %v12882_v29 }
 0x4c6   :  { %3256 = vmatpush1.bf16.msra.mxu0 %v10273_v27 }
 0x4c7   :  { %3297 = vmatpush1.bf16.msra.mxu1 %v9534_v53  ;;  %3257 = vmatprep.subr.bf16.mxu0 %v12882_v29  ;;  %v10291_v53 = vld [vmem:[%s12585_s1 + $0x40] sm:$0xff]  }
 0x4c8   :  { %3298 = vmatprep.subr.bf16.mxu1 %v12882_v29 }
 0x4ca   :  { %3258 = vmatpush1.bf16.msra.mxu0 %v10282_v0 }
 0x4cb   :  { %3299 = vmatpush1.bf16.msra.mxu1 %v9543_v3  ;;  %3259 = vmatprep.subr.bf16.mxu0 %v12882_v29  ;;  %v10300_v3 = vld [vmem:[%s12585_s1 + $0x48] sm:$0xff]  }
 0x4cc   :  { %3300 = vmatprep.subr.bf16.mxu1 %v12882_v29 }
 0x4ce   :  { %3260 = vmatpush1.bf16.msra.mxu0 %v10291_v53 }
 0x4cf   :  { %3301 = vmatpush1.bf16.msra.mxu1 %v9552_v24  ;;  %3261 = vmatprep.subr.bf16.mxu0 %v12882_v29  ;;  %v10309_v24 = vld [vmem:[%s12585_s1 + $0x50] sm:$0xff]  }
 0x4d0   :  { %3302 = vmatprep.subr.bf16.mxu1 %v12882_v29 }
 0x4d2   :  { %3262 = vmatpush1.bf16.msra.mxu0 %v10300_v3 }
 0x4d3   :  { %3303 = vmatpush1.bf16.msra.mxu1 %v9561_v34  ;;  %3263 = vmatprep.subr.bf16.mxu0 %v12882_v29  ;;  %v10318_v34 = vld [vmem:[%s12585_s1 + $0x58] sm:$0xff]  }
 0x4d4   :  { %3304 = vmatprep.subr.bf16.mxu1 %v12882_v29 }
 0x4d6   :  { %3264 = vmatpush1.bf16.msra.mxu0 %v10309_v24 }
 0x4d7   :  { %3305 = vmatpush1.bf16.msra.mxu1 %v9575_v7  ;;  %3265 = vmatprep.subr.bf16.mxu0 %v12882_v29  ;;  %v6596_v7 = vld [vmem:[%s12586_s0 + $0x90] ss:$8 sps:$4 sm:$0xff]  }
 0x4d8   :  { %3306 = vmatprep.subr.bf16.mxu1 %v12882_v29 }
 0x4da   :  { %3266 = vmatpush1.bf16.msra.mxu0 %v10318_v34 }
 0x4db   :  { %3307 = vmatpush1.bf16.msra.mxu1 %v9589_v15  ;;  %3267 = vmatprep.subr.bf16.mxu0 %v12882_v29  ;;  %v10335_v15 = vld [vmem:[%s12585_s1 + $0x12c] sm:$0xff]  }
 0x4dc   :  { %3308 = vmatprep.subr.bf16.mxu1 %v12882_v29  ;;  %13092 = vst [vmem:[#allocation56_spill] sm:$0xff] %v10335_v15 }
 0x4de   :  { %3268 = vmatpush1.bf16.msra.mxu0 %v12938_v16 }
 0x4df   :  { %3309 = vmatpush1.bf16.msra.mxu1 %v13045_v28  ;;  %3327 = vmatprep.subr.bf16.mxu0 %v12882_v29 }
 0x4e0   :  { %3370 = vmatprep.subr.bf16.mxu1 %v12882_v29 }
 0x4e1   :  { %3276 = vmatmul.mubr.bf16.vlgmr.msra.gmra.mrb[92].mxu0 %v9468_v10 }
 0x4e2   :  { %3317 = vmatmul.mubr.bf16.vlgmr.msra.gmra.mrb[92].mxu1 %v6596_v7  ;;  %3328 = vmatpush1.bf16.msra.mxu0 %v10335_v15 }
 0x4e3   :  { %3371 = vmatpush1.bf16.msra.mxu1 %v9614_v55  ;;  %3329 = vmatprep.subr.bf16.mxu0 %v12882_v29  ;;  %v10349_v55 = vld [vmem:[%s12585_s1 + $0x134] sm:$0xff]  }
 0x4e4   :  { %v2916_v45 = vpop.f32.mrb[76].mxu0  ;;  %3372 = vmatprep.subr.bf16.mxu1 %v12882_v29  ;;  %5846 = vmatprep.mubr.msk.bf16.mxu0 %vm180_vm0, %v9628_v1 }
 0x4e5   :  { %v2923_v10 = vadd.f32 %v2916_v45, %v10216_v38  ;;  %v2918_v50 = vpop.f32.mrb[77].mxu0  ;;  %v2959_v9 = vpop.f32.mrb[76].mxu1  ;;  %5847 = vmatprep.mubr.msk.bf16.mxu1 %vm180_vm0, %v9636_v30 }
 0x4e6   :  { %v2919_v7 = vpop.f32.mrb[78].mxu0  ;;  %3330 = vmatpush1.bf16.msra.mxu0 %v10349_v55  ;;  %v2961_v28 = vpop.f32.mrb[77].mxu1  ;;  %v10363_v50 = vld [vmem:[%s12585_s1 + $0x13c] sm:$0xff]  }
 0x4e7   :  { %v2924_v46 = vadd.f32 %v2919_v7, %v10231_v8  ;;  %v10353_v15 = vadd.f32 %v2959_v9, %v2923_v10  ;;  %3373 = vmatpush1.bf16.msra.mxu1 %v9643_v49  ;;  %v2921_v1 = vpop.f32.mrb[79].mxu0  ;;  %v2962_v38 = vpop.f32.mrb[78].mxu1  ;;  %3331 = vmatprep.subr.bf16.mxu0 %v12882_v29  ;;  %v10372_v28 = vld [vmem:[%s12585_s1 + $0x144] sm:$0xff]   ;;  %v10381_v49 = vld [vmem:[%s12585_s1 + $0x14c] sm:$0xff]   ;;  %v13103_v8 = vld [vmem:[#allocation21_spill] sm:$0xff] }
 0x4e8   :  { %3374 = vmatprep.subr.bf16.mxu1 %v12882_v29  ;;  %v2964_v30 = vpop.f32.mrb[79].mxu1  ;;  %v13105_v10 = vld [vmem:[#allocation7_spill] sm:$0xff]  ;;  %v6310_v1 = vld [vmem:[%s12586_s0 + $0x134] ss:$8 sps:$4 sm:$0xff]  }
 0x4e9   :  { %v10358_v45 = vadd.f32 %v2962_v38, %v2924_v46  ;;  %v13106_v9 = vld [vmem:[#allocation23_spill] sm:$0xff]  ;;  %v10519_v38 = vld [vmem:[%s12586_s0 + $0x110] ss:$8 sps:$4 sm:$0xff]   ;;  %v13107_v30 = vld [vmem:[#allocation14_spill] sm:$0xff] }
 0x4ea   :  { %3332 = vmatpush1.bf16.msra.mxu0 %v10363_v50  ;;  %v6608_v7 = vld [vmem:[%s12586_s0 + $0xe0] ss:$8 sps:$4 sm:$0xff]  }
 0x4eb   :  { %3375 = vmatpush1.bf16.msra.mxu1 %v9662_v52  ;;  %3333 = vmatprep.subr.bf16.mxu0 %v12882_v29  ;;  %v10390_v52 = vld [vmem:[%s12585_s1 + $0x154] sm:$0xff]  }
 0x4ec   :  { %3376 = vmatprep.subr.bf16.mxu1 %v12882_v29 }
 0x4ee   :  { %3334 = vmatpush1.bf16.msra.mxu0 %v10372_v28 }
 0x4ef   :  { %3377 = vmatpush1.bf16.msra.mxu1 %v9676_v17  ;;  %3335 = vmatprep.subr.bf16.mxu0 %v12882_v29  ;;  %v10399_v17 = vld [vmem:[%s12585_s1 + $0x15c] sm:$0xff]  }
 0x4f0   :  { %3378 = vmatprep.subr.bf16.mxu1 %v12882_v29 }
 0x4f2   :  { %3336 = vmatpush1.bf16.msra.mxu0 %v10381_v49 }
 0x4f3   :  { %3379 = vmatpush1.bf16.msra.mxu1 %v9690_v54  ;;  %3337 = vmatprep.subr.bf16.mxu0 %v12882_v29  ;;  %v10408_v54 = vld [vmem:[%s12585_s1 + $0x164] sm:$0xff]  }
 0x4f4   :  { %3380 = vmatprep.subr.bf16.mxu1 %v12882_v29 }
 0x4f6   :  { %3338 = vmatpush1.bf16.msra.mxu0 %v10390_v52 }
 0x4f7   :  { %3381 = vmatpush1.bf16.msra.mxu1 %v9704_v22  ;;  %3339 = vmatprep.subr.bf16.mxu0 %v12882_v29  ;;  %v10417_v22 = vld [vmem:[%s12585_s1 + $0x16c] sm:$0xff]  }
 0x4f8   :  { %3382 = vmatprep.subr.bf16.mxu1 %v12882_v29 }
 0x4fa   :  { %3340 = vmatpush1.bf16.msra.mxu0 %v10399_v17 }
 0x4fb   :  { %3383 = vmatpush1.bf16.msra.mxu1 %v9718_v47  ;;  %3341 = vmatprep.subr.bf16.mxu0 %v12882_v29 }
 0x4fc   :  { %3384 = vmatprep.subr.bf16.mxu1 %v12882_v29 }
 0x4fe   :  { %3342 = vmatpush1.bf16.msra.mxu0 %v10408_v54 }
 0x4ff   :  { %3385 = vmatpush1.bf16.msra.mxu1 %v9732_v62  ;;  %3343 = vmatprep.subr.bf16.mxu0 %v12882_v29 }
 0x500   :  { %3386 = vmatprep.subr.bf16.mxu1 %v12882_v29 }
 0x502   :  { %3344 = vmatpush1.bf16.msra.mxu0 %v10417_v22 }
 0x503   :  { %3387 = vmatpush1.bf16.msra.mxu1 %v9746_v18  ;;  %3345 = vmatprep.subr.bf16.mxu0 %v12882_v29 }
 0x504   :  { %3388 = vmatprep.subr.bf16.mxu1 %v12882_v29 }
 0x506   :  { %3346 = vmatpush1.bf16.msra.mxu0 %v9567_v60 }
 0x507   :  { %3389 = vmatpush1.bf16.msra.mxu1 %v9760_v19  ;;  %3347 = vmatprep.subr.bf16.mxu0 %v12882_v29 }
 0x508   :  { %3390 = vmatprep.subr.bf16.mxu1 %v12882_v29 }
 0x50a   :  { %3348 = vmatpush1.bf16.msra.mxu0 %v9581_v11  ;;  %v6606_v11 = vld [vmem:[%s12586_s0 + $0xe4] ss:$8 sps:$4 sm:$0xff]  }
 0x50b   :  { %3391 = vmatpush1.bf16.msra.mxu1 %v9774_v43  ;;  %3349 = vmatprep.subr.bf16.mxu0 %v12882_v29 }
 0x50c   :  { %3392 = vmatprep.subr.bf16.mxu1 %v12882_v29 }
 0x50e   :  { %3350 = vmatpush1.bf16.msra.mxu0 %v9595_v42 }
 0x50f   :  { %3393 = vmatpush1.bf16.msra.mxu1 %v9788_v33  ;;  %3351 = vmatprep.subr.bf16.mxu0 %v12882_v29 }
 0x510   :  { %3394 = vmatprep.subr.bf16.mxu1 %v12882_v29 }
 0x512   :  { %3352 = vmatpush1.bf16.msra.mxu0 %v7178_v63 }
 0x513   :  { %3395 = vmatpush1.bf16.msra.mxu1 %v7376_v32  ;;  %3413 = vmatprep.subr.bf16.mxu0 %v12882_v29 }
 0x514   :  { %3456 = vmatprep.subr.bf16.mxu1 %v12882_v29 }
 0x515   :  { %3360 = vmatmul.mubr.bf16.vlgmr.msra.gmra.mrb[96].mxu0 %v9806_v58 }
 0x516   :  { %3403 = vmatmul.mubr.bf16.vlgmr.msra.gmra.mrb[96].mxu1 %v9812_v2  ;;  %3414 = vmatpush1.bf16.msra.mxu0 %v9620_v41  ;;  %v10453_v41 = vld [vmem:[%s12586_s0 + $0x114] ss:$8 sps:$4 sm:$0xff]  }
 0x517   :  { %3457 = vmatpush1.bf16.msra.mxu1 %v9818_v6  ;;  %3415 = vmatprep.subr.bf16.mxu0 %v12882_v29 }
 0x518   :  { %v3002_v60 = vpop.f32.mrb[80].mxu0  ;;  %3458 = vmatprep.subr.bf16.mxu1 %v12882_v29  ;;  %5848 = vmatprep.mubr.msk.bf16.mxu0 %vm180_vm0, %v6606_v11 }
 0x519   :  { %v3009_v42 = vadd.f32 %v3002_v60, %v10353_v15  ;;  %v3004_v47 = vpop.f32.mrb[81].mxu0  ;;  %v3045_v62 = vpop.f32.mrb[80].mxu1  ;;  %5849 = vmatprep.mubr.msk.bf16.mxu1 %vm180_vm0, %v10453_v41  ;;  %v13104_v15 = vld [vmem:[#allocation37_spill] sm:$0xff] }
 0x51a   :  { %v3005_v18 = vpop.f32.mrb[82].mxu0  ;;  %3416 = vmatpush1.bf16.msra.mxu0 %v9652_v61  ;;  %v3047_v19 = vpop.f32.mrb[81].mxu1  ;;  %v13093_v61 = vld [vmem:[#allocation11_spill] sm:$0xff] }
 0x51b   :  { %v3010_v43 = vadd.f32 %v3005_v18, %v10358_v45  ;;  %v10459_v33 = vadd.f32 %v3045_v62, %v3009_v42  ;;  %3459 = vmatpush1.bf16.msra.mxu1 %v9837_v12  ;;  %v3007_v58 = vpop.f32.mrb[83].mxu0  ;;  %v3048_v2 = vpop.f32.mrb[82].mxu1  ;;  %3417 = vmatprep.subr.bf16.mxu0 %v12882_v29  ;;  %v13098_v12 = vld [vmem:[#allocation52_spill] sm:$0xff]  ;;  %v13108_v45 = vld [vmem:[#allocation41_spill] sm:$0xff]  ;;  %v13109_v18 = vld [vmem:[#allocation15_spill] sm:$0xff] }
 0x51c   :  { %3460 = vmatprep.subr.bf16.mxu1 %v12882_v29  ;;  %v3050_v6 = vpop.f32.mrb[83].mxu1 }
 0x51d   :  { %v10464_v46 = vadd.f32 %v3048_v2, %v3010_v43 }
 0x51e   :  { %3418 = vmatpush1.bf16.msra.mxu0 %v9668_v36  ;;  %v13094_v36 = vld [vmem:[#allocation27_spill] sm:$0xff] }
 0x51f   :  { %3461 = vmatpush1.bf16.msra.mxu1 %v9856_v37  ;;  %3419 = vmatprep.subr.bf16.mxu0 %v12882_v29  ;;  %v13099_v37 = vld [vmem:[#allocation6_spill] sm:$0xff] }
 0x520   :  { %3462 = vmatprep.subr.bf16.mxu1 %v12882_v29 }
 0x522   :  { %3420 = vmatpush1.bf16.msra.mxu0 %v9682_v51  ;;  %v13095_v51 = vld [vmem:[#allocation19_spill] sm:$0xff] }
 0x523   :  { %3463 = vmatpush1.bf16.msra.mxu1 %v9870_v14  ;;  %3421 = vmatprep.subr.bf16.mxu0 %v12882_v29  ;;  %v13100_v14 = vld [vmem:[#allocation53_spill] sm:$0xff] }
 0x524   :  { %3464 = vmatprep.subr.bf16.mxu1 %v12882_v29 }
 0x526   :  { %3422 = vmatpush1.bf16.msra.mxu0 %v9696_v20  ;;  %v13096_v20 = vld [vmem:[#allocation28_spill] sm:$0xff] }
 0x527   :  { %3465 = vmatpush1.bf16.msra.mxu1 %v9884_v48  ;;  %3423 = vmatprep.subr.bf16.mxu0 %v12882_v29  ;;  %v13101_v48 = vld [vmem:[#allocation13_spill] sm:$0xff] }
 0x528   :  { %3466 = vmatprep.subr.bf16.mxu1 %v12882_v29 }
 0x52a   :  { %3424 = vmatpush1.bf16.msra.mxu0 %v9710_v5  ;;  %v13097_v5 = vld [vmem:[#allocation12_spill] sm:$0xff] }
 0x52b   :  { %3467 = vmatpush1.bf16.msra.mxu1 %v9898_v23  ;;  %3425 = vmatprep.subr.bf16.mxu0 %v12882_v29  ;;  %v13102_v23 = vld [vmem:[#allocation33_spill] sm:$0xff] }
 0x52c   :  { %3468 = vmatprep.subr.bf16.mxu1 %v12882_v29 }
 0x52e   :  { %3426 = vmatpush1.bf16.msra.mxu0 %v13093_v61  ;;  %v13110_v61 = vld [vmem:[#allocation25_spill] sm:$0xff] }
 0x52f   :  { %3469 = vmatpush1.bf16.msra.mxu1 %v13094_v36  ;;  %3427 = vmatprep.subr.bf16.mxu0 %v12882_v29  ;;  %v13117_v36 = vld [vmem:[#allocation22_spill] sm:$0xff] }
 0x530   :  { %3470 = vmatprep.subr.bf16.mxu1 %v12882_v29 }
 0x532   :  { %3428 = vmatpush1.bf16.msra.mxu0 %v13095_v51  ;;  %v13119_v51 = vld [vmem:[#allocation29_spill] sm:$0xff] }
 0x533   :  { %3471 = vmatpush1.bf16.msra.mxu1 %v13096_v20  ;;  %3429 = vmatprep.subr.bf16.mxu0 %v12882_v29  ;;  %v13121_v20 = vld [vmem:[#allocation35_spill] sm:$0xff] }
 0x534   :  { %3472 = vmatprep.subr.bf16.mxu1 %v12882_v29 }
 0x536   :  { %3430 = vmatpush1.bf16.msra.mxu0 %v13097_v5  ;;  %v13122_v5 = vld [vmem:[#allocation36_spill] sm:$0xff] }
 0x537   :  { %3473 = vmatpush1.bf16.msra.mxu1 %v13098_v12  ;;  %3431 = vmatprep.subr.bf16.mxu0 %v12882_v29  ;;  %v13123_v12 = vld [vmem:[#allocation43_spill] sm:$0xff] }
 0x538   :  { %3474 = vmatprep.subr.bf16.mxu1 %v12882_v29 }
 0x53a   :  { %3432 = vmatpush1.bf16.msra.mxu0 %v13099_v37  ;;  %v13124_v37 = vld [vmem:[#allocation24_spill] sm:$0xff] }
 0x53b   :  { %3475 = vmatpush1.bf16.msra.mxu1 %v13100_v14  ;;  %3433 = vmatprep.subr.bf16.mxu0 %v12882_v29  ;;  %v6312_v14 = vld [vmem:[%s12586_s0 + $0x130] ss:$8 sps:$4 sm:$0xff]  }
 0x53c   :  { %3476 = vmatprep.subr.bf16.mxu1 %v12882_v29 }
 0x53e   :  { %3434 = vmatpush1.bf16.msra.mxu0 %v13101_v48  ;;  %v13125_v48 = vld [vmem:[#allocation51_spill] sm:$0xff] }
 0x53f   :  { %3477 = vmatpush1.bf16.msra.mxu1 %v13102_v23  ;;  %3435 = vmatprep.subr.bf16.mxu0 %v12882_v29  ;;  %v13126_v23 = vld [vmem:[#allocation49_spill] sm:$0xff] }
 0x540   :  { %3478 = vmatprep.subr.bf16.mxu1 %v12882_v29 }
 0x542   :  { %3436 = vmatpush1.bf16.msra.mxu0 %v13103_v8  ;;  %v13127_v8 = vld [vmem:[#allocation38_spill] sm:$0xff] }
 0x543   :  { %3479 = vmatpush1.bf16.msra.mxu1 %v13104_v15  ;;  %3437 = vmatprep.subr.bf16.mxu0 %v12882_v29  ;;  %v13128_v15 = vld [vmem:[#allocation3_spill] sm:$0xff] }
 0x544   :  { %3480 = vmatprep.subr.bf16.mxu1 %v12882_v29 }
 0x546   :  { %3438 = vmatpush1.bf16.msra.mxu0 %v13105_v10 }
 0x547   :  { %3481 = vmatpush1.bf16.msra.mxu1 %v13106_v9  ;;  %3499 = vmatprep.subr.bf16.mxu0 %v12882_v29 }
 0x548   :  { %3557 = vmatprep.subr.bf16.mxu1 %v12882_v29 }
 0x549   :  { %3446 = vmatmul.mubr.bf16.vlgmr.msra.gmra.mrb[100].mxu0 %v6608_v7 }
 0x54a   :  { %3489 = vmatmul.mubr.bf16.vlgmr.msra.gmra.mrb[100].mxu1 %v10519_v38  ;;  %3500 = vmatpush1.bf16.msra.mxu0 %v13107_v30 }
 0x54b   :  { %3558 = vmatpush1.bf16.msra.mxu1 %v13108_v45  ;;  %3501 = vmatprep.subr.bf16.mxu0 %v12882_v29 }
 0x54c   :  { %v3088_v60 = vpop.f32.mrb[84].mxu0  ;;  %3559 = vmatprep.subr.bf16.mxu1 %v12882_v29  ;;  %5850 = vmatprep.mubr.msk.bf16.mxu0 %vm180_vm0, %v10000_v25 }
 0x54d   :  { %v3095_v11 = vadd.f32 %v3088_v60, %v10459_v33  ;;  %v3090_v42 = vpop.f32.mrb[85].mxu0  ;;  %v3131_v47 = vpop.f32.mrb[84].mxu1  ;;  %5855 = vmatprep.mubr.msk.bf16.mxu1 %vm180_vm0, %v6310_v1  ;;  %v10592_v1 = vld [vmem:[%s12586_s0 + $0xb4] ss:$8 sps:$4 sm:$0xff]  }
 0x54e   :  { %v3091_v62 = vpop.f32.mrb[86].mxu0  ;;  %3502 = vmatpush1.bf16.msra.mxu0 %v13109_v18  ;;  %v3133_v19 = vpop.f32.mrb[85].mxu1  ;;  %v13130_v18 = vld [vmem:[#allocation16_spill] sm:$0xff] }
 0x54f   :  { %v3096_v43 = vadd.f32 %v3091_v62, %v10464_v46  ;;  %v3138_v58 = vadd.f32 %v3131_v47, %v3095_v11  ;;  %3560 = vmatpush1.bf16.msra.mxu1 %v10026_v35  ;;  %v3093_v2 = vpop.f32.mrb[87].mxu0  ;;  %v3134_v6 = vpop.f32.mrb[86].mxu1  ;;  %3503 = vmatprep.subr.bf16.mxu0 %v12882_v29  ;;  %v13111_v46 = vld [vmem:[#allocation40_spill] sm:$0xff]  ;;  %v6611_v11 = vld [vmem:[%s12586_s0 + $0xa4] ss:$8 sps:$4 sm:$0xff]   ;;  %v13129_v47 = vld [vmem:[#allocation45_spill] sm:$0xff] }
 0x550   :  { %3561 = vmatprep.subr.bf16.mxu1 %v12882_v29  ;;  %v3136_v25 = vpop.f32.mrb[87].mxu1  ;;  %v13112_v35 = vld [vmem:[#allocation8_spill] sm:$0xff] }
 0x551   :  { %v10535_v33 = vadd.f32 %v3134_v6, %v3096_v43 }
 0x552   :  { %3504 = vmatpush1.bf16.msra.mxu0 %v13110_v61  ;;  %v13131_v61 = vld [vmem:[#allocation50_spill] sm:$0xff] }
 0x553   :  { %3562 = vmatpush1.bf16.msra.mxu1 %v10047_v59  ;;  %3505 = vmatprep.subr.bf16.mxu0 %v12882_v29  ;;  %v13113_v59 = vld [vmem:[#allocation26_spill] sm:$0xff] }
 0x554   :  { %3563 = vmatprep.subr.bf16.mxu1 %v12882_v29 }
 0x556   :  { %3506 = vmatpush1.bf16.msra.mxu0 %v13111_v46 }
 0x557   :  { %3564 = vmatpush1.bf16.msra.mxu1 %v10062_v39  ;;  %3507 = vmatprep.subr.bf16.mxu0 %v12882_v29  ;;  %v13114_v39 = vld [vmem:[#allocation9_spill] sm:$0xff] }
 0x558   :  { %3565 = vmatprep.subr.bf16.mxu1 %v12882_v29 }
 0x55a   :  { %3508 = vmatpush1.bf16.msra.mxu0 %v13112_v35 }
 0x55b   :  { %3566 = vmatpush1.bf16.msra.mxu1 %v10076_v40  ;;  %3509 = vmatprep.subr.bf16.mxu0 %v12882_v29  ;;  %v13115_v40 = vld [vmem:[#allocation10_spill] sm:$0xff] }
 0x55c   :  { %3567 = vmatprep.subr.bf16.mxu1 %v12882_v29 }
 0x55e   :  { %3510 = vmatpush1.bf16.msra.mxu0 %v13113_v59  ;;  %v13133_v59 = vld [vmem:[#allocation18_spill] sm:$0xff] }
 0x55f   :  { %3568 = vmatpush1.bf16.msra.mxu1 %v10090_v57  ;;  %3511 = vmatprep.subr.bf16.mxu0 %v12882_v29  ;;  %v13116_v57 = vld [vmem:[#allocation30_spill] sm:$0xff] }
 0x560   :  { %3569 = vmatprep.subr.bf16.mxu1 %v12882_v29 }
 0x562   :  { %3512 = vmatpush1.bf16.msra.mxu0 %v13114_v39  ;;  %v13142_v39 = vld [vmem:[#allocation54_spill] sm:$0xff] }
 0x563   :  { %3570 = vmatpush1.bf16.msra.mxu1 %v10104_v21  ;;  %3513 = vmatprep.subr.bf16.mxu0 %v12882_v29  ;;  %v13118_v21 = vld [vmem:[#allocation32_spill] sm:$0xff] }
 0x564   :  { %3571 = vmatprep.subr.bf16.mxu1 %v12882_v29 }
 0x566   :  { %3514 = vmatpush1.bf16.msra.mxu0 %v13115_v40  ;;  %v13143_v40 = vld [vmem:[#allocation56_spill] sm:$0xff] }
 0x567   :  { %3572 = vmatpush1.bf16.msra.mxu1 %v10118_v44  ;;  %3515 = vmatprep.subr.bf16.mxu0 %v12882_v29  ;;  %v13120_v44 = vld [vmem:[#allocation34_spill] sm:$0xff] }
 0x568   :  { %3573 = vmatprep.subr.bf16.mxu1 %v12882_v29 }
 0x56a   :  { %3516 = vmatpush1.bf16.msra.mxu0 %v13116_v57 }
 0x56b   :  { %3574 = vmatpush1.bf16.msra.mxu1 %v13117_v36  ;;  %3517 = vmatprep.subr.bf16.mxu0 %v12882_v29  ;;  %v10671_v36 = vld [vmem:[%s12586_s0 + $0xc4] ss:$8 sps:$4 sm:$0xff]  }
 0x56c   :  { %3575 = vmatprep.subr.bf16.mxu1 %v12882_v29 }
 0x56e   :  { %3518 = vmatpush1.bf16.msra.mxu0 %v13118_v21 }
 0x56f   :  { %3576 = vmatpush1.bf16.msra.mxu1 %v13119_v51  ;;  %3519 = vmatprep.subr.bf16.mxu0 %v12882_v29 }
 0x570   :  { %3577 = vmatprep.subr.bf16.mxu1 %v12882_v29 }
 0x572   :  { %3520 = vmatpush1.bf16.msra.mxu0 %v13120_v44 }
 0x573   :  { %3578 = vmatpush1.bf16.msra.mxu1 %v13121_v20  ;;  %3521 = vmatprep.subr.bf16.mxu0 %v12882_v29  ;;  %v6615_v20 = vld [vmem:[%s12586_s0 + $0xf4] ss:$8 sps:$4 sm:$0xff]  }
 0x574   :  { %3579 = vmatprep.subr.bf16.mxu1 %v12882_v29 }
 0x576   :  { %3522 = vmatpush1.bf16.msra.mxu0 %v13122_v5 }
 0x577   :  { %3580 = vmatpush1.bf16.msra.mxu1 %v13123_v12  ;;  %3523 = vmatprep.subr.bf16.mxu0 %v12882_v29  ;;  %v13144_v12 = vld [vmem:[#allocation57_spill] sm:$0xff] }
 0x578   :  { %3581 = vmatprep.subr.bf16.mxu1 %v12882_v29 }
 0x57a   :  { %3524 = vmatpush1.bf16.msra.mxu0 %v13124_v37 }
 0x57b   :  { %3582 = vmatpush1.bf16.msra.mxu1 %v13125_v48  ;;  %3604 = vmatprep.subr.bf16.mxu0 %v12882_v29 }
 0x57c   :  { %3645 = vmatprep.subr.bf16.mxu1 %v12882_v29 }
 0x57d   :  { %3532 = vmatmul.mubr.bf16.vlgmr.msra.gmra.mrb[104].mxu0 %v13126_v23 }
 0x57e   :  { %3590 = vmatmul.mubr.bf16.vlgmr.msra.gmra.mrb[104].mxu1 %v6312_v14  ;;  %3605 = vmatpush1.bf16.msra.mxu0 %v13127_v8 }
 0x57f   :  { %3646 = vmatpush1.bf16.msra.mxu1 %v13128_v15  ;;  %3606 = vmatprep.subr.bf16.mxu0 %v12882_v29 }
 0x580   :  { %v3189_v7 = vpop.f32.mrb[88].mxu0  ;;  %3647 = vmatprep.subr.bf16.mxu1 %v12882_v29  ;;  %5856 = vmatprep.mubr.msk.bf16.mxu0 %vm180_vm0, %v10592_v1 }
 0x581   :  { %v3196_v30 = vadd.f32 %v3189_v7, %v3138_v58  ;;  %v3191_v45 = vpop.f32.mrb[89].mxu0  ;;  %v10596_v60 = vpop.f32.mrb[88].mxu1  ;;  %5857 = vmatprep.mubr.msk.bf16.mxu1 %vm180_vm0, %v6611_v11  ;;  %v10761_v11 = vld [vmem:[%s12585_s1 + $0x174] sm:$0xff]  }
 0x582   :  { %v3192_v42 = vpop.f32.mrb[90].mxu0  ;;  %3607 = vmatpush1.bf16.msra.mxu0 %v13129_v47  ;;  %v3238_v62 = vpop.f32.mrb[89].mxu1  ;;  %v10783_v47 = vld [vmem:[%s12585_s1 + $0x120] sm:$0xff]  }
 0x583   :  { %v3198_v19 = vadd.f32 %v13130_v18, %v3196_v30  ;;  %v3197_v43 = vadd.f32 %v3192_v42, %v10535_v33  ;;  %3648 = vmatpush1.bf16.msra.mxu1 %v10221_v26  ;;  %v3194_v58 = vpop.f32.mrb[91].mxu0  ;;  %3608 = vmatprep.subr.bf16.mxu0 %v12882_v29  ;;  %v10607_v2 = vpop.f32.mrb[90].mxu1  ;;  %v13132_v33 = vld [vmem:[#allocation42_spill] sm:$0xff] }
 0x584   :  { %3649 = vmatprep.subr.bf16.mxu1 %v12882_v29  ;;  %v3241_v6 = vpop.f32.mrb[91].mxu1  ;;  %v10775_v42 = vld [vmem:[%s12585_s1 + $0x17c] sm:$0xff]   ;;  %v10789_v62 = vld [vmem:[%s12585_s1 + $0x184] sm:$0xff]   ;;  %v10810_v58 = vld [vmem:[%s12585_s1 + $0x190] sm:$0xff]  }
 0x585   :  { %v3199_v25 = vadd.f32 %v13130_v18, %v3197_v43  ;;  %v3200_v46 = vmax.f32 %v3198_v19, 0.0  ;;  %v13145_v18 = vld [vmem:[#allocation4_spill] sm:$0xff]  ;;  %v10801_v19 = vld [vmem:[%s12586_s0 + $0xc0] ss:$8 sps:$4 sm:$0xff]  }
 0x586   :  { %3609 = vmatpush1.bf16.msra.mxu0 %v13131_v61  ;;  %v6630_v43 = vld [vmem:[%s12586_s0 + $0xf0] ss:$8 sps:$4 sm:$0xff]  }
 0x587   :  { %v3201_v35 = vmax.f32 %v3199_v25, 0.0  ;;  %3650 = vmatpush1.bf16.msra.mxu1 %v10237_v56  ;;  %3610 = vmatprep.subr.bf16.mxu0 %v12882_v29  ;;  %v13134_v56 = vld [vmem:[#allocation44_spill] sm:$0xff]  ;;  %v10824_v25 = vld [vmem:[%s12586_s0 + $0x104] ss:$8 sps:$4 sm:$0xff]  }
 0x588   :  { %3651 = vmatprep.subr.bf16.mxu1 %v12882_v29 }
 0x589   :  { %v6131_v26 = vpack.i.bf16 %v3201_v35, %v3200_v46 }
 0x58a   :  { %3611 = vmatpush1.bf16.msra.mxu0 %v13132_v33  ;;  %v10834_v33 = vld [vmem:[%s12585_s1 + $0x198] sm:$0xff]  }
 0x58b   :  { %3652 = vmatpush1.bf16.msra.mxu1 %v10246_v13  ;;  %6132 = vrot.lane.b32.xlu1 %v6131_v26, %s6821_s30  ;;  %v13135_v13 = vld [vmem:[#allocation20_spill] sm:$0xff]  ;;  %s6824_s30 = smov 12  }
 0x58c   :  { %3612 = vmatprep.subr.bf16.mxu0 %v12882_v29  ;;  %3653 = vmatprep.subr.bf16.mxu1 %v12882_v29 }
 0x58e   :  { %3613 = vmatpush1.bf16.msra.mxu0 %v13133_v59 }
 0x58f   :  { %3654 = vmatpush1.bf16.msra.mxu1 %v10255_v4  ;;  %3614 = vmatprep.subr.bf16.mxu0 %v12882_v29  ;;  %v13136_v4 = vld [vmem:[#allocation46_spill] sm:$0xff] }
 0x590   :  { %3655 = vmatprep.subr.bf16.mxu1 %v12882_v29 }
 0x592   :  { %3615 = vmatpush1.bf16.msra.mxu0 %v13134_v56 }
 0x593   :  { %3656 = vmatpush1.bf16.msra.mxu1 %v10264_v31  ;;  %3616 = vmatprep.subr.bf16.mxu0 %v12882_v29  ;;  %v13137_v31 = vld [vmem:[#allocation48_spill] sm:$0xff] }
 0x594   :  { %3657 = vmatprep.subr.bf16.mxu1 %v12882_v29 }
 0x596   :  { %3617 = vmatpush1.bf16.msra.mxu0 %v13135_v13 }
 0x597   :  { %3658 = vmatpush1.bf16.msra.mxu1 %v10273_v27  ;;  %3618 = vmatprep.subr.bf16.mxu0 %v12882_v29  ;;  %v13138_v27 = vld [vmem:[#allocation31_spill] sm:$0xff] }
 0x598   :  { %3659 = vmatprep.subr.bf16.mxu1 %v12882_v29 }
 0x59a   :  { %3619 = vmatpush1.bf16.msra.mxu0 %v13136_v4  ;;  %v10843_v4 = vld [vmem:[%s12585_s1 + $0x1fc] sm:$0xff]  }
 0x59b   :  { %3660 = vmatpush1.bf16.msra.mxu1 %v10282_v0  ;;  %3620 = vmatprep.subr.bf16.mxu0 %v12882_v29  ;;  %v13139_v0 = vld [vmem:[#allocation39_spill] sm:$0xff] }
 0x59c   :  { %3661 = vmatprep.subr.bf16.mxu1 %v12882_v29 }
 0x59e   :  { %3621 = vmatpush1.bf16.msra.mxu0 %v13137_v31 }
 0x59f   :  { %3662 = vmatpush1.bf16.msra.mxu1 %v10291_v53  ;;  %3622 = vmatprep.subr.bf16.mxu0 %v12882_v29  ;;  %v13140_v53 = vld [vmem:[#allocation47_spill] sm:$0xff] }
 0x5a0   :  { %3663 = vmatprep.subr.bf16.mxu1 %v12882_v29 }
 0x5a2   :  { %3623 = vmatpush1.bf16.msra.mxu0 %v13138_v27 }
 0x5a3   :  { %3664 = vmatpush1.bf16.msra.mxu1 %v10300_v3  ;;  %3624 = vmatprep.subr.bf16.mxu0 %v12882_v29  ;;  %v13141_v3 = vld [vmem:[#allocation2_spill] sm:$0xff] }
 0x5a4   :  { %3665 = vmatprep.subr.bf16.mxu1 %v12882_v29 }
 0x5a6   :  { %3625 = vmatpush1.bf16.msra.mxu0 %v13139_v0 }
 0x5a7   :  { %3666 = vmatpush1.bf16.msra.mxu1 %v10309_v24  ;;  %3626 = vmatprep.subr.bf16.mxu0 %v12882_v29  ;;  %v10658_v24 = vld [vmem:[%s12586_s0 + $0xb0] ss:$8 sps:$4 sm:$0xff]  }
 0x5a8   :  { %3667 = vmatprep.subr.bf16.mxu1 %v12882_v29 }
 0x5aa   :  { %3627 = vmatpush1.bf16.msra.mxu0 %v13140_v53  ;;  %v10853_v53 = vld [vmem:[%s12585_s1 + $0x1a0] sm:$0xff]  }
 0x5ab   :  { %3668 = vmatpush1.bf16.msra.mxu1 %v10318_v34  ;;  %3628 = vmatprep.subr.bf16.mxu0 %v12882_v29  ;;  %v6613_v34 = vld [vmem:[%s12586_s0 + $0xa0] ss:$8 sps:$4 sm:$0xff]  }
 0x5ac   :  { %3669 = vmatprep.subr.bf16.mxu1 %v12882_v29 }
 0x5ae   :  { %3629 = vmatpush1.bf16.msra.mxu0 %v13141_v3 }
 0x5af   :  { %3670 = vmatpush1.bf16.msra.mxu1 %v12938_v16  ;;  %3686 = vmatprep.subr.bf16.mxu0 %v12882_v29 }
 0x5b0   :  { %3729 = vmatprep.subr.bf16.mxu1 %v12882_v29 }
 0x5b1   :  { %3637 = vmatmul.mubr.bf16.vlgmr.msra.gmra.mrb[108].mxu0 %v10658_v24 }
 0x5b2   :  { %3678 = vmatmul.mubr.bf16.vlgmr.msra.gmra.mrb[108].mxu1 %v6613_v34  ;;  %3687 = vmatpush1.bf16.msra.mxu0 %v13142_v39  ;;  %v10859_v34 = vld [vmem:[%s12585_s1 + $0x204] sm:$0xff]  }
 0x5b3   :  { %3730 = vmatpush1.bf16.msra.mxu1 %v13143_v40  ;;  %3688 = vmatprep.subr.bf16.mxu0 %v12882_v29  ;;  %v10867_v39 = vld [vmem:[%s12585_s1 + $0x1a8] sm:$0xff]  }
 0x5b4   :  { %v3277_v57 = vpop.f32.mrb[92].mxu0  ;;  %3731 = vmatprep.subr.bf16.mxu1 %v12882_v29  ;;  %5858 = vmatprep.mubr.msk.bf16.mxu0 %vm180_vm0, %v10671_v36  ;;  %v10873_v40 = vld [vmem:[%s12585_s1 + $0x20c] sm:$0xff]  }
 0x5b5   :  { %v3278_v21 = vadd.f32 %v3277_v57, %v10596_v60  ;;  %v3279_v51 = vpop.f32.mrb[93].mxu0  ;;  %v3318_v44 = vpop.f32.mrb[92].mxu1  ;;  %5859 = vmatprep.mubr.msk.bf16.mxu1 %vm180_vm0, %v6615_v20  ;;  %v10692_v60 = vld [vmem:[%s12585_s1 + $0xd8] sm:$0xff]   ;;  %v10881_v57 = vld [vmem:[%s12585_s1 + $0x1b0] sm:$0xff]   ;;  %v10909_v20 = vld [vmem:[%s12585_s1 + $0x1c0] sm:$0xff]  }
 0x5b6   :  { %v3280_v5 = vpop.f32.mrb[94].mxu0  ;;  %3689 = vmatpush1.bf16.msra.mxu0 %v13144_v12  ;;  %v3320_v14 = vpop.f32.mrb[93].mxu1  ;;  %v10895_v51 = vld [vmem:[%s12585_s1 + $0x1b8] sm:$0xff]   ;;  %v10923_v12 = vld [vmem:[%s12585_s1 + $0x1c8] sm:$0xff]  }
 0x5b7   :  { %v3281_v23 = vadd.f32 %v3280_v5, %v10607_v2  ;;  %v10682_v8 = vadd.f32 %v3318_v44, %v3278_v21  ;;  %3732 = vmatpush1.bf16.msra.mxu1 %v10349_v55  ;;  %v3282_v15 = vpop.f32.mrb[95].mxu0  ;;  %v3321_v7 = vpop.f32.mrb[94].mxu1  ;;  %3690 = vmatprep.subr.bf16.mxu0 %v12882_v29  ;;  %v10701_v55 = vld [vmem:[%s12585_s1 + $0xe0] sm:$0xff]   ;;  %v10816_v2 = vld [vmem:[%s12585_s1 + $0x1f4] sm:$0xff]   ;;  %v10929_v14 = vld [vmem:[%s12585_s1 + $0x22c] sm:$0xff]  }
 0x5b8   :  { %3733 = vmatprep.subr.bf16.mxu1 %v12882_v29  ;;  %v3323_v30 = vpop.f32.mrb[95].mxu1  ;;  %v10887_v21 = vld [vmem:[%s12585_s1 + $0x214] sm:$0xff]   ;;  %v10901_v44 = vld [vmem:[%s12585_s1 + $0x21c] sm:$0xff]   ;;  %v10915_v5 = vld [vmem:[%s12585_s1 + $0x224] sm:$0xff]   ;;  %13146 = vst [vmem:[#allocation55_spill] sm:$0xff] %v10929_v14 }
 0x5b9   :  { %v10687_v45 = vadd.f32 %v3321_v7, %v3281_v23  ;;  %v10937_v23 = vld [vmem:[%s12585_s1 + $0x1d0] sm:$0xff]   ;;  %v10951_v15 = vld [vmem:[%s12585_s1 + $0x1d8] sm:$0xff]   ;;  %v10965_v30 = vld [vmem:[%s12585_s1 + $0x1e0] sm:$0xff]  }
 0x5ba   :  { %3691 = vmatpush1.bf16.msra.mxu0 %v10692_v60  ;;  %v10957_v7 = vld [vmem:[%s12585_s1 + $0x23c] sm:$0xff]  }
 0x5bb   :  { %3734 = vmatpush1.bf16.msra.mxu1 %v10363_v50  ;;  %3692 = vmatprep.subr.bf16.mxu0 %v12882_v29  ;;  %v10710_v50 = vld [vmem:[%s12585_s1 + $0xe8] sm:$0xff]   ;;  %13148 = vst [vmem:[#allocation27_spill] sm:$0xff] %v10957_v7 }
 0x5bc   :  { %3735 = vmatprep.subr.bf16.mxu1 %v12882_v29 }
 0x5be   :  { %3693 = vmatpush1.bf16.msra.mxu0 %v10701_v55 }
 0x5bf   :  { %3736 = vmatpush1.bf16.msra.mxu1 %v10372_v28  ;;  %3694 = vmatprep.subr.bf16.mxu0 %v12882_v29  ;;  %v10719_v28 = vld [vmem:[%s12585_s1 + $0xf0] sm:$0xff]  }
 0x5c0   :  { %3737 = vmatprep.subr.bf16.mxu1 %v12882_v29 }
 0x5c2   :  { %3695 = vmatpush1.bf16.msra.mxu0 %v10710_v50 }
 0x5c3   :  { %3738 = vmatpush1.bf16.msra.mxu1 %v10381_v49  ;;  %3696 = vmatprep.subr.bf16.mxu0 %v12882_v29  ;;  %v10728_v49 = vld [vmem:[%s12585_s1 + $0xf8] sm:$0xff]  }
 0x5c4   :  { %3739 = vmatprep.subr.bf16.mxu1 %v12882_v29 }
 0x5c6   :  { %3697 = vmatpush1.bf16.msra.mxu0 %v10719_v28 }
 0x5c7   :  { %3740 = vmatpush1.bf16.msra.mxu1 %v10390_v52  ;;  %3698 = vmatprep.subr.bf16.mxu0 %v12882_v29  ;;  %v10737_v52 = vld [vmem:[%s12585_s1 + $0x100] sm:$0xff]  }
 0x5c8   :  { %3741 = vmatprep.subr.bf16.mxu1 %v12882_v29 }
 0x5ca   :  { %3699 = vmatpush1.bf16.msra.mxu0 %v10728_v49 }
 0x5cb   :  { %3742 = vmatpush1.bf16.msra.mxu1 %v10399_v17  ;;  %3700 = vmatprep.subr.bf16.mxu0 %v12882_v29  ;;  %v10746_v17 = vld [vmem:[%s12585_s1 + $0x108] sm:$0xff]  }
 0x5cc   :  { %3743 = vmatprep.subr.bf16.mxu1 %v12882_v29 }
 0x5ce   :  { %3701 = vmatpush1.bf16.msra.mxu0 %v10737_v52 }
 0x5cf   :  { %3744 = vmatpush1.bf16.msra.mxu1 %v10408_v54  ;;  %3702 = vmatprep.subr.bf16.mxu0 %v12882_v29  ;;  %v10755_v54 = vld [vmem:[%s12585_s1 + $0x110] sm:$0xff]  }
 0x5d0   :  { %3745 = vmatprep.subr.bf16.mxu1 %v12882_v29 }
 0x5d2   :  { %3703 = vmatpush1.bf16.msra.mxu0 %v10746_v17 }
 0x5d3   :  { %3746 = vmatpush1.bf16.msra.mxu1 %v10417_v22  ;;  %3704 = vmatprep.subr.bf16.mxu0 %v12882_v29  ;;  %v10769_v22 = vld [vmem:[%s12585_s1 + $0x118] sm:$0xff]  }
 0x5d4   :  { %3747 = vmatprep.subr.bf16.mxu1 %v12882_v29 }
 0x5d6   :  { %3705 = vmatpush1.bf16.msra.mxu0 %v10755_v54 }
 0x5d7   :  { %3748 = vmatpush1.bf16.msra.mxu1 %v10761_v11  ;;  %3706 = vmatprep.subr.bf16.mxu0 %v12882_v29 }
 0x5d8   :  { %3749 = vmatprep.subr.bf16.mxu1 %v12882_v29 }
 0x5da   :  { %3707 = vmatpush1.bf16.msra.mxu0 %v10769_v22 }
 0x5db   :  { %3750 = vmatpush1.bf16.msra.mxu1 %v10775_v42  ;;  %3708 = vmatprep.subr.bf16.mxu0 %v12882_v29 }
 0x5dc   :  { %3751 = vmatprep.subr.bf16.mxu1 %v12882_v29 }
 0x5de   :  { %3709 = vmatpush1.bf16.msra.mxu0 %v10783_v47 }
 0x5df   :  { %3752 = vmatpush1.bf16.msra.mxu1 %v10789_v62  ;;  %3710 = vmatprep.subr.bf16.mxu0 %v12882_v29 }
 0x5e0   :  { %3753 = vmatprep.subr.bf16.mxu1 %v12882_v29 }
 0x5e2   :  { %3711 = vmatpush1.bf16.msra.mxu0 %v13145_v18 }
 0x5e3   :  { %3754 = vmatpush1.bf16.msra.mxu1 %v7178_v63  ;;  %3772 = vmatprep.subr.bf16.mxu0 %v12882_v29 }
 0x5e4   :  { %3815 = vmatprep.subr.bf16.mxu1 %v12882_v29 }
 0x5e5   :  { %3719 = vmatmul.mubr.bf16.vlgmr.msra.gmra.mrb[112].mxu0 %v10801_v19 }
 0x5e6   :  { %3762 = vmatmul.mubr.bf16.vlgmr.msra.gmra.mrb[112].mxu1 %v6630_v43  ;;  %3773 = vmatpush1.bf16.msra.mxu0 %v10810_v58  ;;  %v10979_v43 = vld [vmem:[%s12585_s1 + $0x1e8] sm:$0xff]  }
 0x5e7   :  { %3816 = vmatpush1.bf16.msra.mxu1 %v10816_v2  ;;  %3774 = vmatprep.subr.bf16.mxu0 %v12882_v29 }
 0x5e8   :  { %v3361_v6 = vpop.f32.mrb[96].mxu0  ;;  %3817 = vmatprep.subr.bf16.mxu1 %v12882_v29  ;;  %5860 = vmatprep.mubr.msk.bf16.mxu0 %vm180_vm0, %v10824_v25 }
 0x5e9   :  { %v3368_v61 = vadd.f32 %v3361_v6, %v10682_v8  ;;  %v3363_v46 = vpop.f32.mrb[97].mxu0  ;;  %v3404_v35 = vpop.f32.mrb[96].mxu1  ;;  %5861 = vmatprep.mubr.msk.bf16.mxu1 %vm180_vm0, %v10453_v41  ;;  %v10943_v8 = vld [vmem:[%s12585_s1 + $0x234] sm:$0xff]   ;;  %v10985_v6 = vld [vmem:[%s12585_s1 + $0x24c] sm:$0xff]  }
 0x5ea   :  { %v3364_v26 = vpop.f32.mrb[98].mxu0  ;;  %3775 = vmatpush1.bf16.msra.mxu0 %v10834_v33  ;;  %v3406_v59 = vpop.f32.mrb[97].mxu1  ;;  %13147 = vst [vmem:[#allocation11_spill] sm:$0xff] %v10943_v8  ;;  %13150 = vst [vmem:[#allocation28_spill] sm:$0xff] %v10985_v6  ;;  %v11000_v46 = vld [vmem:[%s12586_s0 + $0x100] ss:$8 sps:$4 sm:$0xff]  }
 0x5eb   :  { %v3369_v56 = vadd.f32 %v3364_v26, %v10687_v45  ;;  %v10838_v13 = vadd.f32 %v3404_v35, %v3368_v61  ;;  %3818 = vmatpush1.bf16.msra.mxu1 %v10843_v4  ;;  %v3366_v41 = vpop.f32.mrb[99].mxu0  ;;  %v3407_v31 = vpop.f32.mrb[98].mxu1  ;;  %3776 = vmatprep.subr.bf16.mxu0 %v12882_v29  ;;  %v10971_v45 = vld [vmem:[%s12585_s1 + $0x244] sm:$0xff]   ;;  %v11006_v35 = vld [vmem:[%s12586_s0 + $0x154] ss:$8 sps:$4 sm:$0xff]  }
 0x5ec   :  { %3819 = vmatprep.subr.bf16.mxu1 %v12882_v29  ;;  %v3409_v27 = vpop.f32.mrb[99].mxu1  ;;  %13149 = vst [vmem:[#allocation19_spill] sm:$0xff] %v10971_v45  ;;  %v6313_v61 = vld [vmem:[%s12586_s0 + $0x144] ss:$8 sps:$4 sm:$0xff]   ;;  %v11012_v26 = vld [vmem:[%s12585_s1 + $0x258] sm:$0xff]  }
 0x5ed   :  { %v10848_v0 = vadd.f32 %v3407_v31, %v3369_v56  ;;  %v11018_v59 = vld [vmem:[%s12585_s1 + $0x2bc] sm:$0xff]  }
 0x5ee   :  { %3777 = vmatpush1.bf16.msra.mxu0 %v10853_v53  ;;  %13151 = vst [vmem:[#allocation12_spill] sm:$0xff] %v11018_v59 }
 0x5ef   :  { %3820 = vmatpush1.bf16.msra.mxu1 %v10859_v34  ;;  %3778 = vmatprep.subr.bf16.mxu0 %v12882_v29 }
 0x5f0   :  { %3821 = vmatprep.subr.bf16.mxu1 %v12882_v29 }
 0x5f2   :  { %3779 = vmatpush1.bf16.msra.mxu0 %v10867_v39 }
 0x5f3   :  { %3822 = vmatpush1.bf16.msra.mxu1 %v10873_v40  ;;  %3780 = vmatprep.subr.bf16.mxu0 %v12882_v29 }
 0x5f4   :  { %3823 = vmatprep.subr.bf16.mxu1 %v12882_v29 }
 0x5f6   :  { %3781 = vmatpush1.bf16.msra.mxu0 %v10881_v57 }
 0x5f7   :  { %3824 = vmatpush1.bf16.msra.mxu1 %v10887_v21  ;;  %3782 = vmatprep.subr.bf16.mxu0 %v12882_v29 }
 0x5f8   :  { %3825 = vmatprep.subr.bf16.mxu1 %v12882_v29 }
 0x5fa   :  { %3783 = vmatpush1.bf16.msra.mxu0 %v10895_v51 }
 0x5fb   :  { %3826 = vmatpush1.bf16.msra.mxu1 %v10901_v44  ;;  %3784 = vmatprep.subr.bf16.mxu0 %v12882_v29 }
 0x5fc   :  { %3827 = vmatprep.subr.bf16.mxu1 %v12882_v29 }
 0x5fe   :  { %3785 = vmatpush1.bf16.msra.mxu0 %v10909_v20 }
 0x5ff   :  { %3828 = vmatpush1.bf16.msra.mxu1 %v10915_v5  ;;  %3786 = vmatprep.subr.bf16.mxu0 %v12882_v29 }
 0x600   :  { %3829 = vmatprep.subr.bf16.mxu1 %v12882_v29 }
 0x602   :  { %3787 = vmatpush1.bf16.msra.mxu0 %v10923_v12 }
 0x603   :  { %3830 = vmatpush1.bf16.msra.mxu1 %v10929_v14  ;;  %3788 = vmatprep.subr.bf16.mxu0 %v12882_v29 }
 0x604   :  { %3831 = vmatprep.subr.bf16.mxu1 %v12882_v29 }
 0x606   :  { %3789 = vmatpush1.bf16.msra.mxu0 %v10937_v23 }
 0x607   :  { %3832 = vmatpush1.bf16.msra.mxu1 %v10943_v8  ;;  %3790 = vmatprep.subr.bf16.mxu0 %v12882_v29 }
 0x608   :  { %3833 = vmatprep.subr.bf16.mxu1 %v12882_v29 }
 0x60a   :  { %3791 = vmatpush1.bf16.msra.mxu0 %v10951_v15 }
 0x60b   :  { %3834 = vmatpush1.bf16.msra.mxu1 %v10957_v7  ;;  %3792 = vmatprep.subr.bf16.mxu0 %v12882_v29 }
 0x60c   :  { %3835 = vmatprep.subr.bf16.mxu1 %v12882_v29 }
 0x60e   :  { %3793 = vmatpush1.bf16.msra.mxu0 %v10965_v30 }
 0x60f   :  { %3836 = vmatpush1.bf16.msra.mxu1 %v10971_v45  ;;  %3794 = vmatprep.subr.bf16.mxu0 %v12882_v29 }
 0x610   :  { %3837 = vmatprep.subr.bf16.mxu1 %v12882_v29 }
 0x612   :  { %3795 = vmatpush1.bf16.msra.mxu0 %v10979_v43 }
 0x613   :  { %3838 = vmatpush1.bf16.msra.mxu1 %v10985_v6  ;;  %3796 = vmatprep.subr.bf16.mxu0 %v12882_v29 }
 0x614   :  { %3839 = vmatprep.subr.bf16.mxu1 %v12882_v29 }
 0x616   :  { %3797 = vmatpush1.bf16.msra.mxu0 %v7376_v32 }
 0x617   :  { %3840 = vmatpush1.bf16.msra.mxu1 %v13105_v10  ;;  %3873 = vmatprep.subr.bf16.mxu0 %v12882_v29  ;;  %v11030_v10 = vld [vmem:[%s12585_s1 + $0x260] sm:$0xff]  }
 0x618   :  { %3931 = vmatprep.subr.bf16.mxu1 %v12882_v29 }
 0x619   :  { %3805 = vmatmul.mubr.bf16.vlgmr.msra.gmra.mrb[116].mxu0 %v11000_v46 }
 0x61a   :  { %3848 = vmatmul.mubr.bf16.vlgmr.msra.gmra.mrb[116].mxu1 %v10519_v38  ;;  %3874 = vmatpush1.bf16.msra.mxu0 %v11012_v26 }
 0x61b   :  { %3932 = vmatpush1.bf16.msra.mxu1 %v11018_v59  ;;  %3875 = vmatprep.subr.bf16.mxu0 %v12882_v29 }
 0x61c   :  { %v3447_v56 = vpop.f32.mrb[100].mxu0  ;;  %3933 = vmatprep.subr.bf16.mxu1 %v12882_v29  ;;  %5866 = vmatprep.mubr.msk.bf16.mxu0 %vm180_vm0, %v6313_v61 }
 0x61d   :  { %v3454_v38 = vadd.f32 %v3447_v56, %v10838_v13  ;;  %v3449_v41 = vpop.f32.mrb[101].mxu0  ;;  %v3490_v31 = vpop.f32.mrb[100].mxu1  ;;  %5871 = vmatprep.mubr.msk.bf16.mxu1 %vm180_vm0, %v11006_v35  ;;  %v11039_v13 = vld [vmem:[%s12585_s1 + $0x2c4] sm:$0xff]  }
 0x61e   :  { %v3450_v27 = vpop.f32.mrb[102].mxu0  ;;  %3876 = vmatpush1.bf16.msra.mxu0 %v11030_v10  ;;  %v3492_v59 = vpop.f32.mrb[101].mxu1  ;;  %13152 = vst [vmem:[#allocation52_spill] sm:$0xff] %v11039_v13 }
 0x61f   :  { %v3455_v6 = vadd.f32 %v3450_v27, %v10848_v0  ;;  %v11034_v45 = vadd.f32 %v3490_v31, %v3454_v38  ;;  %3934 = vmatpush1.bf16.msra.mxu1 %v11039_v13  ;;  %v3452_v61 = vpop.f32.mrb[103].mxu0  ;;  %v3493_v56 = vpop.f32.mrb[102].mxu1  ;;  %3877 = vmatprep.subr.bf16.mxu0 %v12882_v29  ;;  %v11049_v0 = vld [vmem:[%s12585_s1 + $0x268] sm:$0xff]   ;;  %v11069_v38 = vld [vmem:[%s12585_s1 + $0x2d4] sm:$0xff]   ;;  %v11083_v27 = vld [vmem:[%s12585_s1 + $0x2dc] sm:$0xff]  }
 0x620   :  { %3935 = vmatprep.subr.bf16.mxu1 %v12882_v29  ;;  %v3495_v41 = vpop.f32.mrb[103].mxu1  ;;  %v11055_v59 = vld [vmem:[%s12585_s1 + $0x2cc] sm:$0xff]   ;;  %13154 = vst [vmem:[#allocation53_spill] sm:$0xff] %v11069_v38  ;;  %v11077_v31 = vld [vmem:[%s12585_s1 + $0x278] sm:$0xff]   ;;  %13155 = vst [vmem:[#allocation13_spill] sm:$0xff] %v11083_v27 }
 0x621   :  { %v11044_v7 = vadd.f32 %v3493_v56, %v3455_v6  ;;  %13153 = vst [vmem:[#allocation6_spill] sm:$0xff] %v11055_v59  ;;  %v11063_v6 = vld [vmem:[%s12585_s1 + $0x270] sm:$0xff]   ;;  %v11091_v61 = vld [vmem:[%s12585_s1 + $0x280] sm:$0xff]   ;;  %v11105_v41 = vld [vmem:[%s12585_s1 + $0x288] sm:$0xff]  }
 0x622   :  { %3878 = vmatpush1.bf16.msra.mxu0 %v11049_v0  ;;  %v11097_v56 = vld [vmem:[%s12585_s1 + $0x2e4] sm:$0xff]   ;;  %13157 = vst [vmem:[#allocation21_spill] sm:$0xff] %v11105_v41 }
 0x623   :  { %3936 = vmatpush1.bf16.msra.mxu1 %v11055_v59  ;;  %3879 = vmatprep.subr.bf16.mxu0 %v12882_v29  ;;  %13156 = vst [vmem:[#allocation33_spill] sm:$0xff] %v11097_v56  ;;  %v11139_v59 = vld [vmem:[%s12585_s1 + $0x2fc] sm:$0xff]   ;;  %v11153_v13 = vld [vmem:[%s12585_s1 + $0x304] sm:$0xff]  }
 0x624   :  { %3937 = vmatprep.subr.bf16.mxu1 %v12882_v29  ;;  %13162 = vst [vmem:[#allocation25_spill] sm:$0xff] %v11139_v59  ;;  %13164 = vst [vmem:[#allocation8_spill] sm:$0xff] %v11153_v13 }
 0x626   :  { %3880 = vmatpush1.bf16.msra.mxu0 %v11063_v6 }
 0x627   :  { %3938 = vmatpush1.bf16.msra.mxu1 %v11069_v38  ;;  %3881 = vmatprep.subr.bf16.mxu0 %v12882_v29  ;;  %v11125_v38 = vld [vmem:[%s12585_s1 + $0x2f4] sm:$0xff]  }
 0x628   :  { %3939 = vmatprep.subr.bf16.mxu1 %v12882_v29  ;;  %13160 = vst [vmem:[#allocation41_spill] sm:$0xff] %v11125_v38 }
 0x62a   :  { %3882 = vmatpush1.bf16.msra.mxu0 %v11077_v31 }
 0x62b   :  { %3940 = vmatpush1.bf16.msra.mxu1 %v11083_v27  ;;  %3883 = vmatprep.subr.bf16.mxu0 %v12882_v29  ;;  %v11111_v27 = vld [vmem:[%s12585_s1 + $0x2ec] sm:$0xff]  }
 0x62c   :  { %3941 = vmatprep.subr.bf16.mxu1 %v12882_v29  ;;  %13158 = vst [vmem:[#allocation37_spill] sm:$0xff] %v11111_v27 }
 0x62e   :  { %3884 = vmatpush1.bf16.msra.mxu0 %v11091_v61 }
 0x62f   :  { %3942 = vmatpush1.bf16.msra.mxu1 %v11097_v56  ;;  %3885 = vmatprep.subr.bf16.mxu0 %v12882_v29  ;;  %v11119_v56 = vld [vmem:[%s12585_s1 + $0x290] sm:$0xff]  }
 0x630   :  { %3943 = vmatprep.subr.bf16.mxu1 %v12882_v29  ;;  %13159 = vst [vmem:[#allocation14_spill] sm:$0xff] %v11119_v56 }
 0x632   :  { %3886 = vmatpush1.bf16.msra.mxu0 %v11105_v41 }
 0x633   :  { %3944 = vmatpush1.bf16.msra.mxu1 %v11111_v27  ;;  %3887 = vmatprep.subr.bf16.mxu0 %v12882_v29  ;;  %v11133_v27 = vld [vmem:[%s12585_s1 + $0x298] sm:$0xff]  }
 0x634   :  { %3945 = vmatprep.subr.bf16.mxu1 %v12882_v29  ;;  %13161 = vst [vmem:[#allocation15_spill] sm:$0xff] %v11133_v27 }
 0x636   :  { %3888 = vmatpush1.bf16.msra.mxu0 %v11119_v56 }
 0x637   :  { %3946 = vmatpush1.bf16.msra.mxu1 %v11125_v38  ;;  %3889 = vmatprep.subr.bf16.mxu0 %v12882_v29  ;;  %v11147_v38 = vld [vmem:[%s12585_s1 + $0x2a0] sm:$0xff]  }
 0x638   :  { %3947 = vmatprep.subr.bf16.mxu1 %v12882_v29  ;;  %13163 = vst [vmem:[#allocation40_spill] sm:$0xff] %v11147_v38 }
 0x63a   :  { %3890 = vmatpush1.bf16.msra.mxu0 %v11133_v27 }
 0x63b   :  { %3948 = vmatpush1.bf16.msra.mxu1 %v11139_v59  ;;  %3891 = vmatprep.subr.bf16.mxu0 %v12882_v29  ;;  %v11161_v59 = vld [vmem:[%s12585_s1 + $0x2a8] sm:$0xff]  }
 0x63c   :  { %3949 = vmatprep.subr.bf16.mxu1 %v12882_v29  ;;  %13165 = vst [vmem:[#allocation26_spill] sm:$0xff] %v11161_v59 }
 0x63e   :  { %3892 = vmatpush1.bf16.msra.mxu0 %v11147_v38  ;;  %v11167_v38 = vld [vmem:[%s12585_s1 + $0x30c] sm:$0xff]  }
 0x63f   :  { %3950 = vmatpush1.bf16.msra.mxu1 %v11153_v13  ;;  %3893 = vmatprep.subr.bf16.mxu0 %v12882_v29  ;;  %13166 = vst [vmem:[#allocation9_spill] sm:$0xff] %v11167_v38  ;;  %v11175_v13 = vld [vmem:[%s12585_s1 + $0x2b0] sm:$0xff]  }
 0x640   :  { %3951 = vmatprep.subr.bf16.mxu1 %v12882_v29  ;;  %13167 = vst [vmem:[#allocation10_spill] sm:$0xff] %v11175_v13 }
 0x642   :  { %3894 = vmatpush1.bf16.msra.mxu0 %v11161_v59  ;;  %v11181_v59 = vld [vmem:[%s12585_s1 + $0x314] sm:$0xff]  }
 0x643   :  { %3952 = vmatpush1.bf16.msra.mxu1 %v11167_v38  ;;  %3895 = vmatprep.subr.bf16.mxu0 %v12882_v29  ;;  %13168 = vst [vmem:[#allocation30_spill] sm:$0xff] %v11181_v59  ;;  %v6315_v38 = vld [vmem:[%s12586_s0 + $0x140] ss:$8 sps:$4 sm:$0xff]  }
 0x644   :  { %3953 = vmatprep.subr.bf16.mxu1 %v12882_v29 }
 0x646   :  { %3896 = vmatpush1.bf16.msra.mxu0 %v11175_v13  ;;  %v11193_v13 = vld [vmem:[%s12586_s0 + $0x150] ss:$8 sps:$4 sm:$0xff]  }
 0x647   :  { %3954 = vmatpush1.bf16.msra.mxu1 %v11181_v59  ;;  %3897 = vmatprep.subr.bf16.mxu0 %v12882_v29  ;;  %13169 = vst [vmem:[#allocation22_spill] sm:$0xff] %v11193_v13  ;;  %v11201_v59 = vld [vmem:[%s12586_s0 + $0x164] ss:$8 sps:$4 sm:$0xff]  }
 0x648   :  { %3955 = vmatprep.subr.bf16.mxu1 %v12882_v29 }
 0x64a   :  { %3898 = vmatpush1.bf16.msra.mxu0 %v13106_v9  ;;  %v11207_v9 = vld [vmem:[%s12585_s1 + $0x320] sm:$0xff]  }
 0x64b   :  { %3956 = vmatpush1.bf16.msra.mxu1 %v13124_v37  ;;  %3989 = vmatprep.subr.bf16.mxu0 %v12882_v29  ;;  %13170 = vst [vmem:[#allocation32_spill] sm:$0xff] %v11207_v9  ;;  %v11213_v37 = vld [vmem:[%s12585_s1 + $0x64] sm:$0xff]  }
 0x64c   :  { %4036 = vmatprep.subr.bf16.mxu1 %v12882_v29  ;;  %13171 = vst [vmem:[#allocation29_spill] sm:$0xff] %v11213_v37 }
 0x64d   :  { %3906 = vmatmul.mubr.bf16.vlgmr.msra.gmra.mrb[120].mxu0 %v6315_v38 }
 0x64e   :  { %3964 = vmatmul.mubr.bf16.vlgmr.msra.gmra.mrb[120].mxu1 %v11193_v13  ;;  %3990 = vmatpush1.bf16.msra.mxu0 %v11207_v9 }
 0x64f   :  { %4037 = vmatpush1.bf16.msra.mxu1 %v11213_v37  ;;  %3991 = vmatprep.subr.bf16.mxu0 %v12882_v29  ;;  %v11226_v37 = vld [vmem:[%s12585_s1 + $0x328] sm:$0xff]  }
 0x650   :  { %v3533_v27 = vpop.f32.mrb[104].mxu0  ;;  %4038 = vmatprep.subr.bf16.mxu1 %v12882_v29  ;;  %5876 = vmatprep.mubr.msk.bf16.mxu0 %vm180_vm0, %v11201_v59 }
 0x651   :  { %v3540_v38 = vadd.f32 %v3533_v27, %v11034_v45  ;;  %v3535_v13 = vpop.f32.mrb[105].mxu0  ;;  %v3591_v8 = vpop.f32.mrb[104].mxu1  ;;  %5877 = vmatprep.mubr.msk.bf16.mxu1 %vm180_vm0, %v10671_v36  ;;  %v11233_v45 = vld [vmem:[%s12585_s1 + $0x6c] sm:$0xff]  }
 0x652   :  { %v3536_v9 = vpop.f32.mrb[106].mxu0  ;;  %3992 = vmatpush1.bf16.msra.mxu0 %v11226_v37  ;;  %v3593_v56 = vpop.f32.mrb[105].mxu1  ;;  %13172 = vst [vmem:[#allocation34_spill] sm:$0xff] %v11233_v45 }
 0x653   :  { %v3541_v14 = vadd.f32 %v3536_v9, %v11044_v7  ;;  %v3598_v41 = vadd.f32 %v3591_v8, %v3540_v38  ;;  %4039 = vmatpush1.bf16.msra.mxu1 %v11233_v45  ;;  %v3538_v36 = vpop.f32.mrb[107].mxu0  ;;  %v3594_v13 = vpop.f32.mrb[106].mxu1  ;;  %3993 = vmatprep.subr.bf16.mxu0 %v12882_v29  ;;  %v11241_v56 = vld [vmem:[%s12587_s2] ss:$0 sm:$0xff]  ;;  %v11249_v7 = vld [vmem:[%s12585_s1 + $0x330] sm:$0xff]  }
 0x654   :  { %4040 = vmatprep.subr.bf16.mxu1 %v12882_v29  ;;  %v3596_v27 = vpop.f32.mrb[107].mxu1  ;;  %13173 = vst [vmem:[#allocation35_spill] sm:$0xff] %v11241_v56  ;;  %v11255_v36 = vld [vmem:[%s12585_s1 + $0x74] sm:$0xff]  }
 0x655   :  { %v3600_v9 = vadd.f32 %v11241_v56, %v3598_v41  ;;  %v11244_v8 = vadd.f32 %v3594_v13, %v3541_v14  ;;  %13175 = vst [vmem:[#allocation43_spill] sm:$0xff] %v11255_v36  ;;  %v11264_v14 = vld [vmem:[%s12585_s1 + $0x338] sm:$0xff]   ;;  %v11278_v13 = vld [vmem:[%s12585_s1 + $0x340] sm:$0xff]   ;;  %v11354_v56 = vld [vmem:[%s12585_s1 + $0xac] sm:$0xff]  }
 0x656   :  { %3994 = vmatpush1.bf16.msra.mxu0 %v11249_v7  ;;  %v11270_v41 = vld [vmem:[%s12585_s1 + $0x7c] sm:$0xff]   ;;  %v11284_v27 = vld [vmem:[%s12585_s1 + $0x84] sm:$0xff]   ;;  %13184 = vst [vmem:[#allocation44_spill] sm:$0xff] %v11354_v56  ;;  %v11368_v45 = vld [vmem:[%s12585_s1 + $0xb4] sm:$0xff]  }
 0x657   :  { %13174 = vst [vmem:[#allocation36_spill] sm:$0xff] %v11244_v8  ;;  %v3602_v38 = vmax.f32 %v3600_v9, 0.0  ;;  %4041 = vmatpush1.bf16.msra.mxu1 %v11255_v36  ;;  %3995 = vmatprep.subr.bf16.mxu0 %v12882_v29  ;;  %13176 = vst [vmem:[#allocation49_spill] sm:$0xff] %v11270_v41  ;;  %v11292_v9 = vld [vmem:[%s12585_s1 + $0x348] sm:$0xff]   ;;  %v11326_v8 = vld [vmem:[%s12585_s1 + $0x9c] sm:$0xff]  }
 0x658   :  { %4042 = vmatprep.subr.bf16.mxu1 %v12882_v29  ;;  %13177 = vst [vmem:[#allocation38_spill] sm:$0xff] %v11284_v27  ;;  %13180 = vst [vmem:[#allocation16_spill] sm:$0xff] %v11326_v8  ;;  %v11340_v36 = vld [vmem:[%s12585_s1 + $0xa4] sm:$0xff]  }
 0x659   :  { %4874 = vrot.lane.b32.xlu0 %v3602_v38, %s6822_s22  ;;  %v11298_v38 = vld [vmem:[%s12585_s1 + $0x8c] sm:$0xff]   ;;  %13182 = vst [vmem:[#allocation42_spill] sm:$0xff] %v11340_v36  ;;  %13186 = vst [vmem:[#allocation46_spill] sm:$0xff] %v11368_v45 }
 0x65a   :  { %3996 = vmatpush1.bf16.msra.mxu0 %v11264_v14  ;;  %13178 = vst [vmem:[#allocation3_spill] sm:$0xff] %v11298_v38 }
 0x65b   :  { %4043 = vmatpush1.bf16.msra.mxu1 %v11270_v41  ;;  %3997 = vmatprep.subr.bf16.mxu0 %v12882_v29  ;;  %v11312_v41 = vld [vmem:[%s12585_s1 + $0x94] sm:$0xff]  }
 0x65c   :  { %4044 = vmatprep.subr.bf16.mxu1 %v12882_v29  ;;  %13179 = vst [vmem:[#allocation45_spill] sm:$0xff] %v11312_v41 }
 0x65e   :  { %3998 = vmatpush1.bf16.msra.mxu0 %v11278_v13 }
 0x65f   :  { %4045 = vmatpush1.bf16.msra.mxu1 %v11284_v27  ;;  %3999 = vmatprep.subr.bf16.mxu0 %v12882_v29  ;;  %v11306_v27 = vld [vmem:[%s12585_s1 + $0x350] sm:$0xff]  }
 0x660   :  { %4046 = vmatprep.subr.bf16.mxu1 %v12882_v29 }
 0x662   :  { %4000 = vmatpush1.bf16.msra.mxu0 %v11292_v9 }
 0x663   :  { %4047 = vmatpush1.bf16.msra.mxu1 %v11298_v38  ;;  %4001 = vmatprep.subr.bf16.mxu0 %v12882_v29  ;;  %v11320_v38 = vld [vmem:[%s12585_s1 + $0x358] sm:$0xff]  }
 0x664   :  { %4048 = vmatprep.subr.bf16.mxu1 %v12882_v29 }
 0x666   :  { %4002 = vmatpush1.bf16.msra.mxu0 %v11306_v27 }
 0x667   :  { %4049 = vmatpush1.bf16.msra.mxu1 %v11312_v41  ;;  %4003 = vmatprep.subr.bf16.mxu0 %v12882_v29  ;;  %v11334_v41 = vld [vmem:[%s12585_s1 + $0x360] sm:$0xff]  }
 0x668   :  { %4050 = vmatprep.subr.bf16.mxu1 %v12882_v29  ;;  %13181 = vst [vmem:[#allocation50_spill] sm:$0xff] %v11334_v41 }
 0x66a   :  { %4004 = vmatpush1.bf16.msra.mxu0 %v11320_v38 }
 0x66b   :  { %4051 = vmatpush1.bf16.msra.mxu1 %v11326_v8  ;;  %4005 = vmatprep.subr.bf16.mxu0 %v12882_v29  ;;  %v11348_v8 = vld [vmem:[%s12585_s1 + $0x368] sm:$0xff]  }
 0x66c   :  { %4052 = vmatprep.subr.bf16.mxu1 %v12882_v29  ;;  %13183 = vst [vmem:[#allocation18_spill] sm:$0xff] %v11348_v8 }
 0x66e   :  { %4006 = vmatpush1.bf16.msra.mxu0 %v11334_v41  ;;  %v11426_v41 = vld [vmem:[%s12585_s1 + $0x8] sm:$0xff]  }
 0x66f   :  { %4053 = vmatpush1.bf16.msra.mxu1 %v11340_v36  ;;  %4007 = vmatprep.subr.bf16.mxu0 %v12882_v29  ;;  %v11362_v36 = vld [vmem:[%s12585_s1 + $0x370] sm:$0xff]  }
 0x670   :  { %4054 = vmatprep.subr.bf16.mxu1 %v12882_v29  ;;  %13185 = vst [vmem:[#allocation20_spill] sm:$0xff] %v11362_v36 }
 0x672   :  { %4008 = vmatpush1.bf16.msra.mxu0 %v11348_v8 }
 0x673   :  { %4055 = vmatpush1.bf16.msra.mxu1 %v11354_v56  ;;  %4009 = vmatprep.subr.bf16.mxu0 %v12882_v29  ;;  %v11376_v56 = vld [vmem:[%s12585_s1 + $0x378] sm:$0xff]  }
 0x674   :  { %4056 = vmatprep.subr.bf16.mxu1 %v12882_v29  ;;  %13187 = vst [vmem:[#allocation48_spill] sm:$0xff] %v11376_v56 }
 0x676   :  { %4010 = vmatpush1.bf16.msra.mxu0 %v11362_v36  ;;  %v11382_v36 = vld [vmem:[%s12585_s1 + $0xbc] sm:$0xff]  }
 0x677   :  { %4057 = vmatpush1.bf16.msra.mxu1 %v11368_v45  ;;  %4011 = vmatprep.subr.bf16.mxu0 %v12882_v29  ;;  %13188 = vst [vmem:[#allocation31_spill] sm:$0xff] %v11382_v36  ;;  %v11390_v45 = vld [vmem:[%s12586_s0 + $0x160] ss:$8 sps:$4 sm:$0xff]  }
 0x678   :  { %4058 = vmatprep.subr.bf16.mxu1 %v12882_v29  ;;  %13189 = vst [vmem:[#allocation39_spill] sm:$0xff] %v11390_v45 }
 0x67a   :  { %4012 = vmatpush1.bf16.msra.mxu0 %v11376_v56 }
 0x67b   :  { %4059 = vmatpush1.bf16.msra.mxu1 %v11382_v36  ;;  %4013 = vmatprep.subr.bf16.mxu0 %v12882_v29  ;;  %v11401_v36 = vld [vmem:[%s12585_s1] sm:$0xff]  }
 0x67c   :  { %4060 = vmatprep.subr.bf16.mxu1 %v12882_v29  ;;  %13190 = vst [vmem:[#allocation47_spill] sm:$0xff] %v11401_v36 }
 0x67e   :  { %4014 = vmatpush1.bf16.msra.mxu0 %v13125_v48  ;;  %v11407_v48 = vld [vmem:[%s12585_s1 + $0xc8] sm:$0xff]  }
 0x67f   :  { %4061 = vmatpush1.bf16.msra.mxu1 %v13141_v3  ;;  %4077 = vmatprep.subr.bf16.mxu0 %v12882_v29  ;;  %13191 = vst [vmem:[#allocation54_spill] sm:$0xff] %v11407_v48 }
 0x680   :  { %4118 = vmatprep.subr.bf16.mxu1 %v12882_v29 }
 0x681   :  { %4022 = vmatmul.mubr.bf16.vlgmr.msra.gmra.mrb[124].mxu0 %v11390_v45 }
 0x682   :  { %4069 = vmatmul.mubr.bf16.vlgmr.msra.gmra.mrb[124].mxu1 %v10801_v19  ;;  %4078 = vmatpush1.bf16.msra.mxu0 %v11401_v36  ;;  %v11417_v36 = vld [vmem:[%s12586_s0 + $0xd4] ss:$8 sps:$4 sm:$0xff]  }
 0x683   :  { %4119 = vmatpush1.bf16.msra.mxu1 %v11407_v48  ;;  %4079 = vmatprep.subr.bf16.mxu0 %v12882_v29  ;;  %13192 = vst [vmem:[#allocation56_spill] sm:$0xff] %v11417_v36 }
 0x684   :  { %v3638_v3 = vpop.f32.mrb[108].mxu0  ;;  %4120 = vmatprep.subr.bf16.mxu1 %v12882_v29  ;;  %5878 = vmatprep.mubr.msk.bf16.mxu0 %vm180_vm0, %v10592_v1 }
 0x685   :  { %v3679_v19 = vpop.f32.mrb[108].mxu1  ;;  %v3640_v45 = vpop.f32.mrb[109].mxu0  ;;  %5879 = vmatprep.mubr.msk.bf16.mxu1 %vm180_vm0, %v11417_v36 }
 0x686   :  { %v11421_v56 = vadd.f32 %v3679_v19, %v3638_v3  ;;  %v3681_v48 = vpop.f32.mrb[109].mxu1  ;;  %v3641_v8 = vpop.f32.mrb[110].mxu0  ;;  %4080 = vmatpush1.bf16.msra.mxu0 %v11426_v41  ;;  %v11432_v45 = vld [vmem:[%s12585_s1 + $0xd0] sm:$0xff]  }
 0x687   :  { %v3682_v1 = vpop.f32.mrb[110].mxu1  ;;  %13193 = vst [vmem:[#allocation57_spill] sm:$0xff] %v11432_v45  ;;  %4121 = vmatpush1.bf16.msra.mxu1 %v11432_v45  ;;  %v3643_v36 = vpop.f32.mrb[111].mxu0  ;;  %4081 = vmatprep.subr.bf16.mxu0 %v12882_v29  ;;  %v11442_v19 = vld [vmem:[%s12585_s1 + $0x10] sm:$0xff]  }
 0x688   :  { %v11436_v48 = vadd.f32 %v3682_v1, %v3641_v8  ;;  %4122 = vmatprep.subr.bf16.mxu1 %v12882_v29  ;;  %v3684_v3 = vpop.f32.mrb[111].mxu1  ;;  %v11451_v8 = vld [vmem:[%s12585_s1 + $0x18] sm:$0xff]  }
 0x689   :  { %v11562_v45 = vld [vmem:[%s12585_s1 + $0x134] sm:$0xff]  }
 0x68a   :  { %4082 = vmatpush1.bf16.msra.mxu0 %v11442_v19  ;;  %13197 = vst [vmem:[#allocation61_spill] sm:$0xff] %v11562_v45 }
 0x68b   :  { %4123 = vmatpush1.bf16.msra.mxu1 %v10692_v60  ;;  %4083 = vmatprep.subr.bf16.mxu0 %v12882_v29  ;;  %v11460_v60 = vld [vmem:[%s12585_s1 + $0x20] sm:$0xff]  }
 0x68c   :  { %4124 = vmatprep.subr.bf16.mxu1 %v12882_v29 }
 0x68e   :  { %4084 = vmatpush1.bf16.msra.mxu0 %v11451_v8 }
 0x68f   :  { %4125 = vmatpush1.bf16.msra.mxu1 %v10701_v55  ;;  %4085 = vmatprep.subr.bf16.mxu0 %v12882_v29  ;;  %v11469_v55 = vld [vmem:[%s12585_s1 + $0x28] sm:$0xff]  }
 0x690   :  { %4126 = vmatprep.subr.bf16.mxu1 %v12882_v29 }
 0x692   :  { %4086 = vmatpush1.bf16.msra.mxu0 %v11460_v60 }
 0x693   :  { %4127 = vmatpush1.bf16.msra.mxu1 %v10710_v50  ;;  %4087 = vmatprep.subr.bf16.mxu0 %v12882_v29  ;;  %v11478_v50 = vld [vmem:[%s12585_s1 + $0x30] sm:$0xff]  }
 0x694   :  { %4128 = vmatprep.subr.bf16.mxu1 %v12882_v29 }
 0x696   :  { %4088 = vmatpush1.bf16.msra.mxu0 %v11469_v55 }
 0x697   :  { %4129 = vmatpush1.bf16.msra.mxu1 %v10719_v28  ;;  %4089 = vmatprep.subr.bf16.mxu0 %v12882_v29  ;;  %v11487_v28 = vld [vmem:[%s12585_s1 + $0x38] sm:$0xff]  }
 0x698   :  { %4130 = vmatprep.subr.bf16.mxu1 %v12882_v29 }
 0x69a   :  { %4090 = vmatpush1.bf16.msra.mxu0 %v11478_v50 }
 0x69b   :  { %4131 = vmatpush1.bf16.msra.mxu1 %v10728_v49  ;;  %4091 = vmatprep.subr.bf16.mxu0 %v12882_v29  ;;  %v11496_v49 = vld [vmem:[%s12585_s1 + $0x40] sm:$0xff]  }
 0x69c   :  { %4132 = vmatprep.subr.bf16.mxu1 %v12882_v29 }
 0x69e   :  { %4092 = vmatpush1.bf16.msra.mxu0 %v11487_v28 }
 0x69f   :  { %4133 = vmatpush1.bf16.msra.mxu1 %v10737_v52  ;;  %4093 = vmatprep.subr.bf16.mxu0 %v12882_v29  ;;  %v11505_v52 = vld [vmem:[%s12585_s1 + $0x48] sm:$0xff]  }
 0x6a0   :  { %4134 = vmatprep.subr.bf16.mxu1 %v12882_v29 }
 0x6a2   :  { %4094 = vmatpush1.bf16.msra.mxu0 %v11496_v49 }
 0x6a3   :  { %4135 = vmatpush1.bf16.msra.mxu1 %v10746_v17  ;;  %4095 = vmatprep.subr.bf16.mxu0 %v12882_v29  ;;  %v11514_v17 = vld [vmem:[%s12585_s1 + $0x50] sm:$0xff]  }
 0x6a4   :  { %4136 = vmatprep.subr.bf16.mxu1 %v12882_v29 }
 0x6a6   :  { %4096 = vmatpush1.bf16.msra.mxu0 %v11505_v52 }
 0x6a7   :  { %4137 = vmatpush1.bf16.msra.mxu1 %v10755_v54  ;;  %4097 = vmatprep.subr.bf16.mxu0 %v12882_v29  ;;  %v11523_v54 = vld [vmem:[%s12585_s1 + $0x58] sm:$0xff]  }
 0x6a8   :  { %4138 = vmatprep.subr.bf16.mxu1 %v12882_v29 }
 0x6aa   :  { %4098 = vmatpush1.bf16.msra.mxu0 %v11514_v17 }
 0x6ab   :  { %4139 = vmatpush1.bf16.msra.mxu1 %v10769_v22  ;;  %4099 = vmatprep.subr.bf16.mxu0 %v12882_v29  ;;  %v11537_v22 = vld [vmem:[%s12586_s0 + $0xd0] ss:$8 sps:$4 sm:$0xff]  }
 0x6ac   :  { %4140 = vmatprep.subr.bf16.mxu1 %v12882_v29  ;;  %13194 = vst [vmem:[#allocation58_spill] sm:$0xff] %v11537_v22 }
 0x6ae   :  { %4100 = vmatpush1.bf16.msra.mxu0 %v11523_v54 }
 0x6af   :  { %4141 = vmatpush1.bf16.msra.mxu1 %v10783_v47  ;;  %4101 = vmatprep.subr.bf16.mxu0 %v12882_v29  ;;  %v11543_v47 = vld [vmem:[%s12585_s1 + $0x12c] sm:$0xff]  }
 0x6b0   :  { %4142 = vmatprep.subr.bf16.mxu1 %v12882_v29  ;;  %13195 = vst [vmem:[#allocation59_spill] sm:$0xff] %v11543_v47 }
 0x6b2   :  { %4102 = vmatpush1.bf16.msra.mxu0 %v12938_v16 }
 0x6b3   :  { %4143 = vmatpush1.bf16.msra.mxu1 %v13145_v18  ;;  %4161 = vmatprep.subr.bf16.mxu0 %v12882_v29  ;;  %v11555_v18 = vld [vmem:[%s12586_s0 + $0x114] ss:$8 sps:$4 sm:$0xff]  }
 0x6b4   :  { %4204 = vmatprep.subr.bf16.mxu1 %v12882_v29  ;;  %13196 = vst [vmem:[#allocation60_spill] sm:$0xff] %v11555_v18 }
 0x6b5   :  { %4110 = vmatmul.mubr.bf16.vlgmr.msra.gmra.mrb[128].mxu0 %v10658_v24 }
 0x6b6   :  { %4151 = vmatmul.mubr.bf16.vlgmr.msra.gmra.mrb[128].mxu1 %v11537_v22  ;;  %4162 = vmatpush1.bf16.msra.mxu0 %v11543_v47 }
 0x6b7   :  { %4205 = vmatpush1.bf16.msra.mxu1 %v10810_v58  ;;  %4163 = vmatprep.subr.bf16.mxu0 %v12882_v29 }
 0x6b8   :  { %v3720_v36 = vpop.f32.mrb[112].mxu0  ;;  %4206 = vmatprep.subr.bf16.mxu1 %v12882_v29  ;;  %5880 = vmatprep.mubr.msk.bf16.mxu0 %vm180_vm0, %v10824_v25 }
 0x6b9   :  { %v3727_v24 = vadd.f32 %v3720_v36, %v11421_v56  ;;  %v3722_v1 = vpop.f32.mrb[113].mxu0  ;;  %v3763_v3 = vpop.f32.mrb[112].mxu1  ;;  %5881 = vmatprep.mubr.msk.bf16.mxu1 %vm180_vm0, %v11555_v18 }
 0x6ba   :  { %v3723_v58 = vpop.f32.mrb[114].mxu0  ;;  %4164 = vmatpush1.bf16.msra.mxu0 %v11562_v45  ;;  %v3765_v25 = vpop.f32.mrb[113].mxu1  ;;  %v11576_v45 = vld [vmem:[%s12585_s1 + $0x13c] sm:$0xff]  }
 0x6bb   :  { %v3728_v56 = vadd.f32 %v3723_v58, %v11436_v48  ;;  %v11566_v36 = vadd.f32 %v3763_v3, %v3727_v24  ;;  %4207 = vmatpush1.bf16.msra.mxu1 %v10834_v33  ;;  %v3725_v1 = vpop.f32.mrb[115].mxu0  ;;  %v3766_v47 = vpop.f32.mrb[114].mxu1  ;;  %4165 = vmatprep.subr.bf16.mxu0 %v12882_v29  ;;  %v11585_v33 = vld [vmem:[%s12585_s1 + $0x144] sm:$0xff]   ;;  %v11731_v3 = vld [vmem:[%s12586_s0 + $0x174] ss:$8 sps:$4 sm:$0xff]  }
 0x6bc   :  { %4208 = vmatprep.subr.bf16.mxu1 %v12882_v29  ;;  %v3768_v18 = vpop.f32.mrb[115].mxu1  ;;  %v11725_v24 = vld [vmem:[%s12586_s0 + $0x120] ss:$8 sps:$4 sm:$0xff]   ;;  %v13212_v25 = vld [vmem:[#allocation12_spill] sm:$0xff] }
 0x6bd   :  { %v11571_v22 = vadd.f32 %v3766_v47, %v3728_v56  ;;  %v11594_v18 = vld [vmem:[%s12585_s1 + $0x14c] sm:$0xff]   ;;  %v13211_v58 = vld [vmem:[#allocation22_spill] sm:$0xff] }
 0x6be   :  { %4166 = vmatpush1.bf16.msra.mxu0 %v11576_v45  ;;  %v13213_v56 = vld [vmem:[#allocation32_spill] sm:$0xff] }
 0x6bf   :  { %4209 = vmatpush1.bf16.msra.mxu1 %v10853_v53  ;;  %4167 = vmatprep.subr.bf16.mxu0 %v12882_v29  ;;  %v11603_v53 = vld [vmem:[%s12585_s1 + $0x154] sm:$0xff]  }
 0x6c0   :  { %4210 = vmatprep.subr.bf16.mxu1 %v12882_v29 }
 0x6c2   :  { %4168 = vmatpush1.bf16.msra.mxu0 %v11585_v33 }
 0x6c3   :  { %4211 = vmatpush1.bf16.msra.mxu1 %v10867_v39  ;;  %4169 = vmatprep.subr.bf16.mxu0 %v12882_v29  ;;  %v11612_v39 = vld [vmem:[%s12585_s1 + $0x15c] sm:$0xff]  }
 0x6c4   :  { %4212 = vmatprep.subr.bf16.mxu1 %v12882_v29 }
 0x6c6   :  { %4170 = vmatpush1.bf16.msra.mxu0 %v11594_v18 }
 0x6c7   :  { %4213 = vmatpush1.bf16.msra.mxu1 %v10881_v57  ;;  %4171 = vmatprep.subr.bf16.mxu0 %v12882_v29  ;;  %v11621_v57 = vld [vmem:[%s12585_s1 + $0x164] sm:$0xff]  }
 0x6c8   :  { %4214 = vmatprep.subr.bf16.mxu1 %v12882_v29 }
 0x6ca   :  { %4172 = vmatpush1.bf16.msra.mxu0 %v11603_v53 }
 0x6cb   :  { %4215 = vmatpush1.bf16.msra.mxu1 %v10895_v51  ;;  %4173 = vmatprep.subr.bf16.mxu0 %v12882_v29  ;;  %v11630_v51 = vld [vmem:[%s12585_s1 + $0x16c] sm:$0xff]  }
 0x6cc   :  { %4216 = vmatprep.subr.bf16.mxu1 %v12882_v29 }
 0x6ce   :  { %4174 = vmatpush1.bf16.msra.mxu0 %v11612_v39 }
 0x6cf   :  { %4217 = vmatpush1.bf16.msra.mxu1 %v10909_v20  ;;  %4175 = vmatprep.subr.bf16.mxu0 %v12882_v29 }
 0x6d0   :  { %4218 = vmatprep.subr.bf16.mxu1 %v12882_v29 }
 0x6d2   :  { %4176 = vmatpush1.bf16.msra.mxu0 %v11621_v57 }
 0x6d3   :  { %4219 = vmatpush1.bf16.msra.mxu1 %v10923_v12  ;;  %4177 = vmatprep.subr.bf16.mxu0 %v12882_v29 }
 0x6d4   :  { %4220 = vmatprep.subr.bf16.mxu1 %v12882_v29 }
 0x6d6   :  { %4178 = vmatpush1.bf16.msra.mxu0 %v11630_v51 }
 0x6d7   :  { %4221 = vmatpush1.bf16.msra.mxu1 %v10937_v23  ;;  %4179 = vmatprep.subr.bf16.mxu0 %v12882_v29 }
 0x6d8   :  { %4222 = vmatprep.subr.bf16.mxu1 %v12882_v29 }
 0x6da   :  { %4180 = vmatpush1.bf16.msra.mxu0 %v10761_v11  ;;  %v11656_v11 = vld [vmem:[%s12586_s0 + $0x110] ss:$8 sps:$4 sm:$0xff]  }
 0x6db   :  { %4223 = vmatpush1.bf16.msra.mxu1 %v10951_v15  ;;  %4181 = vmatprep.subr.bf16.mxu0 %v12882_v29 }
 0x6dc   :  { %4224 = vmatprep.subr.bf16.mxu1 %v12882_v29 }
 0x6de   :  { %4182 = vmatpush1.bf16.msra.mxu0 %v10775_v42 }
 0x6df   :  { %4225 = vmatpush1.bf16.msra.mxu1 %v10965_v30  ;;  %4183 = vmatprep.subr.bf16.mxu0 %v12882_v29 }
 0x6e0   :  { %4226 = vmatprep.subr.bf16.mxu1 %v12882_v29 }
 0x6e2   :  { %4184 = vmatpush1.bf16.msra.mxu0 %v10789_v62  ;;  %v11666_v62 = vld [vmem:[%s12586_s0 + $0x124] ss:$8 sps:$4 sm:$0xff]  }
 0x6e3   :  { %4227 = vmatpush1.bf16.msra.mxu1 %v10979_v43  ;;  %4185 = vmatprep.subr.bf16.mxu0 %v12882_v29 }
 0x6e4   :  { %4228 = vmatprep.subr.bf16.mxu1 %v12882_v29 }
 0x6e6   :  { %4186 = vmatpush1.bf16.msra.mxu0 %v7178_v63 }
 0x6e7   :  { %4229 = vmatpush1.bf16.msra.mxu1 %v7376_v32  ;;  %4247 = vmatprep.subr.bf16.mxu0 %v12882_v29 }
 0x6e8   :  { %4290 = vmatprep.subr.bf16.mxu1 %v12882_v29 }
 0x6e9   :  { %4194 = vmatmul.mubr.bf16.vlgmr.msra.gmra.mrb[132].mxu0 %v11000_v46 }
 0x6ea   :  { %4237 = vmatmul.mubr.bf16.vlgmr.msra.gmra.mrb[132].mxu1 %v11656_v11  ;;  %4248 = vmatpush1.bf16.msra.mxu0 %v10816_v2 }
 0x6eb   :  { %4291 = vmatpush1.bf16.msra.mxu1 %v11012_v26  ;;  %4249 = vmatprep.subr.bf16.mxu0 %v12882_v29 }
 0x6ec   :  { %v3806_v42 = vpop.f32.mrb[116].mxu0  ;;  %4292 = vmatprep.subr.bf16.mxu1 %v12882_v29  ;;  %5882 = vmatprep.mubr.msk.bf16.mxu0 %vm180_vm0, %v11666_v62 }
 0x6ed   :  { %v3813_v20 = vadd.f32 %v3806_v42, %v11566_v36  ;;  %v3808_v12 = vpop.f32.mrb[117].mxu0  ;;  %v3849_v23 = vpop.f32.mrb[116].mxu1  ;;  %5883 = vmatprep.mubr.msk.bf16.mxu1 %vm180_vm0, %v11006_v35  ;;  %v13205_v35 = vld [vmem:[#allocation19_spill] sm:$0xff] }
 0x6ee   :  { %v3809_v2 = vpop.f32.mrb[118].mxu0  ;;  %4250 = vmatpush1.bf16.msra.mxu0 %v10843_v4  ;;  %v3851_v15 = vpop.f32.mrb[117].mxu1  ;;  %v13199_v4 = vld [vmem:[#allocation55_spill] sm:$0xff] }
 0x6ef   :  { %v3814_v30 = vadd.f32 %v3809_v2, %v11571_v22  ;;  %v3856_v43 = vadd.f32 %v3849_v23, %v3813_v20  ;;  %4293 = vmatpush1.bf16.msra.mxu1 %v11030_v10  ;;  %v3811_v46 = vpop.f32.mrb[119].mxu0  ;;  %v3852_v26 = vpop.f32.mrb[118].mxu1  ;;  %4251 = vmatprep.subr.bf16.mxu0 %v12882_v29  ;;  %v13198_v10 = vld [vmem:[#allocation21_spill] sm:$0xff]  ;;  %v13210_v22 = vld [vmem:[#allocation23_spill] sm:$0xff]  ;;  %v13214_v23 = vld [vmem:[#allocation52_spill] sm:$0xff] }
 0x6f0   :  { %4294 = vmatprep.subr.bf16.mxu1 %v12882_v29  ;;  %v3854_v48 = vpop.f32.mrb[119].mxu1 }
 0x6f1   :  { %v3857_v47 = vadd.f32 %v3852_v26, %v3814_v30  ;;  %v13215_v48 = vld [vmem:[#allocation6_spill] sm:$0xff] }
 0x6f2   :  { %4252 = vmatpush1.bf16.msra.mxu0 %v10859_v34  ;;  %v13200_v34 = vld [vmem:[#allocation14_spill] sm:$0xff] }
 0x6f3   :  { %4295 = vmatpush1.bf16.msra.mxu1 %v11049_v0  ;;  %4253 = vmatprep.subr.bf16.mxu0 %v12882_v29  ;;  %v13206_v0 = vld [vmem:[#allocation26_spill] sm:$0xff] }
 0x6f4   :  { %4296 = vmatprep.subr.bf16.mxu1 %v12882_v29 }
 0x6f6   :  { %4254 = vmatpush1.bf16.msra.mxu0 %v10873_v40  ;;  %v13201_v40 = vld [vmem:[#allocation11_spill] sm:$0xff] }
 0x6f7   :  { %4297 = vmatpush1.bf16.msra.mxu1 %v11063_v6  ;;  %4255 = vmatprep.subr.bf16.mxu0 %v12882_v29  ;;  %v13207_v6 = vld [vmem:[#allocation28_spill] sm:$0xff] }
 0x6f8   :  { %4298 = vmatprep.subr.bf16.mxu1 %v12882_v29 }
 0x6fa   :  { %4256 = vmatpush1.bf16.msra.mxu0 %v10887_v21  ;;  %v13202_v21 = vld [vmem:[#allocation15_spill] sm:$0xff] }
 0x6fb   :  { %4299 = vmatpush1.bf16.msra.mxu1 %v11077_v31  ;;  %4257 = vmatprep.subr.bf16.mxu0 %v12882_v29  ;;  %v13208_v31 = vld [vmem:[#allocation10_spill] sm:$0xff] }
 0x6fc   :  { %4300 = vmatprep.subr.bf16.mxu1 %v12882_v29 }
 0x6fe   :  { %4258 = vmatpush1.bf16.msra.mxu0 %v10901_v44  ;;  %v13203_v44 = vld [vmem:[#allocation27_spill] sm:$0xff] }
 0x6ff   :  { %4301 = vmatpush1.bf16.msra.mxu1 %v11091_v61  ;;  %4259 = vmatprep.subr.bf16.mxu0 %v12882_v29  ;;  %v13209_v61 = vld [vmem:[#allocation7_spill] sm:$0xff] }
 0x700   :  { %4302 = vmatprep.subr.bf16.mxu1 %v12882_v29 }
 0x702   :  { %4260 = vmatpush1.bf16.msra.mxu0 %v10915_v5  ;;  %v13204_v5 = vld [vmem:[#allocation40_spill] sm:$0xff] }
 0x703   :  { %4303 = vmatpush1.bf16.msra.mxu1 %v13198_v10  ;;  %4261 = vmatprep.subr.bf16.mxu0 %v12882_v29  ;;  %v13222_v10 = vld [vmem:[#allocation50_spill] sm:$0xff] }
 0x704   :  { %4304 = vmatprep.subr.bf16.mxu1 %v12882_v29 }
 0x706   :  { %4262 = vmatpush1.bf16.msra.mxu0 %v13199_v4  ;;  %v13224_v4 = vld [vmem:[#allocation18_spill] sm:$0xff] }
 0x707   :  { %4305 = vmatpush1.bf16.msra.mxu1 %v13200_v34  ;;  %4263 = vmatprep.subr.bf16.mxu0 %v12882_v29  ;;  %v13226_v34 = vld [vmem:[#allocation20_spill] sm:$0xff] }
 0x708   :  { %4306 = vmatprep.subr.bf16.mxu1 %v12882_v29 }
 0x70a   :  { %4264 = vmatpush1.bf16.msra.mxu0 %v13201_v40  ;;  %v13227_v40 = vld [vmem:[#allocation30_spill] sm:$0xff] }
 0x70b   :  { %4307 = vmatpush1.bf16.msra.mxu1 %v13202_v21  ;;  %4265 = vmatprep.subr.bf16.mxu0 %v12882_v29  ;;  %v13228_v21 = vld [vmem:[#allocation48_spill] sm:$0xff] }
 0x70c   :  { %4308 = vmatprep.subr.bf16.mxu1 %v12882_v29 }
 0x70e   :  { %4266 = vmatpush1.bf16.msra.mxu0 %v13203_v44  ;;  %v13229_v44 = vld [vmem:[#allocation24_spill] sm:$0xff] }
 0x70f   :  { %4309 = vmatpush1.bf16.msra.mxu1 %v13204_v5  ;;  %4267 = vmatprep.subr.bf16.mxu0 %v12882_v29  ;;  %v11792_v5 = vld [vmem:[%s12586_s0 + $0x170] ss:$8 sps:$4 sm:$0xff]  }
 0x710   :  { %4310 = vmatprep.subr.bf16.mxu1 %v12882_v29 }
 0x712   :  { %4268 = vmatpush1.bf16.msra.mxu0 %v13205_v35  ;;  %v13230_v35 = vld [vmem:[#allocation51_spill] sm:$0xff] }
 0x713   :  { %4311 = vmatpush1.bf16.msra.mxu1 %v13206_v0  ;;  %4269 = vmatprep.subr.bf16.mxu0 %v12882_v29  ;;  %v13231_v0 = vld [vmem:[#allocation39_spill] sm:$0xff] }
 0x714   :  { %4312 = vmatprep.subr.bf16.mxu1 %v12882_v29 }
 0x716   :  { %4270 = vmatpush1.bf16.msra.mxu0 %v13207_v6  ;;  %v13232_v6 = vld [vmem:[#allocation29_spill] sm:$0xff] }
 0x717   :  { %4313 = vmatpush1.bf16.msra.mxu1 %v13208_v31  ;;  %4271 = vmatprep.subr.bf16.mxu0 %v12882_v29  ;;  %v13233_v31 = vld [vmem:[#allocation47_spill] sm:$0xff] }
 0x718   :  { %4314 = vmatprep.subr.bf16.mxu1 %v12882_v29 }
 0x71a   :  { %4272 = vmatpush1.bf16.msra.mxu0 %v13209_v61 }
 0x71b   :  { %4315 = vmatpush1.bf16.msra.mxu1 %v13210_v22  ;;  %4333 = vmatprep.subr.bf16.mxu0 %v12882_v29 }
 0x71c   :  { %4391 = vmatprep.subr.bf16.mxu1 %v12882_v29 }
 0x71d   :  { %4280 = vmatmul.mubr.bf16.vlgmr.msra.gmra.mrb[136].mxu0 %v11725_v24 }
 0x71e   :  { %4323 = vmatmul.mubr.bf16.vlgmr.msra.gmra.mrb[136].mxu1 %v13211_v58  ;;  %4334 = vmatpush1.bf16.msra.mxu0 %v13212_v25  ;;  %v13234_v25 = vld [vmem:[#allocation56_spill] sm:$0xff] }
 0x71f   :  { %4392 = vmatpush1.bf16.msra.mxu1 %v13213_v56  ;;  %4335 = vmatprep.subr.bf16.mxu0 %v12882_v29 }
 0x720   :  { %v3907_v36 = vpop.f32.mrb[120].mxu0  ;;  %4393 = vmatprep.subr.bf16.mxu1 %v12882_v29  ;;  %5884 = vmatprep.mubr.msk.bf16.mxu0 %vm180_vm0, %v11201_v59 }
 0x721   :  { %v3914_v1 = vadd.f32 %v3907_v36, %v3856_v43  ;;  %v3909_v42 = vpop.f32.mrb[121].mxu0  ;;  %v3965_v20 = vpop.f32.mrb[120].mxu1  ;;  %5889 = vmatprep.mubr.msk.bf16.mxu1 %vm180_vm0, %v11731_v3 }
 0x722   :  { %v3910_v12 = vpop.f32.mrb[122].mxu0  ;;  %4336 = vmatpush1.bf16.msra.mxu0 %v13214_v23  ;;  %v3967_v2 = vpop.f32.mrb[121].mxu1  ;;  %v6735_v42 = vld [vmem:[%s12586_s0 + $0xc4] ss:$8 sps:$4 sm:$0xff]  }
 0x723   :  { %v3915_v15 = vadd.f32 %v3910_v12, %v3857_v47  ;;  %v3972_v30 = vadd.f32 %v3965_v20, %v3914_v1  ;;  %4394 = vmatpush1.bf16.msra.mxu1 %v11226_v37  ;;  %v3912_v46 = vpop.f32.mrb[123].mxu0  ;;  %v3968_v26 = vpop.f32.mrb[122].mxu1  ;;  %4337 = vmatprep.subr.bf16.mxu0 %v12882_v29  ;;  %v13216_v47 = vld [vmem:[#allocation53_spill] sm:$0xff]  ;;  %v13235_v12 = vld [vmem:[#allocation34_spill] sm:$0xff]  ;;  %v13236_v2 = vld [vmem:[#allocation35_spill] sm:$0xff] }
 0x724   :  { %4395 = vmatprep.subr.bf16.mxu1 %v12882_v29  ;;  %v3970_v59 = vpop.f32.mrb[123].mxu1  ;;  %v13217_v37 = vld [vmem:[#allocation13_spill] sm:$0xff] }
 0x725   :  { %v11746_v43 = vadd.f32 %v3968_v26, %v3915_v15 }
 0x726   :  { %4338 = vmatpush1.bf16.msra.mxu0 %v13215_v48 }
 0x727   :  { %4396 = vmatpush1.bf16.msra.mxu1 %v11249_v7  ;;  %4339 = vmatprep.subr.bf16.mxu0 %v12882_v29  ;;  %v13218_v7 = vld [vmem:[#allocation33_spill] sm:$0xff] }
 0x728   :  { %4397 = vmatprep.subr.bf16.mxu1 %v12882_v29 }
 0x72a   :  { %4340 = vmatpush1.bf16.msra.mxu0 %v13216_v47 }
 0x72b   :  { %4398 = vmatpush1.bf16.msra.mxu1 %v11264_v14  ;;  %4341 = vmatprep.subr.bf16.mxu0 %v12882_v29  ;;  %v13219_v14 = vld [vmem:[#allocation37_spill] sm:$0xff] }
 0x72c   :  { %4399 = vmatprep.subr.bf16.mxu1 %v12882_v29 }
 0x72e   :  { %4342 = vmatpush1.bf16.msra.mxu0 %v13217_v37  ;;  %v13237_v37 = vld [vmem:[#allocation43_spill] sm:$0xff] }
 0x72f   :  { %4400 = vmatpush1.bf16.msra.mxu1 %v11278_v13  ;;  %4343 = vmatprep.subr.bf16.mxu0 %v12882_v29  ;;  %v13220_v13 = vld [vmem:[#allocation41_spill] sm:$0xff] }
 0x730   :  { %4401 = vmatprep.subr.bf16.mxu1 %v12882_v29 }
 0x732   :  { %4344 = vmatpush1.bf16.msra.mxu0 %v13218_v7 }
 0x733   :  { %4402 = vmatpush1.bf16.msra.mxu1 %v11292_v9  ;;  %4345 = vmatprep.subr.bf16.mxu0 %v12882_v29  ;;  %v13221_v9 = vld [vmem:[#allocation25_spill] sm:$0xff] }
 0x734   :  { %4403 = vmatprep.subr.bf16.mxu1 %v12882_v29 }
 0x736   :  { %4346 = vmatpush1.bf16.msra.mxu0 %v13219_v14  ;;  %v13239_v14 = vld [vmem:[#allocation49_spill] sm:$0xff] }
 0x737   :  { %4404 = vmatpush1.bf16.msra.mxu1 %v11306_v27  ;;  %4347 = vmatprep.subr.bf16.mxu0 %v12882_v29  ;;  %v13223_v27 = vld [vmem:[#allocation8_spill] sm:$0xff] }
 0x738   :  { %4405 = vmatprep.subr.bf16.mxu1 %v12882_v29 }
 0x73a   :  { %4348 = vmatpush1.bf16.msra.mxu0 %v13220_v13  ;;  %v13240_v13 = vld [vmem:[#allocation38_spill] sm:$0xff] }
 0x73b   :  { %4406 = vmatpush1.bf16.msra.mxu1 %v11320_v38  ;;  %4349 = vmatprep.subr.bf16.mxu0 %v12882_v29  ;;  %v13225_v38 = vld [vmem:[#allocation9_spill] sm:$0xff] }
 0x73c   :  { %4407 = vmatprep.subr.bf16.mxu1 %v12882_v29 }
 0x73e   :  { %4350 = vmatpush1.bf16.msra.mxu0 %v13221_v9  ;;  %v13241_v9 = vld [vmem:[#allocation3_spill] sm:$0xff] }
 0x73f   :  { %4408 = vmatpush1.bf16.msra.mxu1 %v13222_v10  ;;  %4351 = vmatprep.subr.bf16.mxu0 %v12882_v29  ;;  %v6736_v10 = vld [vmem:[%s12586_s0 + $0xc0] ss:$8 sps:$4 sm:$0xff]  }
 0x740   :  { %4409 = vmatprep.subr.bf16.mxu1 %v12882_v29 }
 0x742   :  { %4352 = vmatpush1.bf16.msra.mxu0 %v13223_v27  ;;  %v13251_v27 = vld [vmem:[#allocation59_spill] sm:$0xff] }
 0x743   :  { %4410 = vmatpush1.bf16.msra.mxu1 %v13224_v4  ;;  %4353 = vmatprep.subr.bf16.mxu0 %v12882_v29 }
 0x744   :  { %4411 = vmatprep.subr.bf16.mxu1 %v12882_v29 }
 0x746   :  { %4354 = vmatpush1.bf16.msra.mxu0 %v13225_v38 }
 0x747   :  { %4412 = vmatpush1.bf16.msra.mxu1 %v13226_v34  ;;  %4355 = vmatprep.subr.bf16.mxu0 %v12882_v29 }
 0x748   :  { %4413 = vmatprep.subr.bf16.mxu1 %v12882_v29 }
 0x74a   :  { %4356 = vmatpush1.bf16.msra.mxu0 %v13227_v40 }
 0x74b   :  { %4414 = vmatpush1.bf16.msra.mxu1 %v13228_v21  ;;  %4357 = vmatprep.subr.bf16.mxu0 %v12882_v29  ;;  %v13252_v21 = vld [vmem:[#allocation60_spill] sm:$0xff] }
 0x74c   :  { %4415 = vmatprep.subr.bf16.mxu1 %v12882_v29 }
 0x74e   :  { %4358 = vmatpush1.bf16.msra.mxu0 %v13229_v44 }
 0x74f   :  { %4416 = vmatpush1.bf16.msra.mxu1 %v13230_v35  ;;  %4438 = vmatprep.subr.bf16.mxu0 %v12882_v29 }
 0x750   :  { %4479 = vmatprep.subr.bf16.mxu1 %v12882_v29 }
 0x751   :  { %4366 = vmatmul.mubr.bf16.vlgmr.msra.gmra.mrb[140].mxu0 %v13231_v0 }
 0x752   :  { %4424 = vmatmul.mubr.bf16.vlgmr.msra.gmra.mrb[140].mxu1 %v11792_v5  ;;  %4439 = vmatpush1.bf16.msra.mxu0 %v13232_v6  ;;  %v13253_v6 = vld [vmem:[#allocation57_spill] sm:$0xff] }
 0x753   :  { %4480 = vmatpush1.bf16.msra.mxu1 %v13233_v31  ;;  %4440 = vmatprep.subr.bf16.mxu0 %v12882_v29 }
 0x754   :  { %v4023_v58 = vpop.f32.mrb[124].mxu0  ;;  %4481 = vmatprep.subr.bf16.mxu1 %v12882_v29  ;;  %5890 = vmatprep.mubr.msk.bf16.mxu0 %vm180_vm0, %v13234_v25 }
 0x755   :  { %v4030_v56 = vadd.f32 %v4023_v58, %v3972_v30  ;;  %v4025_v36 = vpop.f32.mrb[125].mxu0  ;;  %v11805_v1 = vpop.f32.mrb[124].mxu1  ;;  %5891 = vmatprep.mubr.msk.bf16.mxu1 %vm180_vm0, %v6735_v42  ;;  %v13254_v42 = vld [vmem:[#allocation61_spill] sm:$0xff] }
 0x756   :  { %v4026_v20 = vpop.f32.mrb[126].mxu0  ;;  %4441 = vmatpush1.bf16.msra.mxu0 %v13235_v12  ;;  %v4072_v23 = vpop.f32.mrb[125].mxu1  ;;  %v6738_v12 = vld [vmem:[%s12585_s1 + $0xd8] sm:$0xff]  }
 0x757   :  { %v4032_v15 = vadd.f32 %v13236_v2, %v4030_v56  ;;  %v4031_v46 = vadd.f32 %v4026_v20, %v11746_v43  ;;  %4482 = vmatpush1.bf16.msra.mxu1 %v11426_v41  ;;  %v4028_v30 = vpop.f32.mrb[127].mxu0  ;;  %4442 = vmatprep.subr.bf16.mxu0 %v12882_v29  ;;  %v11816_v26 = vpop.f32.mrb[126].mxu1  ;;  %v13238_v41 = vld [vmem:[#allocation36_spill] sm:$0xff]  ;;  %v6739_v23 = vld [vmem:[%s12585_s1 + $0xe0] sm:$0xff]  }
 0x758   :  { %4483 = vmatprep.subr.bf16.mxu1 %v12882_v29  ;;  %v4075_v59 = vpop.f32.mrb[127].mxu1  ;;  %v3601_v43 = vadd.f32 %v13236_v2, %v13238_v41  ;;  %v6750_v30 = vld [vmem:[%s12585_s1 + $0x184] sm:$0xff]  }
 0x759   :  { %v4034_v48 = vmax.f32 %v4032_v15, 0.0  ;;  %v4033_v47 = vadd.f32 %v13236_v2, %v4031_v46  ;;  %v6740_v2 = vld [vmem:[%s12585_s1 + $0xe8] sm:$0xff]   ;;  %v6748_v15 = vld [vmem:[%s12585_s1 + $0x17c] sm:$0xff]  }
 0x75a   :  { %4443 = vmatpush1.bf16.msra.mxu0 %v13237_v37  ;;  %v6749_v46 = vld [vmem:[%s12585_s1 + $0x120] sm:$0xff]  }
 0x75b   :  { %4484 = vmatpush1.bf16.msra.mxu1 %v11442_v19  ;;  %4882 = vrot.lane.b32.xlu0 %v4034_v48, %s6823_s16  ;;  %v4035_v7 = vmax.f32 %v4033_v47, 0.0  ;;  %v3603_v19 = vmax.f32 %v3601_v43, 0.0  ;;  %v6751_v59 = vld [vmem:[%s12586_s0 + $0xe0] ss:$8 sps:$4 sm:$0xff]   ;;  %v6752_v48 = vld [vmem:[%s12585_s1 + $0x190] sm:$0xff]  }
 0x75c   :  { %4444 = vmatprep.subr.bf16.mxu0 %v12882_v29  ;;  %4485 = vmatprep.subr.bf16.mxu1 %v12882_v29 }
 0x75e   :  { %4445 = vmatpush1.bf16.msra.mxu0 %v13239_v14  ;;  %v6755_v14 = vld [vmem:[%s12585_s1 + $0x198] sm:$0xff]  }
 0x75f   :  { %4486 = vmatpush1.bf16.msra.mxu1 %v11451_v8  ;;  %4884 = vrot.lane.b32.xlu0 %v4035_v7, %s6823_s16  ;;  %v13242_v8 = vld [vmem:[#allocation45_spill] sm:$0xff] }
 0x760   :  { %4446 = vmatprep.subr.bf16.mxu0 %v12882_v29  ;;  %4487 = vmatprep.subr.bf16.mxu1 %v12882_v29 }
 0x762   :  { %4447 = vmatpush1.bf16.msra.mxu0 %v13240_v13 }
 0x763   :  { %4488 = vmatpush1.bf16.msra.mxu1 %v11460_v60  ;;  %4876 = vrot.lane.b32.xlu0 %v3603_v19, %s6822_s22  ;;  %v13243_v60 = vld [vmem:[#allocation16_spill] sm:$0xff] }
 0x764   :  { %4448 = vmatprep.subr.bf16.mxu0 %v12882_v29  ;;  %4489 = vmatprep.subr.bf16.mxu1 %v12882_v29 }
 0x766   :  { %4449 = vmatpush1.bf16.msra.mxu0 %v13241_v9 }
 0x767   :  { %4490 = vmatpush1.bf16.msra.mxu1 %v11469_v55  ;;  %4450 = vmatprep.subr.bf16.mxu0 %v12882_v29  ;;  %v13244_v55 = vld [vmem:[#allocation42_spill] sm:$0xff] }
 0x768   :  { %4491 = vmatprep.subr.bf16.mxu1 %v12882_v29 }
 0x76a   :  { %4451 = vmatpush1.bf16.msra.mxu0 %v13242_v8 }
 0x76b   :  { %4492 = vmatpush1.bf16.msra.mxu1 %v11478_v50  ;;  %4452 = vmatprep.subr.bf16.mxu0 %v12882_v29  ;;  %v13245_v50 = vld [vmem:[#allocation44_spill] sm:$0xff] }
 0x76c   :  { %4493 = vmatprep.subr.bf16.mxu1 %v12882_v29 }
 0x76e   :  { %4453 = vmatpush1.bf16.msra.mxu0 %v13243_v60  ;;  %v6756_v60 = vld [vmem:[%s12585_s1 + $0x1fc] sm:$0xff]  }
 0x76f   :  { %4494 = vmatpush1.bf16.msra.mxu1 %v11487_v28  ;;  %4454 = vmatprep.subr.bf16.mxu0 %v12882_v29  ;;  %v13246_v28 = vld [vmem:[#allocation46_spill] sm:$0xff] }
 0x770   :  { %4495 = vmatprep.subr.bf16.mxu1 %v12882_v29 }
 0x772   :  { %4455 = vmatpush1.bf16.msra.mxu0 %v13244_v55 }
 0x773   :  { %4496 = vmatpush1.bf16.msra.mxu1 %v11496_v49  ;;  %4456 = vmatprep.subr.bf16.mxu0 %v12882_v29  ;;  %v13247_v49 = vld [vmem:[#allocation31_spill] sm:$0xff] }
 0x774   :  { %4497 = vmatprep.subr.bf16.mxu1 %v12882_v29 }
 0x776   :  { %4457 = vmatpush1.bf16.msra.mxu0 %v13245_v50 }
 0x777   :  { %4498 = vmatpush1.bf16.msra.mxu1 %v11505_v52  ;;  %4458 = vmatprep.subr.bf16.mxu0 %v12882_v29  ;;  %v13248_v52 = vld [vmem:[#allocation2_spill] sm:$0xff] }
 0x778   :  { %4499 = vmatprep.subr.bf16.mxu1 %v12882_v29 }
 0x77a   :  { %4459 = vmatpush1.bf16.msra.mxu0 %v13246_v28  ;;  %v6757_v28 = vld [vmem:[%s12585_s1 + $0x1a0] sm:$0xff]  }
 0x77b   :  { %4500 = vmatpush1.bf16.msra.mxu1 %v11514_v17  ;;  %4460 = vmatprep.subr.bf16.mxu0 %v12882_v29  ;;  %v13249_v17 = vld [vmem:[#allocation58_spill] sm:$0xff] }
 0x77c   :  { %4501 = vmatprep.subr.bf16.mxu1 %v12882_v29 }
 0x77e   :  { %4461 = vmatpush1.bf16.msra.mxu0 %v13247_v49  ;;  %v6758_v49 = vld [vmem:[%s12585_s1 + $0x204] sm:$0xff]  }
 0x77f   :  { %4502 = vmatpush1.bf16.msra.mxu1 %v11523_v54  ;;  %4462 = vmatprep.subr.bf16.mxu0 %v12882_v29  ;;  %v13250_v54 = vld [vmem:[#allocation54_spill] sm:$0xff] }
 0x780   :  { %4503 = vmatprep.subr.bf16.mxu1 %v12882_v29 }
 0x782   :  { %4463 = vmatpush1.bf16.msra.mxu0 %v13248_v52  ;;  %v6759_v52 = vld [vmem:[%s12585_s1 + $0x1a8] sm:$0xff]  }
 0x783   :  { %4504 = vmatpush1.bf16.msra.mxu1 %v12938_v16  ;;  %4520 = vmatprep.subr.bf16.mxu0 %v12882_v29  ;;  %v6737_v16 = vld [vmem:[%s12586_s0 + $0xe4] ss:$8 sps:$4 sm:$0xff]  }
 0x784   :  { %4563 = vmatprep.subr.bf16.mxu1 %v12882_v29 }
 0x785   :  { %4471 = vmatmul.mubr.bf16.vlgmr.msra.gmra.mrb[144].mxu0 %v13249_v17  ;;  %v6760_v17 = vld [vmem:[%s12585_s1 + $0x20c] sm:$0xff]  }
 0x786   :  { %4512 = vmatmul.mubr.bf16.vlgmr.msra.gmra.mrb[144].mxu1 %v6736_v10  ;;  %4521 = vmatpush1.bf16.msra.mxu0 %v13250_v54  ;;  %v6761_v10 = vld [vmem:[%s12585_s1 + $0x1b0] sm:$0xff]  }
 0x787   :  { %4564 = vmatpush1.bf16.msra.mxu1 %v13251_v27  ;;  %4522 = vmatprep.subr.bf16.mxu0 %v12882_v29  ;;  %v6762_v54 = vld [vmem:[%s12585_s1 + $0x214] sm:$0xff]  }
 0x788   :  { %v4111_v4 = vpop.f32.mrb[128].mxu0  ;;  %4565 = vmatprep.subr.bf16.mxu1 %v12882_v29  ;;  %5892 = vmatprep.mubr.msk.bf16.mxu0 %vm180_vm0, %v6737_v16  ;;  %v6763_v27 = vld [vmem:[%s12585_s1 + $0x1b8] sm:$0xff]   ;;  %v6765_v16 = vld [vmem:[%s12585_s1 + $0x1c0] sm:$0xff]  }
 0x789   :  { %v4112_v38 = vadd.f32 %v4111_v4, %v11805_v1  ;;  %v4113_v34 = vpop.f32.mrb[129].mxu0  ;;  %v4152_v40 = vpop.f32.mrb[128].mxu1  ;;  %5893 = vmatprep.mubr.msk.bf16.mxu1 %vm180_vm0, %v13252_v21  ;;  %v6764_v4 = vld [vmem:[%s12585_s1 + $0x21c] sm:$0xff]   ;;  %v6769_v21 = vld [vmem:[%s12585_s1 + $0x1d0] sm:$0xff]  }
 0x78a   :  { %v4114_v0 = vpop.f32.mrb[130].mxu0  ;;  %4523 = vmatpush1.bf16.msra.mxu0 %v13253_v6  ;;  %v4154_v31 = vpop.f32.mrb[129].mxu1  ;;  %v6767_v34 = vld [vmem:[%s12585_s1 + $0x1c8] sm:$0xff]   ;;  %v6771_v6 = vld [vmem:[%s12585_s1 + $0x1d8] sm:$0xff]  }
 0x78b   :  { %v4115_v58 = vadd.f32 %v4114_v0, %v11816_v26  ;;  %v11884_v25 = vadd.f32 %v4152_v40, %v4112_v38  ;;  %v4116_v56 = vpop.f32.mrb[131].mxu0  ;;  %v4155_v36 = vpop.f32.mrb[130].mxu1  ;;  %4566 = vmatpush1.bf16.msra.mxu1 %v13254_v42  ;;  %4524 = vmatprep.subr.bf16.mxu0 %v12882_v29  ;;  %v13255_v26 = vld [vmem:[#allocation4_spill] sm:$0xff]  ;;  %v6766_v38 = vld [vmem:[%s12585_s1 + $0x224] sm:$0xff]   ;;  %v6772_v31 = vld [vmem:[%s12585_s1 + $0x23c] sm:$0xff]  }
 0x78c   :  { %4567 = vmatprep.subr.bf16.mxu1 %v12882_v29  ;;  %v4157_v1 = vpop.f32.mrb[131].mxu1  ;;  %v6768_v40 = vld [vmem:[%s12585_s1 + $0x22c] sm:$0xff]   ;;  %v6770_v0 = vld [vmem:[%s12585_s1 + $0x234] sm:$0xff]  }
 0x78d   :  { %v11889_v20 = vadd.f32 %v4155_v36, %v4115_v58  ;;  %v6773_v58 = vld [vmem:[%s12585_s1 + $0x1e0] sm:$0xff]   ;;  %v6775_v56 = vld [vmem:[%s12585_s1 + $0x1e8] sm:$0xff]   ;;  %v6777_v42 = vld [vmem:[%s12585_s1 + $0x258] sm:$0xff]  }
 0x78e   :  { %4525 = vmatpush1.bf16.msra.mxu0 %v6738_v12  ;;  %v6776_v36 = vld [vmem:[%s12585_s1 + $0x24c] sm:$0xff]  }
 0x78f   :  { %4568 = vmatpush1.bf16.msra.mxu1 %v11576_v45  ;;  %4526 = vmatprep.subr.bf16.mxu0 %v12882_v29  ;;  %v6741_v45 = vld [vmem:[%s12585_s1 + $0xf0] sm:$0xff]  }
 0x790   :  { %4569 = vmatprep.subr.bf16.mxu1 %v12882_v29  ;;  %v6778_v1 = vld [vmem:[%s12586_s0 + $0x130] ss:$8 sps:$4 sm:$0xff]  }
 0x792   :  { %4527 = vmatpush1.bf16.msra.mxu0 %v6739_v23 }
 0x793   :  { %4570 = vmatpush1.bf16.msra.mxu1 %v11585_v33  ;;  %4528 = vmatprep.subr.bf16.mxu0 %v12882_v29  ;;  %v6742_v33 = vld [vmem:[%s12585_s1 + $0xf8] sm:$0xff]  }
 0x794   :  { %4571 = vmatprep.subr.bf16.mxu1 %v12882_v29 }
 0x796   :  { %4529 = vmatpush1.bf16.msra.mxu0 %v6740_v2 }
 0x797   :  { %4572 = vmatpush1.bf16.msra.mxu1 %v11594_v18  ;;  %4530 = vmatprep.subr.bf16.mxu0 %v12882_v29  ;;  %v6743_v18 = vld [vmem:[%s12585_s1 + $0x100] sm:$0xff]  }
 0x798   :  { %4573 = vmatprep.subr.bf16.mxu1 %v12882_v29 }
 0x79a   :  { %4531 = vmatpush1.bf16.msra.mxu0 %v6741_v45  ;;  %v6781_v45 = vld [vmem:[%s12585_s1 + $0x260] sm:$0xff]  }
 0x79b   :  { %4574 = vmatpush1.bf16.msra.mxu1 %v11603_v53  ;;  %4532 = vmatprep.subr.bf16.mxu0 %v12882_v29  ;;  %v6744_v53 = vld [vmem:[%s12585_s1 + $0x108] sm:$0xff]  }
 0x79c   :  { %4575 = vmatprep.subr.bf16.mxu1 %v12882_v29 }
 0x79e   :  { %4533 = vmatpush1.bf16.msra.mxu0 %v6742_v33 }
 0x79f   :  { %4576 = vmatpush1.bf16.msra.mxu1 %v11612_v39  ;;  %4534 = vmatprep.subr.bf16.mxu0 %v12882_v29  ;;  %v6745_v39 = vld [vmem:[%s12585_s1 + $0x110] sm:$0xff]  }
 0x7a0   :  { %4577 = vmatprep.subr.bf16.mxu1 %v12882_v29 }
 0x7a2   :  { %4535 = vmatpush1.bf16.msra.mxu0 %v6743_v18 }
 0x7a3   :  { %4578 = vmatpush1.bf16.msra.mxu1 %v11621_v57  ;;  %4536 = vmatprep.subr.bf16.mxu0 %v12882_v29  ;;  %v6746_v57 = vld [vmem:[%s12585_s1 + $0x174] sm:$0xff]  }
 0x7a4   :  { %4579 = vmatprep.subr.bf16.mxu1 %v12882_v29 }
 0x7a6   :  { %4537 = vmatpush1.bf16.msra.mxu0 %v6744_v53 }
 0x7a7   :  { %4580 = vmatpush1.bf16.msra.mxu1 %v11630_v51  ;;  %4538 = vmatprep.subr.bf16.mxu0 %v12882_v29  ;;  %v6747_v51 = vld [vmem:[%s12585_s1 + $0x118] sm:$0xff]  }
 0x7a8   :  { %4581 = vmatprep.subr.bf16.mxu1 %v12882_v29 }
 0x7aa   :  { %4539 = vmatpush1.bf16.msra.mxu0 %v6745_v39 }
 0x7ab   :  { %4582 = vmatpush1.bf16.msra.mxu1 %v6746_v57  ;;  %4540 = vmatprep.subr.bf16.mxu0 %v12882_v29 }
 0x7ac   :  { %4583 = vmatprep.subr.bf16.mxu1 %v12882_v29 }
 0x7ae   :  { %4541 = vmatpush1.bf16.msra.mxu0 %v6747_v51  ;;  %v6782_v51 = vld [vmem:[%s12585_s1 + $0x2c4] sm:$0xff]  }
 0x7af   :  { %4584 = vmatpush1.bf16.msra.mxu1 %v6748_v15  ;;  %4542 = vmatprep.subr.bf16.mxu0 %v12882_v29 }
 0x7b0   :  { %4585 = vmatprep.subr.bf16.mxu1 %v12882_v29 }
 0x7b2   :  { %4543 = vmatpush1.bf16.msra.mxu0 %v6749_v46  ;;  %v6783_v46 = vld [vmem:[%s12585_s1 + $0x268] sm:$0xff]  }
 0x7b3   :  { %4586 = vmatpush1.bf16.msra.mxu1 %v6750_v30  ;;  %4544 = vmatprep.subr.bf16.mxu0 %v12882_v29  ;;  %v6784_v30 = vld [vmem:[%s12585_s1 + $0x2cc] sm:$0xff]  }
 0x7b4   :  { %4587 = vmatprep.subr.bf16.mxu1 %v12882_v29 }
 0x7b6   :  { %4545 = vmatpush1.bf16.msra.mxu0 %v13255_v26  ;;  %v6785_v26 = vld [vmem:[%s12585_s1 + $0x270] sm:$0xff]  }
 0x7b7   :  { %4588 = vmatpush1.bf16.msra.mxu1 %v7178_v63  ;;  %4606 = vmatprep.subr.bf16.mxu0 %v12882_v29  ;;  %v6753_v63 = vld [vmem:[%s12585_s1 + $0x1f4] sm:$0xff]  }
 0x7b8   :  { %4649 = vmatprep.subr.bf16.mxu1 %v12882_v29 }
 0x7b9   :  { %4553 = vmatmul.mubr.bf16.vlgmr.msra.gmra.mrb[148].mxu0 %v6751_v59  ;;  %v6786_v59 = vld [vmem:[%s12585_s1 + $0x2d4] sm:$0xff]  }
 0x7ba   :  { %4607 = vmatpush1.bf16.msra.mxu0 %v6752_v48  ;;  %4596 = vmatmul.mubr.bf16.vlgmr.msra.gmra.mrb[148].mxu1 %v11656_v11  ;;  %v6754_v11 = vld [vmem:[%s12586_s0 + $0x134] ss:$8 sps:$4 sm:$0xff]  }
 0x7bb   :  { %4650 = vmatpush1.bf16.msra.mxu1 %v6753_v63  ;;  %4608 = vmatprep.subr.bf16.mxu0 %v12882_v29  ;;  %v6787_v48 = vld [vmem:[%s12585_s1 + $0x278] sm:$0xff]  }
 0x7bc   :  { %v4195_v47 = vpop.f32.mrb[132].mxu0  ;;  %4651 = vmatprep.subr.bf16.mxu1 %v12882_v29  ;;  %5894 = vmatprep.mubr.msk.bf16.mxu0 %vm180_vm0, %v11666_v62  ;;  %v6788_v63 = vld [vmem:[%s12585_s1 + $0x2dc] sm:$0xff]  }
 0x7bd   :  { %v4202_v37 = vadd.f32 %v4195_v47, %v11884_v25  ;;  %v4197_v41 = vpop.f32.mrb[133].mxu0  ;;  %v4238_v43 = vpop.f32.mrb[132].mxu1  ;;  %5895 = vmatprep.mubr.msk.bf16.mxu1 %vm180_vm0, %v6754_v11  ;;  %v6774_v25 = vld [vmem:[%s12585_s1 + $0x244] sm:$0xff]   ;;  %v6793_v11 = vld [vmem:[%s12585_s1 + $0x290] sm:$0xff]  }
 0x7be   :  { %v4198_v7 = vpop.f32.mrb[134].mxu0  ;;  %4609 = vmatpush1.bf16.msra.mxu0 %v6755_v14  ;;  %v4240_v19 = vpop.f32.mrb[133].mxu1  ;;  %v6789_v47 = vld [vmem:[%s12585_s1 + $0x280] sm:$0xff]   ;;  %v6791_v41 = vld [vmem:[%s12585_s1 + $0x288] sm:$0xff]   ;;  %v6795_v14 = vld [vmem:[%s12585_s1 + $0x298] sm:$0xff]  }
 0x7bf   :  { %v4203_v13 = vadd.f32 %v4198_v7, %v11889_v20  ;;  %v11984_v62 = vadd.f32 %v4238_v43, %v4202_v37  ;;  %v4200_v9 = vpop.f32.mrb[135].mxu0  ;;  %v4241_v8 = vpop.f32.mrb[134].mxu1  ;;  %4652 = vmatpush1.bf16.msra.mxu1 %v6756_v60  ;;  %4610 = vmatprep.subr.bf16.mxu0 %v12882_v29  ;;  %v6790_v37 = vld [vmem:[%s12585_s1 + $0x2e4] sm:$0xff]   ;;  %v6792_v43 = vld [vmem:[%s12585_s1 + $0x2ec] sm:$0xff]   ;;  %v6794_v7 = vld [vmem:[%s12585_s1 + $0x2f4] sm:$0xff]  }
 0x7c0   :  { %4653 = vmatprep.subr.bf16.mxu1 %v12882_v29  ;;  %v4243_v55 = vpop.f32.mrb[135].mxu1  ;;  %v6796_v19 = vld [vmem:[%s12585_s1 + $0x2fc] sm:$0xff]   ;;  %v6799_v9 = vld [vmem:[%s12585_s1 + $0x2a8] sm:$0xff]   ;;  %v6801_v60 = vld [vmem:[%s12585_s1 + $0x2b0] sm:$0xff]  }
 0x7c1   :  { %v11991_v50 = vadd.f32 %v4241_v8, %v4203_v13  ;;  %v6797_v13 = vld [vmem:[%s12585_s1 + $0x2a0] sm:$0xff]   ;;  %v6800_v8 = vld [vmem:[%s12585_s1 + $0x30c] sm:$0xff]   ;;  %v6802_v55 = vld [vmem:[%s12585_s1 + $0x314] sm:$0xff]  }
 0x7c2   :  { %4611 = vmatpush1.bf16.msra.mxu0 %v6757_v28  ;;  %v6803_v28 = vld [vmem:[%s12586_s0 + $0x160] ss:$8 sps:$4 sm:$0xff]  }
 0x7c3   :  { %4654 = vmatpush1.bf16.msra.mxu1 %v6758_v49  ;;  %4612 = vmatprep.subr.bf16.mxu0 %v12882_v29  ;;  %v6804_v49 = vld [vmem:[%s12585_s1 + $0x320] sm:$0xff]  }
 0x7c4   :  { %4655 = vmatprep.subr.bf16.mxu1 %v12882_v29 }
 0x7c6   :  { %4613 = vmatpush1.bf16.msra.mxu0 %v6759_v52 }
 0x7c7   :  { %4656 = vmatpush1.bf16.msra.mxu1 %v6760_v17  ;;  %4614 = vmatprep.subr.bf16.mxu0 %v12882_v29 }
 0x7c8   :  { %4657 = vmatprep.subr.bf16.mxu1 %v12882_v29 }
 0x7ca   :  { %4615 = vmatpush1.bf16.msra.mxu0 %v6761_v10 }
 0x7cb   :  { %4658 = vmatpush1.bf16.msra.mxu1 %v6762_v54  ;;  %4616 = vmatprep.subr.bf16.mxu0 %v12882_v29  ;;  %v6805_v54 = vld [vmem:[%s12585_s1 + $0x328] sm:$0xff]  }
 0x7cc   :  { %4659 = vmatprep.subr.bf16.mxu1 %v12882_v29 }
 0x7ce   :  { %4617 = vmatpush1.bf16.msra.mxu0 %v6763_v27 }
 0x7cf   :  { %4660 = vmatpush1.bf16.msra.mxu1 %v6764_v4  ;;  %4618 = vmatprep.subr.bf16.mxu0 %v12882_v29 }
 0x7d0   :  { %4661 = vmatprep.subr.bf16.mxu1 %v12882_v29 }
 0x7d2   :  { %4619 = vmatpush1.bf16.msra.mxu0 %v6765_v16 }
 0x7d3   :  { %4662 = vmatpush1.bf16.msra.mxu1 %v6766_v38  ;;  %4620 = vmatprep.subr.bf16.mxu0 %v12882_v29 }
 0x7d4   :  { %4663 = vmatprep.subr.bf16.mxu1 %v12882_v29 }
 0x7d6   :  { %4621 = vmatpush1.bf16.msra.mxu0 %v6767_v34 }
 0x7d7   :  { %4664 = vmatpush1.bf16.msra.mxu1 %v6768_v40  ;;  %4622 = vmatprep.subr.bf16.mxu0 %v12882_v29  ;;  %v12213_v40 = vld [vmem:[%s12587_s2] ss:$0 sm:$0xff]  ;;  %s6826_s2 = smov 32  }
 0x7d8   :  { %4665 = vmatprep.subr.bf16.mxu1 %v12882_v29 }
 0x7da   :  { %4623 = vmatpush1.bf16.msra.mxu0 %v6769_v21 }
 0x7db   :  { %4666 = vmatpush1.bf16.msra.mxu1 %v6770_v0  ;;  %4624 = vmatprep.subr.bf16.mxu0 %v12882_v29 }
 0x7dc   :  { %4667 = vmatprep.subr.bf16.mxu1 %v12882_v29 }
 0x7de   :  { %4625 = vmatpush1.bf16.msra.mxu0 %v6771_v6  ;;  %v6807_v6 = vld [vmem:[%s12585_s1 + $0x330] sm:$0xff]  }
 0x7df   :  { %4668 = vmatpush1.bf16.msra.mxu1 %v6772_v31  ;;  %4626 = vmatprep.subr.bf16.mxu0 %v12882_v29 }
 0x7e0   :  { %4669 = vmatprep.subr.bf16.mxu1 %v12882_v29 }
 0x7e2   :  { %4627 = vmatpush1.bf16.msra.mxu0 %v6773_v58 }
 0x7e3   :  { %4670 = vmatpush1.bf16.msra.mxu1 %v6774_v25  ;;  %4628 = vmatprep.subr.bf16.mxu0 %v12882_v29  ;;  %v6808_v25 = vld [vmem:[%s12585_s1 + $0x338] sm:$0xff]  }
 0x7e4   :  { %4671 = vmatprep.subr.bf16.mxu1 %v12882_v29 }
 0x7e6   :  { %4629 = vmatpush1.bf16.msra.mxu0 %v6775_v56 }
 0x7e7   :  { %4672 = vmatpush1.bf16.msra.mxu1 %v6776_v36  ;;  %4630 = vmatprep.subr.bf16.mxu0 %v12882_v29  ;;  %v6809_v36 = vld [vmem:[%s12585_s1 + $0x340] sm:$0xff]  }
 0x7e8   :  { %4673 = vmatprep.subr.bf16.mxu1 %v12882_v29 }
 0x7ea   :  { %4631 = vmatpush1.bf16.msra.mxu0 %v7376_v32  ;;  %v6779_v32 = vld [vmem:[%s12585_s1 + $0x2bc] sm:$0xff]  }
 0x7eb   :  { %4674 = vmatpush1.bf16.msra.mxu1 %v13209_v61  ;;  %4692 = vmatprep.subr.bf16.mxu0 %v12882_v29 }
 0x7ec   :  { %4735 = vmatprep.subr.bf16.mxu1 %v12882_v29 }
 0x7ed   :  { %4639 = vmatmul.mubr.bf16.vlgmr.msra.gmra.mrb[152].mxu0 %v11725_v24  ;;  %v6780_v24 = vld [vmem:[%s12586_s0 + $0x164] ss:$8 sps:$4 sm:$0xff]  }
 0x7ee   :  { %4693 = vmatpush1.bf16.msra.mxu0 %v6777_v42  ;;  %4682 = vmatmul.mubr.bf16.vlgmr.msra.gmra.mrb[152].mxu1 %v6778_v1  ;;  %v6810_v42 = vld [vmem:[%s12585_s1 + $0x348] sm:$0xff]   ;;  %v6811_v1 = vld [vmem:[%s12585_s1 + $0x350] sm:$0xff]  }
 0x7ef   :  { %4736 = vmatpush1.bf16.msra.mxu1 %v6779_v32  ;;  %4694 = vmatprep.subr.bf16.mxu0 %v12882_v29  ;;  %v6812_v32 = vld [vmem:[%s12585_s1 + $0x358] sm:$0xff]  }
 0x7f0   :  { %v4281_v61 = vpop.f32.mrb[136].mxu0  ;;  %4737 = vmatprep.subr.bf16.mxu1 %v12882_v29  ;;  %5896 = vmatprep.mubr.msk.bf16.mxu0 %vm180_vm0, %v6780_v24  ;;  %v6814_v24 = vld [vmem:[%s12585_s1 + $0x368] sm:$0xff]  }
 0x7f1   :  { %v4288_v20 = vadd.f32 %v4281_v61, %v11984_v62  ;;  %v4283_v12 = vpop.f32.mrb[137].mxu0  ;;  %v4324_v23 = vpop.f32.mrb[136].mxu1  ;;  %5897 = vmatprep.mubr.msk.bf16.mxu1 %vm180_vm0, %v11731_v3  ;;  %v6798_v62 = vld [vmem:[%s12585_s1 + $0x304] sm:$0xff]  }
 0x7f2   :  { %v4284_v2 = vpop.f32.mrb[138].mxu0  ;;  %4695 = vmatpush1.bf16.msra.mxu0 %v6781_v45  ;;  %v4326_v33 = vpop.f32.mrb[137].mxu1  ;;  %v6813_v61 = vld [vmem:[%s12585_s1 + $0x360] sm:$0xff]   ;;  %v6816_v12 = vld [vmem:[%s12585_s1 + $0x378] sm:$0xff]  }
 0x7f3   :  { %v4289_v18 = vadd.f32 %v4284_v2, %v11991_v50  ;;  %v12100_v53 = vadd.f32 %v4324_v23, %v4288_v20  ;;  %v4286_v39 = vpop.f32.mrb[139].mxu0  ;;  %v4327_v57 = vpop.f32.mrb[138].mxu1  ;;  %4738 = vmatpush1.bf16.msra.mxu1 %v6782_v51  ;;  %4696 = vmatprep.subr.bf16.mxu0 %v12882_v29  ;;  %v6325_v50 = vld [vmem:[%s12586_s0 + $0x184] ss:$8 sps:$4 sm:$0xff]   ;;  %v6815_v20 = vld [vmem:[%s12585_s1 + $0x370] sm:$0xff]  }
 0x7f4   :  { %4739 = vmatprep.subr.bf16.mxu1 %v12882_v29  ;;  %v4329_v3 = vpop.f32.mrb[139].mxu1  ;;  %v6327_v23 = vld [vmem:[%s12586_s0 + $0x180] ss:$8 sps:$4 sm:$0xff]  }
 0x7f5   :  { %v12107_v15 = vadd.f32 %v4327_v57, %v4289_v18 }
 0x7f6   :  { %4697 = vmatpush1.bf16.msra.mxu0 %v6783_v46 }
 0x7f7   :  { %4740 = vmatpush1.bf16.msra.mxu1 %v6784_v30  ;;  %4698 = vmatprep.subr.bf16.mxu0 %v12882_v29 }
 0x7f8   :  { %4741 = vmatprep.subr.bf16.mxu1 %v12882_v29 }
 0x7fa   :  { %4699 = vmatpush1.bf16.msra.mxu0 %v6785_v26 }
 0x7fb   :  { %4742 = vmatpush1.bf16.msra.mxu1 %v6786_v59  ;;  %4700 = vmatprep.subr.bf16.mxu0 %v12882_v29 }
 0x7fc   :  { %4743 = vmatprep.subr.bf16.mxu1 %v12882_v29 }
 0x7fe   :  { %4701 = vmatpush1.bf16.msra.mxu0 %v6787_v48 }
 0x7ff   :  { %4744 = vmatpush1.bf16.msra.mxu1 %v6788_v63  ;;  %4702 = vmatprep.subr.bf16.mxu0 %v12882_v29 }
 0x800   :  { %4745 = vmatprep.subr.bf16.mxu1 %v12882_v29 }
 0x802   :  { %4703 = vmatpush1.bf16.msra.mxu0 %v6789_v47 }
 0x803   :  { %4746 = vmatpush1.bf16.msra.mxu1 %v6790_v37  ;;  %4704 = vmatprep.subr.bf16.mxu0 %v12882_v29 }
 0x804   :  { %4747 = vmatprep.subr.bf16.mxu1 %v12882_v29 }
 0x806   :  { %4705 = vmatpush1.bf16.msra.mxu0 %v6791_v41 }
 0x807   :  { %4748 = vmatpush1.bf16.msra.mxu1 %v6792_v43  ;;  %4706 = vmatprep.subr.bf16.mxu0 %v12882_v29 }
 0x808   :  { %4749 = vmatprep.subr.bf16.mxu1 %v12882_v29 }
 0x80a   :  { %4707 = vmatpush1.bf16.msra.mxu0 %v6793_v11  ;;  %v4929_v11 = vld [vmem:[%s12588_s3 + $0x8] sm:$0xff] }
 0x80b   :  { %4750 = vmatpush1.bf16.msra.mxu1 %v6794_v7  ;;  %4708 = vmatprep.subr.bf16.mxu0 %v12882_v29  ;;  %v4931_v7 = vld [vmem:[%s12588_s3 + $0x18] sm:$0xff] }
 0x80c   :  { %4751 = vmatprep.subr.bf16.mxu1 %v12882_v29 }
 0x80e   :  { %4709 = vmatpush1.bf16.msra.mxu0 %v6795_v14  ;;  %v4928_v14 = vld [vmem:[%s12588_s3] sm:$0xff] }
 0x80f   :  { %4752 = vmatpush1.bf16.msra.mxu1 %v6796_v19  ;;  %4710 = vmatprep.subr.bf16.mxu0 %v12882_v29  ;;  %v5989_v19 = vpack.c.bf16 %v4931_v7, %v4929_v11  ;;  %v4960_v11 = vld [vmem:[%s12588_s3 + $0x100] sm:$0xff]  ;;  %v4962_v7 = vld [vmem:[%s12588_s3 + $0x110] sm:$0xff] }
 0x810   :  { %4753 = vmatprep.subr.bf16.mxu1 %v12882_v29 }
 0x812   :  { %4711 = vmatpush1.bf16.msra.mxu0 %v6797_v13  ;;  %v4930_v13 = vld [vmem:[%s12588_s3 + $0x10] sm:$0xff] }
 0x813   :  { %4754 = vmatpush1.bf16.msra.mxu1 %v6798_v62  ;;  %4712 = vmatprep.subr.bf16.mxu0 %v12882_v29  ;;  %v4933_v62 = vld [vmem:[%s12588_s3 + $0x28] sm:$0xff] }
 0x814   :  { %4755 = vmatprep.subr.bf16.mxu1 %v12882_v29 }
 0x816   :  { %4713 = vmatpush1.bf16.msra.mxu0 %v6799_v9  ;;  %v4935_v9 = vld [vmem:[%s12588_s3 + $0x38] sm:$0xff] }
 0x817   :  { %4756 = vmatpush1.bf16.msra.mxu1 %v6800_v8  ;;  %4714 = vmatprep.subr.bf16.mxu0 %v12882_v29  ;;  %v5991_v8 = vpack.c.bf16 %v4930_v13, %v4928_v14  ;;  %v4965_v14 = vld [vmem:[%s12588_s3 + $0x128] sm:$0xff]  ;;  %v6023_v13 = vpack.c.bf16 %v4962_v7, %v4960_v11 }
 0x818   :  { %4757 = vmatprep.subr.bf16.mxu1 %v12882_v29  ;;  %v5081_v11 = vld [vmem:[%s12589_s5 + $0x8] sm:$0xff] }
 0x81a   :  { %4715 = vmatpush1.bf16.msra.mxu0 %v6801_v60  ;;  %v5993_v60 = vpack.c.bf16 %v4935_v9, %v4933_v62  ;;  %v4964_v9 = vld [vmem:[%s12588_s3 + $0x120] sm:$0xff] }
 0x81b   :  { %4758 = vmatpush1.bf16.msra.mxu1 %v6802_v55  ;;  %4716 = vmatprep.subr.bf16.mxu0 %v12882_v29  ;;  %v4932_v55 = vld [vmem:[%s12588_s3 + $0x20] sm:$0xff] }
 0x81c   :  { %4759 = vmatprep.subr.bf16.mxu1 %v12882_v29 }
 0x81e   :  { %4717 = vmatpush1.bf16.msra.mxu0 %v13210_v22 }
 0x81f   :  { %4760 = vmatpush1.bf16.msra.mxu1 %v13229_v44  ;;  %4793 = vmatprep.subr.bf16.mxu0 %v12882_v29 }
 0x820   :  { %5990 = vmatprep.subr.bf16.mxu1 %v5989_v19  ;;  %v4967_v19 = vld [vmem:[%s12588_s3 + $0x138] sm:$0xff] }
 0x821   :  { %4725 = vmatmul.mubr.bf16.vlgmr.msra.gmra.mrb[156].mxu0 %v6803_v28  ;;  %v4937_v28 = vld [vmem:[%s12588_s3 + $0x48] sm:$0xff]  ;;  %v6025_v62 = vpack.c.bf16 %v4967_v19, %v4965_v14 }
 0x822   :  { %4794 = vmatpush1.bf16.msra.mxu0 %v6804_v49  ;;  %4768 = vmatmul.mubr.bf16.vlgmr.msra.gmra.mrb[156].mxu1 %v11792_v5  ;;  %v4939_v49 = vld [vmem:[%s12588_s3 + $0x58] sm:$0xff] }
 0x823   :  { %4795 = vmatprep.subr.bf16.mxu0 %v12882_v29  ;;  %5902 = vmatprep.mubr.msk.bf16.mxu0 %vm180_vm0, %v6325_v50  ;;  %v4934_v50 = vld [vmem:[%s12588_s3 + $0x30] sm:$0xff]  ;;  %vm5211_vm0 = vcmask 613376  }
 0x824   :  { %v4367_v22 = vpop.f32.mrb[140].mxu0  ;;  %5992 = vmatpush1.bf16.msra.mxu1 %v5991_v8  ;;  %v4966_v8 = vld [vmem:[%s12588_s3 + $0x130] sm:$0xff] }
 0x825   :  { %v4374_v44 = vadd.f32 %v4367_v22, %v12100_v53  ;;  %v4369_v52 = vpop.f32.mrb[141].mxu0  ;;  %v4425_v17 = vpop.f32.mrb[140].mxu1  ;;  %v5995_v22 = vpack.c.bf16 %v4934_v50, %v4932_v55  ;;  %5994 = vmatprep.subr.bf16.mxu1 %v5993_v60  ;;  %v4969_v60 = vld [vmem:[%s12588_s3 + $0x148] sm:$0xff]  ;;  %v4971_v55 = vld [vmem:[%s12588_s3 + $0x158] sm:$0xff]  ;;  %v6027_v50 = vpack.c.bf16 %v4966_v8, %v4964_v9 }
 0x826   :  { %v4370_v10 = vpop.f32.mrb[142].mxu0  ;;  %4796 = vmatpush1.bf16.msra.mxu0 %v6805_v54  ;;  %v4427_v27 = vpop.f32.mrb[141].mxu1  ;;  %v4936_v52 = vld [vmem:[%s12588_s3 + $0x40] sm:$0xff]  ;;  %v4943_v54 = vld [vmem:[%s12588_s3 + $0x78] sm:$0xff] }
 0x827   :  { %v4375_v4 = vadd.f32 %v4370_v10, %v12107_v15  ;;  %v4432_v16 = vadd.f32 %v4425_v17, %v4374_v44  ;;  %v4372_v5 = vpop.f32.mrb[143].mxu0  ;;  %v4428_v38 = vpop.f32.mrb[142].mxu1  ;;  %4797 = vmatprep.subr.bf16.mxu0 %v12882_v29  ;;  %v5997_v44 = vpack.c.bf16 %v4939_v49, %v4937_v28  ;;  %v4938_v17 = vld [vmem:[%s12588_s3 + $0x50] sm:$0xff]  ;;  %v4941_v10 = vld [vmem:[%s12588_s3 + $0x68] sm:$0xff]  ;;  %v6029_v28 = vpack.c.bf16 %v4971_v55, %v4969_v60  ;;  %v4968_v49 = vld [vmem:[%s12588_s3 + $0x140] sm:$0xff] }
 0x828   :  { %v4430_v34 = vpop.f32.mrb[143].mxu1  ;;  %5996 = vmatpush1.bf16.msra.mxu1 %v5995_v22  ;;  %v5999_v27 = vpack.c.bf16 %v4938_v17, %v4936_v52  ;;  %v4942_v5 = vld [vmem:[%s12588_s3 + $0x70] sm:$0xff] }
 0x829   :  { %v4434_v21 = vadd.f32 %v12213_v40, %v4432_v16  ;;  %v4433_v0 = vadd.f32 %v4428_v38, %v4375_v4  ;;  %5998 = vmatprep.subr.bf16.mxu1 %v5997_v44  ;;  %v6001_v4 = vpack.c.bf16 %v4943_v54, %v4941_v10  ;;  %v4940_v16 = vld [vmem:[%s12588_s3 + $0x60] sm:$0xff]  ;;  %v4945_v38 = vld [vmem:[%s12588_s3 + $0x88] sm:$0xff]  ;;  %v4947_v34 = vld [vmem:[%s12588_s3 + $0x98] sm:$0xff] }
 0x82a   :  { %4798 = vmatpush1.bf16.msra.mxu0 %v6807_v6  ;;  %v4970_v22 = vld [vmem:[%s12588_s3 + $0x150] sm:$0xff] }
 0x82b   :  { %v4436_v31 = vmax.f32 %v4434_v21, 0.0  ;;  %v4435_v58 = vadd.f32 %v12213_v40, %v4433_v0  ;;  %4799 = vmatprep.subr.bf16.mxu0 %v12882_v29  ;;  %v6003_v0 = vpack.c.bf16 %v4942_v5, %v4940_v16  ;;  %v6031_v44 = vpack.c.bf16 %v4970_v22, %v4968_v49 }
 0x82c   :  { %6000 = vmatpush1.bf16.msra.mxu1 %v5999_v27 }
 0x82d   :  { %4890 = vrot.lane.b32.xlu1 %v4436_v31, %s6824_s30  ;;  %v4437_v56 = vmax.f32 %v4435_v58, 0.0  ;;  %6002 = vmatprep.subr.bf16.mxu1 %v6001_v4 }
 0x82e   :  { %4800 = vmatpush1.bf16.msra.mxu0 %v6808_v25  ;;  %v6005_v25 = vpack.c.bf16 %v4947_v34, %v4945_v38 }
 0x82f   :  { %4801 = vmatprep.subr.bf16.mxu0 %v12882_v29 }
 0x830   :  { %6004 = vmatpush1.bf16.msra.mxu1 %v6003_v0 }
 0x831   :  { %4892 = vrot.lane.b32.xlu1 %v4437_v56, %s6824_s30  ;;  %v4944_v56 = vld [vmem:[%s12588_s3 + $0x80] sm:$0xff]  ;;  %6006 = vmatprep.subr.bf16.mxu1 %v6005_v25 }
 0x832   :  { %4802 = vmatpush1.bf16.msra.mxu0 %v6809_v36  ;;  %v4946_v36 = vld [vmem:[%s12588_s3 + $0x90] sm:$0xff] }
 0x833   :  { %4803 = vmatprep.subr.bf16.mxu0 %v12882_v29 }
 0x836   :  { %4804 = vmatpush1.bf16.msra.mxu0 %v6810_v42 }
 0x837   :  { %4805 = vmatprep.subr.bf16.mxu0 %v12882_v29 }
 0x83a   :  { %4806 = vmatpush1.bf16.msra.mxu0 %v6811_v1 }
 0x83b   :  { %4807 = vmatprep.subr.bf16.mxu0 %v12882_v29 }
 0x83e   :  { %4808 = vmatpush1.bf16.msra.mxu0 %v6812_v32  ;;  %v4949_v32 = vld [vmem:[%s12588_s3 + $0xa8] sm:$0xff] }
 0x83f   :  { %4809 = vmatprep.subr.bf16.mxu0 %v12882_v29 }
 0x842   :  { %4810 = vmatpush1.bf16.msra.mxu0 %v6813_v61  ;;  %v4951_v61 = vld [vmem:[%s12588_s3 + $0xb8] sm:$0xff] }
 0x843   :  { %4811 = vmatprep.subr.bf16.mxu0 %v12882_v29 }
 0x846   :  { %4812 = vmatpush1.bf16.msra.mxu0 %v6814_v24 }
 0x847   :  { %4813 = vmatprep.subr.bf16.mxu0 %v12882_v29 }
 0x84a   :  { %4814 = vmatpush1.bf16.msra.mxu0 %v6815_v20 }
 0x84b   :  { %4815 = vmatprep.subr.bf16.mxu0 %v12882_v29 }
 0x84e   :  { %4816 = vmatpush1.bf16.msra.mxu0 %v6816_v12 }
 0x84f   :  { %4817 = vmatprep.subr.bf16.mxu0 %v12882_v29 }
 0x852   :  { %4818 = vmatpush1.bf16.msra.mxu0 %v13230_v35 }
 0x855   :  { %4826 = vmatmul.mubr.bf16.vlgmr.msra.gmra.mrb[160].mxu0 %v6327_v23 }
 0x858   :  { %v4472_v2 = vpop.f32.mrb[144].mxu0 }
 0x859   :  { %v4513_v45 = vpop.f32.mrb[144].mxu1  ;;  %v4474_v33 = vpop.f32.mrb[145].mxu0 }
 0x85a   :  { %v4514_v18 = vadd.f32 %v4513_v45, %v4472_v2  ;;  %v4515_v53 = vpop.f32.mrb[145].mxu1  ;;  %v4475_v39 = vpop.f32.mrb[146].mxu0  ;;  %v6007_v45 = vpack.c.bf16 %v4946_v36, %v4944_v56  ;;  %v6825_v36 = vmov 0.0|0.0  }
 0x85b   :  { %v4516_v57 = vpop.f32.mrb[146].mxu1  ;;  %v4477_v51 = vpop.f32.mrb[147].mxu0  ;;  %v4948_v53 = vld [vmem:[%s12588_s3 + $0xa0] sm:$0xff] }
 0x85c   :  { %v4517_v3 = vadd.f32 %v4516_v57, %v4475_v39  ;;  %v4518_v15 = vpop.f32.mrb[147].mxu1  ;;  %v4950_v39 = vld [vmem:[%s12588_s3 + $0xb0] sm:$0xff]  ;;  %v4953_v57 = vld [vmem:[%s12588_s3 + $0xc8] sm:$0xff]  ;;  %v4955_v51 = vld [vmem:[%s12588_s3 + $0xd8] sm:$0xff]  ;;  %6008 = vmatpush1.bf16.msra.mxu1 %v6007_v45  ;;  %v6128_v45 = vpop.permute.xlu1 %6127 }
 0x85d   :  { %v6013_v15 = vpack.c.bf16 %v4955_v51, %v4953_v57  ;;  %v13256_v57 = vld [vmem:[#allocation17_spill] sm:$0xff] }
 0x85e   :  { %v1500_v51 = vadd.f32 %v12213_v40, %v13256_v57  ;;  %v5098_v57 = vld [vmem:[%s12589_s5 + $0x90] sm:$0x3f] }
 0x88c   :  { %v4554_v46 = vpop.f32.mrb[148].mxu0 }
 0x88d   :  { %v4561_v30 = vadd.f32 %v4554_v46, %v4514_v18  ;;  %v4556_v29 = vpop.f32.mrb[149].mxu0  ;;  %v4597_v26 = vpop.f32.mrb[148].mxu1  ;;  %v6009_v18 = vpack.c.bf16 %v4951_v61, %v4949_v32  ;;  %v4952_v46 = vld [vmem:[%s12588_s3 + $0xc0] sm:$0xff] }
 0x88e   :  { %v4557_v59 = vpop.f32.mrb[150].mxu0  ;;  %v4599_v48 = vpop.f32.mrb[149].mxu1  ;;  %v4957_v29 = vld [vmem:[%s12588_s3 + $0xe8] sm:$0xff] }
 0x88f   :  { %v4562_v63 = vadd.f32 %v4557_v59, %v4517_v3  ;;  %v4604_v47 = vadd.f32 %v4597_v26, %v4561_v30  ;;  %v4559_v35 = vpop.f32.mrb[151].mxu0  ;;  %v4600_v37 = vpop.f32.mrb[150].mxu1  ;;  %v6011_v3 = vpack.c.bf16 %v4950_v39, %v4948_v53  ;;  %6010 = vmatprep.subr.bf16.mxu1 %v6009_v18  ;;  %v4954_v30 = vld [vmem:[%s12588_s3 + $0xd0] sm:$0xff]  ;;  %v4959_v26 = vld [vmem:[%s12588_s3 + $0xf8] sm:$0xff] }
 0x890   :  { %v4602_v41 = vpop.f32.mrb[151].mxu1  ;;  %v6015_v59 = vpack.c.bf16 %v4954_v30, %v4952_v46  ;;  %v6017_v48 = vpack.c.bf16 %v4959_v26, %v4957_v29  ;;  %v4961_v35 = vld [vmem:[%s12588_s3 + $0x108] sm:$0xff]  ;;  %v6133_v18 = vpop.permute.xlu1 %6132  ;;  %v1502_v26 = vmax.f32 %v1500_v51, 0.0 }
 0x891   :  { %v4605_v43 = vadd.f32 %v4600_v37, %v4562_v63  ;;  %6012 = vmatpush1.bf16.msra.mxu1 %v6011_v3  ;;  %v4956_v63 = vld [vmem:[%s12588_s3 + $0xe0] sm:$0xff]  ;;  %v4963_v37 = vld [vmem:[%s12588_s3 + $0x118] sm:$0xff]  ;;  %v6135_v14 = vunpack.i.h.bf16 %v6133_v18  ;;  %v5195_v51 = vld [vmem:[%s12590_s7 + $0x8] sm:$0xff] }
 0x892   :  { %6014 = vmatprep.subr.bf16.mxu1 %v6013_v15  ;;  %v13257_v3 = vld [vmem:[#allocation5_spill] sm:$0xff] }
 0x893   :  { %v1501_v15 = vadd.f32 %v12213_v40, %v13257_v3  ;;  %v5196_v3 = vld [vmem:[%s12590_s7 + $0x10] sm:$0xff] }
 0x895   :  { %6016 = vmatpush1.bf16.msra.mxu1 %v6015_v59 }
 0x896   :  { %6018 = vmatprep.subr.bf16.mxu1 %v6017_v48  ;;  %v6129_v48 = vunpack.i.l.bf16 %v6128_v45 }
 0x89f   :  { %v4891_v39 = vpop.permute.xlu1 %4890 }
 0x8c0   :  { %v4640_v21 = vpop.f32.mrb[152].mxu0 }
 0x8c1   :  { %v4647_v6 = vadd.f32 %v4640_v21, %v4604_v47  ;;  %v4642_v31 = vpop.f32.mrb[153].mxu0  ;;  %v4683_v58 = vpop.f32.mrb[152].mxu1  ;;  %v4958_v47 = vld [vmem:[%s12588_s3 + $0xf0] sm:$0xff] }
 0x8c2   :  { %v4643_v42 = vpop.f32.mrb[154].mxu0  ;;  %v4685_v1 = vpop.f32.mrb[153].mxu1  ;;  %v6019_v41 = vpack.c.bf16 %v4958_v47, %v4956_v63  ;;  %v4972_v31 = vld [vmem:[%s12588_s3 + $0x160] sm:$0xf]  ;;  %v1503_v63 = vmax.f32 %v1501_v15, 0.0 }
 0x8c3   :  { %v4648_v24 = vadd.f32 %v4643_v42, %v4605_v43  ;;  %v4690_v20 = vadd.f32 %v4683_v58, %v4647_v6  ;;  %v4645_v12 = vpop.f32.mrb[155].mxu0  ;;  %v4686_v23 = vpop.f32.mrb[154].mxu1  ;;  %v6021_v43 = vpack.c.bf16 %v4963_v37, %v4961_v35  ;;  %v4973_v6 = vld [vmem:[%s12588_s3 + $0x168] sm:$0xf]  ;;  %v6134_v35 = vunpack.i.l.bf16 %v6133_v18 }
 0x8c4   :  { %v4688_v2 = vpop.f32.mrb[155].mxu1  ;;  %6020 = vmatpush1.bf16.msra.mxu1 %v6019_v41  ;;  %v4893_v37 = vpop.permute.xlu1 %4892  ;;  %v5097_v18 = vld [vmem:[%s12589_s5 + $0x88] sm:$0xff] }
 0x8c5   :  { %v4691_v33 = vadd.f32 %v4686_v23, %v4648_v24  ;;  %6022 = vmatprep.subr.bf16.mxu1 %v6021_v43  ;;  %v6118_v23 = vpop.permute.xlu0 %6117  ;;  %v6130_v43 = vunpack.i.h.bf16 %v6128_v45 }
 0x8c6   :  { %v6119_v46 = vunpack.i.l.bf16 %v6118_v23  ;;  %v6120_v59 = vunpack.i.h.bf16 %v6118_v23  ;;  %v5094_v23 = vld [vmem:[%s12589_s5 + $0x70] sm:$0xff] }
 0x8c8   :  { %6024 = vmatpush1.bf16.msra.mxu1 %v6023_v13  ;;  %v4905_v41 = vsel %vm4904_vm2, %v1502_v26, %v6119_v46  ;;  %v4906_v19 = vsel %vm4904_vm2, %v1503_v63, %v6120_v59  ;;  %v5197_v46 = vld [vmem:[%s12590_s7 + $0x18] sm:$0xff]  ;;  %v5199_v26 = vld [vmem:[%s12590_s7 + $0x28] sm:$0xff] }
 0x8c9   :  { %6026 = vmatprep.subr.bf16.mxu1 %v6025_v62  ;;  %v6123_v2 = vpop.permute.xlu0 %6122 }
 0x8ca   :  { %v6124_v30 = vunpack.i.l.bf16 %v6123_v2  ;;  %v6125_v47 = vunpack.i.h.bf16 %v6123_v2  ;;  %v5095_v2 = vld [vmem:[%s12589_s5 + $0x78] sm:$0xff] }
 0x8cb   :  { %v6055_v45 = vpack.c.bf16 %v5095_v2, %v5094_v23  ;;  %v5307_v23 = vld [vmem:[%s12592_s9 + $0x40] sm:$0xff]  ;;  %v5308_v2 = vld [vmem:[%s12592_s9 + $0x48] sm:$0x7] }
 0x8cc   :  { %6028 = vmatpush1.bf16.msra.mxu1 %v6027_v50  ;;  %v4908_v7 = vsel %vm4907_vm3, %v4905_v41, %v6124_v30  ;;  %v4909_v62 = vsel %vm4907_vm3, %v4906_v19, %v6125_v47  ;;  %v6064_v30 = vpack.c.bf16 %v5197_v46, %v5196_v3  ;;  %v5915_v3 = vld [vmem:[%s12595_s10] ss:$0 sm:$0xff] }
 0x8cd   :  { %6030 = vmatprep.subr.bf16.mxu1 %v6029_v28  ;;  %v4911_v13 = vsel %vm4910_vm4, %v4908_v7, %v6129_v48  ;;  %v4912_v49 = vsel %vm4910_vm4, %v4909_v62, %v6130_v43  ;;  %v4976_v48 = vlaneseq }
 0x8ce   :  { %v4914_v9 = vsel %vm4913_vm5, %v4911_v13, %v6134_v35  ;;  %v4974_v35 = vld [vmem:[%s12591_s4] sm:$0x3] }
 0x8cf   :  { %v4977_v63 = vshrl.u32 %v4976_v48, 7 }
 0x8d0   :  { %6032 = vmatpush1.bf16.msra.mxu1 %v6031_v44  ;;  %v5082_v44 = vld [vmem:[%s12589_s5 + $0x10] sm:$0xff] }
 0x8d1   :  { %5903 = vmatprep.subr.msk.mxu1 %vm184_vm1, %v4973_v6  ;;  %v5086_v6 = vld [vmem:[%s12589_s5 + $0x30] sm:$0xff]  ;;  %v4978_v47 = vsub.s32 0, %v4977_v63 }
 0x8d3   :  { %v4979_v41 = vrot.slane %v4974_v35, %v4978_v47 }
 0x8d4   :  { %5904 = vmatpush1.msk.msra.mxu1 %vm184_vm1, %v4972_v31  ;;  %v5087_v31 = vld [vmem:[%s12589_s5 + $0x38] sm:$0xff] }
 0x8d5   :  { %6033 = vmatprep.subr.bf16.mxu1 %v6825_v36 }
 0x8f4   :  { %v4726_v52 = vpop.f32.mrb[156].mxu0 }
 0x8f5   :  { %v4733_v17 = vadd.f32 %v4726_v52, %v4690_v20  ;;  %v4728_v10 = vpop.f32.mrb[157].mxu0  ;;  %v4769_v54 = vpop.f32.mrb[156].mxu1  ;;  %v5083_v52 = vld [vmem:[%s12589_s5 + $0x18] sm:$0xff] }
 0x8f6   :  { %v4729_v27 = vpop.f32.mrb[158].mxu0  ;;  %v4771_v4 = vpop.f32.mrb[157].mxu1  ;;  %v4915_v10 = vsel %vm4913_vm5, %v4912_v49, %v6135_v14  ;;  %v5201_v49 = vld [vmem:[%s12590_s7 + $0x38] sm:$0xff] }
 0x8f7   :  { %v4734_v16 = vadd.f32 %v4729_v27, %v4691_v33  ;;  %v4776_v5 = vadd.f32 %v4769_v54, %v4733_v17  ;;  %v4731_v38 = vpop.f32.mrb[159].mxu0  ;;  %v4772_v34 = vpop.f32.mrb[158].mxu1 }
 0x8f8   :  { %v4774_v21 = vpop.f32.mrb[159].mxu1  ;;  %v4875_v33 = vpop.permute.xlu0 %4874  ;;  %v5084_v38 = vld [vmem:[%s12589_s5 + $0x20] sm:$0xff] }
 0x8f9   :  { %v4777_v0 = vadd.f32 %v4772_v34, %v4734_v16  ;;  %v4917_v28 = vsel %vm4916_vm7, %v4914_v9, %v4875_v33  ;;  %v6037_v16 = vpack.c.bf16 %v5083_v52, %v5082_v44  ;;  %v5085_v34 = vld [vmem:[%s12589_s5 + $0x28] sm:$0xff]  ;;  %v5096_v33 = vld [vmem:[%s12589_s5 + $0x80] sm:$0xff] }
 0x8fa   :  { %v5202_v44 = vld [vmem:[%s12590_s7 + $0x40] sm:$0xff]  ;;  %v5203_v52 = vld [vmem:[%s12590_s7 + $0x48] sm:$0x7] }
 0x8fc   :  { %v4883_v53 = vpop.permute.xlu0 %4882 }
 0x8fd   :  { %v4923_v60 = vsel %vm4922_vm6, %v4883_v53, %v4891_v39  ;;  %v4920_v17 = vsel %vm4919_vm9, %v4917_v28, %v4883_v53  ;;  %v6058_v53 = vpack.c.bf16 %v5097_v18, %v5096_v33  ;;  %v6827_v39 = vmov 0.0   ;;  %v5200_v28 = vld [vmem:[%s12590_s7 + $0x30] sm:$0xff]  ;;  %v5911_v33 = vld [vmem:[%s12594_s8] ss:$0 sm:$0xff] }
 0x900   :  { %v4885_v29 = vpop.permute.xlu0 %4884 }
 0x901   :  { %v4924_v27 = vsel %vm4922_vm6, %v4885_v29, %v4893_v37  ;;  %v4982_v37 = vsub.s32 1, %v4977_v63 }
 0x903   :  { %v4983_v43 = vrot.slane %v4974_v35, %v4982_v37 }
 0x904   :  { %v4877_v8 = vpop.permute.xlu0 %4876 }
 0x905   :  { %v4918_v54 = vsel %vm4916_vm7, %v4915_v10, %v4877_v8 }
 0x906   :  { %v4921_v21 = vsel %vm4919_vm9, %v4918_v54, %v4885_v29  ;;  %v5198_v29 = vld [vmem:[%s12590_s7 + $0x20] sm:$0xff] }
 0x907   :  { %v6068_v59 = vpack.c.bf16 %v5199_v26, %v5198_v29  ;;  %v5299_v54 = vld [vmem:[%s12592_s9] sm:$0xff] }
 0x928   :  { %v4827_v58 = vpop.f32.mrb[160].mxu0 }
 0x929   :  { %v4834_v25 = vadd.f32 %v4827_v58, %v4776_v5  ;;  %v4829_v56 = vpop.f32.mrb[161].mxu0  ;;  %v6043_v58 = vpack.c.bf16 %v5087_v31, %v5086_v6  ;;  %v5301_v6 = vld [vmem:[%s12592_s9 + $0x10] sm:$0xff]  ;;  %v5302_v31 = vld [vmem:[%s12592_s9 + $0x18] sm:$0xff] }
 0x92a   :  { %v4830_v42 = vpop.f32.mrb[162].mxu0  ;;  %v5089_v56 = vld [vmem:[%s12589_s5 + $0x48] sm:$0xff] }
 0x92b   :  { %v4836_v1 = vadd.f32 %v12213_v40, %v4834_v25  ;;  %v4835_v32 = vadd.f32 %v4830_v42, %v4777_v0  ;;  %v4832_v61 = vpop.f32.mrb[163].mxu0  ;;  %v6040_v0 = vpack.c.bf16 %v5085_v34, %v5084_v38  ;;  %v5088_v25 = vld [vmem:[%s12589_s5 + $0x40] sm:$0xff] }
 0x92c   :  { %v6046_v42 = vpack.c.bf16 %v5089_v56, %v5088_v25 }
 0x92d   :  { %v4838_v24 = vmax.f32 %v4836_v1, 0.0  ;;  %v4837_v20 = vadd.f32 %v12213_v40, %v4835_v32  ;;  %v5080_v40 = vld [vmem:[%s12589_s5] sm:$0xff]  ;;  %v5090_v1 = vld [vmem:[%s12589_s5 + $0x50] sm:$0xff]  ;;  %v5091_v32 = vld [vmem:[%s12589_s5 + $0x58] sm:$0xff] }
 0x92e   :  { %v6034_v50 = vpack.c.bf16 %v5081_v11, %v5080_v40  ;;  %v6049_v61 = vpack.c.bf16 %v5091_v32, %v5090_v1  ;;  %v5303_v1 = vld [vmem:[%s12592_s9 + $0x20] sm:$0xff]  ;;  %v5304_v32 = vld [vmem:[%s12592_s9 + $0x28] sm:$0xff] }
 0x92f   :  { %4898 = vrot.lane.b32.xlu1 %v4838_v24, %s6826_s2  ;;  %v4839_v12 = vmax.f32 %v4837_v20, 0.0  ;;  %v5092_v24 = vld [vmem:[%s12589_s5 + $0x60] sm:$0xff]  ;;  %v5093_v20 = vld [vmem:[%s12589_s5 + $0x68] sm:$0xff] }
 0x933   :  { %4900 = vrot.lane.b32.xlu1 %v4839_v12, %s6826_s2  ;;  %v6052_v12 = vpack.c.bf16 %v5093_v20, %v5092_v24  ;;  %v5305_v24 = vld [vmem:[%s12592_s9 + $0x30] sm:$0xff]  ;;  %v5306_v20 = vld [vmem:[%s12592_s9 + $0x38] sm:$0xff] }
 0x9a1   :  { %v4899_v55 = vpop.permute.xlu1 %4898 }
 0x9a2   :  { %v4926_v22 = vsel %vm4925_vm8, %v4923_v60, %v4899_v55 }
 0x9a3   :  { %5905 = vmatprep.mubr.msk.f32.mxu1 %vm4986_vm10, %v4926_v22  ;;  %v6072_v22 = vpack.c.bf16 %v5201_v49, %v5200_v28 }
 0x9a4   :  { %5064 = vmatmul.mubr.f32.vlgmr.msra.gmra.mrb[160].mxu1 %v4920_v17  ;;  %v6076_v17 = vpack.c.bf16 %v5203_v52, %v5202_v44 }
 0x9a5   :  { %v4901_v4 = vpop.permute.xlu1 %4900  ;;  %6035 = vmatpush1.bf16.msra.mxu1 %v6034_v50 }
 0x9a6   :  { %v4927_v5 = vsel %vm4925_vm8, %v4924_v27, %v4901_v4  ;;  %6036 = vmatprep.subr.bf16.mxu1 %v6825_v36  ;;  %v5300_v27 = vld [vmem:[%s12592_s9 + $0x8] sm:$0xff] }
 0x9a7   :  { %5906 = vmatprep.mubr.msk.f32.mxu1 %vm4986_vm10, %v4927_v5  ;;  %v6082_v4 = vpack.c.bf16 %v5300_v27, %v5299_v54 }
 0x9a8   :  { %5070 = vmatmul.mubr.f32.gmra.mrb[162].mxu1 %v4921_v21 }
 0x9a9   :  { %6038 = vmatpush1.bf16.msra.mxu1 %v6037_v16  ;;  %v5907_v16 = vld [vmem:[%s12593_s6] ss:$0 sm:$0xff] }
 0x9aa   :  { %6039 = vmatprep.subr.bf16.mxu1 %v6825_v36 }
 0x9ad   :  { %6041 = vmatpush1.bf16.msra.mxu1 %v6040_v0 }
 0x9ae   :  { %6042 = vmatprep.subr.bf16.mxu1 %v6825_v36 }
 0x9b1   :  { %6044 = vmatpush1.bf16.msra.mxu1 %v6043_v58 }
 0x9b2   :  { %6045 = vmatprep.subr.bf16.mxu1 %v6825_v36 }
 0x9b5   :  { %6047 = vmatpush1.bf16.msra.mxu1 %v6046_v42  ;;  %v6086_v42 = vpack.c.bf16 %v5302_v31, %v5301_v6 }
 0x9b6   :  { %6048 = vmatprep.subr.bf16.mxu1 %v6825_v36 }
 0x9b9   :  { %6050 = vmatpush1.bf16.msra.mxu1 %v6049_v61  ;;  %v6090_v61 = vpack.c.bf16 %v5304_v32, %v5303_v1 }
 0x9ba   :  { %6051 = vmatprep.subr.bf16.mxu1 %v6825_v36 }
 0x9bd   :  { %6053 = vmatpush1.bf16.msra.mxu1 %v6052_v12  ;;  %v6094_v12 = vpack.c.bf16 %v5306_v20, %v5305_v24 }
 0x9be   :  { %6054 = vmatprep.subr.bf16.mxu1 %v6825_v36 }
 0x9c1   :  { %6056 = vmatpush1.bf16.msra.mxu1 %v6055_v45  ;;  %v6098_v45 = vpack.c.bf16 %v5308_v2, %v5307_v23 }
 0x9c2   :  { %6057 = vmatprep.subr.bf16.mxu1 %v6825_v36  ;;  %v5194_v36 = vld [vmem:[%s12590_s7] sm:$0xff] }
 0x9c3   :  { %v6060_v15 = vpack.c.bf16 %v5195_v51, %v5194_v36 }
 0x9c5   :  { %6059 = vmatpush1.bf16.msra.mxu1 %v6058_v53  ;;  %6061 = vmatprep.subr.bf16.mxu0 %v6060_v15 }
 0x9c6   :  { %5153 = vmatprep.subr.mxu1 %v6827_v39  ;;  %6063 = vmatpush3.bf16.msra.mxu0 %v6060_v15 }
 0x9c7   :  { %6065 = vmatprep.subr.bf16.mxu0 %v6064_v30 }
 0x9c9   :  { %5908 = vmatpush1.msk.msra.mxu1 %vm5113_vm11, %v5098_v57 }
 0x9ca   :  { %6067 = vmatpush3.bf16.msra.mxu0 %v6064_v30 }
 0x9cb   :  { %6069 = vmatprep.subr.bf16.mxu0 %v6068_v59 }
 0x9ce   :  { %6071 = vmatpush3.bf16.msra.mxu0 %v6068_v59 }
 0x9cf   :  { %6073 = vmatprep.subr.bf16.mxu0 %v6072_v22 }
 0x9d2   :  { %6075 = vmatpush3.bf16.msra.mxu0 %v6072_v22 }
 0x9d3   :  { %6078 = vmatprep.subr.msk.bf16.mxu0 %vm12524_vm15, %v6076_v17 }
 0x9d6   :  { %6081 = vmatpush3.bf16.msk.msra.mxu0 %vm12524_vm15, %v6076_v17 }
 0x9d7   :  { %6083 = vmatprep.subr.bf16.mxu0 %v6082_v4 }
 0xa77   :  { %v5065_v40 = vpop.f32.mrb[160].mxu1 }
 0xa78   :  { %v5066_v11 = vadd.f32 %v5065_v40, %v4979_v41  ;;  %v5067_v7 = vpop.f32.mrb[161].mxu1 }
 0xa79   :  { %v5068_v14 = vadd.f32 %v5067_v7, %v4983_v43 }
 0xa7a   :  { %v5076_v62 = vmax.f32 %v5066_v11, 0.0 }
 0xa7b   :  { %v5077_v19 = vmax.f32 %v5068_v14, 0.0  ;;  %v5071_v13 = vpop.f32.mrb[162].mxu1 }
 0xa7c   :  { %v5072_v9 = vadd.f32 %v5071_v13, %v4979_v41  ;;  %v5073_v8 = vpop.f32.mrb[163].mxu1 }
 0xa7d   :  { %v5074_v60 = vadd.f32 %v5073_v8, %v4983_v43  ;;  %5909 = vmatprep.mubr.msk.f32.mxu1 %vm5106_vm12, %v5077_v19 }
 0xa7e   :  { %5182 = vmatmul.mubr.f32.vlgmr.msra.gmra.mrb[164].mxu1 %v5076_v62  ;;  %v5078_v50 = vmax.f32 %v5072_v9, 0.0 }
 0xa7f   :  { %v5079_v55 = vmax.f32 %v5074_v60, 0.0 }
 0xa81   :  { %5910 = vmatprep.mubr.msk.f32.mxu1 %vm5106_vm12, %v5079_v55 }
 0xa82   :  { %5187 = vmatmul.mubr.f32.gmra.mrb[166].mxu1 %v5078_v50 }
 0xb51   :  { %v5183_v5 = vpop.f32.mrb[164].mxu1 }
 0xb52   :  { %v5184_v38 = vadd.f32 %v5907_v16, %v5183_v5  ;;  %v5185_v34 = vpop.f32.mrb[165].mxu1 }
 0xb54   :  { %v5192_v21 = vmax.f32 %v5184_v38, 0.0 }
 0xb55   :  { %v5188_v0 = vpop.f32.mrb[166].mxu1 }
 0xb56   :  { %v5189_v58 = vadd.f32 %v5907_v16, %v5188_v0  ;;  %v5190_v25 = vpop.f32.mrb[167].mxu1  ;;  %5963 = vmatprep.mubr.msk.f32.mxu0 %vm5211_vm0, %v5192_v21 }
 0xb58   :  { %v5193_v56 = vmax.f32 %v5189_v58, 0.0 }
 0xb5a   :  { %5964 = vmatmul.mubr.msk.f32.vlgmr.msra.gmra.mrb[164].mxu0 %vm5211_vm0, %v5193_v56 }
 0xb5b   :  { %6085 = vmatpush3.bf16.msra.mxu0 %v6082_v4 }
 0xb5c   :  { %6087 = vmatprep.subr.bf16.mxu0 %v6086_v42 }
 0xb5f   :  { %6089 = vmatpush3.bf16.msra.mxu0 %v6086_v42 }
 0xb60   :  { %6091 = vmatprep.subr.bf16.mxu0 %v6090_v61 }
 0xb63   :  { %6093 = vmatpush3.bf16.msra.mxu0 %v6090_v61 }
 0xb64   :  { %6095 = vmatprep.subr.bf16.mxu0 %v6094_v12 }
 0xb67   :  { %6097 = vmatpush3.bf16.msra.mxu0 %v6094_v12 }
 0xb68   :  { %6100 = vmatprep.subr.msk.bf16.mxu0 %vm12524_vm15, %v6098_v45 }
 0xb6b   :  { %6103 = vmatpush3.bf16.msk.msra.mxu0 %vm12524_vm15, %v6098_v45 }
 0xc2d   :  { %v5965_v18 = vpop.f32.mrb[164].mxu0 }
 0xc2e   :  { %v5294_v53 = vadd.f32 %v5965_v18, %v5911_v33  ;;  %v5288_v39 = vpop.f32.mrb[165].mxu0 }
 0xc2f   :  { %v5289_v57 = vadd.f32 %v5911_v33, %v5288_v39 }
 0xc30   :  { %v5298_v51 = vmax.f32 %v5294_v53, 0.0 }
 0xc31   :  { %v5297_v36 = vmax.f32 %v5289_v57, 0.0 }
 0xc33   :  { %5986 = vmatprep.mubr.msk.f32.mxu0 %vm5211_vm0, %v5297_v36 }
 0xc34   :  { %5987 = vmatmul.mubr.msk.f32.vlgmr.msra.gmra.mrb[166].mxu0 %vm5211_vm0, %v5298_v51 }
 0xd07   :  { %v5988_v15 = vpop.f32.mrb[166].mxu0 }
 0xd08   :  { %v5397_v46 = vadd.f32 %v5988_v15, %v5915_v3  ;;  %v5391_v30 = vpop.f32.mrb[167].mxu0 }
 0xd09   :  { %v5392_v29 = vadd.f32 %v5915_v3, %v5391_v30 }
 0xd0a   :  { %5401 = vst [vmem:[%s12596_s11 + $0x8] sm:$0xff] %v5397_v46 }
 0xd0b   :  { %5400 = vst [vmem:[%s12596_s11] sm:$0xff] %v5392_v29 }

</bundles_post_ra>
